<compile_context>
chip_gen: v5e
topology: v5e:2x2
jax: 0.10.0
libtpu: 0.0.40
codegen_flags: <defaults>
</compile_context>

<pallas_src>
import numpy as np
import jax
import jax.numpy as jnp
from jax import lax
from jax.experimental import pallas as pl
from jax.experimental.pallas import tpu as pltpu

T, B, D = 8, 2, 768              # seq_len, logical batch, BERT hidden
B_PAD = 8                        # batch padded to the f32 sublane minimum
H1, H2, L = 64, 20, 10           # lstm_out_1, lstm_out_2, label_num


# ---------------------------------------------------------------------------
# Fused kernel: BiLSTM(768->64) -> [dropout: identity] -> LSTM(128->20) ->
# eval-BatchNorm1d(20) -> Linear(20->10) -> masked Viterbi decode.
# Single program (grid=()), everything resident in VMEM; the time recurrences
# are fully unrolled Python loops (T=8, sequential dependency).
# ---------------------------------------------------------------------------
def ner_kernel(x_ref, mask_ref,
               wih1_ref, b1_ref, whh1f_ref, whh1b_ref,
               wih2f_ref, wih2b_ref, whh2_ref, b2_ref,
               bn_scale_ref, bn_shift_ref, wlin_ref, blin_ref,
               start_ref, end_ref, trans_ref,
               em_ref, tag_ref,
               xg1_buf, h1f_buf, h1b_buf, h2_buf, hist_buf):
    bf16 = jnp.bfloat16
    f32 = jnp.float32

    def rows(t):
        return slice(t * B_PAD, (t + 1) * B_PAD)

    # ---- hoisted BiLSTM input projection: one (T*B,768)@(768,512) bf16 matmul
    xg1_buf[...] = (jnp.dot(x_ref[...].astype(bf16), wih1_ref[...],
                            preferred_element_type=f32) + b1_ref[...])

    whh1f = whh1f_ref[...]
    whh1b = whh1b_ref[...]

    def lstm_cell(xg, h, c, whh, H):
        # xg already contains x @ W_ih + b;  PyTorch gate order: i, f, g, o
        gates = xg + jnp.dot(h.astype(bf16), whh, preferred_element_type=f32)
        i = jax.nn.sigmoid(gates[:, 0 * H:1 * H])
        f = jax.nn.sigmoid(gates[:, 1 * H:2 * H])
        g = jnp.tanh(gates[:, 2 * H:3 * H])
        o = jax.nn.sigmoid(gates[:, 3 * H:4 * H])
        c = f * c + i * g
        h = o * jnp.tanh(c)
        return h, c

    # ---- lstm_1: forward and backward chains interleaved, fully unrolled ----
    z1 = jnp.zeros((B_PAD, H1), f32)
    hf, cf, hb, cb = z1, z1, z1, z1
    for t in range(T):
        tb = T - 1 - t
        hf, cf = lstm_cell(xg1_buf[rows(t), 0:4 * H1], hf, cf, whh1f, H1)
        hb, cb = lstm_cell(xg1_buf[rows(tb), 4 * H1:8 * H1], hb, cb, whh1b, H1)
        h1f_buf[rows(t), :] = hf
        h1b_buf[rows(tb), :] = hb

    # dropout_1 / dropout_2: identity (inference / eval mode)

    # ---- hoisted lstm_2 input projection over all timesteps at once ---------
    xg2 = (jnp.dot(h1f_buf[...].astype(bf16), wih2f_ref[...],
                   preferred_element_type=f32)
           + jnp.dot(h1b_buf[...].astype(bf16), wih2b_ref[...],
                     preferred_element_type=f32)
           + b2_ref[...])                                   # (T*B_PAD, 4*H2)

    whh2 = whh2_ref[...]
    z2 = jnp.zeros((B_PAD, H2), f32)
    h2, c2 = z2, z2
    for t in range(T):
        h2, c2 = lstm_cell(xg2[rows(t), :], h2, c2, whh2, H2)
        h2_buf[rows(t), :] = h2

    # ---- eval-mode BatchNorm1d + Linear, one shot over the (T*B,20) slab ----
    y = h2_buf[...] * bn_scale_ref[...] + bn_shift_ref[...]
    em = jnp.dot(y.astype(bf16), wlin_ref[...],
                 preferred_element_type=f32) + blin_ref[...]  # (T*B_PAD, L)
    em_ref[...] = em

    # ---- CRF Viterbi decode (masked), torchcrf semantics --------------------
    trans = trans_ref[...]                                        # (L, L)
    iota_tag = lax.broadcasted_iota(jnp.int32, (B_PAD, L), 1)
    iota_prev = lax.broadcasted_iota(jnp.int32, (B_PAD, L, L), 1)  # hoisted

    score = start_ref[...] + em[0:B_PAD, :]                       # (B_PAD, L)
    for t in range(1, T):
        em_t = em[rows(t), :]                                     # (B_PAD, L)
        m = mask_ref[t] > 0.5                                     # (B_PAD, 1)
        bc = (score[:, :, None] + trans[None, :, :]
              + em_t[:, None, :])                                 # (B, Lprev, Lnext)
        nxt = jnp.max(bc, axis=1)
        # first-index argmax over the previous tag (numpy/torchcrf tie-break)
        idx = jnp.min(jnp.where(bc >= nxt[:, None, :], iota_prev, L), axis=1)
        hist_buf[t] = jnp.where(m, idx, iota_tag)   # identity on masked steps
        score = jnp.where(m, nxt, score)
    score = score + end_ref[...]

    mx = jnp.max(score, axis=1, keepdims=True)
    last = jnp.min(jnp.where(score >= mx, iota_tag, L),
                   axis=1, keepdims=True)                          # (B_PAD, 1)

    # Backtrack: accumulate tags in vregs, single lane-dense store at the end.
    iota_time = lax.broadcasted_iota(jnp.int32, (B_PAD, T), 1)
    tags_acc = jnp.where(iota_time == (T - 1), last, 0)
    tag = last
    for i in range(T - 1):
        t = T - 1 - i
        hist_t = hist_buf[t]                                       # (B_PAD, L)
        tag = jnp.sum(jnp.where(iota_tag == tag, hist_t, 0),
                      axis=1, keepdims=True)
        tags_acc = jnp.where(iota_time == (t - 1), tag, tags_acc)
    tag_ref[...] = tags_acc                                        # (B_PAD, T)


def _ner_forward_impl(x, mask, p):
    """x: (T, B, 768) f32, mask: (T, B) {0,1} -> (emissions (T,B,L), tags (T,B))."""
    Tn, Bn, Dn = x.shape
    # Pad batch 2 -> 8 (f32 sublane minimum); padded rows are discarded.
    x_pad = jnp.zeros((Tn, B_PAD, Dn), jnp.float32).at[:, :Bn, :].set(x)
    mask_pad = jnp.ones((Tn, B_PAD, 1), jnp.float32).at[:, :Bn, 0].set(mask)
    x_flat = x_pad.reshape(Tn * B_PAD, Dn)

    vmem = pl.BlockSpec(memory_space=pltpu.MemorySpace.VMEM)
    args = (x_flat, mask_pad,
            p["wih1"], p["b1"], p["whh1f"], p["whh1b"],
            p["wih2f"], p["wih2b"], p["whh2"], p["b2"],
            p["bn_scale"], p["bn_shift"], p["wlin"], p["blin"],
            p["crf_start"], p["crf_end"], p["crf_trans"])

    em_flat, tags_bt = pl.pallas_call(
        ner_kernel,
        out_shape=(jax.ShapeDtypeStruct((Tn * B_PAD, L), jnp.float32),
                   jax.ShapeDtypeStruct((B_PAD, Tn), jnp.int32)),
        in_specs=[vmem] * len(args),
        out_specs=(vmem, vmem),
        scratch_shapes=[pltpu.VMEM((Tn * B_PAD, 8 * H1), jnp.float32),  # xg1
                        pltpu.VMEM((Tn * B_PAD, H1), jnp.float32),      # h1 fwd
                        pltpu.VMEM((Tn * B_PAD, H1), jnp.float32),      # h1 bwd
                        pltpu.VMEM((Tn * B_PAD, H2), jnp.float32),      # h2
                        pltpu.VMEM((Tn, B_PAD, L), jnp.int32)],         # history
    )(*args)

    emissions = em_flat.reshape(Tn, B_PAD, L)[:, :Bn, :]
    tags = tags_bt.T[:, :Bn]                                       # (T, B)
    return emissions, tags


ner_forward = jax.jit(_ner_forward_impl)


# ---------------------------------------------------------------------------
# Deterministic parameter init (shapes from the module's __init__).
# Matmul weights are stored in bf16 (MXU inputs); biases/BN/CRF stay f32.
# ---------------------------------------------------------------------------
def init_params(key):
    ks = jax.random.split(key, 16)

    def u(k, shape, bound):
        return jax.random.uniform(k, shape, jnp.float32, -bound, bound)

    s1 = 1.0 / np.sqrt(H1)
    s2 = 1.0 / np.sqrt(H2)
    bf = jnp.bfloat16
    p = {}
    # nn.LSTM(768, 64, bidirectional=True) — weights pre-transposed to (in, 4H),
    # fwd/bwd input projections concatenated into one (768, 512) matrix.
    wih1f = u(ks[0], (D, 4 * H1), s1)
    wih1b = u(ks[3], (D, 4 * H1), s1)
    p["wih1"] = jnp.concatenate([wih1f, wih1b], axis=1).astype(bf)
    p["whh1f"] = u(ks[1], (H1, 4 * H1), s1).astype(bf)
    p["whh1b"] = u(ks[4], (H1, 4 * H1), s1).astype(bf)
    b1f = u(ks[2], (1, 4 * H1), s1)               # b_ih + b_hh combined
    b1b = u(ks[5], (1, 4 * H1), s1)
    p["b1"] = jnp.concatenate([b1f, b1b], axis=1)
    # nn.LSTM(128, 20) — input weight split into fwd/bwd halves of the concat
    wih2 = u(ks[6], (2 * H1, 4 * H2), s2)
    p["wih2f"] = wih2[:H1].astype(bf)
    p["wih2b"] = wih2[H1:].astype(bf)
    p["whh2"] = u(ks[7], (H2, 4 * H2), s2).astype(bf)
    p["b2"] = u(ks[8], (1, 4 * H2), s2)
    # nn.BatchNorm1d(20), eval mode, fresh running stats (mean=0, var=1)
    eps = 1e-5
    p["bn_scale"] = jnp.full((1, H2), 1.0 / np.sqrt(1.0 + eps), jnp.float32)
    p["bn_shift"] = jnp.zeros((1, H2), jnp.float32)
    # nn.Linear(20, 10)
    p["wlin"] = u(ks[9], (H2, L), s2).astype(bf)
    p["blin"] = u(ks[10], (1, L), s2)
    # CRF(10): torchcrf inits uniform(-0.1, 0.1)
    p["crf_start"] = u(ks[11], (1, L), 0.1)
    p["crf_end"] = u(ks[12], (1, L), 0.1)
    p["crf_trans"] = u(ks[13], (L, L), 0.1)
    return p


# ---------------------------------------------------------------------------
# Plain-JAX / numpy references (mirror the kernel's bf16 matmul numerics).
# ---------------------------------------------------------------------------
def fc_reference(x, p):
    bf = jnp.bfloat16
    Tn, Bn, Dn = x.shape

    def cell(xg, h, c, whh, H):
        g = xg + jnp.dot(h.astype(bf), whh, preferred_element_type=jnp.float32)
        i = jax.nn.sigmoid(g[:, 0 * H:1 * H])
        f = jax.nn.sigmoid(g[:, 1 * H:2 * H])
        gg = jnp.tanh(g[:, 2 * H:3 * H])
        o = jax.nn.sigmoid(g[:, 3 * H:4 * H])
        c = f * c + i * gg
        return o * jnp.tanh(c), c

    xg1 = (jnp.dot(x.reshape(Tn * Bn, Dn).astype(bf), p["wih1"],
                   preferred_element_type=jnp.float32)
           + p["b1"]).reshape(Tn, Bn, 8 * H1)
    z1 = jnp.zeros((Bn, H1), jnp.float32)
    hf, cf, hb, cb = z1, z1, z1, z1
    hfs = [None] * Tn
    hbs = [None] * Tn
    for t in range(Tn):
        tb = Tn - 1 - t
        hf, cf = cell(xg1[t, :, :4 * H1], hf, cf, p["whh1f"], H1)
        hb, cb = cell(xg1[tb, :, 4 * H1:], hb, cb, p["whh1b"], H1)
        hfs[t] = hf
        hbs[tb] = hb
    h1f = jnp.stack(hfs).reshape(Tn * Bn, H1)
    h1b = jnp.stack(hbs).reshape(Tn * Bn, H1)

    xg2 = (jnp.dot(h1f.astype(bf), p["wih2f"], preferred_element_type=jnp.float32)
           + jnp.dot(h1b.astype(bf), p["wih2b"], preferred_element_type=jnp.float32)
           + p["b2"]).reshape(Tn, Bn, 4 * H2)
    h2 = jnp.zeros((Bn, H2), jnp.float32)
    c2 = jnp.zeros((Bn, H2), jnp.float32)
    h2s = []
    for t in range(Tn):
        h2, c2 = cell(xg2[t], h2, c2, p["whh2"], H2)
        h2s.append(h2)
    h2_all = jnp.stack(h2s).reshape(Tn * Bn, H2)

    y = h2_all * p["bn_scale"] + p["bn_shift"]
    em = jnp.dot(y.astype(bf), p["wlin"],
                 preferred_element_type=jnp.float32) + p["blin"]
    return em.reshape(Tn, Bn, L)


def viterbi_reference(em, mask, start, end, trans):
    results = []
    for b in range(em.shape[1]):
        length = int(mask[:, b].sum())
        score = start[0] + em[0, b]
        history = []
        for t in range(1, length):
            bc = score[:, None] + trans + em[t, b][None, :]
            history.append(bc.argmax(axis=0))
            score = bc.max(axis=0)
        score = score + end[0]
        best = int(score.argmax())
        seq = [best]
        for idx in reversed(history):
            best = int(idx[best])
            seq.append(best)
        seq.reverse()
        results.append(seq)
    return results


if __name__ == "__main__":
    key = jax.random.PRNGKey(0)
    kp, kx = jax.random.split(key)
    params = init_params(kp)

    # Synthetic BERT features, time-major (T, B, 768); second sequence is
    # shorter (last 2 positions masked), first row of mask all-on (CRF req).
    x = jax.random.normal(kx, (T, B, D), jnp.float32)
    mask = jnp.ones((T, B), jnp.float32).at[T - 2:, 1].set(0.0)

    emissions, tags = ner_forward(x, mask, params)   # (T,B,10) f32, (T,B) i32
    jax.block_until_ready((emissions, tags))

    # --- verify against plain-JAX / numpy references ---
    em_ref = jax.block_until_ready(fc_reference(x, params))
    np.testing.assert_allclose(np.asarray(emissions), np.asarray(em_ref),
                               rtol=2e-3, atol=2e-3)

    ref_tags = viterbi_reference(np.asarray(emissions), np.asarray(mask),
                                 np.asarray(params["crf_start"]),
                                 np.asarray(params["crf_end"]),
                                 np.asarray(params["crf_trans"]))
    tg = np.asarray(tags)
    for b in range(B):
        length = int(np.asarray(mask)[:, b].sum())
        assert np.array_equal(tg[:length, b], np.array(ref_tags[b])), \
            f"Viterbi mismatch for batch {b}"
    assert bool(jnp.all((tags >= 0) & (tags < L)))

    print("KERNEL_OK")
</pallas_src>

<mosaic_0001>
module attributes {stable_mosaic.version = 11 : i64} {
  func.func @ner_kernel(%arg0: memref<64x768xf32, #tpu.memory_space<vmem>>, %arg1: memref<8x8x1xf32, #tpu.memory_space<vmem>>, %arg2: memref<768x512xbf16, #tpu.memory_space<vmem>>, %arg3: memref<1x512xf32, #tpu.memory_space<vmem>>, %arg4: memref<64x256xbf16, #tpu.memory_space<vmem>>, %arg5: memref<64x256xbf16, #tpu.memory_space<vmem>>, %arg6: memref<64x80xbf16, #tpu.memory_space<vmem>>, %arg7: memref<64x80xbf16, #tpu.memory_space<vmem>>, %arg8: memref<20x80xbf16, #tpu.memory_space<vmem>>, %arg9: memref<1x80xf32, #tpu.memory_space<vmem>>, %arg10: memref<1x20xf32, #tpu.memory_space<vmem>>, %arg11: memref<1x20xf32, #tpu.memory_space<vmem>>, %arg12: memref<20x10xbf16, #tpu.memory_space<vmem>>, %arg13: memref<1x10xf32, #tpu.memory_space<vmem>>, %arg14: memref<1x10xf32, #tpu.memory_space<vmem>>, %arg15: memref<1x10xf32, #tpu.memory_space<vmem>>, %arg16: memref<10x10xf32, #tpu.memory_space<vmem>>, %arg17: memref<64x10xf32, #tpu.memory_space<vmem>>, %arg18: memref<8x8xi32, #tpu.memory_space<vmem>>, %arg19: memref<64x512xf32, #tpu.memory_space<vmem>>, %arg20: memref<64x64xf32, #tpu.memory_space<vmem>>, %arg21: memref<64x64xf32, #tpu.memory_space<vmem>>, %arg22: memref<64x20xf32, #tpu.memory_space<vmem>>, %arg23: memref<8x8x10xi32, #tpu.memory_space<vmem>>) attributes {dimension_semantics = [], scalar_prefetch = 0 : i64, scratch_operands = 5 : i64, tpu.core_type = #tpu.core_type<tc>} {
    %c0 = arith.constant 0 : index
    %c0_0 = arith.constant 0 : index
    %0 = vector.load %arg0[%c0, %c0_0] : memref<64x768xf32, #tpu.memory_space<vmem>>, vector<64x768xf32>
    %1 = arith.truncf %0 : vector<64x768xf32> to vector<64x768xbf16>
    %c0_1 = arith.constant 0 : index
    %c0_2 = arith.constant 0 : index
    %2 = vector.load %arg2[%c0_1, %c0_2] : memref<768x512xbf16, #tpu.memory_space<vmem>>, vector<768x512xbf16>
    %cst = arith.constant dense<0.000000e+00> : vector<64x512xf32>
    %3 = tpu.matmul %1, %2, %cst {dimension_numbers = #tpu.dot_dimension_numbers<[1], [0], [0], [1], [0, 0, 1, 1], [], []>} : vector<64x768xbf16>, vector<768x512xbf16>, vector<64x512xf32> -> vector<64x512xf32>
    %c0_3 = arith.constant 0 : index
    %c0_4 = arith.constant 0 : index
    %4 = vector.load %arg3[%c0_3, %c0_4] : memref<1x512xf32, #tpu.memory_space<vmem>>, vector<1x512xf32>
    %5 = vector.broadcast %4 : vector<1x512xf32> to vector<64x512xf32>
    %6 = arith.addf %3, %5 : vector<64x512xf32>
    %c0_5 = arith.constant 0 : index
    %c0_6 = arith.constant 0 : index
    %7 = vector.load %arg19[%c0_5, %c0_6] : memref<64x512xf32, #tpu.memory_space<vmem>>, vector<64x512xf32>
    tpu.vector_store %arg19[%c0_5, %c0_6], %6 {strides = array<i32>} : memref<64x512xf32, #tpu.memory_space<vmem>>, vector<64x512xf32>,
    %c0_7 = arith.constant 0 : index
    %c0_8 = arith.constant 0 : index
    %8 = vector.load %arg4[%c0_7, %c0_8] : memref<64x256xbf16, #tpu.memory_space<vmem>>, vector<64x256xbf16>
    %c0_9 = arith.constant 0 : index
    %c0_10 = arith.constant 0 : index
    %9 = vector.load %arg5[%c0_9, %c0_10] : memref<64x256xbf16, #tpu.memory_space<vmem>>, vector<64x256xbf16>
    %cst_11 = arith.constant 0.000000e+00 : f32
    %10 = vector.broadcast %cst_11 : f32 to vector<8x64xf32>
    %c0_12 = arith.constant 0 : index
    %c0_13 = arith.constant 0 : index
    %11 = vector.load %arg19[%c0_12, %c0_13] : memref<64x512xf32, #tpu.memory_space<vmem>>, vector<8x256xf32>
    %12 = arith.truncf %10 : vector<8x64xf32> to vector<8x64xbf16>
    %cst_14 = arith.constant dense<0.000000e+00> : vector<8x256xf32>
    %13 = tpu.matmul %12, %8, %cst_14 {dimension_numbers = #tpu.dot_dimension_numbers<[1], [0], [0], [1], [0, 0, 1, 1], [], []>} : vector<8x64xbf16>, vector<64x256xbf16>, vector<8x256xf32> -> vector<8x256xf32>
    %14 = arith.addf %11, %13 : vector<8x256xf32>
    %15 = vector.extract_strided_slice %14 {offsets = [0, 0], sizes = [8, 64], strides = [1, 1]} : vector<8x256xf32> to vector<8x64xf32>
    %16 = arith.negf %15 : vector<8x64xf32>
    %17 = math.exp %16 : vector<8x64xf32>
    %cst_15 = arith.constant 1.000000e+00 : f32
    %18 = vector.broadcast %cst_15 : f32 to vector<8x64xf32>
    %19 = arith.addf %18, %17 : vector<8x64xf32>
    %20 = arith.divf %18, %19 : vector<8x64xf32>
    %21 = vector.extract_strided_slice %14 {offsets = [0, 64], sizes = [8, 64], strides = [1, 1]} : vector<8x256xf32> to vector<8x64xf32>
    %22 = arith.negf %21 : vector<8x64xf32>
    %23 = math.exp %22 : vector<8x64xf32>
    %cst_16 = arith.constant 1.000000e+00 : f32
    %24 = vector.broadcast %cst_16 : f32 to vector<8x64xf32>
    %25 = arith.addf %24, %23 : vector<8x64xf32>
    %26 = arith.divf %24, %25 : vector<8x64xf32>
    %27 = vector.extract_strided_slice %14 {offsets = [0, 128], sizes = [8, 64], strides = [1, 1]} : vector<8x256xf32> to vector<8x64xf32>
    %28 = math.tanh %27 : vector<8x64xf32>
    %29 = vector.extract_strided_slice %14 {offsets = [0, 192], sizes = [8, 64], strides = [1, 1]} : vector<8x256xf32> to vector<8x64xf32>
    %30 = arith.negf %29 : vector<8x64xf32>
    %31 = math.exp %30 : vector<8x64xf32>
    %cst_17 = arith.constant 1.000000e+00 : f32
    %32 = vector.broadcast %cst_17 : f32 to vector<8x64xf32>
    %33 = arith.addf %32, %31 : vector<8x64xf32>
    %34 = arith.divf %32, %33 : vector<8x64xf32>
    %35 = arith.mulf %26, %10 : vector<8x64xf32>
    %36 = arith.mulf %20, %28 : vector<8x64xf32>
    %37 = arith.addf %35, %36 : vector<8x64xf32>
    %38 = math.tanh %37 : vector<8x64xf32>
    %39 = arith.mulf %34, %38 : vector<8x64xf32>
    %c56 = arith.constant 56 : index
    %c256 = arith.constant 256 : index
    %40 = vector.load %arg19[%c56, %c256] : memref<64x512xf32, #tpu.memory_space<vmem>>, vector<8x256xf32>
    %41 = arith.truncf %10 : vector<8x64xf32> to vector<8x64xbf16>
    %cst_18 = arith.constant dense<0.000000e+00> : vector<8x256xf32>
    %42 = tpu.matmul %41, %9, %cst_18 {dimension_numbers = #tpu.dot_dimension_numbers<[1], [0], [0], [1], [0, 0, 1, 1], [], []>} : vector<8x64xbf16>, vector<64x256xbf16>, vector<8x256xf32> -> vector<8x256xf32>
    %43 = arith.addf %40, %42 : vector<8x256xf32>
    %44 = vector.extract_strided_slice %43 {offsets = [0, 0], sizes = [8, 64], strides = [1, 1]} : vector<8x256xf32> to vector<8x64xf32>
    %45 = arith.negf %44 : vector<8x64xf32>
    %46 = math.exp %45 : vector<8x64xf32>
    %cst_19 = arith.constant 1.000000e+00 : f32
    %47 = vector.broadcast %cst_19 : f32 to vector<8x64xf32>
    %48 = arith.addf %47, %46 : vector<8x64xf32>
    %49 = arith.divf %47, %48 : vector<8x64xf32>
    %50 = vector.extract_strided_slice %43 {offsets = [0, 64], sizes = [8, 64], strides = [1, 1]} : vector<8x256xf32> to vector<8x64xf32>
    %51 = arith.negf %50 : vector<8x64xf32>
    %52 = math.exp %51 : vector<8x64xf32>
    %cst_20 = arith.constant 1.000000e+00 : f32
    %53 = vector.broadcast %cst_20 : f32 to vector<8x64xf32>
    %54 = arith.addf %53, %52 : vector<8x64xf32>
    %55 = arith.divf %53, %54 : vector<8x64xf32>
    %56 = vector.extract_strided_slice %43 {offsets = [0, 128], sizes = [8, 64], strides = [1, 1]} : vector<8x256xf32> to vector<8x64xf32>
    %57 = math.tanh %56 : vector<8x64xf32>
    %58 = vector.extract_strided_slice %43 {offsets = [0, 192], sizes = [8, 64], strides = [1, 1]} : vector<8x256xf32> to vector<8x64xf32>
    %59 = arith.negf %58 : vector<8x64xf32>
    %60 = math.exp %59 : vector<8x64xf32>
    %cst_21 = arith.constant 1.000000e+00 : f32
    %61 = vector.broadcast %cst_21 : f32 to vector<8x64xf32>
    %62 = arith.addf %61, %60 : vector<8x64xf32>
    %63 = arith.divf %61, %62 : vector<8x64xf32>
    %64 = arith.mulf %55, %10 : vector<8x64xf32>
    %65 = arith.mulf %49, %57 : vector<8x64xf32>
    %66 = arith.addf %64, %65 : vector<8x64xf32>
    %67 = math.tanh %66 : vector<8x64xf32>
    %68 = arith.mulf %63, %67 : vector<8x64xf32>
    %c0_22 = arith.constant 0 : index
    %c0_23 = arith.constant 0 : index
    %69 = vector.load %arg20[%c0_22, %c0_23] : memref<64x64xf32, #tpu.memory_space<vmem>>, vector<8x64xf32>
    tpu.vector_store %arg20[%c0_22, %c0_23], %39 {strides = array<i32>} : memref<64x64xf32, #tpu.memory_space<vmem>>, vector<8x64xf32>,
    %c56_24 = arith.constant 56 : index
    %c0_25 = arith.constant 0 : index
    %70 = vector.load %arg21[%c56_24, %c0_25] : memref<64x64xf32, #tpu.memory_space<vmem>>, vector<8x64xf32>
    tpu.vector_store %arg21[%c56_24, %c0_25], %68 {strides = array<i32>} : memref<64x64xf32, #tpu.memory_space<vmem>>, vector<8x64xf32>,
    %c8 = arith.constant 8 : index
    %c0_26 = arith.constant 0 : index
    %71 = vector.load %arg19[%c8, %c0_26] : memref<64x512xf32, #tpu.memory_space<vmem>>, vector<8x256xf32>
    %72 = arith.truncf %39 : vector<8x64xf32> to vector<8x64xbf16>
    %cst_27 = arith.constant dense<0.000000e+00> : vector<8x256xf32>
    %73 = tpu.matmul %72, %8, %cst_27 {dimension_numbers = #tpu.dot_dimension_numbers<[1], [0], [0], [1], [0, 0, 1, 1], [], []>} : vector<8x64xbf16>, vector<64x256xbf16>, vector<8x256xf32> -> vector<8x256xf32>
    %74 = arith.addf %71, %73 : vector<8x256xf32>
    %75 = vector.extract_strided_slice %74 {offsets = [0, 0], sizes = [8, 64], strides = [1, 1]} : vector<8x256xf32> to vector<8x64xf32>
    %76 = arith.negf %75 : vector<8x64xf32>
    %77 = math.exp %76 : vector<8x64xf32>
    %cst_28 = arith.constant 1.000000e+00 : f32
    %78 = vector.broadcast %cst_28 : f32 to vector<8x64xf32>
    %79 = arith.addf %78, %77 : vector<8x64xf32>
    %80 = arith.divf %78, %79 : vector<8x64xf32>
    %81 = vector.extract_strided_slice %74 {offsets = [0, 64], sizes = [8, 64], strides = [1, 1]} : vector<8x256xf32> to vector<8x64xf32>
    %82 = arith.negf %81 : vector<8x64xf32>
    %83 = math.exp %82 : vector<8x64xf32>
    %cst_29 = arith.constant 1.000000e+00 : f32
    %84 = vector.broadcast %cst_29 : f32 to vector<8x64xf32>
    %85 = arith.addf %84, %83 : vector<8x64xf32>
    %86 = arith.divf %84, %85 : vector<8x64xf32>
    %87 = vector.extract_strided_slice %74 {offsets = [0, 128], sizes = [8, 64], strides = [1, 1]} : vector<8x256xf32> to vector<8x64xf32>
    %88 = math.tanh %87 : vector<8x64xf32>
    %89 = vector.extract_strided_slice %74 {offsets = [0, 192], sizes = [8, 64], strides = [1, 1]} : vector<8x256xf32> to vector<8x64xf32>
    %90 = arith.negf %89 : vector<8x64xf32>
    %91 = math.exp %90 : vector<8x64xf32>
    %cst_30 = arith.constant 1.000000e+00 : f32
    %92 = vector.broadcast %cst_30 : f32 to vector<8x64xf32>
    %93 = arith.addf %92, %91 : vector<8x64xf32>
    %94 = arith.divf %92, %93 : vector<8x64xf32>
    %95 = arith.mulf %86, %37 : vector<8x64xf32>
    %96 = arith.mulf %80, %88 : vector<8x64xf32>
    %97 = arith.addf %95, %96 : vector<8x64xf32>
    %98 = math.tanh %97 : vector<8x64xf32>
    %99 = arith.mulf %94, %98 : vector<8x64xf32>
    %c48 = arith.constant 48 : index
    %c256_31 = arith.constant 256 : index
    %100 = vector.load %arg19[%c48, %c256_31] : memref<64x512xf32, #tpu.memory_space<vmem>>, vector<8x256xf32>
    %101 = arith.truncf %68 : vector<8x64xf32> to vector<8x64xbf16>
    %cst_32 = arith.constant dense<0.000000e+00> : vector<8x256xf32>
    %102 = tpu.matmul %101, %9, %cst_32 {dimension_numbers = #tpu.dot_dimension_numbers<[1], [0], [0], [1], [0, 0, 1, 1], [], []>} : vector<8x64xbf16>, vector<64x256xbf16>, vector<8x256xf32> -> vector<8x256xf32>
    %103 = arith.addf %100, %102 : vector<8x256xf32>
    %104 = vector.extract_strided_slice %103 {offsets = [0, 0], sizes = [8, 64], strides = [1, 1]} : vector<8x256xf32> to vector<8x64xf32>
    %105 = arith.negf %104 : vector<8x64xf32>
    %106 = math.exp %105 : vector<8x64xf32>
    %cst_33 = arith.constant 1.000000e+00 : f32
    %107 = vector.broadcast %cst_33 : f32 to vector<8x64xf32>
    %108 = arith.addf %107, %106 : vector<8x64xf32>
    %109 = arith.divf %107, %108 : vector<8x64xf32>
    %110 = vector.extract_strided_slice %103 {offsets = [0, 64], sizes = [8, 64], strides = [1, 1]} : vector<8x256xf32> to vector<8x64xf32>
    %111 = arith.negf %110 : vector<8x64xf32>
    %112 = math.exp %111 : vector<8x64xf32>
    %cst_34 = arith.constant 1.000000e+00 : f32
    %113 = vector.broadcast %cst_34 : f32 to vector<8x64xf32>
    %114 = arith.addf %113, %112 : vector<8x64xf32>
    %115 = arith.divf %113, %114 : vector<8x64xf32>
    %116 = vector.extract_strided_slice %103 {offsets = [0, 128], sizes = [8, 64], strides = [1, 1]} : vector<8x256xf32> to vector<8x64xf32>
    %117 = math.tanh %116 : vector<8x64xf32>
    %118 = vector.extract_strided_slice %103 {offsets = [0, 192], sizes = [8, 64], strides = [1, 1]} : vector<8x256xf32> to vector<8x64xf32>
    %119 = arith.negf %118 : vector<8x64xf32>
    %120 = math.exp %119 : vector<8x64xf32>
    %cst_35 = arith.constant 1.000000e+00 : f32
    %121 = vector.broadcast %cst_35 : f32 to vector<8x64xf32>
    %122 = arith.addf %121, %120 : vector<8x64xf32>
    %123 = arith.divf %121, %122 : vector<8x64xf32>
    %124 = arith.mulf %115, %66 : vector<8x64xf32>
    %125 = arith.mulf %109, %117 : vector<8x64xf32>
    %126 = arith.addf %124, %125 : vector<8x64xf32>
    %127 = math.tanh %126 : vector<8x64xf32>
    %128 = arith.mulf %123, %127 : vector<8x64xf32>
    %c8_36 = arith.constant 8 : index
    %c0_37 = arith.constant 0 : index
    %129 = vector.load %arg20[%c8_36, %c0_37] : memref<64x64xf32, #tpu.memory_space<vmem>>, vector<8x64xf32>
    tpu.vector_store %arg20[%c8_36, %c0_37], %99 {strides = array<i32>} : memref<64x64xf32, #tpu.memory_space<vmem>>, vector<8x64xf32>,
    %c48_38 = arith.constant 48 : index
    %c0_39 = arith.constant 0 : index
    %130 = vector.load %arg21[%c48_38, %c0_39] : memref<64x64xf32, #tpu.memory_space<vmem>>, vector<8x64xf32>
    tpu.vector_store %arg21[%c48_38, %c0_39], %128 {strides = array<i32>} : memref<64x64xf32, #tpu.memory_space<vmem>>, vector<8x64xf32>,
    %c16 = arith.constant 16 : index
    %c0_40 = arith.constant 0 : index
    %131 = vector.load %arg19[%c16, %c0_40] : memref<64x512xf32, #tpu.memory_space<vmem>>, vector<8x256xf32>
    %132 = arith.truncf %99 : vector<8x64xf32> to vector<8x64xbf16>
    %cst_41 = arith.constant dense<0.000000e+00> : vector<8x256xf32>
    %133 = tpu.matmul %132, %8, %cst_41 {dimension_numbers = #tpu.dot_dimension_numbers<[1], [0], [0], [1], [0, 0, 1, 1], [], []>} : vector<8x64xbf16>, vector<64x256xbf16>, vector<8x256xf32> -> vector<8x256xf32>
    %134 = arith.addf %131, %133 : vector<8x256xf32>
    %135 = vector.extract_strided_slice %134 {offsets = [0, 0], sizes = [8, 64], strides = [1, 1]} : vector<8x256xf32> to vector<8x64xf32>
    %136 = arith.negf %135 : vector<8x64xf32>
    %137 = math.exp %136 : vector<8x64xf32>
    %cst_42 = arith.constant 1.000000e+00 : f32
    %138 = vector.broadcast %cst_42 : f32 to vector<8x64xf32>
    %139 = arith.addf %138, %137 : vector<8x64xf32>
    %140 = arith.divf %138, %139 : vector<8x64xf32>
    %141 = vector.extract_strided_slice %134 {offsets = [0, 64], sizes = [8, 64], strides = [1, 1]} : vector<8x256xf32> to vector<8x64xf32>
    %142 = arith.negf %141 : vector<8x64xf32>
    %143 = math.exp %142 : vector<8x64xf32>
    %cst_43 = arith.constant 1.000000e+00 : f32
    %144 = vector.broadcast %cst_43 : f32 to vector<8x64xf32>
    %145 = arith.addf %144, %143 : vector<8x64xf32>
    %146 = arith.divf %144, %145 : vector<8x64xf32>
    %147 = vector.extract_strided_slice %134 {offsets = [0, 128], sizes = [8, 64], strides = [1, 1]} : vector<8x256xf32> to vector<8x64xf32>
    %148 = math.tanh %147 : vector<8x64xf32>
    %149 = vector.extract_strided_slice %134 {offsets = [0, 192], sizes = [8, 64], strides = [1, 1]} : vector<8x256xf32> to vector<8x64xf32>
    %150 = arith.negf %149 : vector<8x64xf32>
    %151 = math.exp %150 : vector<8x64xf32>
    %cst_44 = arith.constant 1.000000e+00 : f32
    %152 = vector.broadcast %cst_44 : f32 to vector<8x64xf32>
    %153 = arith.addf %152, %151 : vector<8x64xf32>
    %154 = arith.divf %152, %153 : vector<8x64xf32>
    %155 = arith.mulf %146, %97 : vector<8x64xf32>
    %156 = arith.mulf %140, %148 : vector<8x64xf32>
    %157 = arith.addf %155, %156 : vector<8x64xf32>
    %158 = math.tanh %157 : vector<8x64xf32>
    %159 = arith.mulf %154, %158 : vector<8x64xf32>
    %c40 = arith.constant 40 : index
    %c256_45 = arith.constant 256 : index
    %160 = vector.load %arg19[%c40, %c256_45] : memref<64x512xf32, #tpu.memory_space<vmem>>, vector<8x256xf32>
    %161 = arith.truncf %128 : vector<8x64xf32> to vector<8x64xbf16>
    %cst_46 = arith.constant dense<0.000000e+00> : vector<8x256xf32>
    %162 = tpu.matmul %161, %9, %cst_46 {dimension_numbers = #tpu.dot_dimension_numbers<[1], [0], [0], [1], [0, 0, 1, 1], [], []>} : vector<8x64xbf16>, vector<64x256xbf16>, vector<8x256xf32> -> vector<8x256xf32>
    %163 = arith.addf %160, %162 : vector<8x256xf32>
    %164 = vector.extract_strided_slice %163 {offsets = [0, 0], sizes = [8, 64], strides = [1, 1]} : vector<8x256xf32> to vector<8x64xf32>
    %165 = arith.negf %164 : vector<8x64xf32>
    %166 = math.exp %165 : vector<8x64xf32>
    %cst_47 = arith.constant 1.000000e+00 : f32
    %167 = vector.broadcast %cst_47 : f32 to vector<8x64xf32>
    %168 = arith.addf %167, %166 : vector<8x64xf32>
    %169 = arith.divf %167, %168 : vector<8x64xf32>
    %170 = vector.extract_strided_slice %163 {offsets = [0, 64], sizes = [8, 64], strides = [1, 1]} : vector<8x256xf32> to vector<8x64xf32>
    %171 = arith.negf %170 : vector<8x64xf32>
    %172 = math.exp %171 : vector<8x64xf32>
    %cst_48 = arith.constant 1.000000e+00 : f32
    %173 = vector.broadcast %cst_48 : f32 to vector<8x64xf32>
    %174 = arith.addf %173, %172 : vector<8x64xf32>
    %175 = arith.divf %173, %174 : vector<8x64xf32>
    %176 = vector.extract_strided_slice %163 {offsets = [0, 128], sizes = [8, 64], strides = [1, 1]} : vector<8x256xf32> to vector<8x64xf32>
    %177 = math.tanh %176 : vector<8x64xf32>
    %178 = vector.extract_strided_slice %163 {offsets = [0, 192], sizes = [8, 64], strides = [1, 1]} : vector<8x256xf32> to vector<8x64xf32>
    %179 = arith.negf %178 : vector<8x64xf32>
    %180 = math.exp %179 : vector<8x64xf32>
    %cst_49 = arith.constant 1.000000e+00 : f32
    %181 = vector.broadcast %cst_49 : f32 to vector<8x64xf32>
    %182 = arith.addf %181, %180 : vector<8x64xf32>
    %183 = arith.divf %181, %182 : vector<8x64xf32>
    %184 = arith.mulf %175, %126 : vector<8x64xf32>
    %185 = arith.mulf %169, %177 : vector<8x64xf32>
    %186 = arith.addf %184, %185 : vector<8x64xf32>
    %187 = math.tanh %186 : vector<8x64xf32>
    %188 = arith.mulf %183, %187 : vector<8x64xf32>
    %c16_50 = arith.constant 16 : index
    %c0_51 = arith.constant 0 : index
    %189 = vector.load %arg20[%c16_50, %c0_51] : memref<64x64xf32, #tpu.memory_space<vmem>>, vector<8x64xf32>
    tpu.vector_store %arg20[%c16_50, %c0_51], %159 {strides = array<i32>} : memref<64x64xf32, #tpu.memory_space<vmem>>, vector<8x64xf32>,
    %c40_52 = arith.constant 40 : index
    %c0_53 = arith.constant 0 : index
    %190 = vector.load %arg21[%c40_52, %c0_53] : memref<64x64xf32, #tpu.memory_space<vmem>>, vector<8x64xf32>
    tpu.vector_store %arg21[%c40_52, %c0_53], %188 {strides = array<i32>} : memref<64x64xf32, #tpu.memory_space<vmem>>, vector<8x64xf32>,
    %c24 = arith.constant 24 : index
    %c0_54 = arith.constant 0 : index
    %191 = vector.load %arg19[%c24, %c0_54] : memref<64x512xf32, #tpu.memory_space<vmem>>, vector<8x256xf32>
    %192 = arith.truncf %159 : vector<8x64xf32> to vector<8x64xbf16>
    %cst_55 = arith.constant dense<0.000000e+00> : vector<8x256xf32>
    %193 = tpu.matmul %192, %8, %cst_55 {dimension_numbers = #tpu.dot_dimension_numbers<[1], [0], [0], [1], [0, 0, 1, 1], [], []>} : vector<8x64xbf16>, vector<64x256xbf16>, vector<8x256xf32> -> vector<8x256xf32>
    %194 = arith.addf %191, %193 : vector<8x256xf32>
    %195 = vector.extract_strided_slice %194 {offsets = [0, 0], sizes = [8, 64], strides = [1, 1]} : vector<8x256xf32> to vector<8x64xf32>
    %196 = arith.negf %195 : vector<8x64xf32>
    %197 = math.exp %196 : vector<8x64xf32>
    %cst_56 = arith.constant 1.000000e+00 : f32
    %198 = vector.broadcast %cst_56 : f32 to vector<8x64xf32>
    %199 = arith.addf %198, %197 : vector<8x64xf32>
    %200 = arith.divf %198, %199 : vector<8x64xf32>
    %201 = vector.extract_strided_slice %194 {offsets = [0, 64], sizes = [8, 64], strides = [1, 1]} : vector<8x256xf32> to vector<8x64xf32>
    %202 = arith.negf %201 : vector<8x64xf32>
    %203 = math.exp %202 : vector<8x64xf32>
    %cst_57 = arith.constant 1.000000e+00 : f32
    %204 = vector.broadcast %cst_57 : f32 to vector<8x64xf32>
    %205 = arith.addf %204, %203 : vector<8x64xf32>
    %206 = arith.divf %204, %205 : vector<8x64xf32>
    %207 = vector.extract_strided_slice %194 {offsets = [0, 128], sizes = [8, 64], strides = [1, 1]} : vector<8x256xf32> to vector<8x64xf32>
    %208 = math.tanh %207 : vector<8x64xf32>
    %209 = vector.extract_strided_slice %194 {offsets = [0, 192], sizes = [8, 64], strides = [1, 1]} : vector<8x256xf32> to vector<8x64xf32>
    %210 = arith.negf %209 : vector<8x64xf32>
    %211 = math.exp %210 : vector<8x64xf32>
    %cst_58 = arith.constant 1.000000e+00 : f32
    %212 = vector.broadcast %cst_58 : f32 to vector<8x64xf32>
    %213 = arith.addf %212, %211 : vector<8x64xf32>
    %214 = arith.divf %212, %213 : vector<8x64xf32>
    %215 = arith.mulf %206, %157 : vector<8x64xf32>
    %216 = arith.mulf %200, %208 : vector<8x64xf32>
    %217 = arith.addf %215, %216 : vector<8x64xf32>
    %218 = math.tanh %217 : vector<8x64xf32>
    %219 = arith.mulf %214, %218 : vector<8x64xf32>
    %c32 = arith.constant 32 : index
    %c256_59 = arith.constant 256 : index
    %220 = vector.load %arg19[%c32, %c256_59] : memref<64x512xf32, #tpu.memory_space<vmem>>, vector<8x256xf32>
    %221 = arith.truncf %188 : vector<8x64xf32> to vector<8x64xbf16>
    %cst_60 = arith.constant dense<0.000000e+00> : vector<8x256xf32>
    %222 = tpu.matmul %221, %9, %cst_60 {dimension_numbers = #tpu.dot_dimension_numbers<[1], [0], [0], [1], [0, 0, 1, 1], [], []>} : vector<8x64xbf16>, vector<64x256xbf16>, vector<8x256xf32> -> vector<8x256xf32>
    %223 = arith.addf %220, %222 : vector<8x256xf32>
    %224 = vector.extract_strided_slice %223 {offsets = [0, 0], sizes = [8, 64], strides = [1, 1]} : vector<8x256xf32> to vector<8x64xf32>
    %225 = arith.negf %224 : vector<8x64xf32>
    %226 = math.exp %225 : vector<8x64xf32>
    %cst_61 = arith.constant 1.000000e+00 : f32
    %227 = vector.broadcast %cst_61 : f32 to vector<8x64xf32>
    %228 = arith.addf %227, %226 : vector<8x64xf32>
    %229 = arith.divf %227, %228 : vector<8x64xf32>
    %230 = vector.extract_strided_slice %223 {offsets = [0, 64], sizes = [8, 64], strides = [1, 1]} : vector<8x256xf32> to vector<8x64xf32>
    %231 = arith.negf %230 : vector<8x64xf32>
    %232 = math.exp %231 : vector<8x64xf32>
    %cst_62 = arith.constant 1.000000e+00 : f32
    %233 = vector.broadcast %cst_62 : f32 to vector<8x64xf32>
    %234 = arith.addf %233, %232 : vector<8x64xf32>
    %235 = arith.divf %233, %234 : vector<8x64xf32>
    %236 = vector.extract_strided_slice %223 {offsets = [0, 128], sizes = [8, 64], strides = [1, 1]} : vector<8x256xf32> to vector<8x64xf32>
    %237 = math.tanh %236 : vector<8x64xf32>
    %238 = vector.extract_strided_slice %223 {offsets = [0, 192], sizes = [8, 64], strides = [1, 1]} : vector<8x256xf32> to vector<8x64xf32>
    %239 = arith.negf %238 : vector<8x64xf32>
    %240 = math.exp %239 : vector<8x64xf32>
    %cst_63 = arith.constant 1.000000e+00 : f32
    %241 = vector.broadcast %cst_63 : f32 to vector<8x64xf32>
    %242 = arith.addf %241, %240 : vector<8x64xf32>
    %243 = arith.divf %241, %242 : vector<8x64xf32>
    %244 = arith.mulf %235, %186 : vector<8x64xf32>
    %245 = arith.mulf %229, %237 : vector<8x64xf32>
    %246 = arith.addf %244, %245 : vector<8x64xf32>
    %247 = math.tanh %246 : vector<8x64xf32>
    %248 = arith.mulf %243, %247 : vector<8x64xf32>
    %c24_64 = arith.constant 24 : index
    %c0_65 = arith.constant 0 : index
    %249 = vector.load %arg20[%c24_64, %c0_65] : memref<64x64xf32, #tpu.memory_space<vmem>>, vector<8x64xf32>
    tpu.vector_store %arg20[%c24_64, %c0_65], %219 {strides = array<i32>} : memref<64x64xf32, #tpu.memory_space<vmem>>, vector<8x64xf32>,
    %c32_66 = arith.constant 32 : index
    %c0_67 = arith.constant 0 : index
    %250 = vector.load %arg21[%c32_66, %c0_67] : memref<64x64xf32, #tpu.memory_space<vmem>>, vector<8x64xf32>
    tpu.vector_store %arg21[%c32_66, %c0_67], %248 {strides = array<i32>} : memref<64x64xf32, #tpu.memory_space<vmem>>, vector<8x64xf32>,
    %c32_68 = arith.constant 32 : index
    %c0_69 = arith.constant 0 : index
    %251 = vector.load %arg19[%c32_68, %c0_69] : memref<64x512xf32, #tpu.memory_space<vmem>>, vector<8x256xf32>
    %252 = arith.truncf %219 : vector<8x64xf32> to vector<8x64xbf16>
    %cst_70 = arith.constant dense<0.000000e+00> : vector<8x256xf32>
    %253 = tpu.matmul %252, %8, %cst_70 {dimension_numbers = #tpu.dot_dimension_numbers<[1], [0], [0], [1], [0, 0, 1, 1], [], []>} : vector<8x64xbf16>, vector<64x256xbf16>, vector<8x256xf32> -> vector<8x256xf32>
    %254 = arith.addf %251, %253 : vector<8x256xf32>
    %255 = vector.extract_strided_slice %254 {offsets = [0, 0], sizes = [8, 64], strides = [1, 1]} : vector<8x256xf32> to vector<8x64xf32>
    %256 = arith.negf %255 : vector<8x64xf32>
    %257 = math.exp %256 : vector<8x64xf32>
    %cst_71 = arith.constant 1.000000e+00 : f32
    %258 = vector.broadcast %cst_71 : f32 to vector<8x64xf32>
    %259 = arith.addf %258, %257 : vector<8x64xf32>
    %260 = arith.divf %258, %259 : vector<8x64xf32>
    %261 = vector.extract_strided_slice %254 {offsets = [0, 64], sizes = [8, 64], strides = [1, 1]} : vector<8x256xf32> to vector<8x64xf32>
    %262 = arith.negf %261 : vector<8x64xf32>
    %263 = math.exp %262 : vector<8x64xf32>
    %cst_72 = arith.constant 1.000000e+00 : f32
    %264 = vector.broadcast %cst_72 : f32 to vector<8x64xf32>
    %265 = arith.addf %264, %263 : vector<8x64xf32>
    %266 = arith.divf %264, %265 : vector<8x64xf32>
    %267 = vector.extract_strided_slice %254 {offsets = [0, 128], sizes = [8, 64], strides = [1, 1]} : vector<8x256xf32> to vector<8x64xf32>
    %268 = math.tanh %267 : vector<8x64xf32>
    %269 = vector.extract_strided_slice %254 {offsets = [0, 192], sizes = [8, 64], strides = [1, 1]} : vector<8x256xf32> to vector<8x64xf32>
    %270 = arith.negf %269 : vector<8x64xf32>
    %271 = math.exp %270 : vector<8x64xf32>
    %cst_73 = arith.constant 1.000000e+00 : f32
    %272 = vector.broadcast %cst_73 : f32 to vector<8x64xf32>
    %273 = arith.addf %272, %271 : vector<8x64xf32>
    %274 = arith.divf %272, %273 : vector<8x64xf32>
    %275 = arith.mulf %266, %217 : vector<8x64xf32>
    %276 = arith.mulf %260, %268 : vector<8x64xf32>
    %277 = arith.addf %275, %276 : vector<8x64xf32>
    %278 = math.tanh %277 : vector<8x64xf32>
    %279 = arith.mulf %274, %278 : vector<8x64xf32>
    %c24_74 = arith.constant 24 : index
    %c256_75 = arith.constant 256 : index
    %280 = vector.load %arg19[%c24_74, %c256_75] : memref<64x512xf32, #tpu.memory_space<vmem>>, vector<8x256xf32>
    %281 = arith.truncf %248 : vector<8x64xf32> to vector<8x64xbf16>
    %cst_76 = arith.constant dense<0.000000e+00> : vector<8x256xf32>
    %282 = tpu.matmul %281, %9, %cst_76 {dimension_numbers = #tpu.dot_dimension_numbers<[1], [0], [0], [1], [0, 0, 1, 1], [], []>} : vector<8x64xbf16>, vector<64x256xbf16>, vector<8x256xf32> -> vector<8x256xf32>
    %283 = arith.addf %280, %282 : vector<8x256xf32>
    %284 = vector.extract_strided_slice %283 {offsets = [0, 0], sizes = [8, 64], strides = [1, 1]} : vector<8x256xf32> to vector<8x64xf32>
    %285 = arith.negf %284 : vector<8x64xf32>
    %286 = math.exp %285 : vector<8x64xf32>
    %cst_77 = arith.constant 1.000000e+00 : f32
    %287 = vector.broadcast %cst_77 : f32 to vector<8x64xf32>
    %288 = arith.addf %287, %286 : vector<8x64xf32>
    %289 = arith.divf %287, %288 : vector<8x64xf32>
    %290 = vector.extract_strided_slice %283 {offsets = [0, 64], sizes = [8, 64], strides = [1, 1]} : vector<8x256xf32> to vector<8x64xf32>
    %291 = arith.negf %290 : vector<8x64xf32>
    %292 = math.exp %291 : vector<8x64xf32>
    %cst_78 = arith.constant 1.000000e+00 : f32
    %293 = vector.broadcast %cst_78 : f32 to vector<8x64xf32>
    %294 = arith.addf %293, %292 : vector<8x64xf32>
    %295 = arith.divf %293, %294 : vector<8x64xf32>
    %296 = vector.extract_strided_slice %283 {offsets = [0, 128], sizes = [8, 64], strides = [1, 1]} : vector<8x256xf32> to vector<8x64xf32>
    %297 = math.tanh %296 : vector<8x64xf32>
    %298 = vector.extract_strided_slice %283 {offsets = [0, 192], sizes = [8, 64], strides = [1, 1]} : vector<8x256xf32> to vector<8x64xf32>
    %299 = arith.negf %298 : vector<8x64xf32>
    %300 = math.exp %299 : vector<8x64xf32>
    %cst_79 = arith.constant 1.000000e+00 : f32
    %301 = vector.broadcast %cst_79 : f32 to vector<8x64xf32>
    %302 = arith.addf %301, %300 : vector<8x64xf32>
    %303 = arith.divf %301, %302 : vector<8x64xf32>
    %304 = arith.mulf %295, %246 : vector<8x64xf32>
    %305 = arith.mulf %289, %297 : vector<8x64xf32>
    %306 = arith.addf %304, %305 : vector<8x64xf32>
    %307 = math.tanh %306 : vector<8x64xf32>
    %308 = arith.mulf %303, %307 : vector<8x64xf32>
    %c32_80 = arith.constant 32 : index
    %c0_81 = arith.constant 0 : index
    %309 = vector.load %arg20[%c32_80, %c0_81] : memref<64x64xf32, #tpu.memory_space<vmem>>, vector<8x64xf32>
    tpu.vector_store %arg20[%c32_80, %c0_81], %279 {strides = array<i32>} : memref<64x64xf32, #tpu.memory_space<vmem>>, vector<8x64xf32>,
    %c24_82 = arith.constant 24 : index
    %c0_83 = arith.constant 0 : index
    %310 = vector.load %arg21[%c24_82, %c0_83] : memref<64x64xf32, #tpu.memory_space<vmem>>, vector<8x64xf32>
    tpu.vector_store %arg21[%c24_82, %c0_83], %308 {strides = array<i32>} : memref<64x64xf32, #tpu.memory_space<vmem>>, vector<8x64xf32>,
    %c40_84 = arith.constant 40 : index
    %c0_85 = arith.constant 0 : index
    %311 = vector.load %arg19[%c40_84, %c0_85] : memref<64x512xf32, #tpu.memory_space<vmem>>, vector<8x256xf32>
    %312 = arith.truncf %279 : vector<8x64xf32> to vector<8x64xbf16>
    %cst_86 = arith.constant dense<0.000000e+00> : vector<8x256xf32>
    %313 = tpu.matmul %312, %8, %cst_86 {dimension_numbers = #tpu.dot_dimension_numbers<[1], [0], [0], [1], [0, 0, 1, 1], [], []>} : vector<8x64xbf16>, vector<64x256xbf16>, vector<8x256xf32> -> vector<8x256xf32>
    %314 = arith.addf %311, %313 : vector<8x256xf32>
    %315 = vector.extract_strided_slice %314 {offsets = [0, 0], sizes = [8, 64], strides = [1, 1]} : vector<8x256xf32> to vector<8x64xf32>
    %316 = arith.negf %315 : vector<8x64xf32>
    %317 = math.exp %316 : vector<8x64xf32>
    %cst_87 = arith.constant 1.000000e+00 : f32
    %318 = vector.broadcast %cst_87 : f32 to vector<8x64xf32>
    %319 = arith.addf %318, %317 : vector<8x64xf32>
    %320 = arith.divf %318, %319 : vector<8x64xf32>
    %321 = vector.extract_strided_slice %314 {offsets = [0, 64], sizes = [8, 64], strides = [1, 1]} : vector<8x256xf32> to vector<8x64xf32>
    %322 = arith.negf %321 : vector<8x64xf32>
    %323 = math.exp %322 : vector<8x64xf32>
    %cst_88 = arith.constant 1.000000e+00 : f32
    %324 = vector.broadcast %cst_88 : f32 to vector<8x64xf32>
    %325 = arith.addf %324, %323 : vector<8x64xf32>
    %326 = arith.divf %324, %325 : vector<8x64xf32>
    %327 = vector.extract_strided_slice %314 {offsets = [0, 128], sizes = [8, 64], strides = [1, 1]} : vector<8x256xf32> to vector<8x64xf32>
    %328 = math.tanh %327 : vector<8x64xf32>
    %329 = vector.extract_strided_slice %314 {offsets = [0, 192], sizes = [8, 64], strides = [1, 1]} : vector<8x256xf32> to vector<8x64xf32>
    %330 = arith.negf %329 : vector<8x64xf32>
    %331 = math.exp %330 : vector<8x64xf32>
    %cst_89 = arith.constant 1.000000e+00 : f32
    %332 = vector.broadcast %cst_89 : f32 to vector<8x64xf32>
    %333 = arith.addf %332, %331 : vector<8x64xf32>
    %334 = arith.divf %332, %333 : vector<8x64xf32>
    %335 = arith.mulf %326, %277 : vector<8x64xf32>
    %336 = arith.mulf %320, %328 : vector<8x64xf32>
    %337 = arith.addf %335, %336 : vector<8x64xf32>
    %338 = math.tanh %337 : vector<8x64xf32>
    %339 = arith.mulf %334, %338 : vector<8x64xf32>
    %c16_90 = arith.constant 16 : index
    %c256_91 = arith.constant 256 : index
    %340 = vector.load %arg19[%c16_90, %c256_91] : memref<64x512xf32, #tpu.memory_space<vmem>>, vector<8x256xf32>
    %341 = arith.truncf %308 : vector<8x64xf32> to vector<8x64xbf16>
    %cst_92 = arith.constant dense<0.000000e+00> : vector<8x256xf32>
    %342 = tpu.matmul %341, %9, %cst_92 {dimension_numbers = #tpu.dot_dimension_numbers<[1], [0], [0], [1], [0, 0, 1, 1], [], []>} : vector<8x64xbf16>, vector<64x256xbf16>, vector<8x256xf32> -> vector<8x256xf32>
    %343 = arith.addf %340, %342 : vector<8x256xf32>
    %344 = vector.extract_strided_slice %343 {offsets = [0, 0], sizes = [8, 64], strides = [1, 1]} : vector<8x256xf32> to vector<8x64xf32>
    %345 = arith.negf %344 : vector<8x64xf32>
    %346 = math.exp %345 : vector<8x64xf32>
    %cst_93 = arith.constant 1.000000e+00 : f32
    %347 = vector.broadcast %cst_93 : f32 to vector<8x64xf32>
    %348 = arith.addf %347, %346 : vector<8x64xf32>
    %349 = arith.divf %347, %348 : vector<8x64xf32>
    %350 = vector.extract_strided_slice %343 {offsets = [0, 64], sizes = [8, 64], strides = [1, 1]} : vector<8x256xf32> to vector<8x64xf32>
    %351 = arith.negf %350 : vector<8x64xf32>
    %352 = math.exp %351 : vector<8x64xf32>
    %cst_94 = arith.constant 1.000000e+00 : f32
    %353 = vector.broadcast %cst_94 : f32 to vector<8x64xf32>
    %354 = arith.addf %353, %352 : vector<8x64xf32>
    %355 = arith.divf %353, %354 : vector<8x64xf32>
    %356 = vector.extract_strided_slice %343 {offsets = [0, 128], sizes = [8, 64], strides = [1, 1]} : vector<8x256xf32> to vector<8x64xf32>
    %357 = math.tanh %356 : vector<8x64xf32>
    %358 = vector.extract_strided_slice %343 {offsets = [0, 192], sizes = [8, 64], strides = [1, 1]} : vector<8x256xf32> to vector<8x64xf32>
    %359 = arith.negf %358 : vector<8x64xf32>
    %360 = math.exp %359 : vector<8x64xf32>
    %cst_95 = arith.constant 1.000000e+00 : f32
    %361 = vector.broadcast %cst_95 : f32 to vector<8x64xf32>
    %362 = arith.addf %361, %360 : vector<8x64xf32>
    %363 = arith.divf %361, %362 : vector<8x64xf32>
    %364 = arith.mulf %355, %306 : vector<8x64xf32>
    %365 = arith.mulf %349, %357 : vector<8x64xf32>
    %366 = arith.addf %364, %365 : vector<8x64xf32>
    %367 = math.tanh %366 : vector<8x64xf32>
    %368 = arith.mulf %363, %367 : vector<8x64xf32>
    %c40_96 = arith.constant 40 : index
    %c0_97 = arith.constant 0 : index
    %369 = vector.load %arg20[%c40_96, %c0_97] : memref<64x64xf32, #tpu.memory_space<vmem>>, vector<8x64xf32>
    tpu.vector_store %arg20[%c40_96, %c0_97], %339 {strides = array<i32>} : memref<64x64xf32, #tpu.memory_space<vmem>>, vector<8x64xf32>,
    %c16_98 = arith.constant 16 : index
    %c0_99 = arith.constant 0 : index
    %370 = vector.load %arg21[%c16_98, %c0_99] : memref<64x64xf32, #tpu.memory_space<vmem>>, vector<8x64xf32>
    tpu.vector_store %arg21[%c16_98, %c0_99], %368 {strides = array<i32>} : memref<64x64xf32, #tpu.memory_space<vmem>>, vector<8x64xf32>,
    %c48_100 = arith.constant 48 : index
    %c0_101 = arith.constant 0 : index
    %371 = vector.load %arg19[%c48_100, %c0_101] : memref<64x512xf32, #tpu.memory_space<vmem>>, vector<8x256xf32>
    %372 = arith.truncf %339 : vector<8x64xf32> to vector<8x64xbf16>
    %cst_102 = arith.constant dense<0.000000e+00> : vector<8x256xf32>
    %373 = tpu.matmul %372, %8, %cst_102 {dimension_numbers = #tpu.dot_dimension_numbers<[1], [0], [0], [1], [0, 0, 1, 1], [], []>} : vector<8x64xbf16>, vector<64x256xbf16>, vector<8x256xf32> -> vector<8x256xf32>
    %374 = arith.addf %371, %373 : vector<8x256xf32>
    %375 = vector.extract_strided_slice %374 {offsets = [0, 0], sizes = [8, 64], strides = [1, 1]} : vector<8x256xf32> to vector<8x64xf32>
    %376 = arith.negf %375 : vector<8x64xf32>
    %377 = math.exp %376 : vector<8x64xf32>
    %cst_103 = arith.constant 1.000000e+00 : f32
    %378 = vector.broadcast %cst_103 : f32 to vector<8x64xf32>
    %379 = arith.addf %378, %377 : vector<8x64xf32>
    %380 = arith.divf %378, %379 : vector<8x64xf32>
    %381 = vector.extract_strided_slice %374 {offsets = [0, 64], sizes = [8, 64], strides = [1, 1]} : vector<8x256xf32> to vector<8x64xf32>
    %382 = arith.negf %381 : vector<8x64xf32>
    %383 = math.exp %382 : vector<8x64xf32>
    %cst_104 = arith.constant 1.000000e+00 : f32
    %384 = vector.broadcast %cst_104 : f32 to vector<8x64xf32>
    %385 = arith.addf %384, %383 : vector<8x64xf32>
    %386 = arith.divf %384, %385 : vector<8x64xf32>
    %387 = vector.extract_strided_slice %374 {offsets = [0, 128], sizes = [8, 64], strides = [1, 1]} : vector<8x256xf32> to vector<8x64xf32>
    %388 = math.tanh %387 : vector<8x64xf32>
    %389 = vector.extract_strided_slice %374 {offsets = [0, 192], sizes = [8, 64], strides = [1, 1]} : vector<8x256xf32> to vector<8x64xf32>
    %390 = arith.negf %389 : vector<8x64xf32>
    %391 = math.exp %390 : vector<8x64xf32>
    %cst_105 = arith.constant 1.000000e+00 : f32
    %392 = vector.broadcast %cst_105 : f32 to vector<8x64xf32>
    %393 = arith.addf %392, %391 : vector<8x64xf32>
    %394 = arith.divf %392, %393 : vector<8x64xf32>
    %395 = arith.mulf %386, %337 : vector<8x64xf32>
    %396 = arith.mulf %380, %388 : vector<8x64xf32>
    %397 = arith.addf %395, %396 : vector<8x64xf32>
    %398 = math.tanh %397 : vector<8x64xf32>
    %399 = arith.mulf %394, %398 : vector<8x64xf32>
    %c8_106 = arith.constant 8 : index
    %c256_107 = arith.constant 256 : index
    %400 = vector.load %arg19[%c8_106, %c256_107] : memref<64x512xf32, #tpu.memory_space<vmem>>, vector<8x256xf32>
    %401 = arith.truncf %368 : vector<8x64xf32> to vector<8x64xbf16>
    %cst_108 = arith.constant dense<0.000000e+00> : vector<8x256xf32>
    %402 = tpu.matmul %401, %9, %cst_108 {dimension_numbers = #tpu.dot_dimension_numbers<[1], [0], [0], [1], [0, 0, 1, 1], [], []>} : vector<8x64xbf16>, vector<64x256xbf16>, vector<8x256xf32> -> vector<8x256xf32>
    %403 = arith.addf %400, %402 : vector<8x256xf32>
    %404 = vector.extract_strided_slice %403 {offsets = [0, 0], sizes = [8, 64], strides = [1, 1]} : vector<8x256xf32> to vector<8x64xf32>
    %405 = arith.negf %404 : vector<8x64xf32>
    %406 = math.exp %405 : vector<8x64xf32>
    %cst_109 = arith.constant 1.000000e+00 : f32
    %407 = vector.broadcast %cst_109 : f32 to vector<8x64xf32>
    %408 = arith.addf %407, %406 : vector<8x64xf32>
    %409 = arith.divf %407, %408 : vector<8x64xf32>
    %410 = vector.extract_strided_slice %403 {offsets = [0, 64], sizes = [8, 64], strides = [1, 1]} : vector<8x256xf32> to vector<8x64xf32>
    %411 = arith.negf %410 : vector<8x64xf32>
    %412 = math.exp %411 : vector<8x64xf32>
    %cst_110 = arith.constant 1.000000e+00 : f32
    %413 = vector.broadcast %cst_110 : f32 to vector<8x64xf32>
    %414 = arith.addf %413, %412 : vector<8x64xf32>
    %415 = arith.divf %413, %414 : vector<8x64xf32>
    %416 = vector.extract_strided_slice %403 {offsets = [0, 128], sizes = [8, 64], strides = [1, 1]} : vector<8x256xf32> to vector<8x64xf32>
    %417 = math.tanh %416 : vector<8x64xf32>
    %418 = vector.extract_strided_slice %403 {offsets = [0, 192], sizes = [8, 64], strides = [1, 1]} : vector<8x256xf32> to vector<8x64xf32>
    %419 = arith.negf %418 : vector<8x64xf32>
    %420 = math.exp %419 : vector<8x64xf32>
    %cst_111 = arith.constant 1.000000e+00 : f32
    %421 = vector.broadcast %cst_111 : f32 to vector<8x64xf32>
    %422 = arith.addf %421, %420 : vector<8x64xf32>
    %423 = arith.divf %421, %422 : vector<8x64xf32>
    %424 = arith.mulf %415, %366 : vector<8x64xf32>
    %425 = arith.mulf %409, %417 : vector<8x64xf32>
    %426 = arith.addf %424, %425 : vector<8x64xf32>
    %427 = math.tanh %426 : vector<8x64xf32>
    %428 = arith.mulf %423, %427 : vector<8x64xf32>
    %c48_112 = arith.constant 48 : index
    %c0_113 = arith.constant 0 : index
    %429 = vector.load %arg20[%c48_112, %c0_113] : memref<64x64xf32, #tpu.memory_space<vmem>>, vector<8x64xf32>
    tpu.vector_store %arg20[%c48_112, %c0_113], %399 {strides = array<i32>} : memref<64x64xf32, #tpu.memory_space<vmem>>, vector<8x64xf32>,
    %c8_114 = arith.constant 8 : index
    %c0_115 = arith.constant 0 : index
    %430 = vector.load %arg21[%c8_114, %c0_115] : memref<64x64xf32, #tpu.memory_space<vmem>>, vector<8x64xf32>
    tpu.vector_store %arg21[%c8_114, %c0_115], %428 {strides = array<i32>} : memref<64x64xf32, #tpu.memory_space<vmem>>, vector<8x64xf32>,
    %c56_116 = arith.constant 56 : index
    %c0_117 = arith.constant 0 : index
    %431 = vector.load %arg19[%c56_116, %c0_117] : memref<64x512xf32, #tpu.memory_space<vmem>>, vector<8x256xf32>
    %432 = arith.truncf %399 : vector<8x64xf32> to vector<8x64xbf16>
    %cst_118 = arith.constant dense<0.000000e+00> : vector<8x256xf32>
    %433 = tpu.matmul %432, %8, %cst_118 {dimension_numbers = #tpu.dot_dimension_numbers<[1], [0], [0], [1], [0, 0, 1, 1], [], []>} : vector<8x64xbf16>, vector<64x256xbf16>, vector<8x256xf32> -> vector<8x256xf32>
    %434 = arith.addf %431, %433 : vector<8x256xf32>
    %435 = vector.extract_strided_slice %434 {offsets = [0, 0], sizes = [8, 64], strides = [1, 1]} : vector<8x256xf32> to vector<8x64xf32>
    %436 = arith.negf %435 : vector<8x64xf32>
    %437 = math.exp %436 : vector<8x64xf32>
    %cst_119 = arith.constant 1.000000e+00 : f32
    %438 = vector.broadcast %cst_119 : f32 to vector<8x64xf32>
    %439 = arith.addf %438, %437 : vector<8x64xf32>
    %440 = arith.divf %438, %439 : vector<8x64xf32>
    %441 = vector.extract_strided_slice %434 {offsets = [0, 64], sizes = [8, 64], strides = [1, 1]} : vector<8x256xf32> to vector<8x64xf32>
    %442 = arith.negf %441 : vector<8x64xf32>
    %443 = math.exp %442 : vector<8x64xf32>
    %cst_120 = arith.constant 1.000000e+00 : f32
    %444 = vector.broadcast %cst_120 : f32 to vector<8x64xf32>
    %445 = arith.addf %444, %443 : vector<8x64xf32>
    %446 = arith.divf %444, %445 : vector<8x64xf32>
    %447 = vector.extract_strided_slice %434 {offsets = [0, 128], sizes = [8, 64], strides = [1, 1]} : vector<8x256xf32> to vector<8x64xf32>
    %448 = math.tanh %447 : vector<8x64xf32>
    %449 = vector.extract_strided_slice %434 {offsets = [0, 192], sizes = [8, 64], strides = [1, 1]} : vector<8x256xf32> to vector<8x64xf32>
    %450 = arith.negf %449 : vector<8x64xf32>
    %451 = math.exp %450 : vector<8x64xf32>
    %cst_121 = arith.constant 1.000000e+00 : f32
    %452 = vector.broadcast %cst_121 : f32 to vector<8x64xf32>
    %453 = arith.addf %452, %451 : vector<8x64xf32>
    %454 = arith.divf %452, %453 : vector<8x64xf32>
    %455 = arith.mulf %446, %397 : vector<8x64xf32>
    %456 = arith.mulf %440, %448 : vector<8x64xf32>
    %457 = arith.addf %455, %456 : vector<8x64xf32>
    %458 = math.tanh %457 : vector<8x64xf32>
    %459 = arith.mulf %454, %458 : vector<8x64xf32>
    %c0_122 = arith.constant 0 : index
    %c256_123 = arith.constant 256 : index
    %460 = vector.load %arg19[%c0_122, %c256_123] : memref<64x512xf32, #tpu.memory_space<vmem>>, vector<8x256xf32>
    %461 = arith.truncf %428 : vector<8x64xf32> to vector<8x64xbf16>
    %cst_124 = arith.constant dense<0.000000e+00> : vector<8x256xf32>
    %462 = tpu.matmul %461, %9, %cst_124 {dimension_numbers = #tpu.dot_dimension_numbers<[1], [0], [0], [1], [0, 0, 1, 1], [], []>} : vector<8x64xbf16>, vector<64x256xbf16>, vector<8x256xf32> -> vector<8x256xf32>
    %463 = arith.addf %460, %462 : vector<8x256xf32>
    %464 = vector.extract_strided_slice %463 {offsets = [0, 0], sizes = [8, 64], strides = [1, 1]} : vector<8x256xf32> to vector<8x64xf32>
    %465 = arith.negf %464 : vector<8x64xf32>
    %466 = math.exp %465 : vector<8x64xf32>
    %cst_125 = arith.constant 1.000000e+00 : f32
    %467 = vector.broadcast %cst_125 : f32 to vector<8x64xf32>
    %468 = arith.addf %467, %466 : vector<8x64xf32>
    %469 = arith.divf %467, %468 : vector<8x64xf32>
    %470 = vector.extract_strided_slice %463 {offsets = [0, 64], sizes = [8, 64], strides = [1, 1]} : vector<8x256xf32> to vector<8x64xf32>
    %471 = arith.negf %470 : vector<8x64xf32>
    %472 = math.exp %471 : vector<8x64xf32>
    %cst_126 = arith.constant 1.000000e+00 : f32
    %473 = vector.broadcast %cst_126 : f32 to vector<8x64xf32>
    %474 = arith.addf %473, %472 : vector<8x64xf32>
    %475 = arith.divf %473, %474 : vector<8x64xf32>
    %476 = vector.extract_strided_slice %463 {offsets = [0, 128], sizes = [8, 64], strides = [1, 1]} : vector<8x256xf32> to vector<8x64xf32>
    %477 = math.tanh %476 : vector<8x64xf32>
    %478 = vector.extract_strided_slice %463 {offsets = [0, 192], sizes = [8, 64], strides = [1, 1]} : vector<8x256xf32> to vector<8x64xf32>
    %479 = arith.negf %478 : vector<8x64xf32>
    %480 = math.exp %479 : vector<8x64xf32>
    %cst_127 = arith.constant 1.000000e+00 : f32
    %481 = vector.broadcast %cst_127 : f32 to vector<8x64xf32>
    %482 = arith.addf %481, %480 : vector<8x64xf32>
    %483 = arith.divf %481, %482 : vector<8x64xf32>
    %484 = arith.mulf %475, %426 : vector<8x64xf32>
    %485 = arith.mulf %469, %477 : vector<8x64xf32>
    %486 = arith.addf %484, %485 : vector<8x64xf32>
    %487 = math.tanh %486 : vector<8x64xf32>
    %488 = arith.mulf %483, %487 : vector<8x64xf32>
    %c56_128 = arith.constant 56 : index
    %c0_129 = arith.constant 0 : index
    %489 = vector.load %arg20[%c56_128, %c0_129] : memref<64x64xf32, #tpu.memory_space<vmem>>, vector<8x64xf32>
    tpu.vector_store %arg20[%c56_128, %c0_129], %459 {strides = array<i32>} : memref<64x64xf32, #tpu.memory_space<vmem>>, vector<8x64xf32>,
    %c0_130 = arith.constant 0 : index
    %c0_131 = arith.constant 0 : index
    %490 = vector.load %arg21[%c0_130, %c0_131] : memref<64x64xf32, #tpu.memory_space<vmem>>, vector<8x64xf32>
    tpu.vector_store %arg21[%c0_130, %c0_131], %488 {strides = array<i32>} : memref<64x64xf32, #tpu.memory_space<vmem>>, vector<8x64xf32>,
    %c0_132 = arith.constant 0 : index
    %c0_133 = arith.constant 0 : index
    %491 = vector.load %arg20[%c0_132, %c0_133] : memref<64x64xf32, #tpu.memory_space<vmem>>, vector<64x64xf32>
    %492 = arith.truncf %491 : vector<64x64xf32> to vector<64x64xbf16>
    %c0_134 = arith.constant 0 : index
    %c0_135 = arith.constant 0 : index
    %493 = vector.load %arg6[%c0_134, %c0_135] : memref<64x80xbf16, #tpu.memory_space<vmem>>, vector<64x80xbf16>
    %cst_136 = arith.constant dense<0.000000e+00> : vector<64x80xf32>
    %494 = tpu.matmul %492, %493, %cst_136 {dimension_numbers = #tpu.dot_dimension_numbers<[1], [0], [0], [1], [0, 0, 1, 1], [], []>} : vector<64x64xbf16>, vector<64x80xbf16>, vector<64x80xf32> -> vector<64x80xf32>
    %c0_137 = arith.constant 0 : index
    %c0_138 = arith.constant 0 : index
    %495 = vector.load %arg21[%c0_137, %c0_138] : memref<64x64xf32, #tpu.memory_space<vmem>>, vector<64x64xf32>
    %496 = arith.truncf %495 : vector<64x64xf32> to vector<64x64xbf16>
    %c0_139 = arith.constant 0 : index
    %c0_140 = arith.constant 0 : index
    %497 = vector.load %arg7[%c0_139, %c0_140] : memref<64x80xbf16, #tpu.memory_space<vmem>>, vector<64x80xbf16>
    %cst_141 = arith.constant dense<0.000000e+00> : vector<64x80xf32>
    %498 = tpu.matmul %496, %497, %cst_141 {dimension_numbers = #tpu.dot_dimension_numbers<[1], [0], [0], [1], [0, 0, 1, 1], [], []>} : vector<64x64xbf16>, vector<64x80xbf16>, vector<64x80xf32> -> vector<64x80xf32>
    %499 = arith.addf %494, %498 : vector<64x80xf32>
    %c0_142 = arith.constant 0 : index
    %c0_143 = arith.constant 0 : index
    %500 = vector.load %arg9[%c0_142, %c0_143] : memref<1x80xf32, #tpu.memory_space<vmem>>, vector<1x80xf32>
    %501 = vector.broadcast %500 : vector<1x80xf32> to vector<64x80xf32>
    %502 = arith.addf %499, %501 : vector<64x80xf32>
    %c0_144 = arith.constant 0 : index
    %c0_145 = arith.constant 0 : index
    %503 = vector.load %arg8[%c0_144, %c0_145] : memref<20x80xbf16, #tpu.memory_space<vmem>>, vector<20x80xbf16>
    %cst_146 = arith.constant 0.000000e+00 : f32
    %504 = vector.broadcast %cst_146 : f32 to vector<8x20xf32>
    %505 = vector.extract_strided_slice %502 {offsets = [0, 0], sizes = [8, 80], strides = [1, 1]} : vector<64x80xf32> to vector<8x80xf32>
    %506 = arith.truncf %504 : vector<8x20xf32> to vector<8x20xbf16>
    %cst_147 = arith.constant dense<0.000000e+00> : vector<8x80xf32>
    %507 = tpu.matmul %506, %503, %cst_147 {dimension_numbers = #tpu.dot_dimension_numbers<[1], [0], [0], [1], [0, 0, 1, 1], [], []>} : vector<8x20xbf16>, vector<20x80xbf16>, vector<8x80xf32> -> vector<8x80xf32>
    %508 = arith.addf %505, %507 : vector<8x80xf32>
    %509 = vector.extract_strided_slice %508 {offsets = [0, 0], sizes = [8, 20], strides = [1, 1]} : vector<8x80xf32> to vector<8x20xf32>
    %510 = arith.negf %509 : vector<8x20xf32>
    %511 = math.exp %510 : vector<8x20xf32>
    %cst_148 = arith.constant 1.000000e+00 : f32
    %512 = vector.broadcast %cst_148 : f32 to vector<8x20xf32>
    %513 = arith.addf %512, %511 : vector<8x20xf32>
    %514 = arith.divf %512, %513 : vector<8x20xf32>
    %515 = vector.extract_strided_slice %508 {offsets = [0, 20], sizes = [8, 20], strides = [1, 1]} : vector<8x80xf32> to vector<8x20xf32>
    %516 = arith.negf %515 : vector<8x20xf32>
    %517 = math.exp %516 : vector<8x20xf32>
    %cst_149 = arith.constant 1.000000e+00 : f32
    %518 = vector.broadcast %cst_149 : f32 to vector<8x20xf32>
    %519 = arith.addf %518, %517 : vector<8x20xf32>
    %520 = arith.divf %518, %519 : vector<8x20xf32>
    %521 = vector.extract_strided_slice %508 {offsets = [0, 40], sizes = [8, 20], strides = [1, 1]} : vector<8x80xf32> to vector<8x20xf32>
    %522 = math.tanh %521 : vector<8x20xf32>
    %523 = vector.extract_strided_slice %508 {offsets = [0, 60], sizes = [8, 20], strides = [1, 1]} : vector<8x80xf32> to vector<8x20xf32>
    %524 = arith.negf %523 : vector<8x20xf32>
    %525 = math.exp %524 : vector<8x20xf32>
    %cst_150 = arith.constant 1.000000e+00 : f32
    %526 = vector.broadcast %cst_150 : f32 to vector<8x20xf32>
    %527 = arith.addf %526, %525 : vector<8x20xf32>
    %528 = arith.divf %526, %527 : vector<8x20xf32>
    %529 = arith.mulf %520, %504 : vector<8x20xf32>
    %530 = arith.mulf %514, %522 : vector<8x20xf32>
    %531 = arith.addf %529, %530 : vector<8x20xf32>
    %532 = math.tanh %531 : vector<8x20xf32>
    %533 = arith.mulf %528, %532 : vector<8x20xf32>
    %c0_151 = arith.constant 0 : index
    %c0_152 = arith.constant 0 : index
    %534 = vector.load %arg22[%c0_151, %c0_152] : memref<64x20xf32, #tpu.memory_space<vmem>>, vector<8x20xf32>
    tpu.vector_store %arg22[%c0_151, %c0_152], %533 {strides = array<i32>} : memref<64x20xf32, #tpu.memory_space<vmem>>, vector<8x20xf32>,
    %535 = vector.extract_strided_slice %502 {offsets = [8, 0], sizes = [8, 80], strides = [1, 1]} : vector<64x80xf32> to vector<8x80xf32>
    %536 = arith.truncf %533 : vector<8x20xf32> to vector<8x20xbf16>
    %cst_153 = arith.constant dense<0.000000e+00> : vector<8x80xf32>
    %537 = tpu.matmul %536, %503, %cst_153 {dimension_numbers = #tpu.dot_dimension_numbers<[1], [0], [0], [1], [0, 0, 1, 1], [], []>} : vector<8x20xbf16>, vector<20x80xbf16>, vector<8x80xf32> -> vector<8x80xf32>
    %538 = arith.addf %535, %537 : vector<8x80xf32>
    %539 = vector.extract_strided_slice %538 {offsets = [0, 0], sizes = [8, 20], strides = [1, 1]} : vector<8x80xf32> to vector<8x20xf32>
    %540 = arith.negf %539 : vector<8x20xf32>
    %541 = math.exp %540 : vector<8x20xf32>
    %cst_154 = arith.constant 1.000000e+00 : f32
    %542 = vector.broadcast %cst_154 : f32 to vector<8x20xf32>
    %543 = arith.addf %542, %541 : vector<8x20xf32>
    %544 = arith.divf %542, %543 : vector<8x20xf32>
    %545 = vector.extract_strided_slice %538 {offsets = [0, 20], sizes = [8, 20], strides = [1, 1]} : vector<8x80xf32> to vector<8x20xf32>
    %546 = arith.negf %545 : vector<8x20xf32>
    %547 = math.exp %546 : vector<8x20xf32>
    %cst_155 = arith.constant 1.000000e+00 : f32
    %548 = vector.broadcast %cst_155 : f32 to vector<8x20xf32>
    %549 = arith.addf %548, %547 : vector<8x20xf32>
    %550 = arith.divf %548, %549 : vector<8x20xf32>
    %551 = vector.extract_strided_slice %538 {offsets = [0, 40], sizes = [8, 20], strides = [1, 1]} : vector<8x80xf32> to vector<8x20xf32>
    %552 = math.tanh %551 : vector<8x20xf32>
    %553 = vector.extract_strided_slice %538 {offsets = [0, 60], sizes = [8, 20], strides = [1, 1]} : vector<8x80xf32> to vector<8x20xf32>
    %554 = arith.negf %553 : vector<8x20xf32>
    %555 = math.exp %554 : vector<8x20xf32>
    %cst_156 = arith.constant 1.000000e+00 : f32
    %556 = vector.broadcast %cst_156 : f32 to vector<8x20xf32>
    %557 = arith.addf %556, %555 : vector<8x20xf32>
    %558 = arith.divf %556, %557 : vector<8x20xf32>
    %559 = arith.mulf %550, %531 : vector<8x20xf32>
    %560 = arith.mulf %544, %552 : vector<8x20xf32>
    %561 = arith.addf %559, %560 : vector<8x20xf32>
    %562 = math.tanh %561 : vector<8x20xf32>
    %563 = arith.mulf %558, %562 : vector<8x20xf32>
    %c8_157 = arith.constant 8 : index
    %c0_158 = arith.constant 0 : index
    %564 = vector.load %arg22[%c8_157, %c0_158] : memref<64x20xf32, #tpu.memory_space<vmem>>, vector<8x20xf32>
    tpu.vector_store %arg22[%c8_157, %c0_158], %563 {strides = array<i32>} : memref<64x20xf32, #tpu.memory_space<vmem>>, vector<8x20xf32>,
    %565 = vector.extract_strided_slice %502 {offsets = [16, 0], sizes = [8, 80], strides = [1, 1]} : vector<64x80xf32> to vector<8x80xf32>
    %566 = arith.truncf %563 : vector<8x20xf32> to vector<8x20xbf16>
    %cst_159 = arith.constant dense<0.000000e+00> : vector<8x80xf32>
    %567 = tpu.matmul %566, %503, %cst_159 {dimension_numbers = #tpu.dot_dimension_numbers<[1], [0], [0], [1], [0, 0, 1, 1], [], []>} : vector<8x20xbf16>, vector<20x80xbf16>, vector<8x80xf32> -> vector<8x80xf32>
    %568 = arith.addf %565, %567 : vector<8x80xf32>
    %569 = vector.extract_strided_slice %568 {offsets = [0, 0], sizes = [8, 20], strides = [1, 1]} : vector<8x80xf32> to vector<8x20xf32>
    %570 = arith.negf %569 : vector<8x20xf32>
    %571 = math.exp %570 : vector<8x20xf32>
    %cst_160 = arith.constant 1.000000e+00 : f32
    %572 = vector.broadcast %cst_160 : f32 to vector<8x20xf32>
    %573 = arith.addf %572, %571 : vector<8x20xf32>
    %574 = arith.divf %572, %573 : vector<8x20xf32>
    %575 = vector.extract_strided_slice %568 {offsets = [0, 20], sizes = [8, 20], strides = [1, 1]} : vector<8x80xf32> to vector<8x20xf32>
    %576 = arith.negf %575 : vector<8x20xf32>
    %577 = math.exp %576 : vector<8x20xf32>
    %cst_161 = arith.constant 1.000000e+00 : f32
    %578 = vector.broadcast %cst_161 : f32 to vector<8x20xf32>
    %579 = arith.addf %578, %577 : vector<8x20xf32>
    %580 = arith.divf %578, %579 : vector<8x20xf32>
    %581 = vector.extract_strided_slice %568 {offsets = [0, 40], sizes = [8, 20], strides = [1, 1]} : vector<8x80xf32> to vector<8x20xf32>
    %582 = math.tanh %581 : vector<8x20xf32>
    %583 = vector.extract_strided_slice %568 {offsets = [0, 60], sizes = [8, 20], strides = [1, 1]} : vector<8x80xf32> to vector<8x20xf32>
    %584 = arith.negf %583 : vector<8x20xf32>
    %585 = math.exp %584 : vector<8x20xf32>
    %cst_162 = arith.constant 1.000000e+00 : f32
    %586 = vector.broadcast %cst_162 : f32 to vector<8x20xf32>
    %587 = arith.addf %586, %585 : vector<8x20xf32>
    %588 = arith.divf %586, %587 : vector<8x20xf32>
    %589 = arith.mulf %580, %561 : vector<8x20xf32>
    %590 = arith.mulf %574, %582 : vector<8x20xf32>
    %591 = arith.addf %589, %590 : vector<8x20xf32>
    %592 = math.tanh %591 : vector<8x20xf32>
    %593 = arith.mulf %588, %592 : vector<8x20xf32>
    %c16_163 = arith.constant 16 : index
    %c0_164 = arith.constant 0 : index
    %594 = vector.load %arg22[%c16_163, %c0_164] : memref<64x20xf32, #tpu.memory_space<vmem>>, vector<8x20xf32>
    tpu.vector_store %arg22[%c16_163, %c0_164], %593 {strides = array<i32>} : memref<64x20xf32, #tpu.memory_space<vmem>>, vector<8x20xf32>,
    %595 = vector.extract_strided_slice %502 {offsets = [24, 0], sizes = [8, 80], strides = [1, 1]} : vector<64x80xf32> to vector<8x80xf32>
    %596 = arith.truncf %593 : vector<8x20xf32> to vector<8x20xbf16>
    %cst_165 = arith.constant dense<0.000000e+00> : vector<8x80xf32>
    %597 = tpu.matmul %596, %503, %cst_165 {dimension_numbers = #tpu.dot_dimension_numbers<[1], [0], [0], [1], [0, 0, 1, 1], [], []>} : vector<8x20xbf16>, vector<20x80xbf16>, vector<8x80xf32> -> vector<8x80xf32>
    %598 = arith.addf %595, %597 : vector<8x80xf32>
    %599 = vector.extract_strided_slice %598 {offsets = [0, 0], sizes = [8, 20], strides = [1, 1]} : vector<8x80xf32> to vector<8x20xf32>
    %600 = arith.negf %599 : vector<8x20xf32>
    %601 = math.exp %600 : vector<8x20xf32>
    %cst_166 = arith.constant 1.000000e+00 : f32
    %602 = vector.broadcast %cst_166 : f32 to vector<8x20xf32>
    %603 = arith.addf %602, %601 : vector<8x20xf32>
    %604 = arith.divf %602, %603 : vector<8x20xf32>
    %605 = vector.extract_strided_slice %598 {offsets = [0, 20], sizes = [8, 20], strides = [1, 1]} : vector<8x80xf32> to vector<8x20xf32>
    %606 = arith.negf %605 : vector<8x20xf32>
    %607 = math.exp %606 : vector<8x20xf32>
    %cst_167 = arith.constant 1.000000e+00 : f32
    %608 = vector.broadcast %cst_167 : f32 to vector<8x20xf32>
    %609 = arith.addf %608, %607 : vector<8x20xf32>
    %610 = arith.divf %608, %609 : vector<8x20xf32>
    %611 = vector.extract_strided_slice %598 {offsets = [0, 40], sizes = [8, 20], strides = [1, 1]} : vector<8x80xf32> to vector<8x20xf32>
    %612 = math.tanh %611 : vector<8x20xf32>
    %613 = vector.extract_strided_slice %598 {offsets = [0, 60], sizes = [8, 20], strides = [1, 1]} : vector<8x80xf32> to vector<8x20xf32>
    %614 = arith.negf %613 : vector<8x20xf32>
    %615 = math.exp %614 : vector<8x20xf32>
    %cst_168 = arith.constant 1.000000e+00 : f32
    %616 = vector.broadcast %cst_168 : f32 to vector<8x20xf32>
    %617 = arith.addf %616, %615 : vector<8x20xf32>
    %618 = arith.divf %616, %617 : vector<8x20xf32>
    %619 = arith.mulf %610, %591 : vector<8x20xf32>
    %620 = arith.mulf %604, %612 : vector<8x20xf32>
    %621 = arith.addf %619, %620 : vector<8x20xf32>
    %622 = math.tanh %621 : vector<8x20xf32>
    %623 = arith.mulf %618, %622 : vector<8x20xf32>
    %c24_169 = arith.constant 24 : index
    %c0_170 = arith.constant 0 : index
    %624 = vector.load %arg22[%c24_169, %c0_170] : memref<64x20xf32, #tpu.memory_space<vmem>>, vector<8x20xf32>
    tpu.vector_store %arg22[%c24_169, %c0_170], %623 {strides = array<i32>} : memref<64x20xf32, #tpu.memory_space<vmem>>, vector<8x20xf32>,
    %625 = vector.extract_strided_slice %502 {offsets = [32, 0], sizes = [8, 80], strides = [1, 1]} : vector<64x80xf32> to vector<8x80xf32>
    %626 = arith.truncf %623 : vector<8x20xf32> to vector<8x20xbf16>
    %cst_171 = arith.constant dense<0.000000e+00> : vector<8x80xf32>
    %627 = tpu.matmul %626, %503, %cst_171 {dimension_numbers = #tpu.dot_dimension_numbers<[1], [0], [0], [1], [0, 0, 1, 1], [], []>} : vector<8x20xbf16>, vector<20x80xbf16>, vector<8x80xf32> -> vector<8x80xf32>
    %628 = arith.addf %625, %627 : vector<8x80xf32>
    %629 = vector.extract_strided_slice %628 {offsets = [0, 0], sizes = [8, 20], strides = [1, 1]} : vector<8x80xf32> to vector<8x20xf32>
    %630 = arith.negf %629 : vector<8x20xf32>
    %631 = math.exp %630 : vector<8x20xf32>
    %cst_172 = arith.constant 1.000000e+00 : f32
    %632 = vector.broadcast %cst_172 : f32 to vector<8x20xf32>
    %633 = arith.addf %632, %631 : vector<8x20xf32>
    %634 = arith.divf %632, %633 : vector<8x20xf32>
    %635 = vector.extract_strided_slice %628 {offsets = [0, 20], sizes = [8, 20], strides = [1, 1]} : vector<8x80xf32> to vector<8x20xf32>
    %636 = arith.negf %635 : vector<8x20xf32>
    %637 = math.exp %636 : vector<8x20xf32>
    %cst_173 = arith.constant 1.000000e+00 : f32
    %638 = vector.broadcast %cst_173 : f32 to vector<8x20xf32>
    %639 = arith.addf %638, %637 : vector<8x20xf32>
    %640 = arith.divf %638, %639 : vector<8x20xf32>
    %641 = vector.extract_strided_slice %628 {offsets = [0, 40], sizes = [8, 20], strides = [1, 1]} : vector<8x80xf32> to vector<8x20xf32>
    %642 = math.tanh %641 : vector<8x20xf32>
    %643 = vector.extract_strided_slice %628 {offsets = [0, 60], sizes = [8, 20], strides = [1, 1]} : vector<8x80xf32> to vector<8x20xf32>
    %644 = arith.negf %643 : vector<8x20xf32>
    %645 = math.exp %644 : vector<8x20xf32>
    %cst_174 = arith.constant 1.000000e+00 : f32
    %646 = vector.broadcast %cst_174 : f32 to vector<8x20xf32>
    %647 = arith.addf %646, %645 : vector<8x20xf32>
    %648 = arith.divf %646, %647 : vector<8x20xf32>
    %649 = arith.mulf %640, %621 : vector<8x20xf32>
    %650 = arith.mulf %634, %642 : vector<8x20xf32>
    %651 = arith.addf %649, %650 : vector<8x20xf32>
    %652 = math.tanh %651 : vector<8x20xf32>
    %653 = arith.mulf %648, %652 : vector<8x20xf32>
    %c32_175 = arith.constant 32 : index
    %c0_176 = arith.constant 0 : index
    %654 = vector.load %arg22[%c32_175, %c0_176] : memref<64x20xf32, #tpu.memory_space<vmem>>, vector<8x20xf32>
    tpu.vector_store %arg22[%c32_175, %c0_176], %653 {strides = array<i32>} : memref<64x20xf32, #tpu.memory_space<vmem>>, vector<8x20xf32>,
    %655 = vector.extract_strided_slice %502 {offsets = [40, 0], sizes = [8, 80], strides = [1, 1]} : vector<64x80xf32> to vector<8x80xf32>
    %656 = arith.truncf %653 : vector<8x20xf32> to vector<8x20xbf16>
    %cst_177 = arith.constant dense<0.000000e+00> : vector<8x80xf32>
    %657 = tpu.matmul %656, %503, %cst_177 {dimension_numbers = #tpu.dot_dimension_numbers<[1], [0], [0], [1], [0, 0, 1, 1], [], []>} : vector<8x20xbf16>, vector<20x80xbf16>, vector<8x80xf32> -> vector<8x80xf32>
    %658 = arith.addf %655, %657 : vector<8x80xf32>
    %659 = vector.extract_strided_slice %658 {offsets = [0, 0], sizes = [8, 20], strides = [1, 1]} : vector<8x80xf32> to vector<8x20xf32>
    %660 = arith.negf %659 : vector<8x20xf32>
    %661 = math.exp %660 : vector<8x20xf32>
    %cst_178 = arith.constant 1.000000e+00 : f32
    %662 = vector.broadcast %cst_178 : f32 to vector<8x20xf32>
    %663 = arith.addf %662, %661 : vector<8x20xf32>
    %664 = arith.divf %662, %663 : vector<8x20xf32>
    %665 = vector.extract_strided_slice %658 {offsets = [0, 20], sizes = [8, 20], strides = [1, 1]} : vector<8x80xf32> to vector<8x20xf32>
    %666 = arith.negf %665 : vector<8x20xf32>
    %667 = math.exp %666 : vector<8x20xf32>
    %cst_179 = arith.constant 1.000000e+00 : f32
    %668 = vector.broadcast %cst_179 : f32 to vector<8x20xf32>
    %669 = arith.addf %668, %667 : vector<8x20xf32>
    %670 = arith.divf %668, %669 : vector<8x20xf32>
    %671 = vector.extract_strided_slice %658 {offsets = [0, 40], sizes = [8, 20], strides = [1, 1]} : vector<8x80xf32> to vector<8x20xf32>
    %672 = math.tanh %671 : vector<8x20xf32>
    %673 = vector.extract_strided_slice %658 {offsets = [0, 60], sizes = [8, 20], strides = [1, 1]} : vector<8x80xf32> to vector<8x20xf32>
    %674 = arith.negf %673 : vector<8x20xf32>
    %675 = math.exp %674 : vector<8x20xf32>
    %cst_180 = arith.constant 1.000000e+00 : f32
    %676 = vector.broadcast %cst_180 : f32 to vector<8x20xf32>
    %677 = arith.addf %676, %675 : vector<8x20xf32>
    %678 = arith.divf %676, %677 : vector<8x20xf32>
    %679 = arith.mulf %670, %651 : vector<8x20xf32>
    %680 = arith.mulf %664, %672 : vector<8x20xf32>
    %681 = arith.addf %679, %680 : vector<8x20xf32>
    %682 = math.tanh %681 : vector<8x20xf32>
    %683 = arith.mulf %678, %682 : vector<8x20xf32>
    %c40_181 = arith.constant 40 : index
    %c0_182 = arith.constant 0 : index
    %684 = vector.load %arg22[%c40_181, %c0_182] : memref<64x20xf32, #tpu.memory_space<vmem>>, vector<8x20xf32>
    tpu.vector_store %arg22[%c40_181, %c0_182], %683 {strides = array<i32>} : memref<64x20xf32, #tpu.memory_space<vmem>>, vector<8x20xf32>,
    %685 = vector.extract_strided_slice %502 {offsets = [48, 0], sizes = [8, 80], strides = [1, 1]} : vector<64x80xf32> to vector<8x80xf32>
    %686 = arith.truncf %683 : vector<8x20xf32> to vector<8x20xbf16>
    %cst_183 = arith.constant dense<0.000000e+00> : vector<8x80xf32>
    %687 = tpu.matmul %686, %503, %cst_183 {dimension_numbers = #tpu.dot_dimension_numbers<[1], [0], [0], [1], [0, 0, 1, 1], [], []>} : vector<8x20xbf16>, vector<20x80xbf16>, vector<8x80xf32> -> vector<8x80xf32>
    %688 = arith.addf %685, %687 : vector<8x80xf32>
    %689 = vector.extract_strided_slice %688 {offsets = [0, 0], sizes = [8, 20], strides = [1, 1]} : vector<8x80xf32> to vector<8x20xf32>
    %690 = arith.negf %689 : vector<8x20xf32>
    %691 = math.exp %690 : vector<8x20xf32>
    %cst_184 = arith.constant 1.000000e+00 : f32
    %692 = vector.broadcast %cst_184 : f32 to vector<8x20xf32>
    %693 = arith.addf %692, %691 : vector<8x20xf32>
    %694 = arith.divf %692, %693 : vector<8x20xf32>
    %695 = vector.extract_strided_slice %688 {offsets = [0, 20], sizes = [8, 20], strides = [1, 1]} : vector<8x80xf32> to vector<8x20xf32>
    %696 = arith.negf %695 : vector<8x20xf32>
    %697 = math.exp %696 : vector<8x20xf32>
    %cst_185 = arith.constant 1.000000e+00 : f32
    %698 = vector.broadcast %cst_185 : f32 to vector<8x20xf32>
    %699 = arith.addf %698, %697 : vector<8x20xf32>
    %700 = arith.divf %698, %699 : vector<8x20xf32>
    %701 = vector.extract_strided_slice %688 {offsets = [0, 40], sizes = [8, 20], strides = [1, 1]} : vector<8x80xf32> to vector<8x20xf32>
    %702 = math.tanh %701 : vector<8x20xf32>
    %703 = vector.extract_strided_slice %688 {offsets = [0, 60], sizes = [8, 20], strides = [1, 1]} : vector<8x80xf32> to vector<8x20xf32>
    %704 = arith.negf %703 : vector<8x20xf32>
    %705 = math.exp %704 : vector<8x20xf32>
    %cst_186 = arith.constant 1.000000e+00 : f32
    %706 = vector.broadcast %cst_186 : f32 to vector<8x20xf32>
    %707 = arith.addf %706, %705 : vector<8x20xf32>
    %708 = arith.divf %706, %707 : vector<8x20xf32>
    %709 = arith.mulf %700, %681 : vector<8x20xf32>
    %710 = arith.mulf %694, %702 : vector<8x20xf32>
    %711 = arith.addf %709, %710 : vector<8x20xf32>
    %712 = math.tanh %711 : vector<8x20xf32>
    %713 = arith.mulf %708, %712 : vector<8x20xf32>
    %c48_187 = arith.constant 48 : index
    %c0_188 = arith.constant 0 : index
    %714 = vector.load %arg22[%c48_187, %c0_188] : memref<64x20xf32, #tpu.memory_space<vmem>>, vector<8x20xf32>
    tpu.vector_store %arg22[%c48_187, %c0_188], %713 {strides = array<i32>} : memref<64x20xf32, #tpu.memory_space<vmem>>, vector<8x20xf32>,
    %715 = vector.extract_strided_slice %502 {offsets = [56, 0], sizes = [8, 80], strides = [1, 1]} : vector<64x80xf32> to vector<8x80xf32>
    %716 = arith.truncf %713 : vector<8x20xf32> to vector<8x20xbf16>
    %cst_189 = arith.constant dense<0.000000e+00> : vector<8x80xf32>
    %717 = tpu.matmul %716, %503, %cst_189 {dimension_numbers = #tpu.dot_dimension_numbers<[1], [0], [0], [1], [0, 0, 1, 1], [], []>} : vector<8x20xbf16>, vector<20x80xbf16>, vector<8x80xf32> -> vector<8x80xf32>
    %718 = arith.addf %715, %717 : vector<8x80xf32>
    %719 = vector.extract_strided_slice %718 {offsets = [0, 0], sizes = [8, 20], strides = [1, 1]} : vector<8x80xf32> to vector<8x20xf32>
    %720 = arith.negf %719 : vector<8x20xf32>
    %721 = math.exp %720 : vector<8x20xf32>
    %cst_190 = arith.constant 1.000000e+00 : f32
    %722 = vector.broadcast %cst_190 : f32 to vector<8x20xf32>
    %723 = arith.addf %722, %721 : vector<8x20xf32>
    %724 = arith.divf %722, %723 : vector<8x20xf32>
    %725 = vector.extract_strided_slice %718 {offsets = [0, 20], sizes = [8, 20], strides = [1, 1]} : vector<8x80xf32> to vector<8x20xf32>
    %726 = arith.negf %725 : vector<8x20xf32>
    %727 = math.exp %726 : vector<8x20xf32>
    %cst_191 = arith.constant 1.000000e+00 : f32
    %728 = vector.broadcast %cst_191 : f32 to vector<8x20xf32>
    %729 = arith.addf %728, %727 : vector<8x20xf32>
    %730 = arith.divf %728, %729 : vector<8x20xf32>
    %731 = vector.extract_strided_slice %718 {offsets = [0, 40], sizes = [8, 20], strides = [1, 1]} : vector<8x80xf32> to vector<8x20xf32>
    %732 = math.tanh %731 : vector<8x20xf32>
    %733 = vector.extract_strided_slice %718 {offsets = [0, 60], sizes = [8, 20], strides = [1, 1]} : vector<8x80xf32> to vector<8x20xf32>
    %734 = arith.negf %733 : vector<8x20xf32>
    %735 = math.exp %734 : vector<8x20xf32>
    %cst_192 = arith.constant 1.000000e+00 : f32
    %736 = vector.broadcast %cst_192 : f32 to vector<8x20xf32>
    %737 = arith.addf %736, %735 : vector<8x20xf32>
    %738 = arith.divf %736, %737 : vector<8x20xf32>
    %739 = arith.mulf %730, %711 : vector<8x20xf32>
    %740 = arith.mulf %724, %732 : vector<8x20xf32>
    %741 = arith.addf %739, %740 : vector<8x20xf32>
    %742 = math.tanh %741 : vector<8x20xf32>
    %743 = arith.mulf %738, %742 : vector<8x20xf32>
    %c56_193 = arith.constant 56 : index
    %c0_194 = arith.constant 0 : index
    %744 = vector.load %arg22[%c56_193, %c0_194] : memref<64x20xf32, #tpu.memory_space<vmem>>, vector<8x20xf32>
    tpu.vector_store %arg22[%c56_193, %c0_194], %743 {strides = array<i32>} : memref<64x20xf32, #tpu.memory_space<vmem>>, vector<8x20xf32>,
    %c0_195 = arith.constant 0 : index
    %c0_196 = arith.constant 0 : index
    %745 = vector.load %arg22[%c0_195, %c0_196] : memref<64x20xf32, #tpu.memory_space<vmem>>, vector<64x20xf32>
    %c0_197 = arith.constant 0 : index
    %c0_198 = arith.constant 0 : index
    %746 = vector.load %arg10[%c0_197, %c0_198] : memref<1x20xf32, #tpu.memory_space<vmem>>, vector<1x20xf32>
    %747 = vector.broadcast %746 : vector<1x20xf32> to vector<64x20xf32>
    %748 = arith.mulf %745, %747 : vector<64x20xf32>
    %c0_199 = arith.constant 0 : index
    %c0_200 = arith.constant 0 : index
    %749 = vector.load %arg11[%c0_199, %c0_200] : memref<1x20xf32, #tpu.memory_space<vmem>>, vector<1x20xf32>
    %750 = vector.broadcast %749 : vector<1x20xf32> to vector<64x20xf32>
    %751 = arith.addf %748, %750 : vector<64x20xf32>
    %752 = arith.truncf %751 : vector<64x20xf32> to vector<64x20xbf16>
    %c0_201 = arith.constant 0 : index
    %c0_202 = arith.constant 0 : index
    %753 = vector.load %arg12[%c0_201, %c0_202] : memref<20x10xbf16, #tpu.memory_space<vmem>>, vector<20x10xbf16>
    %cst_203 = arith.constant dense<0.000000e+00> : vector<64x10xf32>
    %754 = tpu.matmul %752, %753, %cst_203 {dimension_numbers = #tpu.dot_dimension_numbers<[1], [0], [0], [1], [0, 0, 1, 1], [], []>} : vector<64x20xbf16>, vector<20x10xbf16>, vector<64x10xf32> -> vector<64x10xf32>
    %c0_204 = arith.constant 0 : index
    %c0_205 = arith.constant 0 : index
    %755 = vector.load %arg13[%c0_204, %c0_205] : memref<1x10xf32, #tpu.memory_space<vmem>>, vector<1x10xf32>
    %756 = vector.broadcast %755 : vector<1x10xf32> to vector<64x10xf32>
    %757 = arith.addf %754, %756 : vector<64x10xf32>
    %c0_206 = arith.constant 0 : index
    %c0_207 = arith.constant 0 : index
    %758 = vector.load %arg17[%c0_206, %c0_207] : memref<64x10xf32, #tpu.memory_space<vmem>>, vector<64x10xf32>
    tpu.vector_store %arg17[%c0_206, %c0_207], %757 {strides = array<i32>} : memref<64x10xf32, #tpu.memory_space<vmem>>, vector<64x10xf32>,
    %c0_208 = arith.constant 0 : index
    %c0_209 = arith.constant 0 : index
    %759 = vector.load %arg16[%c0_208, %c0_209] : memref<10x10xf32, #tpu.memory_space<vmem>>, vector<10x10xf32>
    %760 = tpu.iota {dimensions = array<i32: 1>} : vector<8x10xi32>
    %761 = tpu.iota {dimensions = array<i32: 1>} : vector<8x10x10xi32>
    %c0_210 = arith.constant 0 : index
    %c0_211 = arith.constant 0 : index
    %762 = vector.load %arg14[%c0_210, %c0_211] : memref<1x10xf32, #tpu.memory_space<vmem>>, vector<1x10xf32>
    %763 = vector.extract_strided_slice %757 {offsets = [0, 0], sizes = [8, 10], strides = [1, 1]} : vector<64x10xf32> to vector<8x10xf32>
    %764 = vector.broadcast %762 : vector<1x10xf32> to vector<8x10xf32>
    %765 = arith.addf %764, %763 : vector<8x10xf32>
    %766 = vector.extract_strided_slice %757 {offsets = [8, 0], sizes = [8, 10], strides = [1, 1]} : vector<64x10xf32> to vector<8x10xf32>
    %c1 = arith.constant 1 : index
    %c0_212 = arith.constant 0 : index
    %c0_213 = arith.constant 0 : index
    %767 = vector.load %arg1[%c1, %c0_212, %c0_213] : memref<8x8x1xf32, #tpu.memory_space<vmem>>, vector<1x8x1xf32>
    %768 = vector.shape_cast %767 : vector<1x8x1xf32> to vector<8x1xf32>
    %cst_214 = arith.constant 5.000000e-01 : f32
    %769 = vector.broadcast %cst_214 : f32 to vector<8x1xf32>
    %770 = arith.cmpf ogt, %768, %769 : vector<8x1xf32>
    %771 = vector.shape_cast %765 : vector<8x10xf32> to vector<8x10x1xf32>
    %772 = vector.shape_cast %759 : vector<10x10xf32> to vector<1x10x10xf32>
    %773 = vector.broadcast %771 : vector<8x10x1xf32> to vector<8x10x10xf32>
    %774 = vector.broadcast %772 : vector<1x10x10xf32> to vector<8x10x10xf32>
    %775 = arith.addf %773, %774 : vector<8x10x10xf32>
    %776 = vector.shape_cast %766 : vector<8x10xf32> to vector<8x1x10xf32>
    %777 = vector.broadcast %776 : vector<8x1x10xf32> to vector<8x10x10xf32>
    %778 = arith.addf %775, %777 : vector<8x10x10xf32>
    %cst_215 = arith.constant dense<0xFF800000> : vector<8x10xf32>
    %779 = vector.multi_reduction <maximumf>, %778, %cst_215 [1] : vector<8x10x10xf32> to vector<8x10xf32>
    %780 = vector.shape_cast %779 : vector<8x10xf32> to vector<8x1x10xf32>
    %781 = vector.broadcast %780 : vector<8x1x10xf32> to vector<8x10x10xf32>
    %782 = arith.cmpf oge, %778, %781 : vector<8x10x10xf32>
    %c10_i32 = arith.constant 10 : i32
    %783 = vector.broadcast %c10_i32 : i32 to vector<8x10x10xi32>
    %784 = arith.select %782, %761, %783 : vector<8x10x10xi1>, vector<8x10x10xi32>
    %cst_216 = arith.constant dense<2147483647> : vector<8x10xi32>
    %785 = vector.multi_reduction <minsi>, %784, %cst_216 [1] : vector<8x10x10xi32> to vector<8x10xi32>
    %786 = vector.shape_cast %770 : vector<8x1xi1> to vector<8x1xi1>
    %787 = vector.broadcast %786 : vector<8x1xi1> to vector<8x10xi1>
    %788 = arith.select %787, %785, %760 : vector<8x10xi1>, vector<8x10xi32>
    %c1_217 = arith.constant 1 : index
    %c0_218 = arith.constant 0 : index
    %c0_219 = arith.constant 0 : index
    %789 = vector.load %arg23[%c1_217, %c0_218, %c0_219] : memref<8x8x10xi32, #tpu.memory_space<vmem>>, vector<1x8x10xi32>
    %790 = vector.shape_cast %789 : vector<1x8x10xi32> to vector<8x10xi32>
    %791 = vector.shape_cast %788 : vector<8x10xi32> to vector<1x8x10xi32>
    tpu.vector_store %arg23[%c1_217, %c0_218, %c0_219], %791 {strides = array<i32>} : memref<8x8x10xi32, #tpu.memory_space<vmem>>, vector<1x8x10xi32>,
    %792 = vector.shape_cast %770 : vector<8x1xi1> to vector<8x1xi1>
    %793 = vector.broadcast %792 : vector<8x1xi1> to vector<8x10xi1>
    %794 = arith.select %793, %779, %765 : vector<8x10xi1>, vector<8x10xf32>
    %795 = vector.extract_strided_slice %757 {offsets = [16, 0], sizes = [8, 10], strides = [1, 1]} : vector<64x10xf32> to vector<8x10xf32>
    %c2 = arith.constant 2 : index
    %c0_220 = arith.constant 0 : index
    %c0_221 = arith.constant 0 : index
    %796 = vector.load %arg1[%c2, %c0_220, %c0_221] : memref<8x8x1xf32, #tpu.memory_space<vmem>>, vector<1x8x1xf32>
    %797 = vector.shape_cast %796 : vector<1x8x1xf32> to vector<8x1xf32>
    %cst_222 = arith.constant 5.000000e-01 : f32
    %798 = vector.broadcast %cst_222 : f32 to vector<8x1xf32>
    %799 = arith.cmpf ogt, %797, %798 : vector<8x1xf32>
    %800 = vector.shape_cast %794 : vector<8x10xf32> to vector<8x10x1xf32>
    %801 = vector.shape_cast %759 : vector<10x10xf32> to vector<1x10x10xf32>
    %802 = vector.broadcast %800 : vector<8x10x1xf32> to vector<8x10x10xf32>
    %803 = vector.broadcast %801 : vector<1x10x10xf32> to vector<8x10x10xf32>
    %804 = arith.addf %802, %803 : vector<8x10x10xf32>
    %805 = vector.shape_cast %795 : vector<8x10xf32> to vector<8x1x10xf32>
    %806 = vector.broadcast %805 : vector<8x1x10xf32> to vector<8x10x10xf32>
    %807 = arith.addf %804, %806 : vector<8x10x10xf32>
    %cst_223 = arith.constant dense<0xFF800000> : vector<8x10xf32>
    %808 = vector.multi_reduction <maximumf>, %807, %cst_223 [1] : vector<8x10x10xf32> to vector<8x10xf32>
    %809 = vector.shape_cast %808 : vector<8x10xf32> to vector<8x1x10xf32>
    %810 = vector.broadcast %809 : vector<8x1x10xf32> to vector<8x10x10xf32>
    %811 = arith.cmpf oge, %807, %810 : vector<8x10x10xf32>
    %c10_i32_224 = arith.constant 10 : i32
    %812 = vector.broadcast %c10_i32_224 : i32 to vector<8x10x10xi32>
    %813 = arith.select %811, %761, %812 : vector<8x10x10xi1>, vector<8x10x10xi32>
    %cst_225 = arith.constant dense<2147483647> : vector<8x10xi32>
    %814 = vector.multi_reduction <minsi>, %813, %cst_225 [1] : vector<8x10x10xi32> to vector<8x10xi32>
    %815 = vector.shape_cast %799 : vector<8x1xi1> to vector<8x1xi1>
    %816 = vector.broadcast %815 : vector<8x1xi1> to vector<8x10xi1>
    %817 = arith.select %816, %814, %760 : vector<8x10xi1>, vector<8x10xi32>
    %c2_226 = arith.constant 2 : index
    %c0_227 = arith.constant 0 : index
    %c0_228 = arith.constant 0 : index
    %818 = vector.load %arg23[%c2_226, %c0_227, %c0_228] : memref<8x8x10xi32, #tpu.memory_space<vmem>>, vector<1x8x10xi32>
    %819 = vector.shape_cast %818 : vector<1x8x10xi32> to vector<8x10xi32>
    %820 = vector.shape_cast %817 : vector<8x10xi32> to vector<1x8x10xi32>
    tpu.vector_store %arg23[%c2_226, %c0_227, %c0_228], %820 {strides = array<i32>} : memref<8x8x10xi32, #tpu.memory_space<vmem>>, vector<1x8x10xi32>,
    %821 = vector.shape_cast %799 : vector<8x1xi1> to vector<8x1xi1>
    %822 = vector.broadcast %821 : vector<8x1xi1> to vector<8x10xi1>
    %823 = arith.select %822, %808, %794 : vector<8x10xi1>, vector<8x10xf32>
    %824 = vector.extract_strided_slice %757 {offsets = [24, 0], sizes = [8, 10], strides = [1, 1]} : vector<64x10xf32> to vector<8x10xf32>
    %c3 = arith.constant 3 : index
    %c0_229 = arith.constant 0 : index
    %c0_230 = arith.constant 0 : index
    %825 = vector.load %arg1[%c3, %c0_229, %c0_230] : memref<8x8x1xf32, #tpu.memory_space<vmem>>, vector<1x8x1xf32>
    %826 = vector.shape_cast %825 : vector<1x8x1xf32> to vector<8x1xf32>
    %cst_231 = arith.constant 5.000000e-01 : f32
    %827 = vector.broadcast %cst_231 : f32 to vector<8x1xf32>
    %828 = arith.cmpf ogt, %826, %827 : vector<8x1xf32>
    %829 = vector.shape_cast %823 : vector<8x10xf32> to vector<8x10x1xf32>
    %830 = vector.shape_cast %759 : vector<10x10xf32> to vector<1x10x10xf32>
    %831 = vector.broadcast %829 : vector<8x10x1xf32> to vector<8x10x10xf32>
    %832 = vector.broadcast %830 : vector<1x10x10xf32> to vector<8x10x10xf32>
    %833 = arith.addf %831, %832 : vector<8x10x10xf32>
    %834 = vector.shape_cast %824 : vector<8x10xf32> to vector<8x1x10xf32>
    %835 = vector.broadcast %834 : vector<8x1x10xf32> to vector<8x10x10xf32>
    %836 = arith.addf %833, %835 : vector<8x10x10xf32>
    %cst_232 = arith.constant dense<0xFF800000> : vector<8x10xf32>
    %837 = vector.multi_reduction <maximumf>, %836, %cst_232 [1] : vector<8x10x10xf32> to vector<8x10xf32>
    %838 = vector.shape_cast %837 : vector<8x10xf32> to vector<8x1x10xf32>
    %839 = vector.broadcast %838 : vector<8x1x10xf32> to vector<8x10x10xf32>
    %840 = arith.cmpf oge, %836, %839 : vector<8x10x10xf32>
    %c10_i32_233 = arith.constant 10 : i32
    %841 = vector.broadcast %c10_i32_233 : i32 to vector<8x10x10xi32>
    %842 = arith.select %840, %761, %841 : vector<8x10x10xi1>, vector<8x10x10xi32>
    %cst_234 = arith.constant dense<2147483647> : vector<8x10xi32>
    %843 = vector.multi_reduction <minsi>, %842, %cst_234 [1] : vector<8x10x10xi32> to vector<8x10xi32>
    %844 = vector.shape_cast %828 : vector<8x1xi1> to vector<8x1xi1>
    %845 = vector.broadcast %844 : vector<8x1xi1> to vector<8x10xi1>
    %846 = arith.select %845, %843, %760 : vector<8x10xi1>, vector<8x10xi32>
    %c3_235 = arith.constant 3 : index
    %c0_236 = arith.constant 0 : index
    %c0_237 = arith.constant 0 : index
    %847 = vector.load %arg23[%c3_235, %c0_236, %c0_237] : memref<8x8x10xi32, #tpu.memory_space<vmem>>, vector<1x8x10xi32>
    %848 = vector.shape_cast %847 : vector<1x8x10xi32> to vector<8x10xi32>
    %849 = vector.shape_cast %846 : vector<8x10xi32> to vector<1x8x10xi32>
    tpu.vector_store %arg23[%c3_235, %c0_236, %c0_237], %849 {strides = array<i32>} : memref<8x8x10xi32, #tpu.memory_space<vmem>>, vector<1x8x10xi32>,
    %850 = vector.shape_cast %828 : vector<8x1xi1> to vector<8x1xi1>
    %851 = vector.broadcast %850 : vector<8x1xi1> to vector<8x10xi1>
    %852 = arith.select %851, %837, %823 : vector<8x10xi1>, vector<8x10xf32>
    %853 = vector.extract_strided_slice %757 {offsets = [32, 0], sizes = [8, 10], strides = [1, 1]} : vector<64x10xf32> to vector<8x10xf32>
    %c4 = arith.constant 4 : index
    %c0_238 = arith.constant 0 : index
    %c0_239 = arith.constant 0 : index
    %854 = vector.load %arg1[%c4, %c0_238, %c0_239] : memref<8x8x1xf32, #tpu.memory_space<vmem>>, vector<1x8x1xf32>
    %855 = vector.shape_cast %854 : vector<1x8x1xf32> to vector<8x1xf32>
    %cst_240 = arith.constant 5.000000e-01 : f32
    %856 = vector.broadcast %cst_240 : f32 to vector<8x1xf32>
    %857 = arith.cmpf ogt, %855, %856 : vector<8x1xf32>
    %858 = vector.shape_cast %852 : vector<8x10xf32> to vector<8x10x1xf32>
    %859 = vector.shape_cast %759 : vector<10x10xf32> to vector<1x10x10xf32>
    %860 = vector.broadcast %858 : vector<8x10x1xf32> to vector<8x10x10xf32>
    %861 = vector.broadcast %859 : vector<1x10x10xf32> to vector<8x10x10xf32>
    %862 = arith.addf %860, %861 : vector<8x10x10xf32>
    %863 = vector.shape_cast %853 : vector<8x10xf32> to vector<8x1x10xf32>
    %864 = vector.broadcast %863 : vector<8x1x10xf32> to vector<8x10x10xf32>
    %865 = arith.addf %862, %864 : vector<8x10x10xf32>
    %cst_241 = arith.constant dense<0xFF800000> : vector<8x10xf32>
    %866 = vector.multi_reduction <maximumf>, %865, %cst_241 [1] : vector<8x10x10xf32> to vector<8x10xf32>
    %867 = vector.shape_cast %866 : vector<8x10xf32> to vector<8x1x10xf32>
    %868 = vector.broadcast %867 : vector<8x1x10xf32> to vector<8x10x10xf32>
    %869 = arith.cmpf oge, %865, %868 : vector<8x10x10xf32>
    %c10_i32_242 = arith.constant 10 : i32
    %870 = vector.broadcast %c10_i32_242 : i32 to vector<8x10x10xi32>
    %871 = arith.select %869, %761, %870 : vector<8x10x10xi1>, vector<8x10x10xi32>
    %cst_243 = arith.constant dense<2147483647> : vector<8x10xi32>
    %872 = vector.multi_reduction <minsi>, %871, %cst_243 [1] : vector<8x10x10xi32> to vector<8x10xi32>
    %873 = vector.shape_cast %857 : vector<8x1xi1> to vector<8x1xi1>
    %874 = vector.broadcast %873 : vector<8x1xi1> to vector<8x10xi1>
    %875 = arith.select %874, %872, %760 : vector<8x10xi1>, vector<8x10xi32>
    %c4_244 = arith.constant 4 : index
    %c0_245 = arith.constant 0 : index
    %c0_246 = arith.constant 0 : index
    %876 = vector.load %arg23[%c4_244, %c0_245, %c0_246] : memref<8x8x10xi32, #tpu.memory_space<vmem>>, vector<1x8x10xi32>
    %877 = vector.shape_cast %876 : vector<1x8x10xi32> to vector<8x10xi32>
    %878 = vector.shape_cast %875 : vector<8x10xi32> to vector<1x8x10xi32>
    tpu.vector_store %arg23[%c4_244, %c0_245, %c0_246], %878 {strides = array<i32>} : memref<8x8x10xi32, #tpu.memory_space<vmem>>, vector<1x8x10xi32>,
    %879 = vector.shape_cast %857 : vector<8x1xi1> to vector<8x1xi1>
    %880 = vector.broadcast %879 : vector<8x1xi1> to vector<8x10xi1>
    %881 = arith.select %880, %866, %852 : vector<8x10xi1>, vector<8x10xf32>
    %882 = vector.extract_strided_slice %757 {offsets = [40, 0], sizes = [8, 10], strides = [1, 1]} : vector<64x10xf32> to vector<8x10xf32>
    %c5 = arith.constant 5 : index
    %c0_247 = arith.constant 0 : index
    %c0_248 = arith.constant 0 : index
    %883 = vector.load %arg1[%c5, %c0_247, %c0_248] : memref<8x8x1xf32, #tpu.memory_space<vmem>>, vector<1x8x1xf32>
    %884 = vector.shape_cast %883 : vector<1x8x1xf32> to vector<8x1xf32>
    %cst_249 = arith.constant 5.000000e-01 : f32
    %885 = vector.broadcast %cst_249 : f32 to vector<8x1xf32>
    %886 = arith.cmpf ogt, %884, %885 : vector<8x1xf32>
    %887 = vector.shape_cast %881 : vector<8x10xf32> to vector<8x10x1xf32>
    %888 = vector.shape_cast %759 : vector<10x10xf32> to vector<1x10x10xf32>
    %889 = vector.broadcast %887 : vector<8x10x1xf32> to vector<8x10x10xf32>
    %890 = vector.broadcast %888 : vector<1x10x10xf32> to vector<8x10x10xf32>
    %891 = arith.addf %889, %890 : vector<8x10x10xf32>
    %892 = vector.shape_cast %882 : vector<8x10xf32> to vector<8x1x10xf32>
    %893 = vector.broadcast %892 : vector<8x1x10xf32> to vector<8x10x10xf32>
    %894 = arith.addf %891, %893 : vector<8x10x10xf32>
    %cst_250 = arith.constant dense<0xFF800000> : vector<8x10xf32>
    %895 = vector.multi_reduction <maximumf>, %894, %cst_250 [1] : vector<8x10x10xf32> to vector<8x10xf32>
    %896 = vector.shape_cast %895 : vector<8x10xf32> to vector<8x1x10xf32>
    %897 = vector.broadcast %896 : vector<8x1x10xf32> to vector<8x10x10xf32>
    %898 = arith.cmpf oge, %894, %897 : vector<8x10x10xf32>
    %c10_i32_251 = arith.constant 10 : i32
    %899 = vector.broadcast %c10_i32_251 : i32 to vector<8x10x10xi32>
    %900 = arith.select %898, %761, %899 : vector<8x10x10xi1>, vector<8x10x10xi32>
    %cst_252 = arith.constant dense<2147483647> : vector<8x10xi32>
    %901 = vector.multi_reduction <minsi>, %900, %cst_252 [1] : vector<8x10x10xi32> to vector<8x10xi32>
    %902 = vector.shape_cast %886 : vector<8x1xi1> to vector<8x1xi1>
    %903 = vector.broadcast %902 : vector<8x1xi1> to vector<8x10xi1>
    %904 = arith.select %903, %901, %760 : vector<8x10xi1>, vector<8x10xi32>
    %c5_253 = arith.constant 5 : index
    %c0_254 = arith.constant 0 : index
    %c0_255 = arith.constant 0 : index
    %905 = vector.load %arg23[%c5_253, %c0_254, %c0_255] : memref<8x8x10xi32, #tpu.memory_space<vmem>>, vector<1x8x10xi32>
    %906 = vector.shape_cast %905 : vector<1x8x10xi32> to vector<8x10xi32>
    %907 = vector.shape_cast %904 : vector<8x10xi32> to vector<1x8x10xi32>
    tpu.vector_store %arg23[%c5_253, %c0_254, %c0_255], %907 {strides = array<i32>} : memref<8x8x10xi32, #tpu.memory_space<vmem>>, vector<1x8x10xi32>,
    %908 = vector.shape_cast %886 : vector<8x1xi1> to vector<8x1xi1>
    %909 = vector.broadcast %908 : vector<8x1xi1> to vector<8x10xi1>
    %910 = arith.select %909, %895, %881 : vector<8x10xi1>, vector<8x10xf32>
    %911 = vector.extract_strided_slice %757 {offsets = [48, 0], sizes = [8, 10], strides = [1, 1]} : vector<64x10xf32> to vector<8x10xf32>
    %c6 = arith.constant 6 : index
    %c0_256 = arith.constant 0 : index
    %c0_257 = arith.constant 0 : index
    %912 = vector.load %arg1[%c6, %c0_256, %c0_257] : memref<8x8x1xf32, #tpu.memory_space<vmem>>, vector<1x8x1xf32>
    %913 = vector.shape_cast %912 : vector<1x8x1xf32> to vector<8x1xf32>
    %cst_258 = arith.constant 5.000000e-01 : f32
    %914 = vector.broadcast %cst_258 : f32 to vector<8x1xf32>
    %915 = arith.cmpf ogt, %913, %914 : vector<8x1xf32>
    %916 = vector.shape_cast %910 : vector<8x10xf32> to vector<8x10x1xf32>
    %917 = vector.shape_cast %759 : vector<10x10xf32> to vector<1x10x10xf32>
    %918 = vector.broadcast %916 : vector<8x10x1xf32> to vector<8x10x10xf32>
    %919 = vector.broadcast %917 : vector<1x10x10xf32> to vector<8x10x10xf32>
    %920 = arith.addf %918, %919 : vector<8x10x10xf32>
    %921 = vector.shape_cast %911 : vector<8x10xf32> to vector<8x1x10xf32>
    %922 = vector.broadcast %921 : vector<8x1x10xf32> to vector<8x10x10xf32>
    %923 = arith.addf %920, %922 : vector<8x10x10xf32>
    %cst_259 = arith.constant dense<0xFF800000> : vector<8x10xf32>
    %924 = vector.multi_reduction <maximumf>, %923, %cst_259 [1] : vector<8x10x10xf32> to vector<8x10xf32>
    %925 = vector.shape_cast %924 : vector<8x10xf32> to vector<8x1x10xf32>
    %926 = vector.broadcast %925 : vector<8x1x10xf32> to vector<8x10x10xf32>
    %927 = arith.cmpf oge, %923, %926 : vector<8x10x10xf32>
    %c10_i32_260 = arith.constant 10 : i32
    %928 = vector.broadcast %c10_i32_260 : i32 to vector<8x10x10xi32>
    %929 = arith.select %927, %761, %928 : vector<8x10x10xi1>, vector<8x10x10xi32>
    %cst_261 = arith.constant dense<2147483647> : vector<8x10xi32>
    %930 = vector.multi_reduction <minsi>, %929, %cst_261 [1] : vector<8x10x10xi32> to vector<8x10xi32>
    %931 = vector.shape_cast %915 : vector<8x1xi1> to vector<8x1xi1>
    %932 = vector.broadcast %931 : vector<8x1xi1> to vector<8x10xi1>
    %933 = arith.select %932, %930, %760 : vector<8x10xi1>, vector<8x10xi32>
    %c6_262 = arith.constant 6 : index
    %c0_263 = arith.constant 0 : index
    %c0_264 = arith.constant 0 : index
    %934 = vector.load %arg23[%c6_262, %c0_263, %c0_264] : memref<8x8x10xi32, #tpu.memory_space<vmem>>, vector<1x8x10xi32>
    %935 = vector.shape_cast %934 : vector<1x8x10xi32> to vector<8x10xi32>
    %936 = vector.shape_cast %933 : vector<8x10xi32> to vector<1x8x10xi32>
    tpu.vector_store %arg23[%c6_262, %c0_263, %c0_264], %936 {strides = array<i32>} : memref<8x8x10xi32, #tpu.memory_space<vmem>>, vector<1x8x10xi32>,
    %937 = vector.shape_cast %915 : vector<8x1xi1> to vector<8x1xi1>
    %938 = vector.broadcast %937 : vector<8x1xi1> to vector<8x10xi1>
    %939 = arith.select %938, %924, %910 : vector<8x10xi1>, vector<8x10xf32>
    %940 = vector.extract_strided_slice %757 {offsets = [56, 0], sizes = [8, 10], strides = [1, 1]} : vector<64x10xf32> to vector<8x10xf32>
    %c7 = arith.constant 7 : index
    %c0_265 = arith.constant 0 : index
    %c0_266 = arith.constant 0 : index
    %941 = vector.load %arg1[%c7, %c0_265, %c0_266] : memref<8x8x1xf32, #tpu.memory_space<vmem>>, vector<1x8x1xf32>
    %942 = vector.shape_cast %941 : vector<1x8x1xf32> to vector<8x1xf32>
    %cst_267 = arith.constant 5.000000e-01 : f32
    %943 = vector.broadcast %cst_267 : f32 to vector<8x1xf32>
    %944 = arith.cmpf ogt, %942, %943 : vector<8x1xf32>
    %945 = vector.shape_cast %939 : vector<8x10xf32> to vector<8x10x1xf32>
    %946 = vector.shape_cast %759 : vector<10x10xf32> to vector<1x10x10xf32>
    %947 = vector.broadcast %945 : vector<8x10x1xf32> to vector<8x10x10xf32>
    %948 = vector.broadcast %946 : vector<1x10x10xf32> to vector<8x10x10xf32>
    %949 = arith.addf %947, %948 : vector<8x10x10xf32>
    %950 = vector.shape_cast %940 : vector<8x10xf32> to vector<8x1x10xf32>
    %951 = vector.broadcast %950 : vector<8x1x10xf32> to vector<8x10x10xf32>
    %952 = arith.addf %949, %951 : vector<8x10x10xf32>
    %cst_268 = arith.constant dense<0xFF800000> : vector<8x10xf32>
    %953 = vector.multi_reduction <maximumf>, %952, %cst_268 [1] : vector<8x10x10xf32> to vector<8x10xf32>
    %954 = vector.shape_cast %953 : vector<8x10xf32> to vector<8x1x10xf32>
    %955 = vector.broadcast %954 : vector<8x1x10xf32> to vector<8x10x10xf32>
    %956 = arith.cmpf oge, %952, %955 : vector<8x10x10xf32>
    %c10_i32_269 = arith.constant 10 : i32
    %957 = vector.broadcast %c10_i32_269 : i32 to vector<8x10x10xi32>
    %958 = arith.select %956, %761, %957 : vector<8x10x10xi1>, vector<8x10x10xi32>
    %cst_270 = arith.constant dense<2147483647> : vector<8x10xi32>
    %959 = vector.multi_reduction <minsi>, %958, %cst_270 [1] : vector<8x10x10xi32> to vector<8x10xi32>
    %960 = vector.shape_cast %944 : vector<8x1xi1> to vector<8x1xi1>
    %961 = vector.broadcast %960 : vector<8x1xi1> to vector<8x10xi1>
    %962 = arith.select %961, %959, %760 : vector<8x10xi1>, vector<8x10xi32>
    %c7_271 = arith.constant 7 : index
    %c0_272 = arith.constant 0 : index
    %c0_273 = arith.constant 0 : index
    %963 = vector.load %arg23[%c7_271, %c0_272, %c0_273] : memref<8x8x10xi32, #tpu.memory_space<vmem>>, vector<1x8x10xi32>
    %964 = vector.shape_cast %963 : vector<1x8x10xi32> to vector<8x10xi32>
    %965 = vector.shape_cast %962 : vector<8x10xi32> to vector<1x8x10xi32>
    tpu.vector_store %arg23[%c7_271, %c0_272, %c0_273], %965 {strides = array<i32>} : memref<8x8x10xi32, #tpu.memory_space<vmem>>, vector<1x8x10xi32>,
    %966 = vector.shape_cast %944 : vector<8x1xi1> to vector<8x1xi1>
    %967 = vector.broadcast %966 : vector<8x1xi1> to vector<8x10xi1>
    %968 = arith.select %967, %953, %939 : vector<8x10xi1>, vector<8x10xf32>
    %c0_274 = arith.constant 0 : index
    %c0_275 = arith.constant 0 : index
    %969 = vector.load %arg15[%c0_274, %c0_275] : memref<1x10xf32, #tpu.memory_space<vmem>>, vector<1x10xf32>
    %970 = vector.broadcast %969 : vector<1x10xf32> to vector<8x10xf32>
    %971 = arith.addf %968, %970 : vector<8x10xf32>
    %cst_276 = arith.constant dense<0xFF800000> : vector<8xf32>
    %972 = vector.multi_reduction <maximumf>, %971, %cst_276 [1] : vector<8x10xf32> to vector<8xf32>
    %973 = vector.shape_cast %972 : vector<8xf32> to vector<8x1xf32>
    %974 = vector.broadcast %973 : vector<8x1xf32> to vector<8x10xf32>
    %975 = arith.cmpf oge, %971, %974 : vector<8x10xf32>
    %c10_i32_277 = arith.constant 10 : i32
    %976 = vector.broadcast %c10_i32_277 : i32 to vector<8x10xi32>
    %977 = arith.select %975, %760, %976 : vector<8x10xi1>, vector<8x10xi32>
    %cst_278 = arith.constant dense<2147483647> : vector<8xi32>
    %978 = vector.multi_reduction <minsi>, %977, %cst_278 [1] : vector<8x10xi32> to vector<8xi32>
    %979 = vector.shape_cast %978 : vector<8xi32> to vector<8x1xi32>
    %980 = tpu.iota {dimensions = array<i32: 1>} : vector<8x8xi32>
    %c7_i32 = arith.constant 7 : i32
    %981 = vector.broadcast %c7_i32 : i32 to vector<8x8xi32>
    %982 = arith.cmpi eq, %980, %981 : vector<8x8xi32>
    %c0_i32 = arith.constant 0 : i32
    %983 = vector.shape_cast %979 : vector<8x1xi32> to vector<8x1xi32>
    %984 = vector.broadcast %983 : vector<8x1xi32> to vector<8x8xi32>
    %985 = vector.broadcast %c0_i32 : i32 to vector<8x8xi32>
    %986 = arith.select %982, %984, %985 : vector<8x8xi1>, vector<8x8xi32>
    %c7_279 = arith.constant 7 : index
    %c0_280 = arith.constant 0 : index
    %c0_281 = arith.constant 0 : index
    %987 = vector.load %arg23[%c7_279, %c0_280, %c0_281] : memref<8x8x10xi32, #tpu.memory_space<vmem>>, vector<1x8x10xi32>
    %988 = vector.shape_cast %987 : vector<1x8x10xi32> to vector<8x10xi32>
    %989 = vector.broadcast %979 : vector<8x1xi32> to vector<8x10xi32>
    %990 = arith.cmpi eq, %760, %989 : vector<8x10xi32>
    %c0_i32_282 = arith.constant 0 : i32
    %991 = vector.broadcast %c0_i32_282 : i32 to vector<8x10xi32>
    %992 = arith.select %990, %988, %991 : vector<8x10xi1>, vector<8x10xi32>
    %cst_283 = arith.constant dense<0> : vector<8xi32>
    %993 = vector.multi_reduction <add>, %992, %cst_283 [1] : vector<8x10xi32> to vector<8xi32>
    %994 = vector.shape_cast %993 : vector<8xi32> to vector<8x1xi32>
    %c6_i32 = arith.constant 6 : i32
    %995 = vector.broadcast %c6_i32 : i32 to vector<8x8xi32>
    %996 = arith.cmpi eq, %980, %995 : vector<8x8xi32>
    %997 = vector.shape_cast %994 : vector<8x1xi32> to vector<8x1xi32>
    %998 = vector.broadcast %997 : vector<8x1xi32> to vector<8x8xi32>
    %999 = arith.select %996, %998, %986 : vector<8x8xi1>, vector<8x8xi32>
    %c6_284 = arith.constant 6 : index
    %c0_285 = arith.constant 0 : index
    %c0_286 = arith.constant 0 : index
    %1000 = vector.load %arg23[%c6_284, %c0_285, %c0_286] : memref<8x8x10xi32, #tpu.memory_space<vmem>>, vector<1x8x10xi32>
    %1001 = vector.shape_cast %1000 : vector<1x8x10xi32> to vector<8x10xi32>
    %1002 = vector.broadcast %994 : vector<8x1xi32> to vector<8x10xi32>
    %1003 = arith.cmpi eq, %760, %1002 : vector<8x10xi32>
    %c0_i32_287 = arith.constant 0 : i32
    %1004 = vector.broadcast %c0_i32_287 : i32 to vector<8x10xi32>
    %1005 = arith.select %1003, %1001, %1004 : vector<8x10xi1>, vector<8x10xi32>
    %cst_288 = arith.constant dense<0> : vector<8xi32>
    %1006 = vector.multi_reduction <add>, %1005, %cst_288 [1] : vector<8x10xi32> to vector<8xi32>
    %1007 = vector.shape_cast %1006 : vector<8xi32> to vector<8x1xi32>
    %c5_i32 = arith.constant 5 : i32
    %1008 = vector.broadcast %c5_i32 : i32 to vector<8x8xi32>
    %1009 = arith.cmpi eq, %980, %1008 : vector<8x8xi32>
    %1010 = vector.shape_cast %1007 : vector<8x1xi32> to vector<8x1xi32>
    %1011 = vector.broadcast %1010 : vector<8x1xi32> to vector<8x8xi32>
    %1012 = arith.select %1009, %1011, %999 : vector<8x8xi1>, vector<8x8xi32>
    %c5_289 = arith.constant 5 : index
    %c0_290 = arith.constant 0 : index
    %c0_291 = arith.constant 0 : index
    %1013 = vector.load %arg23[%c5_289, %c0_290, %c0_291] : memref<8x8x10xi32, #tpu.memory_space<vmem>>, vector<1x8x10xi32>
    %1014 = vector.shape_cast %1013 : vector<1x8x10xi32> to vector<8x10xi32>
    %1015 = vector.broadcast %1007 : vector<8x1xi32> to vector<8x10xi32>
    %1016 = arith.cmpi eq, %760, %1015 : vector<8x10xi32>
    %c0_i32_292 = arith.constant 0 : i32
    %1017 = vector.broadcast %c0_i32_292 : i32 to vector<8x10xi32>
    %1018 = arith.select %1016, %1014, %1017 : vector<8x10xi1>, vector<8x10xi32>
    %cst_293 = arith.constant dense<0> : vector<8xi32>
    %1019 = vector.multi_reduction <add>, %1018, %cst_293 [1] : vector<8x10xi32> to vector<8xi32>
    %1020 = vector.shape_cast %1019 : vector<8xi32> to vector<8x1xi32>
    %c4_i32 = arith.constant 4 : i32
    %1021 = vector.broadcast %c4_i32 : i32 to vector<8x8xi32>
    %1022 = arith.cmpi eq, %980, %1021 : vector<8x8xi32>
    %1023 = vector.shape_cast %1020 : vector<8x1xi32> to vector<8x1xi32>
    %1024 = vector.broadcast %1023 : vector<8x1xi32> to vector<8x8xi32>
    %1025 = arith.select %1022, %1024, %1012 : vector<8x8xi1>, vector<8x8xi32>
    %c4_294 = arith.constant 4 : index
    %c0_295 = arith.constant 0 : index
    %c0_296 = arith.constant 0 : index
    %1026 = vector.load %arg23[%c4_294, %c0_295, %c0_296] : memref<8x8x10xi32, #tpu.memory_space<vmem>>, vector<1x8x10xi32>
    %1027 = vector.shape_cast %1026 : vector<1x8x10xi32> to vector<8x10xi32>
    %1028 = vector.broadcast %1020 : vector<8x1xi32> to vector<8x10xi32>
    %1029 = arith.cmpi eq, %760, %1028 : vector<8x10xi32>
    %c0_i32_297 = arith.constant 0 : i32
    %1030 = vector.broadcast %c0_i32_297 : i32 to vector<8x10xi32>
    %1031 = arith.select %1029, %1027, %1030 : vector<8x10xi1>, vector<8x10xi32>
    %cst_298 = arith.constant dense<0> : vector<8xi32>
    %1032 = vector.multi_reduction <add>, %1031, %cst_298 [1] : vector<8x10xi32> to vector<8xi32>
    %1033 = vector.shape_cast %1032 : vector<8xi32> to vector<8x1xi32>
    %c3_i32 = arith.constant 3 : i32
    %1034 = vector.broadcast %c3_i32 : i32 to vector<8x8xi32>
    %1035 = arith.cmpi eq, %980, %1034 : vector<8x8xi32>
    %1036 = vector.shape_cast %1033 : vector<8x1xi32> to vector<8x1xi32>
    %1037 = vector.broadcast %1036 : vector<8x1xi32> to vector<8x8xi32>
    %1038 = arith.select %1035, %1037, %1025 : vector<8x8xi1>, vector<8x8xi32>
    %c3_299 = arith.constant 3 : index
    %c0_300 = arith.constant 0 : index
    %c0_301 = arith.constant 0 : index
    %1039 = vector.load %arg23[%c3_299, %c0_300, %c0_301] : memref<8x8x10xi32, #tpu.memory_space<vmem>>, vector<1x8x10xi32>
    %1040 = vector.shape_cast %1039 : vector<1x8x10xi32> to vector<8x10xi32>
    %1041 = vector.broadcast %1033 : vector<8x1xi32> to vector<8x10xi32>
    %1042 = arith.cmpi eq, %760, %1041 : vector<8x10xi32>
    %c0_i32_302 = arith.constant 0 : i32
    %1043 = vector.broadcast %c0_i32_302 : i32 to vector<8x10xi32>
    %1044 = arith.select %1042, %1040, %1043 : vector<8x10xi1>, vector<8x10xi32>
    %cst_303 = arith.constant dense<0> : vector<8xi32>
    %1045 = vector.multi_reduction <add>, %1044, %cst_303 [1] : vector<8x10xi32> to vector<8xi32>
    %1046 = vector.shape_cast %1045 : vector<8xi32> to vector<8x1xi32>
    %c2_i32 = arith.constant 2 : i32
    %1047 = vector.broadcast %c2_i32 : i32 to vector<8x8xi32>
    %1048 = arith.cmpi eq, %980, %1047 : vector<8x8xi32>
    %1049 = vector.shape_cast %1046 : vector<8x1xi32> to vector<8x1xi32>
    %1050 = vector.broadcast %1049 : vector<8x1xi32> to vector<8x8xi32>
    %1051 = arith.select %1048, %1050, %1038 : vector<8x8xi1>, vector<8x8xi32>
    %c2_304 = arith.constant 2 : index
    %c0_305 = arith.constant 0 : index
    %c0_306 = arith.constant 0 : index
    %1052 = vector.load %arg23[%c2_304, %c0_305, %c0_306] : memref<8x8x10xi32, #tpu.memory_space<vmem>>, vector<1x8x10xi32>
    %1053 = vector.shape_cast %1052 : vector<1x8x10xi32> to vector<8x10xi32>
    %1054 = vector.broadcast %1046 : vector<8x1xi32> to vector<8x10xi32>
    %1055 = arith.cmpi eq, %760, %1054 : vector<8x10xi32>
    %c0_i32_307 = arith.constant 0 : i32
    %1056 = vector.broadcast %c0_i32_307 : i32 to vector<8x10xi32>
    %1057 = arith.select %1055, %1053, %1056 : vector<8x10xi1>, vector<8x10xi32>
    %cst_308 = arith.constant dense<0> : vector<8xi32>
    %1058 = vector.multi_reduction <add>, %1057, %cst_308 [1] : vector<8x10xi32> to vector<8xi32>
    %1059 = vector.shape_cast %1058 : vector<8xi32> to vector<8x1xi32>
    %c1_i32 = arith.constant 1 : i32
    %1060 = vector.broadcast %c1_i32 : i32 to vector<8x8xi32>
    %1061 = arith.cmpi eq, %980, %1060 : vector<8x8xi32>
    %1062 = vector.shape_cast %1059 : vector<8x1xi32> to vector<8x1xi32>
    %1063 = vector.broadcast %1062 : vector<8x1xi32> to vector<8x8xi32>
    %1064 = arith.select %1061, %1063, %1051 : vector<8x8xi1>, vector<8x8xi32>
    %c1_309 = arith.constant 1 : index
    %c0_310 = arith.constant 0 : index
    %c0_311 = arith.constant 0 : index
    %1065 = vector.load %arg23[%c1_309, %c0_310, %c0_311] : memref<8x8x10xi32, #tpu.memory_space<vmem>>, vector<1x8x10xi32>
    %1066 = vector.shape_cast %1065 : vector<1x8x10xi32> to vector<8x10xi32>
    %1067 = vector.broadcast %1059 : vector<8x1xi32> to vector<8x10xi32>
    %1068 = arith.cmpi eq, %760, %1067 : vector<8x10xi32>
    %c0_i32_312 = arith.constant 0 : i32
    %1069 = vector.broadcast %c0_i32_312 : i32 to vector<8x10xi32>
    %1070 = arith.select %1068, %1066, %1069 : vector<8x10xi1>, vector<8x10xi32>
    %cst_313 = arith.constant dense<0> : vector<8xi32>
    %1071 = vector.multi_reduction <add>, %1070, %cst_313 [1] : vector<8x10xi32> to vector<8xi32>
    %1072 = vector.shape_cast %1071 : vector<8xi32> to vector<8x1xi32>
    %c0_i32_314 = arith.constant 0 : i32
    %1073 = vector.broadcast %c0_i32_314 : i32 to vector<8x8xi32>
    %1074 = arith.cmpi eq, %980, %1073 : vector<8x8xi32>
    %1075 = vector.shape_cast %1072 : vector<8x1xi32> to vector<8x1xi32>
    %1076 = vector.broadcast %1075 : vector<8x1xi32> to vector<8x8xi32>
    %1077 = arith.select %1074, %1076, %1064 : vector<8x8xi1>, vector<8x8xi32>
    %c0_315 = arith.constant 0 : index
    %c0_316 = arith.constant 0 : index
    %1078 = vector.load %arg18[%c0_315, %c0_316] : memref<8x8xi32, #tpu.memory_space<vmem>>, vector<8x8xi32>
    tpu.vector_store %arg18[%c0_315, %c0_316], %1077 {strides = array<i32>} : memref<8x8xi32, #tpu.memory_space<vmem>>, vector<8x8xi32>,
    return
  }
}

</mosaic_0001>

<bundles_post_ra>
// kernel: _ner_forward_impl.1
= control target key start
LH: loop header
LB: loop body
LE: loop exit
PB: predicated region body
PF: predicated region fallthrough
CT: control target
= control target key end

     0   :  { %s12184_s0 = inlined_call_operand.vmem [shape: f32[64,768], index: 0, kind: input, shape index: {}]   ;;  %s12185_s1 = inlined_call_operand.vmem [shape: f32[8,8,1], index: 1, kind: input, shape index: {}]   ;;  %s12186_s2 = inlined_call_operand.hbm [shape: bf16[768,512], index: 2, kind: input, shape index: {}]   ;;  %s12187_s3 = inlined_call_operand.vmem [shape: f32[1,512], index: 3, kind: input, shape index: {}]   ;;  %s12188_s4 = inlined_call_operand.vmem [shape: bf16[64,256], index: 4, kind: input, shape index: {}]   ;;  %s12189_s5 = inlined_call_operand.vmem [shape: bf16[64,256], index: 5, kind: input, shape index: {}]   ;;  %s12190_s6 = inlined_call_operand.vmem [shape: bf16[64,80], index: 6, kind: input, shape index: {}]   ;;  %s12191_s7 = inlined_call_operand.vmem [shape: bf16[64,80], index: 7, kind: input, shape index: {}]   ;;  %s12192_s8 = inlined_call_operand.vmem [shape: bf16[20,80], index: 8, kind: input, shape index: {}]   ;;  %s12193_s9 = inlined_call_operand.vmem [shape: f32[1,80], index: 9, kind: input, shape index: {}]   ;;  %s12194_s10 = inlined_call_operand.vmem [shape: f32[1,20], index: 10, kind: input, shape index: {}]   ;;  %s12195_s11 = inlined_call_operand.vmem [shape: f32[1,20], index: 11, kind: input, shape index: {}]   ;;  %s12196_s12 = inlined_call_operand.vmem [shape: bf16[20,10], index: 12, kind: input, shape index: {}]   ;;  %s12197_s13 = inlined_call_operand.vmem [shape: f32[1,10], index: 13, kind: input, shape index: {}]   ;;  %s12198_s14 = inlined_call_operand.vmem [shape: f32[1,10], index: 14, kind: input, shape index: {}]   ;;  %s12199_s15 = inlined_call_operand.vmem [shape: f32[1,10], index: 15, kind: input, shape index: {}]   ;;  %s12200_s16 = inlined_call_operand.vmem [shape: f32[10,10], index: 16, kind: input, shape index: {}]   ;;  %s12201_s17 = inlined_call_operand.vmem [shape: f32[64,10], index: 17, kind: output, shape index: {0}]   ;;  %s12202_s18 = inlined_call_operand.vmem [shape: s32[8,8], index: 18, kind: output, shape index: {1}]  }
   0x1   :  { %12214 = sst [smem:[#allocation44_spill]] %s12184_s0 }
   0x2   :  { %12215 = sst [smem:[#allocation45_spill]] %s12185_s1 }
   0x3   :  { %12216 = sst [smem:[#allocation46_spill]] %s12186_s2 }
   0x4   :  { %24 = vsyncpa [#allocation8], 0  ;;  %s12217_s29 = sld [smem:[#allocation46_spill]]  ;;  %s8942_s0 = smov [#allocation7]  }
   0x5   :  { %s35_s19 = sshll.u32 %s8942_s0, 4  ;;  %s8943_s1 = smov 256   ;;  %s36_s19 = int_to_ptr.vmem [resolvable:$true] %s35_s19 }
   0x6   :  { %s8944_s20 = smov 16  }
   0xa   :  { %s33_s30 = sshll.u32 %s12217_s29, 4  ;;  %s34_s30 = int_to_ptr.hbm [resolvable:$true] %s33_s30 }
   0xb   :  { %41 = dma.hbm_to_vmem [thread:$0]  %s34_s30, 24576, %s36_s19, [#allocation8], %s8943_s1, %s8943_s1, %s8944_s20  }
   0xc   :  { %8940 = dma.done.wait [#allocation8], 24576  }
   0xd   :  { %8941 = vsyncadd [#allocation8], 4294942720  ;;  %v7485_v0 = vld [vmem:[#allocation7 + $0xe0] sm:$0xf]  ;;  %v8367_v1 = vld [vmem:[#allocation7 + $0xec] sm:$0xf0] }
   0xe   :  { %v7741_v2 = vld [vmem:[#allocation7 + $0x2e0] sm:$0xf]  ;;  %v7486_v3 = vor.u32 %v8367_v1, %v7485_v0  ;;  %v8431_v4 = vld [vmem:[#allocation7 + $0x2ec] sm:$0xf0]  ;;  %s12218_s2 = sld [smem:[#allocation44_spill]]  ;;  %vm2095_vm12 = vcmask 523264  }
   0xf   :  { %v7869_v5 = vld [vmem:[#allocation7 + $0x3e0] sm:$0xf]  ;;  %v8463_v6 = vld [vmem:[#allocation7 + $0x3ec] sm:$0xf0]  ;;  %v7742_v7 = vor.u32 %v8431_v4, %v7741_v2  ;;  %s8948_s22 = smov 20   ;;  %s8950_s23 = smov 68  }
  0x10   :  { %v7870_v8 = vor.u32 %v8463_v6, %v7869_v5  ;;  %v7469_v9 = vld [vmem:[#allocation7 + $0xc0] sm:$0xf]  ;;  %v8363_v10 = vld [vmem:[#allocation7 + $0xcc] sm:$0xf0]  ;;  %1309 = vmatpush.bf16.msra.mxu0 %v7486_v3  ;;  %8555 = vmatpush.bf16.msra.mxu1 %v7486_v3 }
  0x11   :  { %v7725_v11 = vld [vmem:[#allocation7 + $0x2c0] sm:$0xf]  ;;  %v7470_v12 = vor.u32 %v8363_v10, %v7469_v9  ;;  %v8427_v13 = vld [vmem:[#allocation7 + $0x2cc] sm:$0xf0]  ;;  %1367 = vmatpush.bf16.msra.mxu2 %v7742_v7  ;;  %v8365_v7 = vld [vmem:[#allocation7 + $0xe4] sm:$0xf] }
  0x12   :  { %v7853_v14 = vld [vmem:[#allocation7 + $0x3c0] sm:$0xf]  ;;  %v8459_v15 = vld [vmem:[#allocation7 + $0x3cc] sm:$0xf0]  ;;  %1396 = vmatpush.bf16.msra.mxu3 %v7870_v8  ;;  %v7726_v16 = vor.u32 %v8427_v13, %v7725_v11  ;;  %v7487_v8 = vld [vmem:[#allocation7 + $0xf0] sm:$0xf0] }
  0x13   :  { %v7854_v17 = vor.u32 %v8459_v15, %v7853_v14  ;;  %v7453_v18 = vld [vmem:[#allocation7 + $0xa0] sm:$0xf]  ;;  %v8359_v19 = vld [vmem:[#allocation7 + $0xac] sm:$0xf0] }
  0x14   :  { %v7709_v20 = vld [vmem:[#allocation7 + $0x2a0] sm:$0xf]  ;;  %v8423_v21 = vld [vmem:[#allocation7 + $0x2ac] sm:$0xf0]  ;;  %1310 = vmatpush.bf16.msra.mxu0 %v7470_v12  ;;  %8556 = vmatpush.bf16.msra.mxu1 %v7470_v12  ;;  %v7454_v24 = vor.u32 %v8359_v19, %v7453_v18  ;;  %v78_v18 = vld [vmem:[%s12218_s2 + $0x18] sm:$0xff] }
  0x15   :  { %v7837_v22 = vld [vmem:[#allocation7 + $0x3a0] sm:$0xf]  ;;  %v8455_v23 = vld [vmem:[#allocation7 + $0x3ac] sm:$0xf0]  ;;  %1368 = vmatpush.bf16.msra.mxu2 %v7726_v16  ;;  %v7710_v25 = vor.u32 %v8423_v21, %v7709_v20  ;;  %v84_v19 = vld [vmem:[%s12218_s2 + $0x48] sm:$0xff]  ;;  %v7490_v20 = vor.u32 %v8365_v7, %v7487_v8 }
  0x16   :  { %1397 = vmatpush.bf16.msra.mxu3 %v7854_v17  ;;  %v7838_v26 = vor.u32 %v8455_v23, %v7837_v22  ;;  %v7437_v27 = vld [vmem:[#allocation7 + $0x80] sm:$0xf]  ;;  %v8355_v28 = vld [vmem:[#allocation7 + $0x8c] sm:$0xf0]  ;;  %v7567_v7 = vld [vmem:[#allocation7 + $0x190] sm:$0xf0] }
  0x17   :  { %v7693_v29 = vld [vmem:[#allocation7 + $0x280] sm:$0xf]  ;;  %v8419_v30 = vld [vmem:[#allocation7 + $0x28c] sm:$0xf0]  ;;  %v7438_v33 = vor.u32 %v8355_v28, %v7437_v27  ;;  %v8361_v28 = vld [vmem:[#allocation7 + $0xc4] sm:$0xf] }
  0x18   :  { %v7821_v31 = vld [vmem:[#allocation7 + $0x380] sm:$0xf]  ;;  %v8451_v32 = vld [vmem:[#allocation7 + $0x38c] sm:$0xf0]  ;;  %1311 = vmatpush.bf16.msra.mxu0 %v7454_v24  ;;  %8557 = vmatpush.bf16.msra.mxu1 %v7454_v24  ;;  %v7694_v34 = vor.u32 %v8419_v30, %v7693_v29  ;;  %v7471_v29 = vld [vmem:[#allocation7 + $0xd0] sm:$0xf0] }
  0x19   :  { %1369 = vmatpush.bf16.msra.mxu2 %v7710_v25  ;;  %v7822_v35 = vor.u32 %v8451_v32, %v7821_v31  ;;  %v7421_v36 = vld [vmem:[#allocation7 + $0x60] sm:$0xf]  ;;  %v8351_v37 = vld [vmem:[#allocation7 + $0x6c] sm:$0xf0]  ;;  %v9079_v31 = vpack.c.bf16 %v84_v19, %v78_v18  ;;  %v8397_v32 = vld [vmem:[#allocation7 + $0x1e4] sm:$0xf] }
  0x1a   :  { %1398 = vmatpush.bf16.msra.mxu3 %v7838_v26  ;;  %v7677_v38 = vld [vmem:[#allocation7 + $0x260] sm:$0xf]  ;;  %v8415_v39 = vld [vmem:[#allocation7 + $0x26c] sm:$0xf0]  ;;  %v7422_v42 = vor.u32 %v8351_v37, %v7421_v36 }
  0x1b   :  { %v7805_v40 = vld [vmem:[#allocation7 + $0x360] sm:$0xf]  ;;  %v8447_v41 = vld [vmem:[#allocation7 + $0x36c] sm:$0xf0]  ;;  %v7678_v43 = vor.u32 %v8415_v39, %v7677_v38  ;;  %v7474_v39 = vor.u32 %v8361_v28, %v7471_v29 }
  0x1c   :  { %1312 = vmatpush.bf16.msra.mxu0 %v7438_v33  ;;  %8558 = vmatpush.bf16.msra.mxu1 %v7438_v33  ;;  %v7806_v44 = vor.u32 %v8447_v41, %v7805_v40  ;;  %v7405_v45 = vld [vmem:[#allocation7 + $0x40] sm:$0xf]  ;;  %v8347_v46 = vld [vmem:[#allocation7 + $0x4c] sm:$0xf0]  ;;  %v7615_v33 = vld [vmem:[#allocation7 + $0x1f0] sm:$0xf0] }
  0x1d   :  { %1370 = vmatpush.bf16.msra.mxu2 %v7694_v34  ;;  %v7661_v47 = vld [vmem:[#allocation7 + $0x240] sm:$0xf]  ;;  %v8411_v48 = vld [vmem:[#allocation7 + $0x24c] sm:$0xf0]  ;;  %v7406_v51 = vor.u32 %v8347_v46, %v7405_v45  ;;  %v7599_v45 = vld [vmem:[#allocation7 + $0x1d0] sm:$0xf0] }
  0x1e   :  { %1399 = vmatpush.bf16.msra.mxu3 %v7822_v35  ;;  %v7789_v49 = vld [vmem:[#allocation7 + $0x340] sm:$0xf]  ;;  %v8443_v50 = vld [vmem:[#allocation7 + $0x34c] sm:$0xf0]  ;;  %v7662_v52 = vor.u32 %v8411_v48, %v7661_v47  ;;  %v7618_v35 = vor.u32 %v8397_v32, %v7615_v33 }
  0x1f   :  { %v7790_v53 = vor.u32 %v8443_v50, %v7789_v49  ;;  %v7389_v54 = vld [vmem:[#allocation7 + $0x20] sm:$0xf]  ;;  %v8343_v55 = vld [vmem:[#allocation7 + $0x2c] sm:$0xf0] }
  0x20   :  { %1313 = vmatpush.bf16.msra.mxu0 %v7422_v42  ;;  %8559 = vmatpush.bf16.msra.mxu1 %v7422_v42  ;;  %v7645_v56 = vld [vmem:[#allocation7 + $0x220] sm:$0xf]  ;;  %v8407_v57 = vld [vmem:[#allocation7 + $0x22c] sm:$0xf0]  ;;  %v7390_v60 = vor.u32 %v8343_v55, %v7389_v54  ;;  %v8357_v42 = vld [vmem:[#allocation7 + $0xa4] sm:$0xf] }
  0x21   :  { %1371 = vmatpush.bf16.msra.mxu2 %v7678_v43  ;;  %v7773_v58 = vld [vmem:[#allocation7 + $0x320] sm:$0xf]  ;;  %v8439_v59 = vld [vmem:[#allocation7 + $0x32c] sm:$0xf0]  ;;  %v7646_v0 = vor.u32 %v8407_v57, %v7645_v56  ;;  %v7455_v43 = vld [vmem:[#allocation7 + $0xb0] sm:$0xf0] }
  0x22   :  { %1400 = vmatpush.bf16.msra.mxu3 %v7806_v44  ;;  %v7373_v61 = vld [vmem:[#allocation7] sm:$0xf]  ;;  %v8339_v62 = vld [vmem:[#allocation7 + $0xc] sm:$0xf0]  ;;  %v7774_v1 = vor.u32 %v8439_v59, %v7773_v58  ;;  %v8393_v44 = vld [vmem:[#allocation7 + $0x1c4] sm:$0xf] }
  0x23   :  { %v7629_v63 = vld [vmem:[#allocation7 + $0x200] sm:$0xf]  ;;  %v8403_v2 = vld [vmem:[#allocation7 + $0x20c] sm:$0xf0]  ;;  %v7374_v11 = vor.u32 %v8339_v62, %v7373_v61  ;;  %v7602_v47 = vor.u32 %v8393_v44, %v7599_v45  ;;  %v8353_v54 = vld [vmem:[#allocation7 + $0x84] sm:$0xf] }
  0x24   :  { %1314 = vmatpush.bf16.msra.mxu0 %v7406_v51  ;;  %8560 = vmatpush.bf16.msra.mxu1 %v7406_v51  ;;  %v7757_v3 = vld [vmem:[#allocation7 + $0x300] sm:$0xf]  ;;  %v8435_v4 = vld [vmem:[#allocation7 + $0x30c] sm:$0xf0]  ;;  %v7630_v15 = vor.u32 %v8403_v2, %v7629_v63  ;;  %v7439_v55 = vld [vmem:[#allocation7 + $0x90] sm:$0xf0] }
  0x25   :  { %1372 = vmatpush.bf16.msra.mxu2 %v7662_v52  ;;  %v75_v5 = vld [vmem:[%s12218_s2] sm:$0xff]  ;;  %v81_v6 = vld [vmem:[%s12218_s2 + $0x30] sm:$0xff]  ;;  %v7758_v16 = vor.u32 %v8435_v4, %v7757_v3  ;;  %v7458_v52 = vor.u32 %v8357_v42, %v7455_v43 }
  0x26   :  { %1401 = vmatpush.bf16.msra.mxu3 %v7790_v53  ;;  %v7613_v9 = vld [vmem:[#allocation7 + $0x1e0] sm:$0xf]  ;;  %v8399_v10 = vld [vmem:[#allocation7 + $0x1ec] sm:$0xf0]  ;;  %v9073_v25 = vpack.c.bf16 %v81_v6, %v75_v5  ;;  %v8389_v56 = vld [vmem:[#allocation7 + $0x1a4] sm:$0xf]  ;;  %v7442_v5 = vor.u32 %v8353_v54, %v7439_v55 }
  0x27   :  { %v99_v12 = vld [vmem:[%s12218_s2 + $0xc0] sm:$0xff]  ;;  %v105_v13 = vld [vmem:[%s12218_s2 + $0xf0] sm:$0xff]  ;;  %v7614_v21 = vor.u32 %v8399_v10, %v7613_v9  ;;  %v90_v10 = vld [vmem:[%s12218_s2 + $0x78] sm:$0xff] }
  0x28   :  { %1315 = vmatpush.bf16.msra.mxu0 %v7390_v60  ;;  %8561 = vmatpush.bf16.msra.mxu1 %v7390_v60  ;;  %v77_v14 = vld [vmem:[%s12218_s2 + $0x10] sm:$0xff]  ;;  %v83_v17 = vld [vmem:[%s12218_s2 + $0x40] sm:$0xff]  ;;  %v9075_v26 = vpack.c.bf16 %v105_v13, %v99_v12 }
  0x29   :  { %1373 = vmatpush.bf16.msra.mxu2 %v7646_v0  ;;  %v7997_v22 = vld [vmem:[#allocation7 + $0x4e0] sm:$0xf]  ;;  %v8495_v23 = vld [vmem:[#allocation7 + $0x4ec] sm:$0xf0]  ;;  %v9077_v30 = vpack.c.bf16 %v83_v17, %v77_v14  ;;  %v7583_v57 = vld [vmem:[#allocation7 + $0x1b0] sm:$0xf0] }
  0x2a   :  { %1402 = vmatpush.bf16.msra.mxu3 %v7774_v1  ;;  %v7597_v24 = vld [vmem:[#allocation7 + $0x1c0] sm:$0xf]  ;;  %v8395_v27 = vld [vmem:[#allocation7 + $0x1cc] sm:$0xf0]  ;;  %v7998_v34 = vor.u32 %v8495_v23, %v7997_v22  ;;  %v7586_v62 = vor.u32 %v8389_v56, %v7583_v57  ;;  %v8385_v6 = vld [vmem:[#allocation7 + $0x184] sm:$0xf] }
  0x2b   :  { %v7598_v36 = vor.u32 %v8395_v27, %v7597_v24  ;;  %v7981_v37 = vld [vmem:[#allocation7 + $0x4c0] sm:$0xf]  ;;  %v8491_v38 = vld [vmem:[#allocation7 + $0x4cc] sm:$0xf0]  ;;  %v7423_v12 = vld [vmem:[#allocation7 + $0x70] sm:$0xf0] }
  0x2c   :  { %1316 = vmatpush.bf16.msra.mxu0 %v7374_v11  ;;  %8562 = vmatpush.bf16.msra.mxu1 %v7374_v11  ;;  %v7581_v40 = vld [vmem:[#allocation7 + $0x1a0] sm:$0xf]  ;;  %v8391_v41 = vld [vmem:[#allocation7 + $0x1ac] sm:$0xf0]  ;;  %v7982_v46 = vor.u32 %v8491_v38, %v7981_v37  ;;  %v8349_v11 = vld [vmem:[#allocation7 + $0x64] sm:$0xf] }
  0x2d   :  { %1374 = vmatpush.bf16.msra.mxu2 %v7630_v15  ;;  %v7582_v48 = vor.u32 %v8391_v41, %v7581_v40  ;;  %v7965_v49 = vld [vmem:[#allocation7 + $0x4a0] sm:$0xf]  ;;  %v8487_v50 = vld [vmem:[#allocation7 + $0x4ac] sm:$0xf0]  ;;  %v96_v14 = vld [vmem:[%s12218_s2 + $0xa8] sm:$0xff]  ;;  %v7570_v15 = vor.u32 %v8385_v6, %v7567_v7 }
  0x2e   :  { %1403 = vmatpush.bf16.msra.mxu3 %v7758_v16  ;;  %v7565_v51 = vld [vmem:[#allocation7 + $0x180] sm:$0xf]  ;;  %v8387_v53 = vld [vmem:[#allocation7 + $0x18c] sm:$0xf0]  ;;  %v7966_v58 = vor.u32 %v8487_v50, %v7965_v49  ;;  %v8345_v24 = vld [vmem:[#allocation7 + $0x44] sm:$0xf]  ;;  %v9115_v29 = vpack.c.bf16 %v96_v14, %v90_v10 }
  0x2f   :  { %1317 = vmatmul.bf16.vlgmr.msra.gmra.mxu0 %v9073_v25  ;;  %1327 = vmatmul.bf16.vlgmr.msra.gmra.mxu1 %v9075_v26  ;;  %v7949_v59 = vld [vmem:[#allocation7 + $0x480] sm:$0xf]  ;;  %v8483_v60 = vld [vmem:[#allocation7 + $0x48c] sm:$0xf0]  ;;  %v7566_v63 = vor.u32 %v8387_v53, %v7565_v51  ;;  %v7407_v27 = vld [vmem:[#allocation7 + $0x50] sm:$0xf0] }
  0x30   :  { %1338 = vmatpush.bf16.msrb.mxu1 %v7614_v21  ;;  %1375 = vmatmul.bf16.vlgmr.msra.gmra.mxu2 %v9077_v30  ;;  %v7549_v61 = vld [vmem:[#allocation7 + $0x160] sm:$0xf]  ;;  %v93_v1 = vld [vmem:[%s12218_s2 + $0x90] sm:$0xff]  ;;  %v7950_v13 = vor.u32 %v8483_v60, %v7949_v59  ;;  %v8381_v41 = vld [vmem:[#allocation7 + $0x164] sm:$0xf] }
  0x31   :  { %1483 = vmatpush.bf16.msrb.mxu2 %v7490_v20  ;;  %1404 = vmatmul.bf16.vlgmr.msra.gmra.mxu3 %v9079_v31  ;;  %v87_v0 = vld [vmem:[%s12218_s2 + $0x60] sm:$0xff]  ;;  %v117_v3 = vld [vmem:[%s12218_s2 + $0x150] sm:$0xff]  ;;  %v7426_v20 = vor.u32 %v8349_v11, %v7423_v12  ;;  %v102_v10 = vld [vmem:[%s12218_s2 + $0xd8] sm:$0xff] }
  0x32   :  { %1425 = vmatpush.bf16.msrb.mxu0 %v7998_v34  ;;  %1512 = vmatpush.bf16.msrb.mxu3 %v7618_v35  ;;  %v111_v2 = vld [vmem:[%s12218_s2 + $0x120] sm:$0xff]  ;;  %v8383_v4 = vld [vmem:[#allocation7 + $0x16c] sm:$0xf0]  ;;  %v9109_v21 = vpack.c.bf16 %v93_v1, %v87_v0  ;;  %v7551_v42 = vld [vmem:[#allocation7 + $0x170] sm:$0xf0] }
  0x33   :  { %v89_v8 = vld [vmem:[%s12218_s2 + $0x70] sm:$0xff]  ;;  %v95_v9 = vld [vmem:[%s12218_s2 + $0xa0] sm:$0xff]  ;;  %v7550_v16 = vor.u32 %v8383_v4, %v7549_v61  ;;  %v9111_v22 = vpack.c.bf16 %v117_v3, %v111_v2  ;;  %v76_v1 = vld [vmem:[%s12218_s2 + $0x8] sm:$0xff] }
  0x34   :  { %1339 = vmatpush.bf16.msrb.mxu1 %v7598_v36  ;;  %v7933_v17 = vld [vmem:[#allocation7 + $0x460] sm:$0xf]  ;;  %v8479_v18 = vld [vmem:[#allocation7 + $0x46c] sm:$0xf0]  ;;  %v9113_v28 = vpack.c.bf16 %v95_v9, %v89_v8  ;;  %v7410_v36 = vor.u32 %v8345_v24, %v7407_v27  ;;  %v8341_v45 = vld [vmem:[#allocation7 + $0x24] sm:$0xf] }
  0x35   :  { %1484 = vmatpush.bf16.msrb.mxu2 %v7474_v39  ;;  %v7533_v19 = vld [vmem:[#allocation7 + $0x140] sm:$0xf]  ;;  %v8379_v23 = vld [vmem:[#allocation7 + $0x14c] sm:$0xf0]  ;;  %v7934_v32 = vor.u32 %v8479_v18, %v7933_v17  ;;  %v8377_v51 = vld [vmem:[#allocation7 + $0x144] sm:$0xf] }
  0x36   :  { %1426 = vmatpush.bf16.msrb.mxu0 %v7982_v46  ;;  %1513 = vmatpush.bf16.msrb.mxu3 %v7602_v47  ;;  %v7534_v33 = vor.u32 %v8379_v23, %v7533_v19  ;;  %v7917_v34 = vld [vmem:[#allocation7 + $0x440] sm:$0xf]  ;;  %v8475_v35 = vld [vmem:[#allocation7 + $0x44c] sm:$0xf0]  ;;  %v7391_v46 = vld [vmem:[#allocation7 + $0x30] sm:$0xf0]  ;;  %v7554_v47 = vor.u32 %v8381_v41, %v7551_v42 }
  0x37   :  { %v7517_v37 = vld [vmem:[#allocation7 + $0x120] sm:$0xf]  ;;  %v8375_v38 = vld [vmem:[#allocation7 + $0x12c] sm:$0xf0]  ;;  %v7918_v43 = vor.u32 %v8475_v35, %v7917_v34  ;;  %v7394_v50 = vor.u32 %v8341_v45, %v7391_v46  ;;  %v8337_v55 = vld [vmem:[#allocation7 + $0x4] sm:$0xf] }
  0x38   :  { %1340 = vmatpush.bf16.msrb.mxu1 %v7582_v48  ;;  %v7901_v39 = vld [vmem:[#allocation7 + $0x420] sm:$0xf]  ;;  %v8471_v40 = vld [vmem:[#allocation7 + $0x42c] sm:$0xf0]  ;;  %v7518_v48 = vor.u32 %v8375_v38, %v7517_v37  ;;  %v7375_v56 = vld [vmem:[#allocation7 + $0x10] sm:$0xf0] }
  0x39   :  { %1485 = vmatpush.bf16.msrb.mxu2 %v7458_v52  ;;  %v7501_v44 = vld [vmem:[#allocation7 + $0x100] sm:$0xf]  ;;  %v8371_v49 = vld [vmem:[#allocation7 + $0x10c] sm:$0xf0]  ;;  %v7535_v52 = vld [vmem:[#allocation7 + $0x150] sm:$0xf0]  ;;  %v7902_v60 = vor.u32 %v8471_v40, %v7901_v39  ;;  %v7378_v0 = vor.u32 %v8337_v55, %v7375_v56 }
  0x3a   :  { %1427 = vmatpush.bf16.msrb.mxu0 %v7966_v58  ;;  %1514 = vmatpush.bf16.msrb.mxu3 %v7586_v62  ;;  %v8125_v53 = vld [vmem:[#allocation7 + $0x5e0] sm:$0xf]  ;;  %v7538_v54 = vor.u32 %v8377_v51, %v7535_v52  ;;  %v8527_v57 = vld [vmem:[#allocation7 + $0x5ec] sm:$0xf0]  ;;  %v8373_v58 = vld [vmem:[#allocation7 + $0x124] sm:$0xf]  ;;  %v7502_v61 = vor.u32 %v8371_v49, %v7501_v44 }
  0x3b   :  { %v7519_v59 = vld [vmem:[#allocation7 + $0x130] sm:$0xf0]  ;;  %v7885_v62 = vld [vmem:[#allocation7 + $0x400] sm:$0xf]  ;;  %v82_v2 = vld [vmem:[%s12218_s2 + $0x38] sm:$0xff]  ;;  %v8126_v4 = vor.u32 %v8527_v57, %v8125_v53 }
  0x3c   :  { %1341 = vmatpush.bf16.msrb.mxu1 %v7566_v63  ;;  %v8467_v63 = vld [vmem:[#allocation7 + $0x40c] sm:$0xf0]  ;;  %v107_v6 = vld [vmem:[%s12218_s2 + $0x100] sm:$0xff]  ;;  %v7503_v8 = vld [vmem:[#allocation7 + $0x110] sm:$0xf0] }
  0x3d   :  { %1486 = vmatpush.bf16.msrb.mxu2 %v7442_v5  ;;  %v101_v3 = vld [vmem:[%s12218_s2 + $0xd0] sm:$0xff]  ;;  %v7522_v5 = vor.u32 %v8373_v58, %v7519_v59  ;;  %v8369_v7 = vld [vmem:[#allocation7 + $0x104] sm:$0xf]  ;;  %v7886_v9 = vor.u32 %v8467_v63, %v7885_v62  ;;  %v108_v11 = vld [vmem:[%s12218_s2 + $0x108] sm:$0xff] }
  0x3e   :  { %1428 = vmatpush.bf16.msrb.mxu0 %v7950_v13  ;;  %1515 = vmatpush.bf16.msrb.mxu3 %v7570_v15  ;;  %v79_v12 = vld [vmem:[%s12218_s2 + $0x20] sm:$0xff]  ;;  %v85_v13 = vld [vmem:[%s12218_s2 + $0x50] sm:$0xff]  ;;  %v7506_v17 = vor.u32 %v8369_v7, %v7503_v8  ;;  %v9147_v18 = vpack.c.bf16 %v107_v6, %v101_v3  ;;  %v9149_v19 = vpack.c.bf16 %v108_v11, %v102_v10  ;;  %v88_v55 = vld [vmem:[%s12218_s2 + $0x68] sm:$0xff] }
  0x3f   :  { %1322 = vmatmul.bf16.gmra.mxu0 %v9109_v21  ;;  %1332 = vmatmul.bf16.gmra.mxu1 %v9111_v22  ;;  %v8109_v14 = vld [vmem:[#allocation7 + $0x5c0] sm:$0xf]  ;;  %v8523_v15 = vld [vmem:[#allocation7 + $0x5cc] sm:$0xf0]  ;;  %v7999_v37 = vld [vmem:[#allocation7 + $0x4f0] sm:$0xf0] }
  0x40   :  { %1342 = vmatpush.bf16.msrb.mxu1 %v7550_v16  ;;  %1380 = vmatmul.bf16.gmra.mxu2 %v9113_v28  ;;  %v9145_v16 = vpack.c.bf16 %v82_v2, %v76_v1  ;;  %v8110_v23 = vor.u32 %v8523_v15, %v8109_v14  ;;  %v8093_v24 = vld [vmem:[#allocation7 + $0x5a0] sm:$0xf]  ;;  %v8519_v27 = vld [vmem:[#allocation7 + $0x5ac] sm:$0xf0]  ;;  %v8425_v41 = vld [vmem:[#allocation7 + $0x2c4] sm:$0xf] }
  0x41   :  { %1487 = vmatpush.bf16.msrb.mxu2 %v7426_v20  ;;  %1409 = vmatmul.bf16.gmra.mxu3 %v9115_v29  ;;  %v9151_v20 = vpack.c.bf16 %v85_v13, %v79_v12  ;;  %v8094_v35 = vor.u32 %v8519_v27, %v8093_v24  ;;  %v8077_v38 = vld [vmem:[#allocation7 + $0x580] sm:$0xf]  ;;  %v8515_v40 = vld [vmem:[#allocation7 + $0x58c] sm:$0xf0]  ;;  %v7727_v42 = vld [vmem:[#allocation7 + $0x2d0] sm:$0xf0] }
  0x42   :  { %1429 = vmatpush.bf16.msrb.mxu0 %v7934_v32  ;;  %1516 = vmatpush.bf16.msrb.mxu3 %v7554_v47  ;;  %v8429_v32 = vld [vmem:[#allocation7 + $0x2e4] sm:$0xf]  ;;  %v7983_v45 = vld [vmem:[#allocation7 + $0x4d0] sm:$0xf0]  ;;  %v8078_v49 = vor.u32 %v8515_v40, %v8077_v38  ;;  %v8061_v51 = vld [vmem:[#allocation7 + $0x560] sm:$0xf] }
  0x43   :  { %v8489_v44 = vld [vmem:[#allocation7 + $0x4c4] sm:$0xf]  ;;  %v8511_v52 = vld [vmem:[#allocation7 + $0x56c] sm:$0xf0]  ;;  %v94_v56 = vld [vmem:[%s12218_s2 + $0x98] sm:$0xff] }
  0x44   :  { %1343 = vmatpush.bf16.msrb.mxu1 %v7534_v33  ;;  %v7743_v33 = vld [vmem:[#allocation7 + $0x2f0] sm:$0xf0]  ;;  %v8421_v46 = vld [vmem:[#allocation7 + $0x2a4] sm:$0xf]  ;;  %v7986_v47 = vor.u32 %v8489_v44, %v7983_v45  ;;  %v114_v59 = vld [vmem:[%s12218_s2 + $0x138] sm:$0xff]  ;;  %v9181_v1 = vpack.c.bf16 %v94_v56, %v88_v55 }
  0x45   :  { %1488 = vmatpush.bf16.msrb.mxu2 %v7410_v36  ;;  %v7746_v34 = vor.u32 %v8429_v32, %v7743_v33  ;;  %v8493_v36 = vld [vmem:[#allocation7 + $0x4e4] sm:$0xf]  ;;  %v113_v57 = vld [vmem:[%s12218_s2 + $0x130] sm:$0xff]  ;;  %v8045_v10 = vld [vmem:[#allocation7 + $0x540] sm:$0xf] }
  0x46   :  { %1430 = vmatpush.bf16.msrb.mxu0 %v7918_v43  ;;  %1517 = vmatpush.bf16.msrb.mxu3 %v7538_v54  ;;  %v8002_v39 = vor.u32 %v8493_v36, %v7999_v37  ;;  %v7730_v43 = vor.u32 %v8425_v41, %v7727_v42  ;;  %v8417_v53 = vld [vmem:[#allocation7 + $0x284] sm:$0xf]  ;;  %v7695_v54 = vld [vmem:[#allocation7 + $0x290] sm:$0xf0]  ;;  %v8507_v12 = vld [vmem:[#allocation7 + $0x54c] sm:$0xf0] }
  0x47   :  { %v119_v58 = vld [vmem:[%s12218_s2 + $0x160] sm:$0xff]  ;;  %v97_v63 = vld [vmem:[%s12218_s2 + $0xb0] sm:$0xff]  ;;  %v8046_v15 = vor.u32 %v8507_v12, %v8045_v10  ;;  %v118_v12 = vld [vmem:[%s12218_s2 + $0x158] sm:$0xff] }
  0x48   :  { %1344 = vmatpush.bf16.msrb.mxu1 %v7518_v48  ;;  %v7711_v48 = vld [vmem:[#allocation7 + $0x2b0] sm:$0xf0]  ;;  %v91_v62 = vld [vmem:[%s12218_s2 + $0x80] sm:$0xff]  ;;  %v9183_v2 = vpack.c.bf16 %v119_v58, %v113_v57  ;;  %v8499_v42 = vld [vmem:[#allocation7 + $0x50c] sm:$0xf0] }
  0x49   :  { %1489 = vmatpush.bf16.msrb.mxu2 %v7394_v50  ;;  %v7714_v50 = vor.u32 %v8421_v46, %v7711_v48  ;;  %v7679_v6 = vld [vmem:[#allocation7 + $0x270] sm:$0xf0]  ;;  %v8485_v8 = vld [vmem:[#allocation7 + $0x4a4] sm:$0xf]  ;;  %v8013_v41 = vld [vmem:[#allocation7 + $0x500] sm:$0xf] }
  0x4a   :  { %1431 = vmatpush.bf16.msrb.mxu0 %v7902_v60  ;;  %1518 = vmatpush.bf16.msrb.mxu3 %v7522_v5  ;;  %v120_v60 = vld [vmem:[%s12218_s2 + $0x168] sm:$0xff]  ;;  %v8413_v5 = vld [vmem:[#allocation7 + $0x264] sm:$0xf]  ;;  %v7663_v14 = vld [vmem:[#allocation7 + $0x250] sm:$0xf0] }
  0x4b   :  { %v9185_v3 = vpack.c.bf16 %v120_v60, %v114_v59  ;;  %v7682_v7 = vor.u32 %v8413_v5, %v7679_v6  ;;  %v8409_v13 = vld [vmem:[#allocation7 + $0x244] sm:$0xf]  ;;  %v8127_v24 = vld [vmem:[#allocation7 + $0x5f0] sm:$0xf0]  ;;  %v106_v48 = vld [vmem:[%s12218_s2 + $0xf8] sm:$0xff] }
  0x4c   :  { %1345 = vmatpush.bf16.msrb.mxu1 %v7502_v61  ;;  %v8062_v61 = vor.u32 %v8511_v52, %v8061_v51  ;;  %v8481_v27 = vld [vmem:[#allocation7 + $0x484] sm:$0xf]  ;;  %v7951_v33 = vld [vmem:[#allocation7 + $0x490] sm:$0xf0] }
  0x4d   :  { %1490 = vmatpush.bf16.msrb.mxu2 %v7378_v0  ;;  %v7698_v0 = vor.u32 %v8417_v53, %v7695_v54  ;;  %v7954_v36 = vor.u32 %v8481_v27, %v7951_v33  ;;  %v8405_v38 = vld [vmem:[#allocation7 + $0x224] sm:$0xf]  ;;  %v7631_v44 = vld [vmem:[#allocation7 + $0x210] sm:$0xf0] }
  0x4e   :  { %1432 = vmatpush.bf16.msrb.mxu0 %v7886_v9  ;;  %1519 = vmatpush.bf16.msrb.mxu3 %v7506_v17  ;;  %v7967_v9 = vld [vmem:[#allocation7 + $0x4b0] sm:$0xf0]  ;;  %v7666_v17 = vor.u32 %v8409_v13, %v7663_v14  ;;  %v8521_v45 = vld [vmem:[#allocation7 + $0x5c4] sm:$0xf] }
  0x4f   :  { %1346 = vmatmul.bf16.vlgmr.msrb.gmra.mxu1 %v9145_v16  ;;  %v7970_v11 = vor.u32 %v8485_v8, %v7967_v9  ;;  %v8111_v46 = vld [vmem:[#allocation7 + $0x5d0] sm:$0xf0]  ;;  %v103_v51 = vld [vmem:[%s12218_s2 + $0xe0] sm:$0xff] }
  0x50   :  { %1454 = vmatpush.bf16.msra.mxu1 %v8126_v4  ;;  %1385 = vmatmul.bf16.gmra.mxu2 %v9147_v18  ;;  %v9187_v4 = vpack.c.bf16 %v97_v63, %v91_v62  ;;  %v109_v52 = vld [vmem:[%s12218_s2 + $0x110] sm:$0xff]  ;;  %v8477_v56 = vld [vmem:[#allocation7 + $0x464] sm:$0xf] }
  0x51   :  { %1414 = vmatmul.bf16.gmra.mxu3 %v9149_v19  ;;  %1433 = vmatmul.bf16.vlgmr.msrb.gmra.mxu0 %v9151_v20  ;;  %v9207_v55 = vpack.c.bf16 %v109_v52, %v103_v51  ;;  %v7935_v57 = vld [vmem:[#allocation7 + $0x470] sm:$0xf0]  ;;  %v8517_v58 = vld [vmem:[#allocation7 + $0x5a4] sm:$0xf] }
  0x52   :  { %1541 = vmatpush.bf16.msra.mxu0 %v7746_v34  ;;  %1599 = vmatpush.bf16.msra.mxu2 %v8002_v39  ;;  %v8029_v34 = vld [vmem:[#allocation7 + $0x520] sm:$0xf]  ;;  %v7647_v39 = vld [vmem:[#allocation7 + $0x230] sm:$0xf0]  ;;  %v7938_v59 = vor.u32 %v8477_v56, %v7935_v57  ;;  %v8513_v6 = vld [vmem:[#allocation7 + $0x584] sm:$0xf] }
  0x53   :  { %v7650_v40 = vor.u32 %v8405_v38, %v7647_v39  ;;  %v8095_v60 = vld [vmem:[#allocation7 + $0x5b0] sm:$0xf0]  ;;  %v115_v13 = vld [vmem:[%s12218_s2 + $0x140] sm:$0xff] }
  0x54   :  { %1455 = vmatpush.bf16.msra.mxu1 %v8110_v23  ;;  %v8525_v23 = vld [vmem:[#allocation7 + $0x5e4] sm:$0xf]  ;;  %v7919_v62 = vld [vmem:[#allocation7 + $0x450] sm:$0xf0]  ;;  %v8098_v63 = vor.u32 %v8517_v58, %v8095_v60  ;;  %v7493_v58 = vld [vmem:[#allocation7 + $0xe8] sm:$0xf] }
  0x55   :  { %v8130_v32 = vor.u32 %v8525_v23, %v8127_v24  ;;  %v7871_v5 = vld [vmem:[#allocation7 + $0x3f0] sm:$0xf0]  ;;  %v8509_v23 = vld [vmem:[#allocation7 + $0x564] sm:$0xf] }
  0x56   :  { %1542 = vmatpush.bf16.msra.mxu0 %v7730_v43  ;;  %1600 = vmatpush.bf16.msra.mxu2 %v7986_v47  ;;  %v8401_v43 = vld [vmem:[#allocation7 + $0x204] sm:$0xf]  ;;  %v100_v47 = vld [vmem:[%s12218_s2 + $0xc8] sm:$0xff]  ;;  %v8079_v9 = vld [vmem:[#allocation7 + $0x590] sm:$0xf0] }
  0x57   :  { %1628 = vmatpush.bf16.msra.mxu3 %v8130_v32  ;;  %v7634_v53 = vor.u32 %v8401_v43, %v7631_v44  ;;  %v9205_v54 = vpack.c.bf16 %v106_v48, %v100_v47  ;;  %v8082_v10 = vor.u32 %v8513_v6, %v8079_v9  ;;  %v121_v14 = vld [vmem:[%s12218_s2 + $0x170] sm:$0xff]  ;;  %v8469_v32 = vld [vmem:[#allocation7 + $0x424] sm:$0xf]  ;;  %v80_v47 = vld [vmem:[%s12218_s2 + $0x28] sm:$0xff] }
  0x58   :  { %1456 = vmatpush.bf16.msra.mxu1 %v8094_v35  ;;  %v8503_v35 = vld [vmem:[#allocation7 + $0x52c] sm:$0xf0]  ;;  %v8063_v24 = vld [vmem:[#allocation7 + $0x570] sm:$0xf0]  ;;  %v8501_v43 = vld [vmem:[#allocation7 + $0x524] sm:$0xf] }
  0x59   :  { %v8030_v37 = vor.u32 %v8503_v35, %v8029_v34  ;;  %v8066_v27 = vor.u32 %v8509_v23, %v8063_v24  ;;  %v7903_v33 = vld [vmem:[#allocation7 + $0x430] sm:$0xf0]  ;;  %v8457_v34 = vld [vmem:[#allocation7 + $0x3c4] sm:$0xf]  ;;  %v86_v48 = vld [vmem:[%s12218_s2 + $0x58] sm:$0xff] }
  0x5a   :  { %1543 = vmatpush.bf16.msra.mxu0 %v7714_v50  ;;  %1601 = vmatpush.bf16.msra.mxu2 %v7970_v11  ;;  %v8014_v50 = vor.u32 %v8499_v42, %v8013_v41  ;;  %v112_v11 = vld [vmem:[%s12218_s2 + $0x128] sm:$0xff]  ;;  %v7906_v35 = vor.u32 %v8469_v32, %v7903_v33  ;;  %v8047_v38 = vld [vmem:[#allocation7 + $0x550] sm:$0xf0]  ;;  %v8465_v41 = vld [vmem:[#allocation7 + $0x404] sm:$0xf] }
  0x5b   :  { %v7887_v42 = vld [vmem:[#allocation7 + $0x410] sm:$0xf0]  ;;  %v7733_v9 = vld [vmem:[#allocation7 + $0x2c8] sm:$0xf] }
  0x5c   :  { %1457 = vmatpush.bf16.msra.mxu1 %v8078_v49  ;;  %v8114_v49 = vor.u32 %v8521_v45, %v8111_v46  ;;  %v7890_v44 = vor.u32 %v8465_v41, %v7887_v42  ;;  %v8031_v45 = vld [vmem:[#allocation7 + $0x530] sm:$0xf0]  ;;  %v92_v24 = vld [vmem:[%s12218_s2 + $0x88] sm:$0xff] }
  0x5d   :  { %v8034_v46 = vor.u32 %v8501_v43, %v8031_v45  ;;  %v8015_v51 = vld [vmem:[#allocation7 + $0x510] sm:$0xf0]  ;;  %v7445_v33 = vld [vmem:[#allocation7 + $0x88] sm:$0xf]  ;;  %v8424_v43 = vld [vmem:[#allocation7 + $0x2b4] sm:$0xf0] }
  0x5e   :  { %1544 = vmatpush.bf16.msra.mxu0 %v7698_v0  ;;  %1602 = vmatpush.bf16.msra.mxu2 %v7954_v36  ;;  %v8461_v0 = vld [vmem:[#allocation7 + $0x3e4] sm:$0xf]  ;;  %v7855_v36 = vld [vmem:[#allocation7 + $0x3d0] sm:$0xf0]  ;;  %v7717_v42 = vld [vmem:[#allocation7 + $0x2a8] sm:$0xf] }
  0x5f   :  { %1351 = vmatmul.bf16.gmra.mxu1 %v9181_v1  ;;  %1629 = vmatpush.bf16.msra.mxu3 %v8114_v49  ;;  %v7874_v8 = vor.u32 %v8461_v0, %v7871_v5  ;;  %v7858_v39 = vor.u32 %v8457_v34, %v7855_v36  ;;  %v9239_v49 = vpack.c.bf16 %v86_v48, %v80_v47  ;;  %v7839_v56 = vld [vmem:[#allocation7 + $0x3b0] sm:$0xf0]  ;;  %v7477_v0 = vld [vmem:[#allocation7 + $0xc8] sm:$0xf]  ;;  %v8364_v5 = vld [vmem:[#allocation7 + $0xd4] sm:$0xf0] }
  0x60   :  { %1458 = vmatpush.bf16.msra.mxu1 %v8062_v61  ;;  %1390 = vmatmul.bf16.gmra.mxu2 %v9183_v2  ;;  %v8473_v61 = vld [vmem:[#allocation7 + $0x444] sm:$0xf]  ;;  %v7478_v6 = vor.u32 %v8364_v5, %v7477_v0  ;;  %v8356_v34 = vld [vmem:[#allocation7 + $0x94] sm:$0xf0]  ;;  %v7413_v47 = vld [vmem:[#allocation7 + $0x48] sm:$0xf] }
  0x61   :  { %1419 = vmatmul.bf16.gmra.mxu3 %v9185_v3  ;;  %1438 = vmatmul.bf16.gmra.mxu0 %v9187_v4  ;;  %v8445_v36 = vld [vmem:[#allocation7 + $0x364] sm:$0xf]  ;;  %v9260_v48 = vld [vmem:[%s12187_s3] sm:$0xf]  ;;  %v7397_v0 = vld [vmem:[#allocation7 + $0x28] sm:$0xf] }
  0x62   :  { %1545 = vmatpush.bf16.msra.mxu0 %v7682_v7  ;;  %1603 = vmatpush.bf16.msra.mxu2 %v7938_v59  ;;  %v7922_v7 = vor.u32 %v8473_v61, %v7919_v62  ;;  %v8368_v59 = vld [vmem:[#allocation7 + $0xf4] sm:$0xf0]  ;;  %v7749_v61 = vld [vmem:[#allocation7 + $0x2e8] sm:$0xf]  ;;  %v8441_v45 = vld [vmem:[#allocation7 + $0x344] sm:$0xf] }
  0x63   :  { %1630 = vmatpush.bf16.msra.mxu3 %v8098_v63  ;;  %v7494_v60 = vor.u32 %v8368_v59, %v7493_v58  ;;  %v8432_v62 = vld [vmem:[#allocation7 + $0x2f4] sm:$0xf0] }
  0x64   :  { %1459 = vmatpush.bf16.msra.mxu1 %v8046_v15  ;;  %v9225_v15 = vpack.c.bf16 %v118_v12, %v112_v11  ;;  %v7750_v63 = vor.u32 %v8432_v62, %v7749_v61  ;;  %v8428_v11 = vld [vmem:[#allocation7 + $0x2d4] sm:$0xf0]  ;;  %v7461_v12 = vld [vmem:[#allocation7 + $0xa8] sm:$0xf]  ;;  %v7775_v61 = vld [vmem:[#allocation7 + $0x330] sm:$0xf0] }
  0x65   :  { %v8420_v59 = vld [vmem:[#allocation7 + $0x294] sm:$0xf0] }
  0x66   :  { %1546 = vmatpush.bf16.msra.mxu0 %v7666_v17  ;;  %1604 = vmatpush.bf16.msra.mxu2 %v7922_v7  ;;  %v9227_v17 = vpack.c.bf16 %v121_v14, %v115_v13  ;;  %v8449_v7 = vld [vmem:[#allocation7 + $0x384] sm:$0xf]  ;;  %v8360_v13 = vld [vmem:[#allocation7 + $0xb4] sm:$0xf0]  ;;  %v7734_v14 = vor.u32 %v8428_v11, %v7733_v9  ;;  %v9269_v9 = vperm.slane %v9260_v48, 0 }
  0x67   :  { %1631 = vmatpush.bf16.msra.mxu3 %v8082_v10  ;;  %v7462_v23 = vor.u32 %v8360_v13, %v7461_v12  ;;  %v8344_v5 = vld [vmem:[#allocation7 + $0x34] sm:$0xf0]  ;;  %v8433_v11 = vld [vmem:[#allocation7 + $0x304] sm:$0xf]  ;;  %v7759_v12 = vld [vmem:[#allocation7 + $0x310] sm:$0xf0] }
  0x68   :  { %1460 = vmatpush.bf16.msra.mxu1 %v8030_v37  ;;  %v8505_v37 = vld [vmem:[#allocation7 + $0x544] sm:$0xf]  ;;  %v7381_v13 = vld [vmem:[#allocation7 + $0x8] sm:$0xf] }
  0x6a   :  { %1547 = vmatpush.bf16.msra.mxu0 %v7650_v40  ;;  %v8050_v40 = vor.u32 %v8505_v37, %v8047_v38  ;;  %1605 = vmatpush.bf16.msra.mxu2 %v7906_v35  ;;  %v7446_v35 = vor.u32 %v8356_v34, %v7445_v33  ;;  %v7807_v37 = vld [vmem:[#allocation7 + $0x370] sm:$0xf0] }
  0x6b   :  { %1632 = vmatpush.bf16.msra.mxu3 %v8066_v27  ;;  %v98_v27 = vld [vmem:[%s12218_s2 + $0xb8] sm:$0xff]  ;;  %v7810_v38 = vor.u32 %v8445_v36, %v7807_v37  ;;  %v7861_v37 = vld [vmem:[#allocation7 + $0x3c8] sm:$0xf] }
  0x6c   :  { %1461 = vmatpush.bf16.msra.mxu1 %v8014_v50  ;;  %v8497_v50 = vld [vmem:[#allocation7 + $0x504] sm:$0xf]  ;;  %v9251_v32 = vpack.c.bf16 %v98_v27, %v92_v24  ;;  %v7762_v24 = vor.u32 %v8433_v11, %v7759_v12  ;;  %v8340_v27 = vld [vmem:[#allocation7 + $0x14] sm:$0xf0]  ;;  %v7813_v11 = vld [vmem:[#allocation7 + $0x368] sm:$0xf] }
  0x6d   :  { %v8018_v52 = vor.u32 %v8497_v50, %v8015_v51  ;;  %v8348_v51 = vld [vmem:[#allocation7 + $0x54] sm:$0xf0]  ;;  %v7382_v34 = vor.u32 %v8340_v27, %v7381_v13  ;;  %v7621_v27 = vld [vmem:[#allocation7 + $0x1e8] sm:$0xf] }
  0x6e   :  { %1548 = vmatpush.bf16.msra.mxu0 %v7634_v53  ;;  %1606 = vmatpush.bf16.msra.mxu2 %v7890_v44  ;;  %v8453_v53 = vld [vmem:[#allocation7 + $0x3a4] sm:$0xf]  ;;  %v7718_v44 = vor.u32 %v8424_v43, %v7717_v42  ;;  %v8416_v43 = vld [vmem:[#allocation7 + $0x274] sm:$0xf0] }
  0x6f   :  { %1356 = vmatmul.bf16.gmra.mxu1 %v9205_v54  ;;  %1633 = vmatpush.bf16.msra.mxu3 %v8050_v40  ;;  %v7842_v57 = vor.u32 %v8453_v53, %v7839_v56  ;;  %v8352_v40 = vld [vmem:[#allocation7 + $0x74] sm:$0xf0]  ;;  %v7877_v53 = vld [vmem:[#allocation7 + $0x3e8] sm:$0xf] }
  0x70   :  { %1491 = vmatmul.bf16.vlgmr.msrb.gmra.mxu2 %v9073_v25  ;;  %1570 = vmatpush.bf16.msrb.mxu1 %v7874_v8  ;;  %v7823_v8 = vld [vmem:[#allocation7 + $0x390] sm:$0xf0]  ;;  %v8464_v56 = vld [vmem:[#allocation7 + $0x3f4] sm:$0xf0] }
  0x71   :  { %1520 = vmatmul.bf16.vlgmr.msrb.gmra.mxu3 %v9145_v16  ;;  %1443 = vmatmul.bf16.gmra.mxu0 %v9207_v55  ;;  %v7826_v10 = vor.u32 %v8449_v7, %v7823_v8  ;;  %v7878_v58 = vor.u32 %v8464_v56, %v7877_v53  ;;  %v110_v7 = vld [vmem:[%s12218_s2 + $0x118] sm:$0xff]  ;;  %v7398_v8 = vor.u32 %v8344_v5, %v7397_v0 }
  0x72   :  { %1657 = vmatpush.bf16.msrb.mxu0 %v7494_v60  ;;  %1715 = vmatpush.bf16.msrb.mxu2 %v7750_v63  ;;  %v8437_v60 = vld [vmem:[#allocation7 + $0x324] sm:$0xf]  ;;  %v8452_v5 = vld [vmem:[#allocation7 + $0x394] sm:$0xf0] }
  0x73   :  { %1634 = vmatpush.bf16.msra.mxu3 %v8034_v46  ;;  %v7791_v46 = vld [vmem:[#allocation7 + $0x350] sm:$0xf0]  ;;  %v7778_v63 = vor.u32 %v8437_v60, %v7775_v61  ;;  %v8412_v60 = vld [vmem:[#allocation7 + $0x254] sm:$0xf0]  ;;  %v7829_v61 = vld [vmem:[#allocation7 + $0x388] sm:$0xf] }
  0x74   :  { %1571 = vmatpush.bf16.msrb.mxu1 %v7858_v39  ;;  %v7429_v39 = vld [vmem:[#allocation7 + $0x68] sm:$0xf]  ;;  %v7794_v50 = vor.u32 %v8441_v45, %v7791_v46  ;;  %v8448_v12 = vld [vmem:[#allocation7 + $0x374] sm:$0xf0] }
  0x75   :  { %v7430_v41 = vor.u32 %v8352_v40, %v7429_v39  ;;  %v7685_v39 = vld [vmem:[#allocation7 + $0x268] sm:$0xf]  ;;  %v7814_v13 = vor.u32 %v8448_v12, %v7813_v11  ;;  %v8404_v12 = vld [vmem:[#allocation7 + $0x214] sm:$0xf0] }
  0x76   :  { %1658 = vmatpush.bf16.msrb.mxu0 %v7478_v6  ;;  %1716 = vmatpush.bf16.msrb.mxu2 %v7734_v14  ;;  %v104_v6 = vld [vmem:[%s12218_s2 + $0xe8] sm:$0xff]  ;;  %v7686_v46 = vor.u32 %v8416_v43, %v7685_v39  ;;  %v8444_v43 = vld [vmem:[#allocation7 + $0x354] sm:$0xf0] }
  0x77   :  { %1635 = vmatpush.bf16.msra.mxu3 %v8018_v52  ;;  %v7414_v52 = vor.u32 %v8348_v51, %v7413_v47  ;;  %v7845_v47 = vld [vmem:[#allocation7 + $0x3a8] sm:$0xf] }
  0x78   :  { %1572 = vmatpush.bf16.msrb.mxu1 %v7842_v57  ;;  %v7701_v57 = vld [vmem:[#allocation7 + $0x288] sm:$0xf] }
  0x79   :  { %v7702_v62 = vor.u32 %v8420_v59, %v7701_v57  ;;  %v116_v51 = vld [vmem:[%s12218_s2 + $0x148] sm:$0xff] }
  0x7a   :  { %1659 = vmatpush.bf16.msrb.mxu0 %v7462_v23  ;;  %1717 = vmatpush.bf16.msrb.mxu2 %v7718_v44  ;;  %v7669_v59 = vld [vmem:[#allocation7 + $0x248] sm:$0xf] }
  0x7b   :  { %1744 = vmatpush.bf16.msrb.mxu3 %v7878_v58  ;;  %v7670_v0 = vor.u32 %v8412_v60, %v7669_v59 }
  0x7c   :  { %1573 = vmatpush.bf16.msrb.mxu1 %v7826_v10  ;;  %v9271_v10 = vpack.c.bf16 %v110_v7, %v104_v6 }
  0x7e   :  { %1660 = vmatpush.bf16.msrb.mxu0 %v7446_v35  ;;  %1718 = vmatpush.bf16.msrb.mxu2 %v7702_v62 }
  0x7f   :  { %1361 = vmatmul.bf16.gmra.mxu1 %v9225_v15 }
  0x80   :  { %1496 = vmatmul.bf16.gmra.mxu2 %v9109_v21  ;;  %1574 = vmatpush.bf16.msrb.mxu1 %v7810_v38  ;;  %v8460_v38 = vld [vmem:[#allocation7 + $0x3d4] sm:$0xf0] }
  0x81   :  { %1525 = vmatmul.bf16.gmra.mxu3 %v9181_v1  ;;  %1448 = vmatmul.bf16.gmra.mxu0 %v9227_v17  ;;  %v7862_v42 = vor.u32 %v8460_v38, %v7861_v37  ;;  %v7653_v37 = vld [vmem:[#allocation7 + $0x228] sm:$0xf] }
  0x82   :  { %1661 = vmatpush.bf16.msrb.mxu0 %v7430_v41  ;;  %1719 = vmatpush.bf16.msrb.mxu2 %v7686_v46 }
  0x83   :  { %1745 = vmatpush.bf16.msrb.mxu3 %v7862_v42  ;;  %v7797_v42 = vld [vmem:[#allocation7 + $0x348] sm:$0xf] }
  0x84   :  { %1575 = vmatpush.bf16.msrb.mxu1 %v7794_v50  ;;  %v8456_v50 = vld [vmem:[#allocation7 + $0x3b4] sm:$0xf0] }
  0x85   :  { %v7846_v53 = vor.u32 %v8456_v50, %v7845_v47 }
  0x86   :  { %1662 = vmatpush.bf16.msrb.mxu0 %v7414_v52  ;;  %v122_v52 = vld [vmem:[%s12218_s2 + $0x178] sm:$0xff]  ;;  %1720 = vmatpush.bf16.msrb.mxu2 %v7670_v0 }
  0x87   :  { %1746 = vmatpush.bf16.msrb.mxu3 %v7846_v53  ;;  %v9302_v58 = vpack.c.bf16 %v122_v52, %v116_v51  ;;  %v7798_v51 = vor.u32 %v8444_v43, %v7797_v42  ;;  %v7781_v52 = vld [vmem:[#allocation7 + $0x328] sm:$0xf]  ;;  %v8440_v53 = vld [vmem:[#allocation7 + $0x334] sm:$0xf0] }
  0x88   :  { %1576 = vmatpush.bf16.msrb.mxu1 %v7778_v63  ;;  %v7782_v59 = vor.u32 %v8440_v53, %v7781_v52  ;;  %v8396_v0 = vld [vmem:[#allocation7 + $0x1d4] sm:$0xf0]  ;;  %v8366_v53 = vld [vmem:[#allocation7 + $0xec] sm:$0xf] }
  0x89   :  { %v8392_v52 = vld [vmem:[#allocation7 + $0x1b4] sm:$0xf0] }
  0x8a   :  { %1663 = vmatpush.bf16.msrb.mxu0 %v7398_v8  ;;  %v7830_v8 = vor.u32 %v8452_v5, %v7829_v61  ;;  %v7637_v5 = vld [vmem:[#allocation7 + $0x208] sm:$0xf] }
  0x8c   :  { %1577 = vmatpush.bf16.msrb.mxu1 %v7762_v24  ;;  %1747 = vmatpush.bf16.msrb.mxu3 %v7830_v8 }
  0x8e   :  { %1664 = vmatpush.bf16.msrb.mxu0 %v7382_v34  ;;  %v8400_v34 = vld [vmem:[#allocation7 + $0x1f4] sm:$0xf0] }
  0x8f   :  { %1462 = vmatmul.bf16.vlgmr.msra.gmra.mxu1 %v9239_v49 }
  0x90   :  { %1501 = vmatmul.bf16.gmra.mxu2 %v9075_v26  ;;  %1748 = vmatpush.bf16.msrb.mxu3 %v7814_v13  ;;  %v7765_v13 = vld [vmem:[#allocation7 + $0x308] sm:$0xf] }
  0x91   :  { %1530 = vmatmul.bf16.gmra.mxu3 %v9205_v54  ;;  %1549 = vmatmul.bf16.vlgmr.msra.gmra.mxu0 %v9077_v30 }
  0x94   :  { %1749 = vmatpush.bf16.msrb.mxu3 %v7798_v51  ;;  %v7589_v51 = vld [vmem:[#allocation7 + $0x1a8] sm:$0xf] }
  0x98   :  { %1750 = vmatpush.bf16.msrb.mxu3 %v7782_v59 }
  0x9f   :  { %1467 = vmatmul.bf16.gmra.mxu1 %v9251_v32 }
  0xa0   :  { %1506 = vmatmul.bf16.gmra.mxu2 %v9111_v22 }
  0xa1   :  { %1535 = vmatmul.bf16.gmra.mxu3 %v9225_v15  ;;  %1554 = vmatmul.bf16.gmra.mxu0 %v9113_v28 }
  0xac   :  { %v9273_v14 = vpop.f32.mrf.mxu0  ;;  %v1328_v23 = vpop.f32.mrf.mxu1 }
  0xad   :  { %v9276_v33 = vadd.f32 %v1328_v23, %v9269_v9  ;;  %v1319_v60 = vadd.f32 %v9273_v14, %v9269_v9  ;;  %v8005_v14 = vld [vmem:[#allocation7 + $0x4e8] sm:$0xf] }
  0xaf   :  { %1472 = vmatmul.bf16.gmra.mxu1 %v9271_v10 }
  0xb0   :  { %1607 = vmatmul.bf16.vlgmr.msra.gmra.mxu2 %v9151_v20 }
  0xb1   :  { %1636 = vmatmul.bf16.vlgmr.msra.gmra.mxu3 %v9239_v49  ;;  %1559 = vmatmul.bf16.gmra.mxu0 %v9147_v18 }
  0xb3   :  { %v9282_v35 = vpop.f32.mrf.mxu2 }
  0xb4   :  { %v9284_v36 = vpop.f32.mrf.mxu3  ;;  %v1320_v40 = vpop.f32.mrf.mxu0 }
  0xb5   :  { %v1330_v41 = vpop.f32.mrf.mxu1  ;;  %v9287_v44 = vadd.f32 %v1320_v40, %v9269_v9  ;;  %v7622_v40 = vor.u32 %v8400_v34, %v7621_v27  ;;  %v8436_v27 = vld [vmem:[#allocation7 + $0x314] sm:$0xf0] }
  0xb6   :  { %v9290_v45 = vadd.f32 %v1330_v41, %v9269_v9  ;;  %v8408_v41 = vld [vmem:[#allocation7 + $0x234] sm:$0xf0] }
  0xb7   :  { %v7654_v50 = vor.u32 %v8408_v41, %v7653_v37  ;;  %1686 = vmatpush.bf16.msra.mxu1 %v7622_v40  ;;  %v7638_v37 = vor.u32 %v8404_v12, %v7637_v5  ;;  %v8496_v40 = vld [vmem:[#allocation7 + $0x4f4] sm:$0xf0] }
  0xb8   :  { %v8006_v41 = vor.u32 %v8496_v40, %v8005_v14  ;;  %v8388_v40 = vld [vmem:[#allocation7 + $0x194] sm:$0xf0] }
  0xb9   :  { %1721 = vmatpush.bf16.msrb.mxu2 %v7654_v50 }
  0xba   :  { %1773 = vmatpush.bf16.msra.mxu0 %v8006_v41  ;;  %v8362_v41 = vld [vmem:[#allocation7 + $0xcc] sm:$0xf] }
  0xbb   :  { %v9298_v56 = vpop.f32.mrf.mxu2 }
  0xbc   :  { %v9300_v57 = vpop.f32.mrf.mxu3  ;;  %v1323_v62 = vpop.f32.mrf.mxu0 }
  0xbd   :  { %v1333_v63 = vpop.f32.mrf.mxu1  ;;  %v9305_v6 = vadd.f32 %v1323_v62, %v9269_v9  ;;  %1722 = vmatpush.bf16.msrb.mxu2 %v7638_v37 }
  0xbe   :  { %v9308_v7 = vadd.f32 %v1333_v63, %v9269_v9  ;;  %v7605_v63 = vld [vmem:[#allocation7 + $0x1c8] sm:$0xf] }
  0xbf   :  { %1477 = vmatmul.bf16.gmra.mxu1 %v9302_v58  ;;  %v7606_v11 = vor.u32 %v8396_v0, %v7605_v63  ;;  %v7495_v63 = vld [vmem:[#allocation7 + $0xf8] sm:$0xf0]  ;;  %v7989_v0 = vld [vmem:[#allocation7 + $0x4c8] sm:$0xf] }
  0xc0   :  { %1612 = vmatmul.bf16.gmra.mxu2 %v9187_v4 }
  0xc1   :  { %1641 = vmatmul.bf16.gmra.mxu3 %v9251_v32  ;;  %1564 = vmatmul.bf16.gmra.mxu0 %v9183_v2 }
  0xc2   :  { %1687 = vmatpush.bf16.msra.mxu1 %v7606_v11 }
  0xc3   :  { %v9314_v23 = vpop.f32.mrf.mxu2 }
  0xc4   :  { %v9316_v24 = vpop.f32.mrf.mxu3  ;;  %v1325_v38 = vpop.f32.mrf.mxu0 }
  0xc5   :  { %v1335_v39 = vpop.f32.mrf.mxu1  ;;  %v9319_v46 = vadd.f32 %v1325_v38, %v9269_v9  ;;  %v7766_v38 = vor.u32 %v8436_v27, %v7765_v13  ;;  %v7973_v27 = vld [vmem:[#allocation7 + $0x4a8] sm:$0xf] }
  0xc6   :  { %v9322_v47 = vadd.f32 %v1335_v39, %v9269_v9 }
  0xc7   :  { %1751 = vmatpush.bf16.msrb.mxu3 %v7766_v38 }
  0xcb   :  { %v9326_v61 = vpop.f32.mrf.mxu2 }
  0xcc   :  { %v9328_v62 = vpop.f32.mrf.mxu3 }
  0xcd   :  { %v1347_v8 = vpop.f32.mrf.mxu1 }
  0xce   :  { %v1348_v34 = vadd.f32 %v1347_v8, %v1319_v60  ;;  %v1434_v39 = vpop.f32.mrf.mxu0  ;;  %v7590_v60 = vor.u32 %v8392_v52, %v7589_v51  ;;  %v8492_v8 = vld [vmem:[#allocation7 + $0x4d4] sm:$0xf0]  ;;  %v7479_v52 = vld [vmem:[#allocation7 + $0xd8] sm:$0xf0] }
  0xcf   :  { %1578 = vmatmul.bf16.vlgmr.msrb.gmra.mxu1 %v9079_v31  ;;  %v7990_v12 = vor.u32 %v8492_v8, %v7989_v0  ;;  %v7941_v8 = vld [vmem:[#allocation7 + $0x468] sm:$0xf] }
  0xd0   :  { %v1377_v9 = vadd.f32 %v9282_v35, %v1348_v34  ;;  %1617 = vmatmul.bf16.gmra.mxu2 %v9207_v55  ;;  %1688 = vmatpush.bf16.msra.mxu1 %v7590_v60  ;;  %v8488_v34 = vld [vmem:[#allocation7 + $0x4b4] sm:$0xf0]  ;;  %v7482_v60 = vor.u32 %v8362_v41, %v7479_v52 }
  0xd1   :  { %1646 = vmatmul.bf16.gmra.mxu3 %v9271_v10  ;;  %1665 = vmatmul.bf16.vlgmr.msrb.gmra.mxu0 %v9073_v25  ;;  %v7974_v37 = vor.u32 %v8488_v34, %v7973_v27  ;;  %v8476_v52 = vld [vmem:[#allocation7 + $0x454] sm:$0xf0] }
  0xd2   :  { %v1406_v42 = vadd.f32 %v9284_v36, %v1377_v9  ;;  %v7498_v36 = vor.u32 %v8366_v53, %v7495_v63  ;;  %1774 = vmatpush.bf16.msra.mxu0 %v7990_v12  ;;  %v8484_v53 = vld [vmem:[#allocation7 + $0x494] sm:$0xf0] }
  0xd3   :  { %v9338_v50 = vpop.f32.mrf.mxu2  ;;  %v8480_v12 = vld [vmem:[#allocation7 + $0x474] sm:$0xf0] }
  0xd4   :  { %v9336_v43 = vadd.f32 %v1434_v39, %v1406_v42  ;;  %v9340_v35 = vpop.f32.mrf.mxu3  ;;  %1831 = vmatpush.bf16.msra.mxu2 %v7498_v36  ;;  %v8384_v36 = vld [vmem:[#allocation7 + $0x174] sm:$0xf0] }
  0xd5   :  { %v1349_v59 = vpop.f32.mrf.mxu1 }
  0xd6   :  { %v1350_v5 = vadd.f32 %v1349_v59, %v9287_v44  ;;  %v1436_v11 = vpop.f32.mrf.mxu0  ;;  %v7573_v44 = vld [vmem:[#allocation7 + $0x188] sm:$0xf]  ;;  %1775 = vmatpush.bf16.msra.mxu0 %v7974_v37  ;;  %v8358_v37 = vld [vmem:[#allocation7 + $0xac] sm:$0xf] }
  0xd7   :  { %v7574_v51 = vor.u32 %v8388_v40, %v7573_v44  ;;  %v7541_v44 = vld [vmem:[#allocation7 + $0x148] sm:$0xf] }
  0xd8   :  { %v1379_v13 = vadd.f32 %v9298_v56, %v1350_v5  ;;  %v7957_v56 = vld [vmem:[#allocation7 + $0x488] sm:$0xf]  ;;  %1832 = vmatpush.bf16.msra.mxu2 %v7482_v60 }
  0xd9   :  { %1689 = vmatpush.bf16.msra.mxu1 %v7574_v51  ;;  %v7557_v5 = vld [vmem:[#allocation7 + $0x168] sm:$0xf] }
  0xda   :  { %v1408_v38 = vadd.f32 %v9300_v57, %v1379_v13  ;;  %v7958_v57 = vor.u32 %v8484_v53, %v7957_v56  ;;  %v7942_v13 = vor.u32 %v8480_v12, %v7941_v8  ;;  %v7925_v51 = vld [vmem:[#allocation7 + $0x448] sm:$0xf] }
  0xdb   :  { %v9347_v9 = vpop.f32.mrf.mxu2 }
  0xdc   :  { %v9345_v39 = vadd.f32 %v1436_v11, %v1408_v38  ;;  %v9349_v14 = vpop.f32.mrf.mxu3  ;;  %v7558_v11 = vor.u32 %v8384_v36, %v7557_v5  ;;  %1776 = vmatpush.bf16.msra.mxu0 %v7958_v57  ;;  %v7463_v38 = vld [vmem:[#allocation7 + $0xb8] sm:$0xf0]  ;;  %v8376_v57 = vld [vmem:[#allocation7 + $0x134] sm:$0xf0] }
  0xdd   :  { %v1352_v42 = vpop.f32.mrf.mxu1  ;;  %v7466_v41 = vor.u32 %v8358_v37, %v7463_v38  ;;  %v8472_v36 = vld [vmem:[#allocation7 + $0x434] sm:$0xf0]  ;;  %v7623_v37 = vld [vmem:[#allocation7 + $0x1f8] sm:$0xf0]  ;;  %v8354_v38 = vld [vmem:[#allocation7 + $0x8c] sm:$0xf] }
  0xde   :  { %v1353_v59 = vadd.f32 %v1352_v42, %v9305_v6  ;;  %v1439_v63 = vpop.f32.mrf.mxu0  ;;  %1690 = vmatpush.bf16.msra.mxu1 %v7558_v11  ;;  %v8380_v42 = vld [vmem:[#allocation7 + $0x154] sm:$0xf0] }
  0xdf   :  { %1583 = vmatmul.bf16.gmra.mxu1 %v9115_v29  ;;  %v7542_v56 = vor.u32 %v8380_v42, %v7541_v44  ;;  %1833 = vmatpush.bf16.msra.mxu2 %v7466_v41  ;;  %v7509_v41 = vld [vmem:[#allocation7 + $0x108] sm:$0xf]  ;;  %v8372_v42 = vld [vmem:[#allocation7 + $0x114] sm:$0xf0] }
  0xe0   :  { %v1382_v0 = vadd.f32 %v9314_v23, %v1353_v59  ;;  %1622 = vmatmul.bf16.gmra.mxu2 %v9227_v17  ;;  %1777 = vmatpush.bf16.msra.mxu0 %v7942_v13  ;;  %v7926_v59 = vor.u32 %v8476_v52, %v7925_v51  ;;  %v8398_v13 = vld [vmem:[#allocation7 + $0x1ec] sm:$0xf]  ;;  %v7510_v52 = vor.u32 %v8372_v42, %v7509_v41  ;;  %v7591_v42 = vld [vmem:[#allocation7 + $0x1b8] sm:$0xf0] }
  0xe1   :  { %1651 = vmatmul.bf16.gmra.mxu3 %v9302_v58  ;;  %1670 = vmatmul.bf16.gmra.mxu0 %v9109_v21  ;;  %v7626_v44 = vor.u32 %v8398_v13, %v7623_v37  ;;  %v8390_v41 = vld [vmem:[#allocation7 + $0x1ac] sm:$0xf] }
  0xe2   :  { %v1411_v6 = vadd.f32 %v9316_v24, %v1382_v0  ;;  %1691 = vmatpush.bf16.msra.mxu1 %v7542_v56  ;;  %v7909_v0 = vld [vmem:[#allocation7 + $0x428] sm:$0xf]  ;;  %v8468_v56 = vld [vmem:[#allocation7 + $0x414] sm:$0xf0] }
  0xe3   :  { %v9360_v27 = vpop.f32.mrf.mxu2  ;;  %v7910_v11 = vor.u32 %v8472_v36, %v7909_v0  ;;  %1860 = vmatpush.bf16.msra.mxu3 %v7626_v44  ;;  %v8350_v36 = vld [vmem:[#allocation7 + $0x6c] sm:$0xf] }
  0xe4   :  { %v9358_v23 = vadd.f32 %v1439_v63, %v1411_v6  ;;  %v9362_v34 = vpop.f32.mrf.mxu3  ;;  %v7525_v63 = vld [vmem:[#allocation7 + $0x128] sm:$0xf]  ;;  %1778 = vmatpush.bf16.msra.mxu0 %v7926_v59 }
  0xe5   :  { %v1354_v40 = vpop.f32.mrf.mxu1  ;;  %v7526_v5 = vor.u32 %v8376_v57, %v7525_v63  ;;  %v8394_v63 = vld [vmem:[#allocation7 + $0x1cc] sm:$0xf]  ;;  %v7607_v57 = vld [vmem:[#allocation7 + $0x1d8] sm:$0xf0] }
  0xe6   :  { %v1355_v24 = vadd.f32 %v1354_v40, %v9319_v46  ;;  %v1441_v53 = vpop.f32.mrf.mxu0  ;;  %v7447_v40 = vld [vmem:[#allocation7 + $0x98] sm:$0xf0]  ;;  %v7610_v0 = vor.u32 %v8394_v63, %v7607_v57 }
  0xe7   :  { %1692 = vmatpush.bf16.msra.mxu1 %v7526_v5  ;;  %v7575_v63 = vld [vmem:[#allocation7 + $0x198] sm:$0xf0] }
  0xe8   :  { %v1384_v60 = vadd.f32 %v9326_v61, %v1355_v24  ;;  %v7893_v24 = vld [vmem:[#allocation7 + $0x408] sm:$0xf]  ;;  %1779 = vmatpush.bf16.msra.mxu0 %v7910_v11  ;;  %1861 = vmatpush.bf16.msra.mxu3 %v7610_v0 }
  0xe9   :  { %v7894_v59 = vor.u32 %v8468_v56, %v7893_v24 }
  0xea   :  { %v1413_v8 = vadd.f32 %v9328_v62, %v1384_v60  ;;  %v7450_v62 = vor.u32 %v8354_v38, %v7447_v40 }
  0xeb   :  { %v9369_v46 = vpop.f32.mrf.mxu2  ;;  %1693 = vmatpush.bf16.msra.mxu1 %v7510_v52  ;;  %v7415_v52 = vld [vmem:[#allocation7 + $0x58] sm:$0xf0] }
  0xec   :  { %v9367_v12 = vadd.f32 %v1441_v53, %v1413_v8  ;;  %v9371_v6 = vpop.f32.mrf.mxu3  ;;  %1834 = vmatpush.bf16.msra.mxu2 %v7450_v62  ;;  %1780 = vmatpush.bf16.msra.mxu0 %v7894_v59  ;;  %v7594_v62 = vor.u32 %v8390_v41, %v7591_v42 }
  0xed   :  { %v1357_v61 = vpop.f32.mrf.mxu1 }
  0xee   :  { %v1358_v51 = vadd.f32 %v1357_v61, %v9276_v33  ;;  %v1444_v53 = vpop.f32.mrf.mxu0  ;;  %v9379_v33 = vperm.slane %v9260_v48, 1  ;;  %1862 = vmatpush.bf16.msra.mxu3 %v7594_v62  ;;  %v8378_v62 = vld [vmem:[#allocation7 + $0x14c] sm:$0xf] }
  0xef   :  { %1588 = vmatmul.bf16.gmra.mxu1 %v9149_v19 }
  0xf0   :  { %v1387_v60 = vadd.f32 %v9338_v50, %v1358_v51  ;;  %1723 = vmatmul.bf16.vlgmr.msrb.gmra.mxu2 %v9077_v30  ;;  %v7431_v50 = vld [vmem:[#allocation7 + $0x78] sm:$0xf0]  ;;  %v8346_v51 = vld [vmem:[#allocation7 + $0x4c] sm:$0xf] }
  0xf1   :  { %1752 = vmatmul.bf16.vlgmr.msrb.gmra.mxu3 %v9079_v31  ;;  %1675 = vmatmul.bf16.gmra.mxu0 %v9075_v26  ;;  %v7434_v8 = vor.u32 %v8350_v36, %v7431_v50  ;;  %v7418_v56 = vor.u32 %v8346_v51, %v7415_v52  ;;  %v7543_v52 = vld [vmem:[#allocation7 + $0x158] sm:$0xf0] }
  0xf2   :  { %v1416_v5 = vadd.f32 %v9340_v35, %v1387_v60 }
  0xf3   :  { %v1492_v13 = vpop.f32.mrf.mxu2  ;;  %1835 = vmatpush.bf16.msra.mxu2 %v7434_v8  ;;  %v8133_v8 = vld [vmem:[#allocation7 + $0x5e8] sm:$0xf] }
  0xf4   :  { %v9383_v11 = vadd.f32 %v1444_v53, %v1416_v5  ;;  %v1521_v37 = vpop.f32.mrf.mxu3  ;;  %v1493_v38 = vadd.f32 %v1492_v13, %v9379_v33  ;;  %v8528_v13 = vld [vmem:[#allocation7 + $0x5f4] sm:$0xf0] }
  0xf5   :  { %v1359_v61 = vpop.f32.mrf.mxu1 }
  0xf6   :  { %v1360_v48 = vadd.f32 %v1359_v61, %v9290_v45  ;;  %v9387_v44 = vadd.f32 %v1521_v37, %v1493_v38  ;;  %v1446_v35 = vpop.f32.mrf.mxu0  ;;  %v8386_v45 = vld [vmem:[#allocation7 + $0x18c] sm:$0xf]  ;;  %v8134_v38 = vor.u32 %v8528_v13, %v8133_v8  ;;  %v7559_v61 = vld [vmem:[#allocation7 + $0x178] sm:$0xf0] }
  0xf7   :  { %1836 = vmatpush.bf16.msra.mxu2 %v7418_v56  ;;  %v8382_v37 = vld [vmem:[#allocation7 + $0x16c] sm:$0xf]  ;;  %v7527_v8 = vld [vmem:[#allocation7 + $0x138] sm:$0xf0] }
  0xf8   :  { %v1389_v40 = vadd.f32 %v9347_v9, %v1360_v48  ;;  %v7578_v9 = vor.u32 %v8386_v45, %v7575_v63  ;;  %1802 = vmatpush.bf16.msrb.mxu1 %v8134_v38 }
  0xfa   :  { %v1418_v24 = vadd.f32 %v9349_v14, %v1389_v40  ;;  %1863 = vmatpush.bf16.msra.mxu3 %v7578_v9  ;;  %v7562_v40 = vor.u32 %v8382_v37, %v7559_v61  ;;  %v8338_v9 = vld [vmem:[#allocation7 + $0xc] sm:$0xf] }
  0xfb   :  { %v1494_v59 = vpop.f32.mrf.mxu2 }
  0xfc   :  { %v9391_v53 = vadd.f32 %v1446_v35, %v1418_v24  ;;  %v1523_v60 = vpop.f32.mrf.mxu3  ;;  %v1495_v57 = vadd.f32 %v1494_v59, %v9379_v33  ;;  %v7399_v35 = vld [vmem:[#allocation7 + $0x38] sm:$0xf0]  ;;  %v7546_v59 = vor.u32 %v8378_v62, %v7543_v52  ;;  %v8101_v52 = vld [vmem:[#allocation7 + $0x5a8] sm:$0xf] }
  0xfd   :  { %v1362_v0 = vpop.f32.mrf.mxu1 }
  0xfe   :  { %v1363_v5 = vadd.f32 %v1362_v0, %v9308_v7  ;;  %v9395_v36 = vadd.f32 %v1523_v60, %v1495_v57  ;;  %v1449_v50 = vpop.f32.mrf.mxu0  ;;  %v8342_v7 = vld [vmem:[#allocation7 + $0x2c] sm:$0xf]  ;;  %1864 = vmatpush.bf16.msra.mxu3 %v7562_v40  ;;  %v8117_v57 = vld [vmem:[#allocation7 + $0x5c8] sm:$0xf]  ;;  %v8524_v0 = vld [vmem:[#allocation7 + $0x5d4] sm:$0xf0] }
  0xff   :  { %1593 = vmatmul.bf16.gmra.mxu1 %v9185_v3 }
 0x100   :  { %v1392_v14 = vadd.f32 %v9360_v27, %v1363_v5  ;;  %1728 = vmatmul.bf16.gmra.mxu2 %v9113_v28  ;;  %v7402_v27 = vor.u32 %v8342_v7, %v7399_v35  ;;  %v8118_v5 = vor.u32 %v8524_v0, %v8117_v57  ;;  %v7511_v7 = vld [vmem:[#allocation7 + $0x118] sm:$0xf0] }
 0x101   :  { %1757 = vmatmul.bf16.gmra.mxu3 %v9115_v29  ;;  %1680 = vmatmul.bf16.gmra.mxu0 %v9111_v22 }
 0x102   :  { %v1421_v48 = vadd.f32 %v9362_v34, %v1392_v14  ;;  %1837 = vmatpush.bf16.msra.mxu2 %v7402_v27  ;;  %1865 = vmatpush.bf16.msra.mxu3 %v7546_v59  ;;  %v8374_v14 = vld [vmem:[#allocation7 + $0x12c] sm:$0xf] }
 0x103   :  { %v1497_v42 = vpop.f32.mrf.mxu2  ;;  %v7530_v38 = vor.u32 %v8374_v14, %v7527_v8  ;;  %1803 = vmatpush.bf16.msrb.mxu1 %v8118_v5  ;;  %v7735_v5 = vld [vmem:[#allocation7 + $0x2d8] sm:$0xf0] }
 0x104   :  { %v9403_v41 = vadd.f32 %v1449_v50, %v1421_v48  ;;  %v1526_v51 = vpop.f32.mrf.mxu3  ;;  %v1498_v24 = vadd.f32 %v1497_v42, %v9379_v33  ;;  %v7383_v50 = vld [vmem:[#allocation7 + $0x18] sm:$0xf0] }
 0x105   :  { %v1364_v56 = vpop.f32.mrf.mxu1  ;;  %v7386_v37 = vor.u32 %v8338_v9, %v7383_v50  ;;  %v8426_v9 = vld [vmem:[#allocation7 + $0x2cc] sm:$0xf] }
 0x106   :  { %v1365_v34 = vadd.f32 %v1364_v56, %v9322_v47  ;;  %v9407_v60 = vadd.f32 %v1526_v51, %v1498_v24  ;;  %v1451_v45 = vpop.f32.mrf.mxu0  ;;  %1866 = vmatpush.bf16.msra.mxu3 %v7530_v38  ;;  %v8520_v24 = vld [vmem:[#allocation7 + $0x5b4] sm:$0xf0]  ;;  %v8430_v56 = vld [vmem:[#allocation7 + $0x2ec] sm:$0xf]  ;;  %v7738_v8 = vor.u32 %v8426_v9, %v7735_v5  ;;  %v8069_v9 = vld [vmem:[#allocation7 + $0x568] sm:$0xf] }
 0x107   :  { %1838 = vmatpush.bf16.msra.mxu2 %v7386_v37  ;;  %v8102_v59 = vor.u32 %v8520_v24, %v8101_v52  ;;  %v8512_v5 = vld [vmem:[#allocation7 + $0x574] sm:$0xf0] }
 0x108   :  { %v1394_v63 = vadd.f32 %v9369_v46, %v1365_v34  ;;  %v8370_v46 = vld [vmem:[#allocation7 + $0x10c] sm:$0xf]  ;;  %v7751_v34 = vld [vmem:[#allocation7 + $0x2f8] sm:$0xf0] }
 0x109   :  { %v7514_v27 = vor.u32 %v8370_v46, %v7511_v7  ;;  %1804 = vmatpush.bf16.msrb.mxu1 %v8102_v59  ;;  %v8516_v46 = vld [vmem:[#allocation7 + $0x594] sm:$0xf0]  ;;  %v8490_v7 = vld [vmem:[#allocation7 + $0x4cc] sm:$0xf] }
 0x10a   :  { %v1423_v13 = vadd.f32 %v9371_v6, %v1394_v63  ;;  %v7754_v63 = vor.u32 %v8430_v56, %v7751_v34  ;;  %v8418_v59 = vld [vmem:[#allocation7 + $0x28c] sm:$0xf]  ;;  %v7703_v34 = vld [vmem:[#allocation7 + $0x298] sm:$0xf0] }
 0x10b   :  { %v1499_v47 = vpop.f32.mrf.mxu2  ;;  %1867 = vmatpush.bf16.msra.mxu3 %v7514_v27  ;;  %v8422_v27 = vld [vmem:[#allocation7 + $0x2ac] sm:$0xf] }
 0x10c   :  { %v9411_v61 = vadd.f32 %v1451_v45, %v1423_v13  ;;  %v1528_v48 = vpop.f32.mrf.mxu3  ;;  %v1500_v35 = vadd.f32 %v1499_v47, %v9379_v33  ;;  %v8007_v45 = vld [vmem:[#allocation7 + $0x4f8] sm:$0xf0]  ;;  %1889 = vmatpush.bf16.msrb.mxu0 %v7754_v63 }
 0x10d   :  { %v1463_v40 = vpop.f32.mrf.mxu1 }
 0x10e   :  { %v9415_v42 = vadd.f32 %v1463_v40, %v9336_v43  ;;  %v9417_v51 = vadd.f32 %v1528_v48, %v1500_v35  ;;  %v1550_v6 = vpop.f32.mrf.mxu0  ;;  %v8494_v43 = vld [vmem:[#allocation7 + $0x4ec] sm:$0xf]  ;;  %v8085_v48 = vld [vmem:[#allocation7 + $0x588] sm:$0xf]  ;;  %v7991_v40 = vld [vmem:[#allocation7 + $0x4d8] sm:$0xf0] }
 0x10f   :  { %v9420_v62 = vadd.f32 %v1550_v6, %v9387_v44  ;;  %1694 = vmatmul.bf16.vlgmr.msra.gmra.mxu1 %v9145_v16  ;;  %v8010_v44 = vor.u32 %v8494_v43, %v8007_v45  ;;  %v8086_v35 = vor.u32 %v8516_v46, %v8085_v48  ;;  %v7719_v6 = vld [vmem:[#allocation7 + $0x2b8] sm:$0xf0]  ;;  %v7994_v52 = vor.u32 %v8490_v7, %v7991_v40  ;;  %v8508_v40 = vld [vmem:[#allocation7 + $0x554] sm:$0xf0] }
 0x110   :  { %1733 = vmatmul.bf16.gmra.mxu2 %v9147_v18  ;;  %1890 = vmatpush.bf16.msrb.mxu0 %v7738_v8  ;;  %v7722_v24 = vor.u32 %v8422_v27, %v7719_v6  ;;  %v7706_v45 = vor.u32 %v8418_v59, %v7703_v34  ;;  %v7687_v8 = vld [vmem:[#allocation7 + $0x278] sm:$0xf0]  ;;  %v8410_v27 = vld [vmem:[#allocation7 + $0x24c] sm:$0xf] }
 0x111   :  { %1762 = vmatmul.bf16.gmra.mxu3 %v9149_v19  ;;  %1781 = vmatmul.bf16.vlgmr.msra.gmra.mxu0 %v9151_v20 }
 0x112   :  { %1947 = vmatpush.bf16.msrb.mxu2 %v8010_v44  ;;  %1805 = vmatpush.bf16.msrb.mxu1 %v8086_v35  ;;  %v8053_v35 = vld [vmem:[#allocation7 + $0x548] sm:$0xf] }
 0x113   :  { %v1502_v57 = vpop.f32.mrf.mxu2 }
 0x114   :  { %v1531_v0 = vpop.f32.mrf.mxu3  ;;  %v1503_v50 = vadd.f32 %v1502_v57, %v9379_v33  ;;  %1891 = vmatpush.bf16.msrb.mxu0 %v7722_v24  ;;  %v8054_v24 = vor.u32 %v8508_v40, %v8053_v35  ;;  %v8500_v35 = vld [vmem:[#allocation7 + $0x514] sm:$0xf0]  ;;  %v8402_v40 = vld [vmem:[#allocation7 + $0x20c] sm:$0xf] }
 0x115   :  { %v1465_v14 = vpop.f32.mrf.mxu1 }
 0x116   :  { %v9428_v13 = vadd.f32 %v1465_v14, %v9345_v39  ;;  %v9430_v37 = vadd.f32 %v1531_v0, %v1503_v50  ;;  %v1552_v38 = vpop.f32.mrf.mxu0  ;;  %1948 = vmatpush.bf16.msrb.mxu2 %v7994_v52  ;;  %v8414_v50 = vld [vmem:[#allocation7 + $0x26c] sm:$0xf]  ;;  %v8070_v14 = vor.u32 %v8512_v5, %v8069_v9 }
 0x117   :  { %v9433_v47 = vadd.f32 %v1552_v38, %v9395_v36  ;;  %v7975_v38 = vld [vmem:[#allocation7 + $0x4b8] sm:$0xf0]  ;;  %v7690_v48 = vor.u32 %v8414_v50, %v7687_v8  ;;  %v8482_v9 = vld [vmem:[#allocation7 + $0x48c] sm:$0xf]  ;;  %v8504_v8 = vld [vmem:[#allocation7 + $0x534] sm:$0xf0] }
 0x118   :  { %1892 = vmatpush.bf16.msrb.mxu0 %v7706_v45  ;;  %1806 = vmatpush.bf16.msrb.mxu1 %v8070_v14  ;;  %v8526_v45 = vld [vmem:[#allocation7 + $0x5ec] sm:$0xf]  ;;  %v7959_v50 = vld [vmem:[#allocation7 + $0x498] sm:$0xf0]  ;;  %v8037_v14 = vld [vmem:[#allocation7 + $0x528] sm:$0xf] }
 0x11b   :  { %v1504_v56 = vpop.f32.mrf.mxu2 }
 0x11c   :  { %v1533_v39 = vpop.f32.mrf.mxu3  ;;  %v1505_v36 = vadd.f32 %v1504_v56, %v9379_v33  ;;  %1893 = vmatpush.bf16.msrb.mxu0 %v7690_v48  ;;  %v7671_v56 = vld [vmem:[#allocation7 + $0x258] sm:$0xf0]  ;;  %1807 = vmatpush.bf16.msrb.mxu1 %v8054_v24 }
 0x11d   :  { %v1468_v43 = vpop.f32.mrf.mxu1  ;;  %v7674_v59 = vor.u32 %v8410_v27, %v7671_v56  ;;  %v7655_v48 = vld [vmem:[#allocation7 + $0x238] sm:$0xf0] }
 0x11e   :  { %v9437_v63 = vadd.f32 %v1468_v43, %v9358_v23  ;;  %v9439_v44 = vadd.f32 %v1533_v39, %v1505_v36  ;;  %v1555_v57 = vpop.f32.mrf.mxu0  ;;  %v8486_v23 = vld [vmem:[#allocation7 + $0x4ac] sm:$0xf] }
 0x11f   :  { %v9442_v0 = vadd.f32 %v1555_v57, %v9407_v60  ;;  %1699 = vmatmul.bf16.gmra.mxu1 %v9181_v1  ;;  %v7978_v60 = vor.u32 %v8486_v23, %v7975_v38  ;;  %v8135_v57 = vld [vmem:[#allocation7 + $0x5f8] sm:$0xf0]  ;;  %v7962_v23 = vor.u32 %v8482_v9, %v7959_v50  ;;  %v8038_v38 = vor.u32 %v8504_v8, %v8037_v14  ;;  %v8522_v9 = vld [vmem:[#allocation7 + $0x5cc] sm:$0xf] }
 0x120   :  { %12219 = vst [vmem:[#allocation10_spill] sm:$0xff] %v9437_v63  ;;  %1738 = vmatmul.bf16.gmra.mxu2 %v9183_v2  ;;  %1894 = vmatpush.bf16.msrb.mxu0 %v7674_v59  ;;  %v8138_v5 = vor.u32 %v8526_v45, %v8135_v57  ;;  %v7943_v50 = vld [vmem:[#allocation7 + $0x478] sm:$0xf0] }
 0x121   :  { %1767 = vmatmul.bf16.gmra.mxu3 %v9185_v3  ;;  %1786 = vmatmul.bf16.gmra.mxu0 %v9187_v4 }
 0x122   :  { %1949 = vmatpush.bf16.msrb.mxu2 %v7978_v60  ;;  %1976 = vmatpush.bf16.msrb.mxu3 %v8138_v5  ;;  %v8119_v5 = vld [vmem:[#allocation7 + $0x5d8] sm:$0xf0] }
 0x123   :  { %v1507_v46 = vpop.f32.mrf.mxu2  ;;  %1808 = vmatpush.bf16.msrb.mxu1 %v8038_v38 }
 0x124   :  { %v1536_v7 = vpop.f32.mrf.mxu3  ;;  %v1508_v6 = vadd.f32 %v1507_v46, %v9379_v33 }
 0x125   :  { %v1470_v52 = vpop.f32.mrf.mxu1 }
 0x126   :  { %v9450_v39 = vadd.f32 %v1470_v52, %v9367_v12  ;;  %v9452_v34 = vadd.f32 %v1536_v7, %v1508_v6  ;;  %v1557_v36 = vpop.f32.mrf.mxu0  ;;  %v8406_v12 = vld [vmem:[#allocation7 + $0x22c] sm:$0xf]  ;;  %1950 = vmatpush.bf16.msrb.mxu2 %v7962_v23  ;;  %v7639_v52 = vld [vmem:[#allocation7 + $0x218] sm:$0xf0] }
 0x127   :  { %v9455_v43 = vadd.f32 %v1557_v36, %v9417_v51  ;;  %v7658_v60 = vor.u32 %v8406_v12, %v7655_v48  ;;  %v8021_v51 = vld [vmem:[#allocation7 + $0x508] sm:$0xf]  ;;  %v7642_v45 = vor.u32 %v8402_v40, %v7639_v52  ;;  %v8518_v12 = vld [vmem:[#allocation7 + $0x5ac] sm:$0xf]  ;;  %v8103_v48 = vld [vmem:[#allocation7 + $0x5b8] sm:$0xf0] }
 0x128   :  { %12220 = vst [vmem:[#allocation11_spill] sm:$0xff] %v9450_v39  ;;  %v8022_v56 = vor.u32 %v8500_v35, %v8021_v51 }
 0x129   :  { %1895 = vmatpush.bf16.msrb.mxu0 %v7658_v60  ;;  %v8474_v60 = vld [vmem:[#allocation7 + $0x44c] sm:$0xf] }
 0x12a   :  { %1809 = vmatpush.bf16.msrb.mxu1 %v8022_v56 }
 0x12b   :  { %v1509_v46 = vpop.f32.mrf.mxu2 }
 0x12c   :  { %v1538_v7 = vpop.f32.mrf.mxu3  ;;  %v1510_v27 = vadd.f32 %v1509_v46, %v9379_v33  ;;  %v8122_v33 = vor.u32 %v8522_v9, %v8119_v5  ;;  %v8106_v46 = vor.u32 %v8518_v12, %v8103_v48  ;;  %v7879_v9 = vld [vmem:[#allocation7 + $0x3f8] sm:$0xf0]  ;;  %v8510_v5 = vld [vmem:[#allocation7 + $0x56c] sm:$0xf] }
 0x12d   :  { %v1473_v6 = vpop.f32.mrf.mxu1  ;;  %1896 = vmatpush.bf16.msrb.mxu0 %v7642_v45  ;;  %v8462_v45 = vld [vmem:[#allocation7 + $0x3ec] sm:$0xf]  ;;  %v8055_v48 = vld [vmem:[#allocation7 + $0x558] sm:$0xf0] }
 0x12e   :  { %v9459_v24 = vadd.f32 %v1473_v6, %v9383_v11  ;;  %v9461_v59 = vadd.f32 %v1538_v7, %v1510_v27  ;;  %v1560_v36 = vpop.f32.mrf.mxu0  ;;  %v8478_v11 = vld [vmem:[#allocation7 + $0x46c] sm:$0xf]  ;;  %1977 = vmatpush.bf16.msrb.mxu3 %v8122_v33  ;;  %v7927_v7 = vld [vmem:[#allocation7 + $0x458] sm:$0xf0]  ;;  %v7882_v33 = vor.u32 %v8462_v45, %v7879_v9 }
 0x12f   :  { %v9464_v57 = vadd.f32 %v1560_v36, %v9430_v37  ;;  %1704 = vmatmul.bf16.gmra.mxu1 %v9205_v54  ;;  %v7946_v14 = vor.u32 %v8478_v11, %v7943_v50  ;;  %v7930_v51 = vor.u32 %v8474_v60, %v7927_v7  ;;  %v8514_v27 = vld [vmem:[#allocation7 + $0x58c] sm:$0xf]  ;;  %v8087_v6 = vld [vmem:[#allocation7 + $0x598] sm:$0xf0] }
 0x130   :  { %12221 = vst [vmem:[#allocation12_spill] sm:$0xff] %v9459_v24  ;;  %1839 = vmatmul.bf16.vlgmr.msra.gmra.mxu2 %v9073_v25  ;;  %v8090_v52 = vor.u32 %v8514_v27, %v8087_v6  ;;  %v8071_v11 = vld [vmem:[#allocation7 + $0x578] sm:$0xf0]  ;;  %1918 = vmatpush.bf16.msra.mxu1 %v7882_v33  ;;  %v8506_v12 = vld [vmem:[#allocation7 + $0x54c] sm:$0xf] }
 0x131   :  { %1868 = vmatmul.bf16.vlgmr.msra.gmra.mxu3 %v9145_v16  ;;  %1791 = vmatmul.bf16.gmra.mxu0 %v9207_v55  ;;  %v7911_v50 = vld [vmem:[#allocation7 + $0x438] sm:$0xf0]  ;;  %v8466_v6 = vld [vmem:[#allocation7 + $0x40c] sm:$0xf] }
 0x132   :  { %1951 = vmatpush.bf16.msrb.mxu2 %v7946_v14  ;;  %1978 = vmatpush.bf16.msrb.mxu3 %v8106_v46  ;;  %v8074_v14 = vor.u32 %v8510_v5, %v8071_v11  ;;  %v7863_v27 = vld [vmem:[#allocation7 + $0x3d8] sm:$0xf0] }
 0x133   :  { %v9470_v8 = vpop.f32.mrf.mxu2  ;;  %v8039_v45 = vld [vmem:[#allocation7 + $0x538] sm:$0xf0] }
 0x134   :  { %v9472_v37 = vpop.f32.mrf.mxu3 }
 0x135   :  { %v1475_v23 = vpop.f32.mrf.mxu1 }
 0x136   :  { %v9475_v38 = vadd.f32 %v1475_v23, %v9391_v53  ;;  %v1562_v25 = vpop.f32.mrf.mxu0  ;;  %1952 = vmatpush.bf16.msrb.mxu2 %v7930_v51  ;;  %1979 = vmatpush.bf16.msrb.mxu3 %v8090_v52  ;;  %v8458_v51 = vld [vmem:[#allocation7 + $0x3cc] sm:$0xf]  ;;  %v7895_v52 = vld [vmem:[#allocation7 + $0x418] sm:$0xf0] }
 0x137   :  { %v9478_v16 = vadd.f32 %v1562_v25, %v9439_v44  ;;  %v7898_v9 = vor.u32 %v8466_v6, %v7895_v52 }
 0x138   :  { %12222 = vst [vmem:[#allocation13_spill] sm:$0xff] %v9475_v38 }
 0x13a   :  { %1980 = vmatpush.bf16.msrb.mxu3 %v8074_v14 }
 0x13b   :  { %v9480_v35 = vpop.f32.mrf.mxu2 }
 0x13c   :  { %v9482_v40 = vpop.f32.mrf.mxu3 }
 0x13d   :  { %v1478_v53 = vpop.f32.mrf.mxu1 }
 0x13e   :  { %v9485_v56 = vadd.f32 %v1478_v53, %v9403_v41  ;;  %v1565_v44 = vpop.f32.mrf.mxu0  ;;  %v8470_v41 = vld [vmem:[#allocation7 + $0x42c] sm:$0xf]  ;;  %v7866_v53 = vor.u32 %v8458_v51, %v7863_v27  ;;  %v7847_v51 = vld [vmem:[#allocation7 + $0x3b8] sm:$0xf0] }
 0x13f   :  { %v9488_v36 = vadd.f32 %v1565_v44, %v9452_v34  ;;  %1709 = vmatmul.bf16.gmra.mxu1 %v9225_v15  ;;  %v7914_v23 = vor.u32 %v8470_v41, %v7911_v50  ;;  %v8502_v44 = vld [vmem:[#allocation7 + $0x52c] sm:$0xf]  ;;  %v8023_v50 = vld [vmem:[#allocation7 + $0x518] sm:$0xf0] }
 0x140   :  { %12223 = vst [vmem:[#allocation14_spill] sm:$0xff] %v9485_v56  ;;  %1844 = vmatmul.bf16.gmra.mxu2 %v9109_v21  ;;  %v8058_v21 = vor.u32 %v8506_v12, %v8055_v48  ;;  %v8042_v5 = vor.u32 %v8502_v44, %v8039_v45  ;;  %1919 = vmatpush.bf16.msra.mxu1 %v7866_v53  ;;  %v8498_v41 = vld [vmem:[#allocation7 + $0x50c] sm:$0xf] }
 0x141   :  { %1873 = vmatmul.bf16.gmra.mxu3 %v9181_v1  ;;  %1796 = vmatmul.bf16.gmra.mxu0 %v9227_v17 }
 0x142   :  { %1953 = vmatpush.bf16.msrb.mxu2 %v7914_v23  ;;  %1981 = vmatpush.bf16.msrb.mxu3 %v8058_v21  ;;  %v8026_v23 = vor.u32 %v8498_v41, %v8023_v50 }
 0x143   :  { %v9494_v34 = vpop.f32.mrf.mxu2 }
 0x144   :  { %v9496_v25 = vpop.f32.mrf.mxu3 }
 0x145   :  { %v1480_v60 = vpop.f32.mrf.mxu1 }
 0x146   :  { %v9499_v1 = vadd.f32 %v1480_v60, %v9411_v61  ;;  %v1567_v46 = vpop.f32.mrf.mxu0  ;;  %v9511_v61 = vld [vmem:[%s12187_s3] sm:$0xf]  ;;  %1954 = vmatpush.bf16.msrb.mxu2 %v7898_v9  ;;  %1982 = vmatpush.bf16.msrb.mxu3 %v8042_v5  ;;  %v8450_v9 = vld [vmem:[#allocation7 + $0x38c] sm:$0xf]  ;;  %s8947_s3 = smov 88  }
 0x147   :  { %v9502_v7 = vadd.f32 %v1567_v46, %v9461_v59  ;;  %v9514_v59 = vperm.slane %v9511_v61, 2  ;;  %v8454_v46 = vld [vmem:[#allocation7 + $0x3ac] sm:$0xf] }
 0x148   :  { %12224 = vst [vmem:[#allocation15_spill] sm:$0xff] %v9499_v1  ;;  %v7850_v27 = vor.u32 %v8454_v46, %v7847_v51  ;;  %v7815_v46 = vld [vmem:[#allocation7 + $0x378] sm:$0xf0] }
 0x14a   :  { %1983 = vmatpush.bf16.msrb.mxu3 %v8026_v23  ;;  %1920 = vmatpush.bf16.msra.mxu1 %v7850_v27 }
 0x14b   :  { %v9504_v33 = vpop.f32.mrf.mxu2 }
 0x14c   :  { %v9506_v11 = vpop.f32.mrf.mxu3 }
 0x14d   :  { %v1579_v14 = vpop.f32.mrf.mxu1 }
 0x14e   :  { %v1580_v12 = vadd.f32 %v1579_v14, %v9420_v62  ;;  %v1666_v48 = vpop.f32.mrf.mxu0  ;;  %v8165_v62 = vld [vmem:[%s12188_s4 + $0x30] sm:$0xf] }
 0x14f   :  { %v9519_v21 = vadd.f32 %v1666_v48, %v9514_v59  ;;  %1810 = vmatmul.bf16.vlgmr.msrb.gmra.mxu1 %v9239_v49 }
 0x150   :  { %v1609_v60 = vadd.f32 %v9470_v8, %v1580_v12  ;;  %1849 = vmatmul.bf16.gmra.mxu2 %v9075_v26  ;;  %v8536_v8 = vld [vmem:[%s12188_s4 + $0x34] sm:$0xf0] }
 0x151   :  { %1878 = vmatmul.bf16.gmra.mxu3 %v9205_v54  ;;  %1897 = vmatmul.bf16.vlgmr.msrb.gmra.mxu0 %v9077_v30  ;;  %v9534_v53 = vor.u32 %v8536_v8, %v8165_v62  ;;  %v7799_v8 = vld [vmem:[#allocation7 + $0x358] sm:$0xf0] }
 0x152   :  { %v9532_v6 = vadd.f32 %v9472_v37, %v1609_v60  ;;  %v7831_v37 = vld [vmem:[#allocation7 + $0x398] sm:$0xf0] }
 0x153   :  { %v1618_v26 = vpop.f32.mrf.mxu2  ;;  %2103 = vmatpush.bf16.msra.mxu2 %v9534_v53  ;;  %2316 = vmatpush.bf16.msra.mxu0 %v9534_v53  ;;  %v7834_v5 = vor.u32 %v8450_v9, %v7831_v37  ;;  %v8535_v9 = vld [vmem:[%s12188_s4 + $0x34] sm:$0xf]  ;;  %v8167_v37 = vld [vmem:[%s12188_s4 + $0x38] sm:$0xf0] }
 0x154   :  { %v9536_v52 = vpop.f32.mrf.mxu3 }
 0x155   :  { %v1581_v54 = vpop.f32.mrf.mxu1  ;;  %1921 = vmatpush.bf16.msra.mxu1 %v7834_v5  ;;  %v8438_v5 = vld [vmem:[#allocation7 + $0x32c] sm:$0xf] }
 0x156   :  { %v1582_v30 = vadd.f32 %v1581_v54, %v9433_v47  ;;  %v9541_v44 = vpop.f32.mrf.mxu0 }
 0x158   :  { %v1611_v45 = vadd.f32 %v9480_v35, %v1582_v30  ;;  %v8446_v35 = vld [vmem:[#allocation7 + $0x36c] sm:$0xf] }
 0x15a   :  { %v9545_v41 = vadd.f32 %v9482_v40, %v1611_v45  ;;  %v7818_v40 = vor.u32 %v8446_v35, %v7815_v46  ;;  %v8434_v35 = vld [vmem:[#allocation7 + $0x30c] sm:$0xf]  ;;  %v7767_v46 = vld [vmem:[#allocation7 + $0x318] sm:$0xf0] }
 0x15b   :  { %v9547_v50 = vpop.f32.mrf.mxu2 }
 0x15c   :  { %12225 = vst [vmem:[#allocation16_spill] sm:$0xff] %v9545_v41  ;;  %v9549_v14 = vpop.f32.mrf.mxu3  ;;  %1922 = vmatpush.bf16.msra.mxu1 %v7818_v40 }
 0x15d   :  { %v1584_v23 = vpop.f32.mrf.mxu1 }
 0x15e   :  { %v1585_v12 = vadd.f32 %v1584_v23, %v9442_v0  ;;  %v1671_v48 = vpop.f32.mrf.mxu0  ;;  %v8157_v0 = vld [vmem:[%s12188_s4 + $0x20] sm:$0xf]  ;;  %v9585_v23 = vor.u32 %v8535_v9, %v8167_v37 }
 0x15f   :  { %v9554_v60 = vadd.f32 %v1671_v48, %v9514_v59  ;;  %1815 = vmatmul.bf16.gmra.mxu1 %v9251_v32 }
 0x160   :  { %v1614_v47 = vadd.f32 %v9494_v34, %v1585_v12  ;;  %1854 = vmatmul.bf16.gmra.mxu2 %v9111_v22  ;;  %v8534_v34 = vld [vmem:[%s12188_s4 + $0x24] sm:$0xf0]  ;;  %v7783_v12 = vld [vmem:[#allocation7 + $0x338] sm:$0xf0]  ;;  %2116 = vmatpush.bf16.msra.mxu3 %v9585_v23 }
 0x161   :  { %1883 = vmatmul.bf16.gmra.mxu3 %v9225_v15  ;;  %1902 = vmatmul.bf16.gmra.mxu0 %v9113_v28  ;;  %v9569_v27 = vor.u32 %v8534_v34, %v8157_v0  ;;  %v8442_v15 = vld [vmem:[#allocation7 + $0x34c] sm:$0xf]  ;;  %v7786_v48 = vor.u32 %v8438_v5, %v7783_v12  ;;  %v7770_v34 = vor.u32 %v8434_v35, %v7767_v46  ;;  %v8533_v12 = vld [vmem:[%s12188_s4 + $0x24] sm:$0xf] }
 0x162   :  { %v9567_v51 = vadd.f32 %v9496_v25, %v1614_v47  ;;  %v7802_v54 = vor.u32 %v8442_v15, %v7799_v8 }
 0x163   :  { %v1623_v22 = vpop.f32.mrf.mxu2  ;;  %2104 = vmatpush.bf16.msra.mxu2 %v9569_v27  ;;  %2317 = vmatpush.bf16.msra.mxu0 %v9569_v27 }
 0x164   :  { %12226 = vst [vmem:[#allocation17_spill] sm:$0xff] %v9567_v51  ;;  %v9571_v62 = vpop.f32.mrf.mxu3  ;;  %1923 = vmatpush.bf16.msra.mxu1 %v7802_v54 }
 0x165   :  { %v1586_v28 = vpop.f32.mrf.mxu1 }
 0x166   :  { %v1587_v30 = vadd.f32 %v1586_v28, %v9455_v43  ;;  %v9576_v45 = vpop.f32.mrf.mxu0 }
 0x168   :  { %v1616_v25 = vadd.f32 %v9504_v33, %v1587_v30  ;;  %1924 = vmatpush.bf16.msra.mxu1 %v7786_v48 }
 0x16a   :  { %v9588_v43 = vadd.f32 %v9506_v11, %v1616_v25 }
 0x16b   :  { %v1625_v47 = vpop.f32.mrf.mxu2 }
 0x16c   :  { %12227 = vst [vmem:[#allocation18_spill] sm:$0xff] %v9588_v43  ;;  %v1654_v33 = vpop.f32.mrf.mxu3  ;;  %1925 = vmatpush.bf16.msra.mxu1 %v7770_v34 }
 0x16d   :  { %v1589_v40 = vpop.f32.mrf.mxu1 }
 0x16e   :  { %v1590_v0 = vadd.f32 %v1589_v40, %v9464_v57  ;;  %v1676_v15 = vpop.f32.mrf.mxu0 }
 0x16f   :  { %v9593_v28 = vadd.f32 %v1676_v15, %v9514_v59  ;;  %1820 = vmatmul.bf16.gmra.mxu1 %v9271_v10  ;;  %v8530_v15 = vld [vmem:[%s12188_s4 + $0x4] sm:$0xf0] }
 0x170   :  { %v1619_v8 = vadd.f32 %v1618_v26, %v1590_v0  ;;  %1955 = vmatmul.bf16.vlgmr.msrb.gmra.mxu2 %v9151_v20  ;;  %2329 = vmatpush.bf16.msrb.mxu1 %v9585_v23  ;;  %v8149_v26 = vld [vmem:[%s12188_s4 + $0x10] sm:$0xf]  ;;  %v8532_v20 = vld [vmem:[%s12188_s4 + $0x14] sm:$0xf0] }
 0x171   :  { %1984 = vmatmul.bf16.vlgmr.msrb.gmra.mxu3 %v9239_v49  ;;  %1907 = vmatmul.bf16.gmra.mxu0 %v9147_v18  ;;  %v9611_v30 = vor.u32 %v8532_v20, %v8149_v26  ;;  %v8531_v26 = vld [vmem:[%s12188_s4 + $0x14] sm:$0xf]  ;;  %v8151_v20 = vld [vmem:[%s12188_s4 + $0x18] sm:$0xf0] }
 0x172   :  { %v9600_v11 = vadd.f32 %v9536_v52, %v1619_v8 }
 0x173   :  { %v1724_v57 = vpop.f32.mrf.mxu2  ;;  %2105 = vmatpush.bf16.msra.mxu2 %v9611_v30  ;;  %2318 = vmatpush.bf16.msra.mxu0 %v9611_v30 }
 0x174   :  { %12228 = vst [vmem:[#allocation19_spill] sm:$0xff] %v9600_v11  ;;  %v9603_v54 = vpop.f32.mrf.mxu3 }
 0x175   :  { %v1591_v49 = vpop.f32.mrf.mxu1 }
 0x176   :  { %v1592_v18 = vadd.f32 %v1591_v49, %v9478_v16  ;;  %v9614_v52 = vpop.f32.mrf.mxu0  ;;  %v8159_v16 = vld [vmem:[%s12188_s4 + $0x28] sm:$0xf0]  ;;  %v9671_v49 = vor.u32 %v8531_v26, %v8151_v20 }
 0x177   :  { %v9632_v35 = vor.u32 %v8533_v12, %v8159_v16  ;;  %v8143_v12 = vld [vmem:[%s12188_s4 + $0x8] sm:$0xf0] }
 0x178   :  { %v1621_v25 = vadd.f32 %v9547_v50, %v1592_v18 }
 0x179   :  { %2117 = vmatpush.bf16.msra.mxu3 %v9632_v35  ;;  %2330 = vmatpush.bf16.msrb.mxu1 %v9632_v35 }
 0x17a   :  { %v9620_v9 = vadd.f32 %v9549_v14, %v1621_v25  ;;  %v8529_v25 = vld [vmem:[%s12188_s4 + $0x4] sm:$0xf] }
 0x17b   :  { %v9622_v37 = vpop.f32.mrf.mxu2  ;;  %v9688_v16 = vor.u32 %v8529_v25, %v8143_v12  ;;  %v8183_v25 = vld [vmem:[%s12189_s5 + $0x10] sm:$0xf]  ;;  %v8540_v12 = vld [vmem:[%s12189_s5 + $0x14] sm:$0xf0] }
 0x17c   :  { %12229 = vst [vmem:[#allocation20_spill] sm:$0xff] %v9620_v9  ;;  %v9624_v5 = vpop.f32.mrf.mxu3 }
 0x17d   :  { %v1594_v48 = vpop.f32.mrf.mxu1  ;;  %2118 = vmatpush.bf16.msra.mxu3 %v9671_v49  ;;  %2331 = vmatpush.bf16.msrb.mxu1 %v9671_v49 }
 0x17e   :  { %v1595_v50 = vadd.f32 %v1594_v48, %v9488_v36  ;;  %v1681_v46 = vpop.f32.mrf.mxu0 }
 0x17f   :  { %v9638_v40 = vadd.f32 %v1681_v46, %v9514_v59  ;;  %1825 = vmatmul.bf16.gmra.mxu1 %v9302_v58 }
 0x180   :  { %v1624_v14 = vadd.f32 %v1623_v22, %v1595_v50  ;;  %1960 = vmatmul.bf16.gmra.mxu2 %v9187_v4  ;;  %v8141_v22 = vld [vmem:[%s12188_s4] sm:$0xf]  ;;  %s8949_s4 = smov 40  }
 0x181   :  { %1989 = vmatmul.bf16.gmra.mxu3 %v9251_v32  ;;  %1912 = vmatmul.bf16.gmra.mxu0 %v9183_v2  ;;  %v9657_v8 = vor.u32 %v8530_v15, %v8141_v22  ;;  %v8544_v22 = vld [vmem:[%s12189_s5 + $0x34] sm:$0xf0] }
 0x182   :  { %v9645_v0 = vadd.f32 %v9571_v62, %v1624_v14  ;;  %2119 = vmatpush.bf16.msra.mxu3 %v9688_v16  ;;  %2332 = vmatpush.bf16.msrb.mxu1 %v9688_v16  ;;  %v8199_v14 = vld [vmem:[%s12189_s5 + $0x30] sm:$0xf] }
 0x183   :  { %v9647_v36 = vpop.f32.mrf.mxu2  ;;  %2106 = vmatpush.bf16.msra.mxu2 %v9657_v8  ;;  %2319 = vmatpush.bf16.msra.mxu0 %v9657_v8 }
 0x184   :  { %12230 = vst [vmem:[#allocation21_spill] sm:$0xff] %v9645_v0  ;;  %v9649_v34 = vpop.f32.mrf.mxu3 }
 0x185   :  { %v1596_v4 = vpop.f32.mrf.mxu1 }
 0x186   :  { %v1597_v2 = vadd.f32 %v1596_v4, %v9502_v7  ;;  %v9660_v32 = vpop.f32.mrf.mxu0 }
 0x187   :  { %2496 = vmatpush.bf16.msrb.mxu0 %v9534_v53 }
 0x188   :  { %v1626_v62 = vadd.f32 %v1625_v47, %v1597_v2 }
 0x18a   :  { %v9673_v7 = vadd.f32 %v1654_v33, %v1626_v62 }
 0x18b   :  { %v9677_v18 = vpop.f32.mrf.mxu2  ;;  %2497 = vmatpush.bf16.msrb.mxu0 %v9569_v27 }
 0x18c   :  { %12231 = vst [vmem:[#allocation22_spill] sm:$0xff] %v9673_v7  ;;  %v9679_v47 = vpop.f32.mrf.mxu3 }
 0x18d   :  { %v1695_v33 = vpop.f32.mrf.mxu1 }
 0x18e   :  { %v1696_v48 = vadd.f32 %v1695_v33, %v9519_v21  ;;  %v1782_v50 = vpop.f32.mrf.mxu0  ;;  %v9703_v21 = vor.u32 %v8544_v22, %v8199_v14  ;;  %v8543_v33 = vld [vmem:[%s12189_s5 + $0x34] sm:$0xf] }
 0x18f   :  { %1926 = vmatmul.bf16.vlgmr.msra.gmra.mxu1 %v9079_v31  ;;  %2498 = vmatpush.bf16.msrb.mxu0 %v9611_v30 }
 0x190   :  { %v1725_v46 = vadd.f32 %v1724_v57, %v1696_v48  ;;  %1965 = vmatmul.bf16.gmra.mxu2 %v9207_v55  ;;  %v1669_v57 = vadd.f32 %v9541_v44, %v9514_v59  ;;  %2509 = vmatpush.bf16.msra.mxu1 %v9585_v23  ;;  %v8191_v55 = vld [vmem:[%s12189_s5 + $0x20] sm:$0xf]  ;;  %v9739_v48 = vor.u32 %v8540_v12, %v8183_v25 }
 0x191   :  { %1994 = vmatmul.bf16.gmra.mxu3 %v9271_v10  ;;  %2221 = vmatpush.bf16.msrb.mxu2 %v9703_v21  ;;  %v8542_v10 = vld [vmem:[%s12189_s5 + $0x24] sm:$0xf0] }
 0x192   :  { %v1754_v31 = vadd.f32 %v9603_v54, %v1725_v46  ;;  %v9723_v54 = vor.u32 %v8542_v10, %v8191_v55 }
 0x193   :  { %v9712_v4 = vpop.f32.mrf.mxu2  ;;  %2499 = vmatpush.bf16.msrb.mxu0 %v9657_v8 }
 0x194   :  { %v9710_v15 = vadd.f32 %v1782_v50, %v1754_v31  ;;  %v9714_v2 = vpop.f32.mrf.mxu3  ;;  %2510 = vmatpush.bf16.msra.mxu1 %v9632_v35  ;;  %v8201_v50 = vld [vmem:[%s12189_s5 + $0x38] sm:$0xf0]  ;;  %v8541_v31 = vld [vmem:[%s12189_s5 + $0x24] sm:$0xf] }
 0x195   :  { %v1697_v44 = vpop.f32.mrf.mxu1  ;;  %2222 = vmatpush.bf16.msrb.mxu2 %v9723_v54  ;;  %v9747_v46 = vor.u32 %v8543_v33, %v8201_v50  ;;  %v8539_v33 = vld [vmem:[%s12189_s5 + $0x14] sm:$0xf] }
 0x196   :  { %v1698_v62 = vadd.f32 %v1697_v44, %v1669_v57  ;;  %v9726_v26 = vpop.f32.mrf.mxu0  ;;  %v8175_v57 = vld [vmem:[%s12189_s5] sm:$0xf]  ;;  %v8193_v44 = vld [vmem:[%s12189_s5 + $0x28] sm:$0xf0] }
 0x197   :  { %12232 = vst [vmem:[#allocation23_spill] sm:$0xff] %v9726_v26  ;;  %2234 = vmatpush.bf16.msrb.mxu3 %v9747_v46 }
 0x198   :  { %v1727_v20 = vadd.f32 %v9622_v37, %v1698_v62  ;;  %2511 = vmatpush.bf16.msra.mxu1 %v9671_v49 }
 0x199   :  { %2223 = vmatpush.bf16.msrb.mxu2 %v9739_v48 }
 0x19a   :  { %v9745_v37 = vadd.f32 %v9624_v5, %v1727_v20  ;;  %v8538_v5 = vld [vmem:[%s12189_s5 + $0x4] sm:$0xf0]  ;;  %v9771_v20 = vor.u32 %v8541_v31, %v8193_v44 }
 0x19b   :  { %v9751_v14 = vpop.f32.mrf.mxu2  ;;  %v9765_v10 = vor.u32 %v8538_v5, %v8175_v57 }
 0x19c   :  { %12233 = vst [vmem:[#allocation24_spill] sm:$0xff] %v9745_v37  ;;  %v9753_v22 = vpop.f32.mrf.mxu3  ;;  %2512 = vmatpush.bf16.msra.mxu1 %v9688_v16  ;;  %2235 = vmatpush.bf16.msrb.mxu3 %v9771_v20 }
 0x19d   :  { %v1700_v55 = vpop.f32.mrf.mxu1  ;;  %2224 = vmatpush.bf16.msrb.mxu2 %v9765_v10 }
 0x19e   :  { %v1701_v62 = vadd.f32 %v1700_v55, %v9554_v60  ;;  %v1787_v25 = vpop.f32.mrf.mxu0  ;;  %v8185_v60 = vld [vmem:[%s12189_s5 + $0x18] sm:$0xf0]  ;;  %v8537_v55 = vld [vmem:[%s12189_s5 + $0x4] sm:$0xf] }
 0x19f   :  { %1931 = vmatmul.bf16.gmra.mxu1 %v9115_v29  ;;  %v9786_v50 = vor.u32 %v8539_v33, %v8185_v60 }
 0x1a0   :  { %v1730_v12 = vadd.f32 %v9647_v36, %v1701_v62  ;;  %1970 = vmatmul.bf16.gmra.mxu2 %v9227_v17  ;;  %v1674_v36 = vadd.f32 %v9576_v45, %v9514_v59  ;;  %v8177_v17 = vld [vmem:[%s12189_s5 + $0x8] sm:$0xf0]  ;;  %s8946_s5 = smov 64  }
 0x1a1   :  { %1999 = vmatmul.bf16.gmra.mxu3 %v9302_v58  ;;  %v9800_v44 = vor.u32 %v8537_v55, %v8177_v17 }
 0x1a2   :  { %v1759_v29 = vadd.f32 %v9649_v34, %v1730_v12  ;;  %2236 = vmatpush.bf16.msrb.mxu3 %v9786_v50 }
 0x1a3   :  { %v1739_v5 = vpop.f32.mrf.mxu2 }
 0x1a4   :  { %v9791_v57 = vadd.f32 %v1787_v25, %v1759_v29  ;;  %v1768_v31 = vpop.f32.mrf.mxu3 }
 0x1a5   :  { %v1702_v58 = vpop.f32.mrf.mxu1 }
 0x1a6   :  { %v1703_v45 = vadd.f32 %v1702_v58, %v1674_v36  ;;  %v9802_v62 = vpop.f32.mrf.mxu0  ;;  %2237 = vmatpush.bf16.msrb.mxu3 %v9800_v44  ;;  %v12205_v36 = vmov 0  }
 0x1a7   :  { %12234 = vst [vmem:[#allocation25_spill] sm:$0xff] %v9802_v62 }
 0x1a8   :  { %v1732_v34 = vadd.f32 %v9677_v18, %v1703_v45  ;;  %v9819_v18 = vperm.slane %v9511_v61, 3 }
 0x1aa   :  { %v9807_v25 = vadd.f32 %v9679_v47, %v1732_v34 }
 0x1ab   :  { %v9809_v12 = vpop.f32.mrf.mxu2 }
 0x1ac   :  { %12235 = vst [vmem:[#allocation26_spill] sm:$0xff] %v9807_v25  ;;  %v9811_v33 = vpop.f32.mrf.mxu3 }
 0x1ad   :  { %v1705_v60 = vpop.f32.mrf.mxu1 }
 0x1ae   :  { %v1706_v29 = vadd.f32 %v1705_v60, %v9593_v28  ;;  %v1792_v7 = vpop.f32.mrf.mxu0 }
 0x1af   :  { %1936 = vmatmul.bf16.gmra.mxu1 %v9149_v19 }
 0x1b0   :  { %v1735_v55 = vadd.f32 %v9712_v4, %v1706_v29  ;;  %2107 = vmatmul.bf16.vlgmr.msra.gmra.mxu2 %v12205_v36 }
 0x1b1   :  { %2120 = vmatmul.bf16.vlgmr.msra.gmra.mxu3 %v12205_v36  ;;  %2401 = vmatpush.bf16.msra.mxu2 %v9703_v21 }
 0x1b2   :  { %v1764_v47 = vadd.f32 %v9714_v2, %v1735_v55  ;;  %2414 = vmatpush.bf16.msra.mxu3 %v9747_v46 }
 0x1b3   :  { %v1840_v17 = vpop.f32.mrf.mxu2 }
 0x1b4   :  { %v9824_v28 = vadd.f32 %v1792_v7, %v1764_v47  ;;  %v1869_v4 = vpop.f32.mrf.mxu3  ;;  %v1841_v19 = vadd.f32 %v1840_v17, %v9819_v18 }
 0x1b5   :  { %v9827_v58 = vpop.f32.mrf.mxu1  ;;  %2402 = vmatpush.bf16.msra.mxu2 %v9723_v54 }
 0x1b6   :  { %2415 = vmatpush.bf16.msra.mxu3 %v9771_v20  ;;  %v1870_v61 = vadd.f32 %v1869_v4, %v1841_v19  ;;  %v9831_v45 = vpop.f32.mrf.mxu0 }
 0x1b9   :  { %2403 = vmatpush.bf16.msra.mxu2 %v9739_v48 }
 0x1ba   :  { %2416 = vmatpush.bf16.msra.mxu3 %v9786_v50 }
 0x1bb   :  { %v9835_v2 = vpop.f32.mrf.mxu2 }
 0x1bc   :  { %12236 = vst [vmem:[#allocation27_spill] sm:$0xff] %v9835_v2  ;;  %v9837_v7 = vpop.f32.mrf.mxu3 }
 0x1bd   :  { %12237 = vst [vmem:[#allocation28_spill] sm:$0xff] %v9837_v7  ;;  %v1710_v34 = vpop.f32.mrf.mxu1  ;;  %2404 = vmatpush.bf16.msra.mxu2 %v9765_v10 }
 0x1be   :  { %v1711_v60 = vadd.f32 %v1710_v34, %v9638_v40  ;;  %2417 = vmatpush.bf16.msra.mxu3 %v9800_v44  ;;  %v1797_v29 = vpop.f32.mrf.mxu0 }
 0x1bf   :  { %1941 = vmatmul.bf16.gmra.mxu1 %v9185_v3 }
 0x1c0   :  { %v1740_v55 = vadd.f32 %v1739_v5, %v1711_v60  ;;  %2225 = vmatmul.bf16.vlgmr.msrb.gmra.mxu2 %v12205_v36 }
 0x1c1   :  { %2238 = vmatmul.bf16.vlgmr.msrb.gmra.mxu3 %v12205_v36  ;;  %2581 = vmatpush.bf16.msrb.mxu2 %v9703_v21 }
 0x1c2   :  { %v1769_v47 = vadd.f32 %v1768_v31, %v1740_v55  ;;  %2594 = vmatpush.bf16.msrb.mxu3 %v9747_v46 }
 0x1c3   :  { %v1845_v4 = vpop.f32.mrf.mxu2 }
 0x1c4   :  { %v1798_v17 = vadd.f32 %v1797_v29, %v1769_v47  ;;  %v1874_v40 = vpop.f32.mrf.mxu3  ;;  %v1846_v19 = vadd.f32 %v1845_v4, %v9819_v18 }
 0x1c5   :  { %v9848_v34 = vpop.f32.mrf.mxu1  ;;  %2582 = vmatpush.bf16.msrb.mxu2 %v9723_v54 }
 0x1c6   :  { %2595 = vmatpush.bf16.msrb.mxu3 %v9771_v20  ;;  %v1875_v3 = vadd.f32 %v1874_v40, %v1846_v19  ;;  %v9852_v5 = vpop.f32.mrf.mxu0 }
 0x1c9   :  { %2583 = vmatpush.bf16.msrb.mxu2 %v9739_v48 }
 0x1ca   :  { %2596 = vmatpush.bf16.msrb.mxu3 %v9786_v50 }
 0x1cb   :  { %v9856_v31 = vpop.f32.mrf.mxu2 }
 0x1cc   :  { %12238 = vst [vmem:[#allocation29_spill] sm:$0xff] %v9856_v31  ;;  %v9858_v60 = vpop.f32.mrf.mxu3 }
 0x1cd   :  { %12239 = vst [vmem:[#allocation30_spill] sm:$0xff] %v9858_v60  ;;  %v1811_v29 = vpop.f32.mrf.mxu1  ;;  %2584 = vmatpush.bf16.msrb.mxu2 %v9765_v10 }
 0x1ce   :  { %v9861_v55 = vadd.f32 %v1811_v29, %v9710_v15  ;;  %2597 = vmatpush.bf16.msrb.mxu3 %v9800_v44  ;;  %v1898_v47 = vpop.f32.mrf.mxu0 }
 0x1cf   :  { %v1899_v4 = vadd.f32 %v1898_v47, %v1870_v61 }
 0x1d0   :  { %12240 = vst [vmem:[#allocation31_spill] sm:$0xff] %v9861_v55 }
 0x1d3   :  { %v1850_v40 = vpop.f32.mrf.mxu2 }
 0x1d4   :  { %v1879_v19 = vpop.f32.mrf.mxu3  ;;  %v1851_v36 = vadd.f32 %v1850_v40, %v9819_v18 }
 0x1d5   :  { %v9866_v1 = vpop.f32.mrf.mxu1 }
 0x1d6   :  { %12241 = vst [vmem:[#allocation32_spill] sm:$0xff] %v9866_v1  ;;  %v1880_v0 = vadd.f32 %v1879_v19, %v1851_v36  ;;  %v9868_v56 = vpop.f32.mrf.mxu0 }
 0x1d7   :  { %12242 = vst [vmem:[#allocation33_spill] sm:$0xff] %v9868_v56 }
 0x1db   :  { %v9870_v9 = vpop.f32.mrf.mxu2 }
 0x1dc   :  { %v9872_v7 = vpop.f32.mrf.mxu3 }
 0x1dd   :  { %v1816_v15 = vpop.f32.mrf.mxu1 }
 0x1de   :  { %v9875_v29 = vadd.f32 %v1816_v15, %v9791_v57  ;;  %v1903_v55 = vpop.f32.mrf.mxu0 }
 0x1df   :  { %v1904_v38 = vadd.f32 %v1903_v55, %v1875_v3 }
 0x1e0   :  { %12243 = vst [vmem:[#allocation34_spill] sm:$0xff] %v9875_v29 }
 0x1e3   :  { %v1855_v61 = vpop.f32.mrf.mxu2 }
 0x1e4   :  { %v1884_v47 = vpop.f32.mrf.mxu3  ;;  %v1856_v2 = vadd.f32 %v1855_v61, %v9819_v18 }
 0x1e5   :  { %v9878_v40 = vpop.f32.mrf.mxu1 }
 0x1e6   :  { %12244 = vst [vmem:[#allocation35_spill] sm:$0xff] %v9878_v40  ;;  %v1885_v1 = vadd.f32 %v1884_v47, %v1856_v2  ;;  %v9880_v36 = vpop.f32.mrf.mxu0 }
 0x1e7   :  { %12245 = vst [vmem:[#allocation36_spill] sm:$0xff] %v9880_v36 }
 0x1eb   :  { %v9882_v19 = vpop.f32.mrf.mxu2 }
 0x1ec   :  { %v9884_v56 = vpop.f32.mrf.mxu3 }
 0x1ed   :  { %v1821_v26 = vpop.f32.mrf.mxu1 }
 0x1ee   :  { %v9887_v37 = vadd.f32 %v1821_v26, %v9824_v28  ;;  %v1908_v57 = vpop.f32.mrf.mxu0 }
 0x1ef   :  { %v1909_v15 = vadd.f32 %v1908_v57, %v1880_v0 }
 0x1f0   :  { %12246 = vst [vmem:[#allocation37_spill] sm:$0xff] %v9887_v37 }
 0x1f3   :  { %v1956_v3 = vpop.f32.mrf.mxu2 }
 0x1f4   :  { %v1985_v55 = vpop.f32.mrf.mxu3 }
 0x1f5   :  { %v9889_v11 = vpop.f32.mrf.mxu1 }
 0x1f6   :  { %v9891_v61 = vpop.f32.mrf.mxu0 }
 0x1fb   :  { %v9893_v29 = vpop.f32.mrf.mxu2 }
 0x1fc   :  { %12247 = vst [vmem:[#allocation38_spill] sm:$0xff] %v9893_v29  ;;  %v9895_v2 = vpop.f32.mrf.mxu3 }
 0x1fd   :  { %12248 = vst [vmem:[#allocation39_spill] sm:$0xff] %v9895_v2  ;;  %v1826_v47 = vpop.f32.mrf.mxu1 }
 0x1fe   :  { %v9897_v24 = vadd.f32 %v1826_v47, %v1798_v17  ;;  %v1913_v43 = vpop.f32.mrf.mxu0 }
 0x1ff   :  { %v1914_v36 = vadd.f32 %v1913_v43, %v1885_v1 }
 0x203   :  { %v1961_v60 = vpop.f32.mrf.mxu2 }
 0x204   :  { %v1990_v26 = vpop.f32.mrf.mxu3 }
 0x205   :  { %v1828_v28 = vpop.f32.mrf.mxu1 }
 0x20b   :  { %v9899_v31 = vpop.f32.mrf.mxu2 }
 0x20c   :  { %12249 = vst [vmem:[#allocation40_spill] sm:$0xff] %v9899_v31  ;;  %v9901_v0 = vpop.f32.mrf.mxu3 }
 0x20d   :  { %12250 = vst [vmem:[#allocation41_spill] sm:$0xff] %v9901_v0  ;;  %v1927_v57 = vpop.f32.mrf.mxu1 }
 0x20e   :  { %v1928_v40 = vadd.f32 %v1927_v57, %v1899_v4  ;;  %v1684_v57 = vadd.f32 %v9660_v32, %v9514_v59 }
 0x210   :  { %v1957_v62 = vadd.f32 %v1956_v3, %v1928_v40 }
 0x212   :  { %v9903_v25 = vadd.f32 %v1985_v55, %v1957_v62 }
 0x213   :  { %v1966_v29 = vpop.f32.mrf.mxu2 }
 0x214   :  { %12251 = vst [vmem:[#allocation42_spill] sm:$0xff] %v9903_v25  ;;  %v1995_v39 = vpop.f32.mrf.mxu3 }
 0x215   :  { %v9905_v2 = vpop.f32.mrf.mxu1 }
 0x216   :  { %12252 = vst [vmem:[#allocation43_spill] sm:$0xff] %v9905_v2 }
 0x21b   :  { %v9907_v17 = vpop.f32.mrf.mxu2 }
 0x21c   :  { %v9909_v47 = vpop.f32.mrf.mxu3 }
 0x21d   :  { %v1932_v1 = vpop.f32.mrf.mxu1 }
 0x21e   :  { %v1933_v43 = vadd.f32 %v1932_v1, %v1904_v38  ;;  %v1713_v38 = vadd.f32 %v9848_v34, %v1684_v57 }
 0x220   :  { %v1962_v51 = vadd.f32 %v1961_v60, %v1933_v43 }
 0x222   :  { %v9911_v63 = vadd.f32 %v1990_v26, %v1962_v51 }
 0x223   :  { %v1971_v31 = vpop.f32.mrf.mxu2 }
 0x224   :  { %v2000_v0 = vpop.f32.mrf.mxu3 }
 0x225   :  { %v9913_v37 = vpop.f32.mrf.mxu1 }
 0x22b   :  { %v1973_v4 = vpop.f32.mrf.mxu2 }
 0x22c   :  { %v2002_v62 = vpop.f32.mrf.mxu3 }
 0x22d   :  { %v1937_v40 = vpop.f32.mrf.mxu1 }
 0x22e   :  { %v1938_v3 = vadd.f32 %v1937_v40, %v1909_v15  ;;  %v1742_v15 = vadd.f32 %v9809_v12, %v1713_v38 }
 0x230   :  { %v1967_v55 = vadd.f32 %v1966_v29, %v1938_v3 }
 0x232   :  { %v9917_v25 = vadd.f32 %v1995_v39, %v1967_v55  ;;  %v1771_v39 = vadd.f32 %v9811_v33, %v1742_v15 }
 0x233   :  { %v2108_v2 = vpop.f32.mrf.mxu2 }
 0x234   :  { %v2121_v41 = vpop.f32.mrf.mxu3  ;;  %v2125_v51 = vadd.f32 %v2108_v2, %v9415_v42  ;;  %v1800_v42 = vadd.f32 %v9852_v5, %v1771_v39  ;;  %v1858_v2 = vadd.f32 %v9882_v19, %v9819_v18 }
 0x235   :  { %v9922_v60 = vadd.f32 %v2121_v41, %v9532_v6  ;;  %v9924_v26 = vpop.f32.mrf.mxu1 }
 0x236   :  { %v8171_v1 = vmul.f32 -1.442695, %v2125_v51  ;;  %v1829_v41 = vadd.f32 %v1828_v28, %v1800_v42  ;;  %v1915_v51 = vpop.f32.mrf.mxu0 }
 0x238   :  { %8648 = vpow2.f32 %v8171_v1 }
 0x23b   :  { %v2110_v29 = vpop.f32.mrf.mxu2 }
 0x23c   :  { %v2123_v43 = vpop.f32.mrf.mxu3 }
 0x23d   :  { %v1942_v32 = vpop.f32.mrf.mxu1 }
 0x23e   :  { %v1943_v40 = vadd.f32 %v1942_v32, %v1914_v36  ;;  %v8649_v3 = vpop.eup %8648  ;;  %v1887_v36 = vadd.f32 %v9884_v56, %v1858_v2 }
 0x23f   :  { %v2130_v55 = vadd.f32 1.0, %v8649_v3 }
 0x240   :  { %v1972_v34 = vadd.f32 %v1971_v31, %v1943_v40  ;;  %v1916_v29 = vadd.f32 %v1915_v51, %v1887_v36 }
 0x241   :  { %8650 = vrcp.f32 %v2130_v55  ;;  %v2142_v19 = vand.u32 2147483648, %v2130_v55  ;;  %v2140_v32 = vand.u32 2147483647, %v2130_v55  ;;  %vm2136_vm1 = vweird.f32 %v2130_v55 }
 0x242   :  { %v9929_v6 = vadd.f32 %v2000_v0, %v1972_v34 }
 0x243   :  { %v2226_v12 = vpop.f32.mrf.mxu2  ;;  %vm2141_vm3 = vcmp.eq.f32.partialorder %v2140_v32, 8.507059e+37 }
 0x244   :  { %v2239_v57 = vpop.f32.mrf.mxu3  ;;  %v2243_v38 = vadd.f32 %v2226_v12, %v1829_v41  ;;  %v2143_v41 = vor.u32 1.1754944e-38, %v2142_v19 }
 0x245   :  { %v1944_v31 = vpop.f32.mrf.mxu1 }
 0x246   :  { %v8205_v1 = vmul.f32 -1.442695, %v2243_v38  ;;  %v1945_v43 = vadd.f32 %v1944_v31, %v1916_v29 }
 0x247   :  { %v8651_v33 = vpop.eup %8650 }
 0x248   :  { %v2132_v15 = vmul.f32 %v8651_v33, %v2130_v55  ;;  %8652 = vpow2.f32 %v8205_v1  ;;  %vm2137_vm0 = vweird.f32 %v8651_v33  ;;  %v1974_v42 = vadd.f32 %v1973_v4, %v1945_v43 }
 0x249   :  { %8654 = vtanh.f32 %v9922_v60  ;;  %vm2138_vm2 = vmor %vm2136_vm1, %vm2137_vm0 }
 0x24a   :  { %v2133_v5 = vsub.f32 1.0, %v2132_v15  ;;  %v2003_v38 = vadd.f32 %v2002_v62, %v1974_v42 }
 0x24b   :  { %v2228_v0 = vpop.f32.mrf.mxu2 }
 0x24c   :  { %v2241_v39 = vpop.f32.mrf.mxu3  ;;  %v2134_v28 = vmul.f32 %v8651_v33, %v2133_v5  ;;  %v2244_v36 = vadd.f32 %v2239_v57, %v2003_v38 }
 0x24e   :  { %v8653_v40 = vpop.eup %8652  ;;  %v2135_v3 = vadd.f32 %v8651_v33, %v2134_v28  ;;  %v8206_v57 = vmul.f32 -1.442695, %v2244_v36 }
 0x24f   :  { %v2248_v34 = vadd.f32 1.0, %v8653_v40  ;;  %v8655_v2 = vpop.eup %8654 }
 0x250   :  { %v2139_v56 = vsel %vm2138_vm2, %v8651_v33, %v2135_v3 }
 0x251   :  { %8656 = vrcp.f32 %v2248_v34  ;;  %v9935_v12 = vsel %vm2141_vm3, %v2143_v41, %v2139_v56  ;;  %v2260_v55 = vand.u32 2147483648, %v2248_v34  ;;  %v2258_v4 = vand.u32 2147483647, %v2248_v34 }
 0x252   :  { %v9938_v51 = vmul.f32 %v8655_v2, %v9935_v12  ;;  %8658 = vtanh.f32 %v2244_v36  ;;  %vm2254_vm5 = vweird.f32 %v2248_v34 }
 0x253   :  { %v2261_v5 = vor.u32 1.1754944e-38, %v2260_v55  ;;  %vm2259_vm7 = vcmp.eq.f32.partialorder %v2258_v4, 8.507059e+37  ;;  %8660 = vpow2.f32 %v8206_v57 }
 0x257   :  { %v8657_v1 = vpop.eup %8656 }
 0x258   :  { %v2250_v15 = vmul.f32 %v8657_v1, %v2248_v34  ;;  %vm2255_vm4 = vweird.f32 %v8657_v1  ;;  %v8659_v0 = vpop.eup %8658 }
 0x259   :  { %vm2256_vm6 = vmor %vm2254_vm5, %vm2255_vm4  ;;  %v8661_v28 = vpop.eup %8660 }
 0x25a   :  { %v2251_v31 = vsub.f32 1.0, %v2250_v15  ;;  %v2268_v19 = vadd.f32 1.0, %v8661_v28 }
 0x25c   :  { %v2252_v29 = vmul.f32 %v8657_v1, %v2251_v31  ;;  %8662 = vrcp.f32 %v2268_v19  ;;  %v2280_v38 = vand.u32 2147483648, %v2268_v19  ;;  %vm2274_vm9 = vweird.f32 %v2268_v19 }
 0x25e   :  { %v2253_v33 = vadd.f32 %v8657_v1, %v2252_v29  ;;  %v2281_v15 = vor.u32 1.1754944e-38, %v2280_v38 }
 0x260   :  { %v2257_v43 = vsel %vm2256_vm6, %v8657_v1, %v2253_v33  ;;  %v2278_v1 = vand.u32 2147483647, %v2268_v19 }
 0x261   :  { %v2262_v62 = vsel %vm2259_vm7, %v2261_v5, %v2257_v43 }
 0x262   :  { %v2285_v39 = vmul.f32 %v8659_v0, %v2262_v62  ;;  %v8663_v32 = vpop.eup %8662  ;;  %v2284_v34 = vmul.f32 0.0, %v2262_v62  ;;  %vm2279_vm11 = vcmp.eq.f32.partialorder %v2278_v1, 8.507059e+37 }
 0x263   :  { %v2270_v40 = vmul.f32 %v8663_v32, %v2268_v19  ;;  %vm2275_vm8 = vweird.f32 %v8663_v32 }
 0x264   :  { %2287 = vrot.lane.b32.xlu0 %v2285_v39, %s8946_s5  ;;  %vm2276_vm10 = vmor %vm2274_vm9, %vm2275_vm8 }
 0x265   :  { %v2271_v3 = vsub.f32 1.0, %v2270_v40 }
 0x267   :  { %v2272_v42 = vmul.f32 %v8663_v32, %v2271_v3 }
 0x269   :  { %v2273_v2 = vadd.f32 %v8663_v32, %v2272_v42 }
 0x26b   :  { %v2277_v36 = vsel %vm2276_vm10, %v8663_v32, %v2273_v2 }
 0x26c   :  { %v2282_v55 = vsel %vm2279_vm11, %v2281_v15, %v2277_v36 }
 0x2d6   :  { %v2288_v56 = vpop.permute.xlu0 %2287 }
 0x2d7   :  { %v9941_v41 = vadd.f32 %v2288_v56, %v2284_v34 }
 0x2d9   :  { %8664 = vtanh.f32 %v9941_v41 }
 0x2df   :  { %v8665_v31 = vpop.eup %8664 }
 0x2e0   :  { %v9944_v29 = vmul.f32 %v8665_v31, %v2282_v55  ;;  %v8172_v55 = vmul.f32 -1.442695, %v9922_v60 }
 0x2e2   :  { %v2390_v4 = vpack.c.bf16 %v9944_v29, %v9944_v29 }
 0x2e4   :  { %2392 = vrot.lane.b32.xlu0 %v2390_v4, %s8946_s5 }
 0x356   :  { %v2393_v33 = vpop.permute.xlu0 %2392 }
 0x357   :  { %8211 = vmatmul.msk.bf16.vlgmr.msra.gmra.mxu2 %vm2095_vm12, %v2393_v33  ;;  %8212 = vmatmul.msk.bf16.vlgmr.msra.gmra.mxu3 %vm2095_vm12, %v2393_v33 }
 0x358   :  { %2761 = vmatpush.bf16.msra.mxu2 %v9703_v21  ;;  %2774 = vmatpush.bf16.msra.mxu3 %v9747_v46 }
 0x35c   :  { %2762 = vmatpush.bf16.msra.mxu2 %v9723_v54  ;;  %2775 = vmatpush.bf16.msra.mxu3 %v9771_v20 }
 0x360   :  { %2763 = vmatpush.bf16.msra.mxu2 %v9739_v48  ;;  %2776 = vmatpush.bf16.msra.mxu3 %v9786_v50 }
 0x364   :  { %2764 = vmatpush.bf16.msra.mxu2 %v9765_v10  ;;  %2777 = vmatpush.bf16.msra.mxu3 %v9800_v44 }
 0x3da   :  { %v2406_v5 = vpop.f32.mrf.mxu2  ;;  %v2419_v43 = vpop.f32.mrf.mxu3 }
 0x3db   :  { %v2423_v0 = vadd.f32 %v2406_v5, %v9897_v24  ;;  %v2424_v40 = vadd.f32 %v2419_v43, %v9929_v6 }
 0x3dd   :  { %v8213_v62 = vmul.f32 -1.442695, %v2423_v0  ;;  %v8214_v6 = vmul.f32 -1.442695, %v2424_v40 }
 0x3df   :  { %8666 = vpow2.f32 %v8213_v62 }
 0x3e2   :  { %v2408_v39 = vpop.f32.mrf.mxu2  ;;  %v2421_v57 = vpop.f32.mrf.mxu3 }
 0x3e5   :  { %v8667_v28 = vpop.eup %8666 }
 0x3e6   :  { %v2428_v19 = vadd.f32 1.0, %v8667_v28 }
 0x3e8   :  { %8668 = vrcp.f32 %v2428_v19  ;;  %v2440_v34 = vand.u32 2147483648, %v2428_v19  ;;  %v2438_v2 = vand.u32 2147483647, %v2428_v19  ;;  %vm2434_vm14 = vweird.f32 %v2428_v19 }
 0x3e9   :  { %8670 = vtanh.f32 %v2424_v40 }
 0x3ea   :  { %v2441_v24 = vor.u32 1.1754944e-38, %v2440_v34  ;;  %vm2439_vm0 = vcmp.eq.f32.partialorder %v2438_v2, 8.507059e+37  ;;  %8672 = vpow2.f32 %v8214_v6 }
 0x3eb   :  { %8674 = vpow2.f32 %v8172_v55 }
 0x3ee   :  { %v8669_v32 = vpop.eup %8668 }
 0x3ef   :  { %v2430_v3 = vmul.f32 %v8669_v32, %v2428_v19  ;;  %vm2435_vm13 = vweird.f32 %v8669_v32  ;;  %v8671_v36 = vpop.eup %8670 }
 0x3f0   :  { %vm2436_vm15 = vmor %vm2434_vm14, %vm2435_vm13  ;;  %v8673_v4 = vpop.eup %8672 }
 0x3f1   :  { %v2431_v42 = vsub.f32 1.0, %v2430_v3  ;;  %v2448_v33 = vadd.f32 1.0, %v8673_v4  ;;  %v8675_v5 = vpop.eup %8674 }
 0x3f2   :  { %v2150_v43 = vadd.f32 1.0, %v8675_v5 }
 0x3f3   :  { %v2432_v56 = vmul.f32 %v8669_v32, %v2431_v42  ;;  %8676 = vrcp.f32 %v2448_v33  ;;  %v2460_v42 = vand.u32 2147483648, %v2448_v33  ;;  %vm2454_vm2 = vweird.f32 %v2448_v33 }
 0x3f4   :  { %8678 = vrcp.f32 %v2150_v43  ;;  %v2458_v34 = vand.u32 2147483647, %v2448_v33  ;;  %v2162_v55 = vand.u32 2147483648, %v2150_v43  ;;  %vm2156_vm6 = vweird.f32 %v2150_v43 }
 0x3f5   :  { %v2433_v38 = vadd.f32 %v8669_v32, %v2432_v56 }
 0x3f6   :  { %vm2459_vm4 = vcmp.eq.f32.partialorder %v2458_v34, 8.507059e+37  ;;  %v2163_v5 = vor.u32 1.1754944e-38, %v2162_v55 }
 0x3f7   :  { %v2437_v1 = vsel %vm2436_vm15, %v8669_v32, %v2433_v38  ;;  %v2166_v38 = vmul.f32 0.0, %v9935_v12 }
 0x3f8   :  { %v2442_v15 = vsel %vm2439_vm0, %v2441_v24, %v2437_v1  ;;  %v2461_v24 = vor.u32 1.1754944e-38, %v2460_v42 }
 0x3f9   :  { %v2465_v31 = vmul.f32 %v8671_v36, %v2442_v15  ;;  %v8677_v0 = vpop.eup %8676  ;;  %v2464_v32 = vmul.f32 %v2442_v15, %v9941_v41 }
 0x3fa   :  { %v2450_v62 = vmul.f32 %v8677_v0, %v2448_v33  ;;  %v8679_v57 = vpop.eup %8678  ;;  %vm2455_vm1 = vweird.f32 %v8677_v0  ;;  %v2160_v33 = vand.u32 2147483647, %v2150_v43 }
 0x3fb   :  { %2467 = vrot.lane.b32.xlu1 %v2465_v31, %s8946_s5  ;;  %v2152_v28 = vmul.f32 %v8679_v57, %v2150_v43  ;;  %vm2456_vm3 = vmor %vm2454_vm2, %vm2455_vm1  ;;  %vm2157_vm5 = vweird.f32 %v8679_v57 }
 0x3fc   :  { %v2451_v39 = vsub.f32 1.0, %v2450_v62  ;;  %vm2158_vm7 = vmor %vm2156_vm6, %vm2157_vm5  ;;  %vm2161_vm8 = vcmp.eq.f32.partialorder %v2160_v33, 8.507059e+37 }
 0x3fd   :  { %v2153_v60 = vsub.f32 1.0, %v2152_v28 }
 0x3fe   :  { %v2452_v19 = vmul.f32 %v8677_v0, %v2451_v39 }
 0x3ff   :  { %v2154_v2 = vmul.f32 %v8679_v57, %v2153_v60 }
 0x400   :  { %v2453_v3 = vadd.f32 %v8677_v0, %v2452_v19 }
 0x401   :  { %v2155_v6 = vadd.f32 %v8679_v57, %v2154_v2 }
 0x402   :  { %v2457_v56 = vsel %vm2456_vm3, %v8677_v0, %v2453_v3 }
 0x403   :  { %2169 = vrot.lane.b32.xlu1 %v9938_v51, %s8946_s5  ;;  %v2462_v15 = vsel %vm2459_vm4, %v2461_v24, %v2457_v56  ;;  %v2159_v12 = vsel %vm2158_vm7, %v8679_v57, %v2155_v6  ;;  %v1679_v57 = vadd.f32 %v9614_v52, %v9514_v59 }
 0x404   :  { %v2164_v62 = vsel %vm2161_vm8, %v2163_v5, %v2159_v12 }
 0x46d   :  { %v2468_v51 = vpop.permute.xlu1 %2467 }
 0x46e   :  { %v9966_v40 = vadd.f32 %v2468_v51, %v2464_v32  ;;  %v1708_v32 = vadd.f32 %v9827_v58, %v1679_v57 }
 0x470   :  { %8680 = vtanh.f32 %v9966_v40  ;;  %v1737_v51 = vadd.f32 %v9751_v14, %v1708_v32 }
 0x472   :  { %v1766_v3 = vadd.f32 %v9753_v22, %v1737_v51 }
 0x474   :  { %v1795_v60 = vadd.f32 %v9831_v45, %v1766_v3 }
 0x475   :  { %v2170_v1 = vpop.permute.xlu1 %2169 }
 0x476   :  { %v8681_v41 = vpop.eup %8680  ;;  %v9970_v36 = vadd.f32 %v2170_v1, %v2166_v38  ;;  %v1824_v42 = vadd.f32 %v9889_v11, %v1795_v60  ;;  %v1853_v38 = vadd.f32 %v9870_v9, %v9819_v18 }
 0x477   :  { %v9972_v31 = vmul.f32 %v8681_v41, %v2462_v15 }
 0x478   :  { %8682 = vtanh.f32 %v9970_v36  ;;  %v1882_v14 = vadd.f32 %v9872_v7, %v1853_v38 }
 0x479   :  { %v2570_v4 = vpack.c.bf16 %v9972_v31, %v9972_v31 }
 0x47a   :  { %v1911_v22 = vadd.f32 %v9891_v61, %v1882_v14 }
 0x47b   :  { %2572 = vrot.lane.b32.xlu2 %v2570_v4, %s8946_s5 }
 0x47c   :  { %v1940_v45 = vadd.f32 %v9924_v26, %v1911_v22 }
 0x47e   :  { %v8683_v0 = vpop.eup %8682  ;;  %v1969_v33 = vadd.f32 %v9907_v17, %v1940_v45 }
 0x47f   :  { %v9978_v39 = vmul.f32 %v8683_v0, %v2164_v62  ;;  %v12253_v62 = vld [vmem:[#allocation16_spill] sm:$0xff] }
 0x480   :  { %v1998_v12 = vadd.f32 %v9909_v47, %v1969_v33 }
 0x481   :  { %v2305_v28 = vpack.c.bf16 %v9978_v39, %v9978_v39 }
 0x483   :  { %2307 = vrot.lane.b32.xlu2 %v2305_v28, %s8946_s5 }
 0x4d5   :  { %v2573_v19 = vpop.permute.xlu2 %2572 }
 0x4d6   :  { %8219 = vmatmul.msk.bf16.vlgmr.msrb.gmra.mxu2 %vm2095_vm12, %v2573_v19  ;;  %8220 = vmatmul.msk.bf16.vlgmr.msrb.gmra.mxu3 %vm2095_vm12, %v2573_v19 }
 0x4d7   :  { %2941 = vmatpush.bf16.msrb.mxu2 %v9703_v21  ;;  %2954 = vmatpush.bf16.msrb.mxu3 %v9747_v46 }
 0x4db   :  { %2942 = vmatpush.bf16.msrb.mxu2 %v9723_v54  ;;  %2955 = vmatpush.bf16.msrb.mxu3 %v9771_v20 }
 0x4dd   :  { %v2308_v43 = vpop.permute.xlu2 %2307 }
 0x4de   :  { %8207 = vmatmul.msk.bf16.vlgmr.msra.gmra.mxu0 %vm2095_vm12, %v2308_v43  ;;  %8208 = vmatmul.msk.bf16.vlgmr.msrb.gmra.mxu1 %vm2095_vm12, %v2308_v43 }
 0x4df   :  { %2676 = vmatpush.bf16.msra.mxu0 %v9534_v53  ;;  %2689 = vmatpush.bf16.msrb.mxu1 %v9585_v23 }
 0x4e0   :  { %2943 = vmatpush.bf16.msrb.mxu2 %v9739_v48  ;;  %2956 = vmatpush.bf16.msrb.mxu3 %v9786_v50 }
 0x4e3   :  { %2677 = vmatpush.bf16.msra.mxu0 %v9569_v27  ;;  %2690 = vmatpush.bf16.msrb.mxu1 %v9632_v35 }
 0x4e4   :  { %2944 = vmatpush.bf16.msrb.mxu2 %v9765_v10  ;;  %2957 = vmatpush.bf16.msrb.mxu3 %v9800_v44 }
 0x4e7   :  { %2678 = vmatpush.bf16.msra.mxu0 %v9611_v30  ;;  %2691 = vmatpush.bf16.msrb.mxu1 %v9671_v49 }
 0x4eb   :  { %2679 = vmatpush.bf16.msra.mxu0 %v9657_v8  ;;  %2692 = vmatpush.bf16.msrb.mxu1 %v9688_v16 }
 0x559   :  { %v2586_v34 = vpop.f32.mrf.mxu2  ;;  %v2599_v56 = vpop.f32.mrf.mxu3 }
 0x55a   :  { %v2603_v2 = vadd.f32 %v2586_v34, %v1824_v42  ;;  %v2604_v5 = vadd.f32 %v2599_v56, %v1998_v12 }
 0x55b   :  { %v2321_v24 = vpop.f32.mrf.mxu0  ;;  %v2334_v1 = vpop.f32.mrf.mxu1 }
 0x55c   :  { %v8221_v41 = vmul.f32 -1.442695, %v2603_v2  ;;  %v2338_v59 = vadd.f32 %v2321_v24, %v9428_v13  ;;  %v2339_v28 = vadd.f32 %v2334_v1, %v12253_v62  ;;  %v8222_v22 = vmul.f32 -1.442695, %v2604_v5 }
 0x55e   :  { %8684 = vpow2.f32 %v8221_v41  ;;  %v8209_v52 = vmul.f32 -1.442695, %v2338_v59 }
 0x560   :  { %8686 = vpow2.f32 %v8209_v52 }
 0x561   :  { %v2588_v58 = vpop.f32.mrf.mxu2  ;;  %v2601_v11 = vpop.f32.mrf.mxu3 }
 0x562   :  { %v8210_v58 = vmul.f32 -1.442695, %v2339_v28 }
 0x563   :  { %v2323_v15 = vpop.f32.mrf.mxu0  ;;  %v2336_v6 = vpop.f32.mrf.mxu1 }
 0x564   :  { %v8685_v55 = vpop.eup %8684 }
 0x565   :  { %v2608_v9 = vadd.f32 1.0, %v8685_v55 }
 0x566   :  { %v8687_v4 = vpop.eup %8686 }
 0x567   :  { %8688 = vrcp.f32 %v2608_v9  ;;  %v2343_v13 = vadd.f32 1.0, %v8687_v4  ;;  %v2620_v43 = vand.u32 2147483648, %v2608_v9  ;;  %v2618_v32 = vand.u32 2147483647, %v2608_v9 }
 0x568   :  { %vm2614_vm10 = vweird.f32 %v2608_v9 }
 0x569   :  { %8690 = vrcp.f32 %v2343_v13  ;;  %v2355_v17 = vand.u32 2147483648, %v2343_v13  ;;  %v2353_v47 = vand.u32 2147483647, %v2343_v13  ;;  %v2621_v42 = vor.u32 1.1754944e-38, %v2620_v43 }
 0x56a   :  { %8692 = vtanh.f32 %v2604_v5  ;;  %vm2619_vm14 = vcmp.eq.f32.partialorder %v2618_v32, 8.507059e+37  ;;  %vm2349_vm15 = vweird.f32 %v2343_v13 }
 0x56b   :  { %8694 = vtanh.f32 %v2339_v28  ;;  %v2356_v24 = vor.u32 1.1754944e-38, %v2355_v17  ;;  %vm2354_vm1 = vcmp.eq.f32.partialorder %v2353_v47, 8.507059e+37 }
 0x56c   :  { %8696 = vpow2.f32 %v8222_v22 }
 0x56d   :  { %v8689_v7 = vpop.eup %8688  ;;  %8698 = vpow2.f32 %v8210_v58  ;;  %v12254_v58 = vld [vmem:[#allocation37_spill] sm:$0xff] }
 0x56e   :  { %v2610_v0 = vmul.f32 %v8689_v7, %v2608_v9  ;;  %vm2615_vm9 = vweird.f32 %v8689_v7 }
 0x56f   :  { %v8691_v61 = vpop.eup %8690  ;;  %vm2616_vm13 = vmor %vm2614_vm10, %vm2615_vm9 }
 0x570   :  { %v2345_v19 = vmul.f32 %v8691_v61, %v2343_v13  ;;  %v2611_v26 = vsub.f32 1.0, %v2610_v0  ;;  %vm2350_vm11 = vweird.f32 %v8691_v61  ;;  %v8693_v2 = vpop.eup %8692 }
 0x571   :  { %vm2351_vm0 = vmor %vm2349_vm15, %vm2350_vm11  ;;  %v8695_v59 = vpop.eup %8694 }
 0x572   :  { %v2612_v57 = vmul.f32 %v8689_v7, %v2611_v26  ;;  %v2346_v51 = vsub.f32 1.0, %v2345_v19  ;;  %v8697_v11 = vpop.eup %8696 }
 0x573   :  { %v8699_v45 = vpop.eup %8698  ;;  %v2628_v15 = vadd.f32 1.0, %v8697_v11 }
 0x574   :  { %v2613_v3 = vadd.f32 %v8689_v7, %v2612_v57  ;;  %v2347_v60 = vmul.f32 %v8691_v61, %v2346_v51  ;;  %v2363_v6 = vadd.f32 1.0, %v8699_v45 }
 0x575   :  { %8700 = vrcp.f32 %v2628_v15  ;;  %v2640_v57 = vand.u32 2147483648, %v2628_v15  ;;  %vm2634_vm3 = vweird.f32 %v2628_v15  ;;  %v2638_v32 = vand.u32 2147483647, %v2628_v15 }
 0x576   :  { %v2617_v34 = vsel %vm2616_vm13, %v8689_v7, %v2613_v3  ;;  %v2348_v56 = vadd.f32 %v8691_v61, %v2347_v60  ;;  %8702 = vrcp.f32 %v2363_v6  ;;  %vm2369_vm6 = vweird.f32 %v2363_v6 }
 0x577   :  { %v2622_v38 = vsel %vm2619_vm14, %v2621_v42, %v2617_v34  ;;  %v2373_v3 = vand.u32 2147483647, %v2363_v6  ;;  %vm2639_vm8 = vcmp.eq.f32.partialorder %v2638_v32, 8.507059e+37 }
 0x578   :  { %v2645_v1 = vmul.f32 %v8693_v2, %v2622_v38  ;;  %v2352_v41 = vsel %vm2351_vm0, %v8691_v61, %v2348_v56  ;;  %v2644_v0 = vmul.f32 %v2622_v38, %v9966_v40  ;;  %v2375_v40 = vand.u32 2147483648, %v2363_v6 }
 0x579   :  { %v2357_v52 = vsel %vm2354_vm1, %v2356_v24, %v2352_v41  ;;  %vm2374_vm9 = vcmp.eq.f32.partialorder %v2373_v3, 8.507059e+37 }
 0x57a   :  { %2647 = vrot.lane.b32.xlu0 %v2645_v1, %s8946_s5  ;;  %v2380_v14 = vmul.f32 %v8695_v59, %v2357_v52  ;;  %v2379_v28 = vmul.f32 %v2357_v52, %v9970_v36  ;;  %v2641_v36 = vor.u32 1.1754944e-38, %v2640_v57  ;;  %v2376_v34 = vor.u32 1.1754944e-38, %v2375_v40 }
 0x57b   :  { %v8701_v55 = vpop.eup %8700 }
 0x57c   :  { %2382 = vrot.lane.b32.xlu1 %v2380_v14, %s8946_s5  ;;  %v8703_v9 = vpop.eup %8702  ;;  %v2630_v4 = vmul.f32 %v8701_v55, %v2628_v15  ;;  %vm2635_vm2 = vweird.f32 %v8701_v55 }
 0x57d   :  { %v2365_v33 = vmul.f32 %v8703_v9, %v2363_v6  ;;  %vm2370_vm4 = vweird.f32 %v8703_v9  ;;  %vm2636_vm5 = vmor %vm2634_vm3, %vm2635_vm2 }
 0x57e   :  { %v2631_v13 = vsub.f32 1.0, %v2630_v4  ;;  %vm2371_vm7 = vmor %vm2369_vm6, %vm2370_vm4 }
 0x57f   :  { %v2366_v12 = vsub.f32 1.0, %v2365_v33 }
 0x580   :  { %v2632_v7 = vmul.f32 %v8701_v55, %v2631_v13 }
 0x581   :  { %v2367_v5 = vmul.f32 %v8703_v9, %v2366_v12 }
 0x582   :  { %v2633_v26 = vadd.f32 %v8701_v55, %v2632_v7 }
 0x583   :  { %v2368_v51 = vadd.f32 %v8703_v9, %v2367_v5 }
 0x584   :  { %v2637_v17 = vsel %vm2636_vm5, %v8701_v55, %v2633_v26 }
 0x585   :  { %v2372_v60 = vsel %vm2371_vm7, %v8703_v9, %v2368_v51  ;;  %v2642_v42 = vsel %vm2639_vm8, %v2641_v36, %v2637_v17 }
 0x586   :  { %v2377_v38 = vsel %vm2374_vm9, %v2376_v34, %v2372_v60 }
 0x5ec   :  { %v2648_v61 = vpop.permute.xlu0 %2647 }
 0x5ed   :  { %v10022_v62 = vadd.f32 %v2648_v61, %v2644_v0  ;;  %v12255_v0 = vld [vmem:[#allocation10_spill] sm:$0xff] }
 0x5ee   :  { %v2383_v19 = vpop.permute.xlu1 %2382 }
 0x5ef   :  { %8704 = vtanh.f32 %v10022_v62  ;;  %v10026_v43 = vadd.f32 %v2383_v19, %v2379_v28 }
 0x5f1   :  { %8706 = vtanh.f32 %v10026_v43 }
 0x5f5   :  { %v8705_v47 = vpop.eup %8704 }
 0x5f6   :  { %v10029_v56 = vmul.f32 %v8705_v47, %v2642_v42 }
 0x5f7   :  { %v8707_v2 = vpop.eup %8706 }
 0x5f8   :  { %v2750_v24 = vpack.c.bf16 %v10029_v56, %v10029_v56  ;;  %v10033_v1 = vmul.f32 %v8707_v2, %v2377_v38  ;;  %v12256_v2 = vld [vmem:[#allocation17_spill] sm:$0xff] }
 0x5fa   :  { %2752 = vrot.lane.b32.xlu2 %v2750_v24, %s8946_s5  ;;  %v2485_v41 = vpack.c.bf16 %v10033_v1, %v10033_v1 }
 0x5fc   :  { %2487 = vrot.lane.b32.xlu0 %v2485_v41, %s8946_s5 }
 0x654   :  { %v2753_v59 = vpop.permute.xlu2 %2752 }
 0x655   :  { %8227 = vmatmul.msk.bf16.vlgmr.msra.gmra.mxu2 %vm2095_vm12, %v2753_v59  ;;  %8228 = vmatmul.msk.bf16.vlgmr.msra.gmra.mxu3 %vm2095_vm12, %v2753_v59 }
 0x656   :  { %3121 = vmatpush.bf16.msra.mxu2 %v9703_v21  ;;  %3134 = vmatpush.bf16.msra.mxu3 %v9747_v46 }
 0x65a   :  { %3122 = vmatpush.bf16.msra.mxu2 %v9723_v54  ;;  %3135 = vmatpush.bf16.msra.mxu3 %v9771_v20 }
 0x65e   :  { %3123 = vmatpush.bf16.msra.mxu2 %v9739_v48  ;;  %3136 = vmatpush.bf16.msra.mxu3 %v9786_v50 }
 0x662   :  { %3124 = vmatpush.bf16.msra.mxu2 %v9765_v10  ;;  %3137 = vmatpush.bf16.msra.mxu3 %v9800_v44 }
 0x66e   :  { %v2488_v52 = vpop.permute.xlu0 %2487 }
 0x66f   :  { %8215 = vmatmul.msk.bf16.vlgmr.msrb.gmra.mxu0 %vm2095_vm12, %v2488_v52  ;;  %8216 = vmatmul.msk.bf16.vlgmr.msra.gmra.mxu1 %vm2095_vm12, %v2488_v52 }
 0x670   :  { %2856 = vmatpush.bf16.msrb.mxu0 %v9534_v53  ;;  %2869 = vmatpush.bf16.msra.mxu1 %v9585_v23 }
 0x674   :  { %2857 = vmatpush.bf16.msrb.mxu0 %v9569_v27  ;;  %2870 = vmatpush.bf16.msra.mxu1 %v9632_v35 }
 0x678   :  { %2858 = vmatpush.bf16.msrb.mxu0 %v9611_v30  ;;  %2871 = vmatpush.bf16.msra.mxu1 %v9671_v49 }
 0x67c   :  { %2859 = vmatpush.bf16.msrb.mxu0 %v9657_v8  ;;  %2872 = vmatpush.bf16.msra.mxu1 %v9688_v16 }
 0x6d8   :  { %v2766_v14 = vpop.f32.mrf.mxu2  ;;  %v2779_v22 = vpop.f32.mrf.mxu3 }
 0x6d9   :  { %v2783_v11 = vadd.f32 %v2766_v14, %v12254_v58  ;;  %v2784_v33 = vadd.f32 %v2779_v22, %v9917_v25 }
 0x6db   :  { %v8229_v45 = vmul.f32 -1.442695, %v2783_v11 }
 0x6dd   :  { %8708 = vpow2.f32 %v8229_v45 }
 0x6e0   :  { %v2768_v15 = vpop.f32.mrf.mxu2  ;;  %v2781_v6 = vpop.f32.mrf.mxu3 }
 0x6e3   :  { %v8709_v55 = vpop.eup %8708 }
 0x6e4   :  { %v2788_v9 = vadd.f32 1.0, %v8709_v55 }
 0x6e6   :  { %8710 = vrcp.f32 %v2788_v9  ;;  %v2800_v19 = vand.u32 2147483648, %v2788_v9  ;;  %v2798_v57 = vand.u32 2147483647, %v2788_v9  ;;  %vm2794_vm11 = vweird.f32 %v2788_v9 }
 0x6e7   :  { %8712 = vtanh.f32 %v2784_v33 }
 0x6e8   :  { %v2801_v17 = vor.u32 1.1754944e-38, %v2800_v19  ;;  %vm2799_vm14 = vcmp.eq.f32.partialorder %v2798_v57, 8.507059e+37 }
 0x6ec   :  { %v8711_v4 = vpop.eup %8710  ;;  %v2501_v13 = vpop.f32.mrf.mxu0 }
 0x6ed   :  { %v2514_v12 = vpop.f32.mrf.mxu1  ;;  %v2790_v7 = vmul.f32 %v8711_v4, %v2788_v9  ;;  %v2518_v61 = vadd.f32 %v2501_v13, %v12255_v0  ;;  %vm2795_vm10 = vweird.f32 %v8711_v4  ;;  %v8713_v3 = vpop.eup %8712  ;;  %v8230_v9 = vmul.f32 -1.442695, %v2784_v33 }
 0x6ee   :  { %vm2796_vm13 = vmor %vm2794_vm11, %vm2795_vm10  ;;  %v2519_v38 = vadd.f32 %v2514_v12, %v12256_v2 }
 0x6ef   :  { %v8217_v5 = vmul.f32 -1.442695, %v2518_v61  ;;  %v2791_v28 = vsub.f32 1.0, %v2790_v7 }
 0x6f0   :  { %v8218_v55 = vmul.f32 -1.442695, %v2519_v38 }
 0x6f1   :  { %8714 = vpow2.f32 %v8217_v5  ;;  %v2792_v26 = vmul.f32 %v8711_v4, %v2791_v28 }
 0x6f3   :  { %v2793_v32 = vadd.f32 %v8711_v4, %v2792_v26 }
 0x6f4   :  { %v2503_v51 = vpop.f32.mrf.mxu0 }
 0x6f5   :  { %v2516_v40 = vpop.f32.mrf.mxu1  ;;  %v2797_v25 = vsel %vm2796_vm13, %v8711_v4, %v2793_v32 }
 0x6f6   :  { %v2802_v36 = vsel %vm2799_vm14, %v2801_v17, %v2797_v25 }
 0x6f7   :  { %v8715_v60 = vpop.eup %8714  ;;  %v2825_v47 = vmul.f32 %v8713_v3, %v2802_v36  ;;  %v2824_v25 = vmul.f32 %v2802_v36, %v10022_v62 }
 0x6f8   :  { %v2523_v42 = vadd.f32 1.0, %v8715_v60 }
 0x6f9   :  { %2827 = vrot.lane.b32.xlu1 %v2825_v47, %s8946_s5 }
 0x6fa   :  { %8716 = vrcp.f32 %v2523_v42  ;;  %v2535_v59 = vand.u32 2147483648, %v2523_v42  ;;  %v2533_v14 = vand.u32 2147483647, %v2523_v42  ;;  %vm2529_vm0 = vweird.f32 %v2523_v42 }
 0x6fb   :  { %8718 = vtanh.f32 %v2519_v38 }
 0x6fc   :  { %v2536_v58 = vor.u32 1.1754944e-38, %v2535_v59  ;;  %vm2534_vm2 = vcmp.eq.f32.partialorder %v2533_v14, 8.507059e+37  ;;  %8720 = vpow2.f32 %v8218_v55 }
 0x6fd   :  { %8722 = vpow2.f32 %v8230_v9 }
 0x700   :  { %v8717_v34 = vpop.eup %8716 }
 0x701   :  { %v2525_v24 = vmul.f32 %v8717_v34, %v2523_v42  ;;  %vm2530_vm15 = vweird.f32 %v8717_v34  ;;  %v8719_v45 = vpop.eup %8718 }
 0x702   :  { %vm2531_vm1 = vmor %vm2529_vm0, %vm2530_vm15  ;;  %v8721_v4 = vpop.eup %8720 }
 0x703   :  { %v2526_v41 = vsub.f32 1.0, %v2525_v24  ;;  %v2543_v13 = vadd.f32 1.0, %v8721_v4  ;;  %v8723_v12 = vpop.eup %8722  ;;  %v12257_v4 = vld [vmem:[#allocation11_spill] sm:$0xff] }
 0x704   :  { %v2808_v7 = vadd.f32 1.0, %v8723_v12 }
 0x705   :  { %v2527_v52 = vmul.f32 %v8717_v34, %v2526_v41  ;;  %8724 = vrcp.f32 %v2543_v13  ;;  %v2555_v3 = vand.u32 2147483648, %v2543_v13  ;;  %vm2549_vm4 = vweird.f32 %v2543_v13 }
 0x706   :  { %8726 = vrcp.f32 %v2808_v7  ;;  %v2553_v47 = vand.u32 2147483647, %v2543_v13  ;;  %v2820_v38 = vand.u32 2147483648, %v2808_v7  ;;  %vm2814_vm8 = vweird.f32 %v2808_v7 }
 0x707   :  { %v2528_v22 = vadd.f32 %v8717_v34, %v2527_v52  ;;  %v2818_v24 = vand.u32 2147483647, %v2808_v7 }
 0x708   :  { %vm2554_vm7 = vcmp.eq.f32.partialorder %v2553_v47, 8.507059e+37  ;;  %v2821_v52 = vor.u32 1.1754944e-38, %v2820_v38  ;;  %v12262_v47 = vld [vmem:[#allocation30_spill] sm:$0xff] }
 0x709   :  { %v2532_v11 = vsel %vm2531_vm1, %v8717_v34, %v2528_v22  ;;  %vm2819_vm10 = vcmp.eq.f32.partialorder %v2818_v24, 8.507059e+37 }
 0x70a   :  { %v2537_v15 = vsel %vm2534_vm2, %v2536_v58, %v2532_v11 }
 0x70b   :  { %v2560_v6 = vmul.f32 %v8719_v45, %v2537_v15  ;;  %v8725_v0 = vpop.eup %8724  ;;  %v2559_v32 = vmul.f32 %v2537_v15, %v10026_v43  ;;  %v2556_v43 = vor.u32 1.1754944e-38, %v2555_v3 }
 0x70c   :  { %v2545_v61 = vmul.f32 %v8725_v0, %v2543_v13  ;;  %v8727_v5 = vpop.eup %8726  ;;  %vm2550_vm3 = vweird.f32 %v8725_v0 }
 0x70d   :  { %2562 = vrot.lane.b32.xlu2 %v2560_v6, %s8946_s5  ;;  %v2810_v28 = vmul.f32 %v8727_v5, %v2808_v7  ;;  %vm2551_vm5 = vmor %vm2549_vm4, %vm2550_vm3  ;;  %vm2815_vm6 = vweird.f32 %v8727_v5  ;;  %v12258_v7 = vld [vmem:[#allocation26_spill] sm:$0xff] }
 0x70e   :  { %v2546_v19 = vsub.f32 1.0, %v2545_v61  ;;  %vm2816_vm9 = vmor %vm2814_vm8, %vm2815_vm6 }
 0x70f   :  { %v2811_v57 = vsub.f32 1.0, %v2810_v28 }
 0x710   :  { %v2547_v26 = vmul.f32 %v8725_v0, %v2546_v19  ;;  %v12260_v19 = vld [vmem:[#allocation35_spill] sm:$0xff] }
 0x711   :  { %v2812_v17 = vmul.f32 %v8727_v5, %v2811_v57 }
 0x712   :  { %v2548_v33 = vadd.f32 %v8725_v0, %v2547_v26 }
 0x713   :  { %v2813_v2 = vadd.f32 %v8727_v5, %v2812_v17  ;;  %v12261_v17 = vld [vmem:[#allocation29_spill] sm:$0xff] }
 0x714   :  { %v2552_v34 = vsel %vm2551_vm5, %v8725_v0, %v2548_v33  ;;  %v12259_v0 = vld [vmem:[#allocation25_spill] sm:$0xff] }
 0x715   :  { %v2557_v59 = vsel %vm2554_vm7, %v2556_v43, %v2552_v34  ;;  %v2817_v36 = vsel %vm2816_vm9, %v8727_v5, %v2813_v2  ;;  %v1790_v61 = vadd.f32 %v12259_v0, %v12258_v7  ;;  %v12263_v2 = vld [vmem:[#allocation36_spill] sm:$0xff]  ;;  %v12266_v0 = vld [vmem:[#allocation41_spill] sm:$0xff] }
 0x716   :  { %v2822_v58 = vsel %vm2819_vm10, %v2821_v52, %v2817_v36  ;;  %v12264_v36 = vld [vmem:[#allocation18_spill] sm:$0xff] }
 0x717   :  { %v1819_v26 = vadd.f32 %v12260_v19, %v1790_v61 }
 0x767   :  { %v2563_v51 = vpop.permute.xlu2 %2562 }
 0x768   :  { %v10066_v40 = vadd.f32 %v2563_v51, %v2559_v32 }
 0x76a   :  { %8728 = vtanh.f32 %v10066_v40 }
 0x76b   :  { %v2828_v60 = vpop.permute.xlu1 %2827 }
 0x76c   :  { %v10070_v42 = vadd.f32 %v2828_v60, %v2824_v25  ;;  %v1848_v25 = vadd.f32 %v12261_v17, %v9819_v18 }
 0x76e   :  { %8730 = vtanh.f32 %v10070_v42  ;;  %v1877_v34 = vadd.f32 %v12262_v47, %v1848_v25 }
 0x770   :  { %v8729_v41 = vpop.eup %8728  ;;  %v1906_v43 = vadd.f32 %v12263_v2, %v1877_v34 }
 0x771   :  { %v10073_v62 = vmul.f32 %v8729_v41, %v2557_v59 }
 0x772   :  { %v1935_v59 = vadd.f32 %v9913_v37, %v1906_v43 }
 0x773   :  { %v2665_v14 = vpack.c.bf16 %v10073_v62, %v10073_v62 }
 0x774   :  { %v8731_v22 = vpop.eup %8730 }
 0x775   :  { %2667 = vrot.lane.b32.xlu1 %v2665_v14, %s8946_s5  ;;  %v10078_v11 = vmul.f32 %v8731_v22, %v2822_v58 }
 0x777   :  { %v2930_v45 = vpack.c.bf16 %v10078_v11, %v10078_v11 }
 0x779   :  { %2932 = vrot.lane.b32.xlu0 %v2930_v45, %s8946_s5 }
 0x7e7   :  { %v2668_v15 = vpop.permute.xlu1 %2667 }
 0x7e8   :  { %8223 = vmatmul.msk.bf16.vlgmr.msra.gmra.mxu0 %vm2095_vm12, %v2668_v15  ;;  %8224 = vmatmul.msk.bf16.vlgmr.msrb.gmra.mxu1 %vm2095_vm12, %v2668_v15  ;;  %v12265_v15 = vld [vmem:[#allocation40_spill] sm:$0xff] }
 0x7e9   :  { %3036 = vmatpush.bf16.msra.mxu0 %v9534_v53  ;;  %3049 = vmatpush.bf16.msrb.mxu1 %v9585_v23 }
 0x7eb   :  { %v2933_v6 = vpop.permute.xlu0 %2932 }
 0x7ec   :  { %8235 = vmatmul.msk.bf16.vlgmr.msrb.gmra.mxu2 %vm2095_vm12, %v2933_v6  ;;  %8236 = vmatmul.msk.bf16.vlgmr.msrb.gmra.mxu3 %vm2095_vm12, %v2933_v6  ;;  %v1964_v6 = vadd.f32 %v12265_v15, %v1935_v59 }
 0x7ed   :  { %3301 = vmatpush.bf16.msrb.mxu2 %v9703_v21  ;;  %3314 = vmatpush.bf16.msrb.mxu3 %v9747_v46 }
 0x7ee   :  { %3037 = vmatpush.bf16.msra.mxu0 %v9569_v27  ;;  %3050 = vmatpush.bf16.msrb.mxu1 %v9632_v35  ;;  %v1993_v37 = vadd.f32 %v12266_v0, %v1964_v6 }
 0x7f1   :  { %3302 = vmatpush.bf16.msrb.mxu2 %v9723_v54  ;;  %3315 = vmatpush.bf16.msrb.mxu3 %v9771_v20 }
 0x7f2   :  { %3038 = vmatpush.bf16.msra.mxu0 %v9611_v30  ;;  %3051 = vmatpush.bf16.msrb.mxu1 %v9671_v49 }
 0x7f5   :  { %3303 = vmatpush.bf16.msrb.mxu2 %v9739_v48  ;;  %3316 = vmatpush.bf16.msrb.mxu3 %v9786_v50 }
 0x7f6   :  { %3039 = vmatpush.bf16.msra.mxu0 %v9657_v8  ;;  %3052 = vmatpush.bf16.msrb.mxu1 %v9688_v16 }
 0x7f9   :  { %3304 = vmatpush.bf16.msrb.mxu2 %v9765_v10  ;;  %3317 = vmatpush.bf16.msrb.mxu3 %v9800_v44 }
 0x865   :  { %v2681_v55 = vpop.f32.mrf.mxu0  ;;  %v2694_v9 = vpop.f32.mrf.mxu1 }
 0x866   :  { %v2698_v13 = vadd.f32 %v2681_v55, %v12257_v4  ;;  %v2699_v52 = vadd.f32 %v2694_v9, %v12264_v36 }
 0x868   :  { %v8225_v12 = vmul.f32 -1.442695, %v2698_v13 }
 0x86a   :  { %8732 = vpow2.f32 %v8225_v12 }
 0x86d   :  { %v2683_v5 = vpop.f32.mrf.mxu0  ;;  %v2696_v28 = vpop.f32.mrf.mxu1 }
 0x86f   :  { %v2946_v57 = vpop.f32.mrf.mxu2  ;;  %v2959_v32 = vpop.f32.mrf.mxu3 }
 0x870   :  { %v8733_v51 = vpop.eup %8732  ;;  %v2963_v33 = vadd.f32 %v2946_v57, %v1819_v26  ;;  %v2964_v19 = vadd.f32 %v2959_v32, %v1993_v37 }
 0x871   :  { %v2703_v3 = vadd.f32 1.0, %v8733_v51 }
 0x872   :  { %v8237_v60 = vmul.f32 -1.442695, %v2963_v33  ;;  %v8238_v32 = vmul.f32 -1.442695, %v2964_v19 }
 0x873   :  { %8734 = vrcp.f32 %v2703_v3  ;;  %v2715_v55 = vand.u32 2147483648, %v2703_v3  ;;  %v2713_v13 = vand.u32 2147483647, %v2703_v3  ;;  %vm2709_vm13 = vweird.f32 %v2703_v3 }
 0x874   :  { %8736 = vpow2.f32 %v8237_v60 }
 0x875   :  { %8738 = vtanh.f32 %v2699_v52  ;;  %v2716_v7 = vor.u32 1.1754944e-38, %v2715_v55  ;;  %vm2714_vm15 = vcmp.eq.f32.partialorder %v2713_v13, 8.507059e+37 }
 0x877   :  { %v2948_v38 = vpop.f32.mrf.mxu2  ;;  %v2961_v24 = vpop.f32.mrf.mxu3 }
 0x878   :  { %v8226_v24 = vmul.f32 -1.442695, %v2699_v52 }
 0x879   :  { %v8735_v41 = vpop.eup %8734 }
 0x87a   :  { %v2705_v14 = vmul.f32 %v8735_v41, %v2703_v3  ;;  %v8737_v22 = vpop.eup %8736  ;;  %vm2710_vm11 = vweird.f32 %v8735_v41 }
 0x87b   :  { %v2968_v58 = vadd.f32 1.0, %v8737_v22  ;;  %vm2711_vm14 = vmor %vm2709_vm13, %vm2710_vm11  ;;  %v8739_v9 = vpop.eup %8738 }
 0x87c   :  { %v2706_v45 = vsub.f32 1.0, %v2705_v14 }
 0x87d   :  { %8740 = vrcp.f32 %v2968_v58  ;;  %v2980_v33 = vand.u32 2147483648, %v2968_v58  ;;  %v2978_v25 = vand.u32 2147483647, %v2968_v58  ;;  %vm2974_vm1 = vweird.f32 %v2968_v58 }
 0x87e   :  { %v2707_v4 = vmul.f32 %v8735_v41, %v2706_v45  ;;  %8742 = vtanh.f32 %v2964_v19 }
 0x87f   :  { %v2981_v60 = vor.u32 1.1754944e-38, %v2980_v33  ;;  %vm2979_vm3 = vcmp.eq.f32.partialorder %v2978_v25, 8.507059e+37  ;;  %8744 = vpow2.f32 %v8238_v32 }
 0x880   :  { %v2708_v12 = vadd.f32 %v8735_v41, %v2707_v4  ;;  %8746 = vpow2.f32 %v8226_v24  ;;  %v12267_v24 = vld [vmem:[#allocation12_spill] sm:$0xff] }
 0x882   :  { %v2712_v61 = vsel %vm2711_vm14, %v8735_v41, %v2708_v12 }
 0x883   :  { %v2717_v5 = vsel %vm2714_vm15, %v2716_v7, %v2712_v61  ;;  %v8741_v28 = vpop.eup %8740 }
 0x884   :  { %v2740_v26 = vmul.f32 %v8739_v9, %v2717_v5  ;;  %v2970_v57 = vmul.f32 %v8741_v28, %v2968_v58  ;;  %vm2975_vm0 = vweird.f32 %v8741_v28  ;;  %v8743_v34 = vpop.eup %8742 }
 0x885   :  { %vm2976_vm2 = vmor %vm2974_vm1, %vm2975_vm0  ;;  %v8745_v38 = vpop.eup %8744 }
 0x886   :  { %2742 = vrot.lane.b32.xlu0 %v2740_v26, %s8946_s5  ;;  %v2971_v51 = vsub.f32 1.0, %v2970_v57  ;;  %v2988_v41 = vadd.f32 1.0, %v8745_v38  ;;  %v8747_v59 = vpop.eup %8746  ;;  %v2739_v26 = vmul.f32 %v2717_v5, %v10066_v40 }
 0x887   :  { %v2723_v14 = vadd.f32 1.0, %v8747_v59 }
 0x888   :  { %v2972_v17 = vmul.f32 %v8741_v28, %v2971_v51  ;;  %8748 = vrcp.f32 %v2988_v41  ;;  %v3000_v52 = vand.u32 2147483648, %v2988_v41  ;;  %vm2994_vm5 = vweird.f32 %v2988_v41 }
 0x889   :  { %8750 = vrcp.f32 %v2723_v14  ;;  %v2998_v7 = vand.u32 2147483647, %v2988_v41  ;;  %v2735_v25 = vand.u32 2147483648, %v2723_v14  ;;  %vm2729_vm9 = vweird.f32 %v2723_v14 }
 0x88a   :  { %v2973_v3 = vadd.f32 %v8741_v28, %v2972_v17  ;;  %v3001_v37 = vor.u32 1.1754944e-38, %v3000_v52 }
 0x88b   :  { %vm2999_vm7 = vcmp.eq.f32.partialorder %v2998_v7, 8.507059e+37 }
 0x88c   :  { %v2977_v47 = vsel %vm2976_vm2, %v8741_v28, %v2973_v3  ;;  %v2733_v3 = vand.u32 2147483647, %v2723_v14 }
 0x88d   :  { %v2982_v2 = vsel %vm2979_vm3, %v2981_v60, %v2977_v47  ;;  %v2736_v47 = vor.u32 1.1754944e-38, %v2735_v25 }
 0x88e   :  { %v3005_v43 = vmul.f32 %v8743_v34, %v2982_v2  ;;  %v8749_v36 = vpop.eup %8748  ;;  %v3004_v15 = vmul.f32 %v2982_v2, %v10070_v42  ;;  %vm2734_vm11 = vcmp.eq.f32.partialorder %v2733_v3, 8.507059e+37 }
 0x88f   :  { %v2990_v22 = vmul.f32 %v8749_v36, %v2988_v41  ;;  %v8751_v6 = vpop.eup %8750  ;;  %vm2995_vm4 = vweird.f32 %v8749_v36 }
 0x890   :  { %3007 = vrot.lane.b32.xlu2 %v3005_v43, %s8946_s5  ;;  %v2725_v12 = vmul.f32 %v8751_v6, %v2723_v14  ;;  %vm2996_vm6 = vmor %vm2994_vm5, %vm2995_vm4  ;;  %vm2730_vm8 = vweird.f32 %v8751_v6 }
 0x891   :  { %v2991_v58 = vsub.f32 1.0, %v2990_v22  ;;  %vm2731_vm10 = vmor %vm2729_vm9, %vm2730_vm8 }
 0x892   :  { %v2726_v61 = vsub.f32 1.0, %v2725_v12 }
 0x893   :  { %v2992_v45 = vmul.f32 %v8749_v36, %v2991_v58 }
 0x894   :  { %v2727_v19 = vmul.f32 %v8751_v6, %v2726_v61 }
 0x895   :  { %v2993_v13 = vadd.f32 %v8749_v36, %v2992_v45  ;;  %v12269_v45 = vld [vmem:[#allocation19_spill] sm:$0xff] }
 0x896   :  { %v2728_v17 = vadd.f32 %v8751_v6, %v2727_v19 }
 0x897   :  { %v2997_v0 = vsel %vm2996_vm6, %v8749_v36, %v2993_v13 }
 0x898   :  { %v3002_v28 = vsel %vm2999_vm7, %v3001_v37, %v2997_v0  ;;  %v2732_v60 = vsel %vm2731_vm10, %v8751_v6, %v2728_v17 }
 0x899   :  { %v2737_v5 = vsel %vm2734_vm11, %v2736_v47, %v2732_v60 }
 0x8ea   :  { %v3008_v55 = vpop.permute.xlu2 %3007 }
 0x8eb   :  { %v10118_v4 = vadd.f32 %v3008_v55, %v3004_v15 }
 0x8ed   :  { %8752 = vtanh.f32 %v10118_v4 }
 0x8f3   :  { %v8753_v9 = vpop.eup %8752 }
 0x8f4   :  { %v10121_v42 = vmul.f32 %v8753_v9, %v3002_v28 }
 0x8f6   :  { %v3110_v57 = vpack.c.bf16 %v10121_v42, %v10121_v42 }
 0x8f8   :  { %v2743_v51 = vpop.permute.xlu0 %2742  ;;  %3112 = vrot.lane.b32.xlu1 %v3110_v57, %s8946_s5 }
 0x8f9   :  { %v10126_v33 = vadd.f32 %v2743_v51, %v2739_v26 }
 0x8fb   :  { %8754 = vtanh.f32 %v10126_v33 }
 0x901   :  { %v8755_v40 = vpop.eup %8754 }
 0x902   :  { %v10130_v34 = vmul.f32 %v8755_v40, %v2737_v5 }
 0x904   :  { %v2845_v2 = vpack.c.bf16 %v10130_v34, %v10130_v34 }
 0x906   :  { %2847 = vrot.lane.b32.xlu2 %v2845_v2, %s8946_s5 }
 0x960   :  { %v2848_v43 = vpop.permute.xlu2 %2847 }
 0x961   :  { %8231 = vmatmul.msk.bf16.vlgmr.msrb.gmra.mxu0 %vm2095_vm12, %v2848_v43  ;;  %8232 = vmatmul.msk.bf16.vlgmr.msra.gmra.mxu1 %vm2095_vm12, %v2848_v43 }
 0x962   :  { %3216 = vmatpush.bf16.msrb.mxu0 %v9534_v53  ;;  %3229 = vmatpush.bf16.msra.mxu1 %v9585_v23 }
 0x966   :  { %3217 = vmatpush.bf16.msrb.mxu0 %v9569_v27  ;;  %3230 = vmatpush.bf16.msra.mxu1 %v9632_v35 }
 0x96a   :  { %3218 = vmatpush.bf16.msrb.mxu0 %v9611_v30  ;;  %3231 = vmatpush.bf16.msra.mxu1 %v9671_v49  ;;  %v3113_v32 = vpop.permute.xlu1 %3112 }
 0x96b   :  { %8243 = vmatmul.msk.bf16.vlgmr.msra.gmra.mxu2 %vm2095_vm12, %v3113_v32  ;;  %8244 = vmatmul.msk.bf16.vlgmr.msra.gmra.mxu3 %vm2095_vm12, %v3113_v32 }
 0x96c   :  { %3481 = vmatpush.bf16.msra.mxu2 %v9703_v21  ;;  %3494 = vmatpush.bf16.msra.mxu3 %v9747_v46 }
 0x96e   :  { %3219 = vmatpush.bf16.msrb.mxu0 %v9657_v8  ;;  %3232 = vmatpush.bf16.msra.mxu1 %v9688_v16 }
 0x970   :  { %3482 = vmatpush.bf16.msra.mxu2 %v9723_v54  ;;  %3495 = vmatpush.bf16.msra.mxu3 %v9771_v20 }
 0x974   :  { %3483 = vmatpush.bf16.msra.mxu2 %v9739_v48  ;;  %3496 = vmatpush.bf16.msra.mxu3 %v9786_v50  ;;  %v12268_v48 = vld [vmem:[#allocation34_spill] sm:$0xff] }
 0x978   :  { %3484 = vmatpush.bf16.msra.mxu2 %v9765_v10  ;;  %3497 = vmatpush.bf16.msra.mxu3 %v9800_v44 }
 0x9de   :  { %v2861_v38 = vpop.f32.mrf.mxu0  ;;  %v2874_v21 = vpop.f32.mrf.mxu1 }
 0x9df   :  { %v2878_v46 = vadd.f32 %v2861_v38, %v12267_v24  ;;  %v2879_v10 = vadd.f32 %v2874_v21, %v12269_v45 }
 0x9e1   :  { %v8233_v41 = vmul.f32 -1.442695, %v2878_v46  ;;  %v8234_v24 = vmul.f32 -1.442695, %v2879_v10 }
 0x9e3   :  { %8756 = vpow2.f32 %v8233_v41 }
 0x9e6   :  { %v2863_v59 = vpop.f32.mrf.mxu0  ;;  %v2876_v36 = vpop.f32.mrf.mxu1 }
 0x9e9   :  { %v8757_v14 = vpop.eup %8756 }
 0x9ea   :  { %v2883_v54 = vadd.f32 1.0, %v8757_v14 }
 0x9ec   :  { %8758 = vrcp.f32 %v2883_v54  ;;  %v2895_v55 = vand.u32 2147483648, %v2883_v54  ;;  %v2893_v7 = vand.u32 2147483647, %v2883_v54  ;;  %vm2889_vm14 = vweird.f32 %v2883_v54 }
 0x9ee   :  { %v3126_v20 = vpop.f32.mrf.mxu2  ;;  %v3139_v22 = vpop.f32.mrf.mxu3  ;;  %v2896_v61 = vor.u32 1.1754944e-38, %v2895_v55  ;;  %vm2894_vm0 = vcmp.eq.f32.partialorder %v2893_v7, 8.507059e+37 }
 0x9ef   :  { %v3143_v58 = vadd.f32 %v3126_v20, %v12268_v48  ;;  %v3144_v17 = vadd.f32 %v3139_v22, %v9911_v63 }
 0x9f1   :  { %v8245_v15 = vmul.f32 -1.442695, %v3143_v58  ;;  %v8246_v41 = vmul.f32 -1.442695, %v3144_v17 }
 0x9f2   :  { %v8759_v50 = vpop.eup %8758 }
 0x9f3   :  { %v2885_v44 = vmul.f32 %v8759_v50, %v2883_v54  ;;  %8760 = vpow2.f32 %v8245_v15  ;;  %vm2890_vm13 = vweird.f32 %v8759_v50 }
 0x9f4   :  { %8762 = vtanh.f32 %v2879_v10  ;;  %vm2891_vm15 = vmor %vm2889_vm14, %vm2890_vm13 }
 0x9f5   :  { %v2886_v6 = vsub.f32 1.0, %v2885_v44 }
 0x9f6   :  { %v3128_v13 = vpop.f32.mrf.mxu2  ;;  %v3141_v12 = vpop.f32.mrf.mxu3 }
 0x9f7   :  { %v2887_v52 = vmul.f32 %v8759_v50, %v2886_v6 }
 0x9f9   :  { %v2888_v0 = vadd.f32 %v8759_v50, %v2887_v52  ;;  %v8761_v37 = vpop.eup %8760 }
 0x9fa   :  { %v3148_v9 = vadd.f32 1.0, %v8761_v37  ;;  %v8763_v19 = vpop.eup %8762 }
 0x9fb   :  { %v2892_v28 = vsel %vm2891_vm15, %v8759_v50, %v2888_v0 }
 0x9fc   :  { %v2897_v26 = vsel %vm2894_vm0, %v2896_v61, %v2892_v28  ;;  %8764 = vrcp.f32 %v3148_v9  ;;  %v3160_v60 = vand.u32 2147483648, %v3148_v9  ;;  %v3158_v40 = vand.u32 2147483647, %v3148_v9 }
 0x9fd   :  { %v2920_v57 = vmul.f32 %v8763_v19, %v2897_v26  ;;  %8766 = vtanh.f32 %v3144_v17  ;;  %vm3154_vm2 = vweird.f32 %v3148_v9  ;;  %v2919_v48 = vmul.f32 %v2897_v26, %v10126_v33 }
 0x9fe   :  { %v3161_v2 = vor.u32 1.1754944e-38, %v3160_v60  ;;  %vm3159_vm4 = vcmp.eq.f32.partialorder %v3158_v40, 8.507059e+37  ;;  %8768 = vpow2.f32 %v8234_v24 }
 0x9ff   :  { %2922 = vrot.lane.b32.xlu1 %v2920_v57, %s8946_s5 }
 0xa02   :  { %v8765_v51 = vpop.eup %8764 }
 0xa03   :  { %v3150_v25 = vmul.f32 %v8765_v51, %v3148_v9  ;;  %vm3155_vm1 = vweird.f32 %v8765_v51  ;;  %v8767_v32 = vpop.eup %8766 }
 0xa04   :  { %vm3156_vm3 = vmor %vm3154_vm2, %vm3155_vm1  ;;  %v8769_v63 = vpop.eup %8768 }
 0xa05   :  { %v3151_v3 = vsub.f32 1.0, %v3150_v25  ;;  %v2903_v46 = vadd.f32 1.0, %v8769_v63 }
 0xa07   :  { %v3152_v47 = vmul.f32 %v8765_v51, %v3151_v3  ;;  %8770 = vrcp.f32 %v2903_v46  ;;  %v2915_v10 = vand.u32 2147483648, %v2903_v46  ;;  %vm2909_vm6 = vweird.f32 %v2903_v46 }
 0xa08   :  { %8772 = vpow2.f32 %v8246_v41  ;;  %v2913_v44 = vand.u32 2147483647, %v2903_v46 }
 0xa09   :  { %v3153_v5 = vadd.f32 %v8765_v51, %v3152_v47  ;;  %v2916_v13 = vor.u32 1.1754944e-38, %v2915_v10 }
 0xa0a   :  { %vm2914_vm8 = vcmp.eq.f32.partialorder %v2913_v44, 8.507059e+37 }
 0xa0b   :  { %v3157_v43 = vsel %vm3156_vm3, %v8765_v51, %v3153_v5  ;;  %v12270_v5 = vld [vmem:[#allocation24_spill] sm:$0xff] }
 0xa0c   :  { %v3162_v38 = vsel %vm3159_vm4, %v3161_v2, %v3157_v43  ;;  %v12271_v2 = vld [vmem:[#allocation23_spill] sm:$0xff] }
 0xa0d   :  { %v3185_v21 = vmul.f32 %v8767_v32, %v3162_v38  ;;  %v8771_v59 = vpop.eup %8770  ;;  %v3184_v61 = vmul.f32 %v3162_v38, %v10118_v4  ;;  %v1785_v43 = vadd.f32 %v12271_v2, %v12270_v5  ;;  %v12272_v32 = vld [vmem:[#allocation32_spill] sm:$0xff] }
 0xa0e   :  { %v2905_v36 = vmul.f32 %v8771_v59, %v2903_v46  ;;  %v8773_v14 = vpop.eup %8772  ;;  %vm2910_vm5 = vweird.f32 %v8771_v59 }
 0xa0f   :  { %3187 = vrot.lane.b32.xlu0 %v3185_v21, %s8946_s5  ;;  %v3168_v54 = vadd.f32 1.0, %v8773_v14  ;;  %vm2911_vm7 = vmor %vm2909_vm6, %vm2910_vm5  ;;  %v1814_v38 = vadd.f32 %v12272_v32, %v1785_v43 }
 0xa10   :  { %v2906_v20 = vsub.f32 1.0, %v2905_v36 }
 0xa11   :  { %8774 = vrcp.f32 %v3168_v54  ;;  %v3180_v26 = vand.u32 2147483648, %v3168_v54  ;;  %vm3174_vm10 = vweird.f32 %v3168_v54  ;;  %v3178_v57 = vand.u32 2147483647, %v3168_v54 }
 0xa12   :  { %v2907_v22 = vmul.f32 %v8771_v59, %v2906_v20 }
 0xa13   :  { %v3181_v17 = vor.u32 1.1754944e-38, %v3180_v26  ;;  %vm3179_vm13 = vcmp.eq.f32.partialorder %v3178_v57, 8.507059e+37 }
 0xa14   :  { %v2908_v45 = vadd.f32 %v8771_v59, %v2907_v22 }
 0xa16   :  { %v2912_v6 = vsel %vm2911_vm7, %v8771_v59, %v2908_v45  ;;  %v12276_v59 = vld [vmem:[#allocation33_spill] sm:$0xff] }
 0xa17   :  { %v8775_v15 = vpop.eup %8774  ;;  %v2917_v52 = vsel %vm2914_vm8, %v2916_v13, %v2912_v6 }
 0xa18   :  { %v3170_v55 = vmul.f32 %v8775_v15, %v3168_v54  ;;  %vm3175_vm9 = vweird.f32 %v8775_v15 }
 0xa19   :  { %vm3176_vm11 = vmor %vm3174_vm10, %vm3175_vm9 }
 0xa1a   :  { %v3171_v33 = vsub.f32 1.0, %v3170_v55  ;;  %v12279_v55 = vld [vmem:[#allocation39_spill] sm:$0xff] }
 0xa1c   :  { %v3172_v37 = vmul.f32 %v8775_v15, %v3171_v33 }
 0xa1e   :  { %v3173_v19 = vadd.f32 %v8775_v15, %v3172_v37  ;;  %v12280_v37 = vld [vmem:[#allocation20_spill] sm:$0xff] }
 0xa20   :  { %v3177_v51 = vsel %vm3176_vm11, %v8775_v15, %v3173_v19 }
 0xa21   :  { %v3182_v3 = vsel %vm3179_vm13, %v3181_v17, %v3177_v51 }
 0xa71   :  { %v2923_v58 = vpop.permute.xlu1 %2922 }
 0xa72   :  { %v10162_v50 = vadd.f32 %v2923_v58, %v2919_v48  ;;  %v12277_v48 = vld [vmem:[#allocation43_spill] sm:$0xff] }
 0xa74   :  { %8776 = vtanh.f32 %v10162_v50 }
 0xa7a   :  { %v8777_v12 = vpop.eup %8776 }
 0xa7b   :  { %v10165_v7 = vmul.f32 %v8777_v12, %v2917_v52 }
 0xa7d   :  { %v3025_v0 = vpack.c.bf16 %v10165_v7, %v10165_v7 }
 0xa7f   :  { %3027 = vrot.lane.b32.xlu0 %v3025_v0, %s8946_s5 }
 0xa81   :  { %v3188_v9 = vpop.permute.xlu0 %3187 }
 0xa82   :  { %v10171_v28 = vadd.f32 %v3188_v9, %v3184_v61 }
 0xa84   :  { %8778 = vtanh.f32 %v10171_v28 }
 0xa8a   :  { %v8779_v25 = vpop.eup %8778 }
 0xa8b   :  { %v10174_v60 = vmul.f32 %v8779_v25, %v3182_v3 }
 0xa8d   :  { %v3290_v4 = vpack.c.bf16 %v10174_v60, %v10174_v60 }
 0xa8f   :  { %3292 = vrot.lane.b32.xlu2 %v3290_v4, %s8946_s5 }
 0xae9   :  { %v3293_v47 = vpop.permute.xlu2 %3292 }
 0xaea   :  { %8251 = vmatmul.msk.bf16.vlgmr.msrb.gmra.mxu2 %vm2095_vm12, %v3293_v47  ;;  %8252 = vmatmul.msk.bf16.vlgmr.msrb.gmra.mxu3 %vm2095_vm12, %v3293_v47 }
 0xaf1   :  { %v3028_v40 = vpop.permute.xlu0 %3027 }
 0xaf2   :  { %8239 = vmatmul.msk.bf16.vlgmr.msra.gmra.mxu0 %vm2095_vm12, %v3028_v40  ;;  %8240 = vmatmul.msk.bf16.vlgmr.msrb.gmra.mxu1 %vm2095_vm12, %v3028_v40 }
 0xaf3   :  { %3396 = vmatpush.bf16.msra.mxu0 %v9534_v53  ;;  %3409 = vmatpush.bf16.msrb.mxu1 %v9585_v23 }
 0xaf7   :  { %3397 = vmatpush.bf16.msra.mxu0 %v9569_v27  ;;  %3410 = vmatpush.bf16.msrb.mxu1 %v9632_v35  ;;  %v12273_v35 = vld [vmem:[#allocation27_spill] sm:$0xff] }
 0xaf8   :  { %v1843_v63 = vadd.f32 %v12273_v35, %v9819_v18  ;;  %v12278_v18 = vld [vmem:[#allocation38_spill] sm:$0xff] }
 0xafb   :  { %3398 = vmatpush.bf16.msra.mxu0 %v9611_v30  ;;  %3411 = vmatpush.bf16.msrb.mxu1 %v9671_v49  ;;  %v12274_v30 = vld [vmem:[#allocation13_spill] sm:$0xff] }
 0xaff   :  { %3399 = vmatpush.bf16.msra.mxu0 %v9657_v8  ;;  %3412 = vmatpush.bf16.msrb.mxu1 %v9688_v16  ;;  %v12275_v8 = vld [vmem:[#allocation28_spill] sm:$0xff] }
 0xb00   :  { %v1872_v16 = vadd.f32 %v12275_v8, %v1843_v63 }
 0xb02   :  { %v1901_v36 = vadd.f32 %v12276_v59, %v1872_v16 }
 0xb04   :  { %v1930_v58 = vadd.f32 %v12277_v48, %v1901_v36 }
 0xb06   :  { %v1959_v44 = vadd.f32 %v12278_v18, %v1930_v58 }
 0xb08   :  { %v1988_v13 = vadd.f32 %v12279_v55, %v1959_v44 }
 0xb6d   :  { %v3306_v53 = vpop.f32.mrf.mxu2  ;;  %v3319_v21 = vpop.f32.mrf.mxu3 }
 0xb6e   :  { %v3323_v23 = vadd.f32 %v3306_v53, %v1814_v38  ;;  %v3324_v52 = vadd.f32 %v3319_v21, %v1988_v13 }
 0xb6f   :  { %v3041_v24 = vpop.f32.mrf.mxu0  ;;  %v3054_v27 = vpop.f32.mrf.mxu1 }
 0xb70   :  { %v3058_v46 = vadd.f32 %v3041_v24, %v12274_v30  ;;  %v8253_v49 = vmul.f32 -1.442695, %v3323_v23  ;;  %v3059_v61 = vadd.f32 %v3054_v27, %v12280_v37  ;;  %v8254_v35 = vmul.f32 -1.442695, %v3324_v52 }
 0xb72   :  { %v8241_v41 = vmul.f32 -1.442695, %v3058_v46  ;;  %8780 = vpow2.f32 %v8253_v49 }
 0xb74   :  { %8782 = vpow2.f32 %v8241_v41  ;;  %v8242_v41 = vmul.f32 -1.442695, %v3059_v61 }
 0xb75   :  { %v3308_v14 = vpop.f32.mrf.mxu2  ;;  %v3321_v54 = vpop.f32.mrf.mxu3 }
 0xb77   :  { %v3043_v20 = vpop.f32.mrf.mxu0  ;;  %v3056_v22 = vpop.f32.mrf.mxu1 }
 0xb78   :  { %v8781_v45 = vpop.eup %8780 }
 0xb79   :  { %v3328_v10 = vadd.f32 1.0, %v8781_v45 }
 0xb7a   :  { %v8783_v15 = vpop.eup %8782 }
 0xb7b   :  { %8784 = vrcp.f32 %v3328_v10  ;;  %v3063_v6 = vadd.f32 1.0, %v8783_v15  ;;  %v3340_v26 = vand.u32 2147483648, %v3328_v10  ;;  %v3338_v51 = vand.u32 2147483647, %v3328_v10 }
 0xb7c   :  { %vm3334_vm15 = vweird.f32 %v3328_v10 }
 0xb7d   :  { %8786 = vrcp.f32 %v3063_v6  ;;  %v3075_v25 = vand.u32 2147483648, %v3063_v6  ;;  %v3073_v47 = vand.u32 2147483647, %v3063_v6  ;;  %v3341_v40 = vor.u32 1.1754944e-38, %v3340_v26 }
 0xb7e   :  { %8788 = vtanh.f32 %v3324_v52  ;;  %vm3339_vm2 = vcmp.eq.f32.partialorder %v3338_v51, 8.507059e+37  ;;  %vm3069_vm3 = vweird.f32 %v3063_v6 }
 0xb7f   :  { %8790 = vtanh.f32 %v3059_v61  ;;  %v3076_v38 = vor.u32 1.1754944e-38, %v3075_v25  ;;  %vm3074_vm5 = vcmp.eq.f32.partialorder %v3073_v47, 8.507059e+37 }
 0xb80   :  { %8792 = vpow2.f32 %v8254_v35 }
 0xb81   :  { %v8785_v12 = vpop.eup %8784 }
 0xb82   :  { %v3330_v33 = vmul.f32 %v8785_v12, %v3328_v10  ;;  %vm3335_vm14 = vweird.f32 %v8785_v12 }
 0xb83   :  { %v8787_v0 = vpop.eup %8786  ;;  %vm3336_vm1 = vmor %vm3334_vm15, %vm3335_vm14 }
 0xb84   :  { %v3065_v9 = vmul.f32 %v8787_v0, %v3063_v6  ;;  %v3331_v19 = vsub.f32 1.0, %v3330_v33  ;;  %vm3070_vm0 = vweird.f32 %v8787_v0  ;;  %v8789_v43 = vpop.eup %8788 }
 0xb85   :  { %vm3071_vm4 = vmor %vm3069_vm3, %vm3070_vm0  ;;  %v8791_v23 = vpop.eup %8790 }
 0xb86   :  { %v3332_v57 = vmul.f32 %v8785_v12, %v3331_v19  ;;  %v3066_v17 = vsub.f32 1.0, %v3065_v9  ;;  %v8793_v63 = vpop.eup %8792 }
 0xb87   :  { %v3348_v30 = vadd.f32 1.0, %v8793_v63 }
 0xb88   :  { %v3333_v3 = vadd.f32 %v8785_v12, %v3332_v57  ;;  %v3067_v4 = vmul.f32 %v8787_v0, %v3066_v17 }
 0xb89   :  { %8794 = vrcp.f32 %v3348_v30  ;;  %v3360_v48 = vand.u32 2147483648, %v3348_v30  ;;  %vm3354_vm7 = vweird.f32 %v3348_v30  ;;  %v3358_v58 = vand.u32 2147483647, %v3348_v30 }
 0xb8a   :  { %v3337_v5 = vsel %vm3336_vm1, %v8785_v12, %v3333_v3  ;;  %v3068_v2 = vadd.f32 %v8787_v0, %v3067_v4  ;;  %8796 = vpow2.f32 %v8242_v41 }
 0xb8b   :  { %v3342_v32 = vsel %vm3339_vm2, %v3341_v40, %v3337_v5  ;;  %v3361_v10 = vor.u32 1.1754944e-38, %v3360_v48  ;;  %vm3359_vm9 = vcmp.eq.f32.partialorder %v3358_v58, 8.507059e+37  ;;  %v12281_v40 = vld [vmem:[#allocation31_spill] sm:$0xff] }
 0xb8c   :  { %v3365_v53 = vmul.f32 %v8789_v43, %v3342_v32  ;;  %v3072_v21 = vsel %vm3071_vm4, %v8787_v0, %v3068_v2  ;;  %v3364_v59 = vmul.f32 %v3342_v32, %v10171_v28 }
 0xb8d   :  { %v3077_v24 = vsel %vm3074_vm5, %v3076_v38, %v3072_v21 }
 0xb8e   :  { %3367 = vrot.lane.b32.xlu2 %v3365_v53, %s8946_s5  ;;  %v3100_v27 = vmul.f32 %v8791_v23, %v3077_v24  ;;  %v3099_v52 = vmul.f32 %v3077_v24, %v10162_v50  ;;  %v12282_v23 = vld [vmem:[#allocation42_spill] sm:$0xff] }
 0xb8f   :  { %v8795_v46 = vpop.eup %8794 }
 0xb90   :  { %3102 = vrot.lane.b32.xlu1 %v3100_v27, %s8946_s5  ;;  %v3350_v49 = vmul.f32 %v8795_v46, %v3348_v30  ;;  %v8797_v36 = vpop.eup %8796  ;;  %vm3355_vm6 = vweird.f32 %v8795_v46  ;;  %v12283_v30 = vld [vmem:[#allocation14_spill] sm:$0xff] }
 0xb91   :  { %v3083_v22 = vadd.f32 1.0, %v8797_v36  ;;  %vm3356_vm8 = vmor %vm3354_vm7, %vm3355_vm6 }
 0xb92   :  { %v3351_v8 = vsub.f32 1.0, %v3350_v49 }
 0xb93   :  { %v3095_v61 = vand.u32 2147483648, %v3083_v22  ;;  %vm3089_vm11 = vweird.f32 %v3083_v22  ;;  %v3093_v9 = vand.u32 2147483647, %v3083_v22 }
 0xb94   :  { %v3352_v16 = vmul.f32 %v8795_v46, %v3351_v8 }
 0xb95   :  { %v3096_v26 = vor.u32 1.1754944e-38, %v3095_v61  ;;  %vm3094_vm14 = vcmp.eq.f32.partialorder %v3093_v9, 8.507059e+37 }
 0xb96   :  { %v3353_v20 = vadd.f32 %v8795_v46, %v3352_v16 }
 0xb98   :  { %v3357_v45 = vsel %vm3356_vm8, %v8795_v46, %v3353_v20 }
 0xb99   :  { %v3362_v18 = vsel %vm3359_vm9, %v3361_v10, %v3357_v45 }
 0xbe8   :  { %v3368_v14 = vpop.permute.xlu2 %3367 }
 0xbe9   :  { %v10206_v54 = vadd.f32 %v3368_v14, %v3364_v59 }
 0xbeb   :  { %8798 = vtanh.f32 %v10206_v54 }
 0xbec   :  { %8800 = vrcp.f32 %v3083_v22 }
 0xbf1   :  { %v8799_v15 = vpop.eup %8798 }
 0xbf2   :  { %v10209_v28 = vmul.f32 %v8799_v15, %v3362_v18  ;;  %v8801_v6 = vpop.eup %8800 }
 0xbf3   :  { %v3085_v55 = vmul.f32 %v8801_v6, %v3083_v22  ;;  %vm3090_vm10 = vweird.f32 %v8801_v6 }
 0xbf4   :  { %v3470_v44 = vpack.c.bf16 %v10209_v28, %v10209_v28  ;;  %vm3091_vm13 = vmor %vm3089_vm11, %vm3090_vm10 }
 0xbf5   :  { %v3086_v13 = vsub.f32 1.0, %v3085_v55 }
 0xbf6   :  { %3472 = vrot.lane.b32.xlu1 %v3470_v44, %s8946_s5 }
 0xbf7   :  { %v3087_v12 = vmul.f32 %v8801_v6, %v3086_v13 }
 0xbf9   :  { %v3088_v37 = vadd.f32 %v8801_v6, %v3087_v12 }
 0xbfb   :  { %v3092_v19 = vsel %vm3091_vm13, %v8801_v6, %v3088_v37  ;;  %v12284_v6 = vld [vmem:[#allocation21_spill] sm:$0xff] }
 0xbfc   :  { %v3097_v51 = vsel %vm3094_vm14, %v3096_v26, %v3092_v19 }
 0xc02   :  { %v3103_v33 = vpop.permute.xlu1 %3102 }
 0xc03   :  { %v10215_v0 = vadd.f32 %v3103_v33, %v3099_v52 }
 0xc05   :  { %8802 = vtanh.f32 %v10215_v0 }
 0xc0b   :  { %v8803_v57 = vpop.eup %8802 }
 0xc0c   :  { %v10218_v17 = vmul.f32 %v8803_v57, %v3097_v51 }
 0xc0e   :  { %v3205_v50 = vpack.c.bf16 %v10218_v17, %v10218_v17 }
 0xc10   :  { %3207 = vrot.lane.b32.xlu0 %v3205_v50, %s8946_s5 }
 0xc68   :  { %v3473_v25 = vpop.permute.xlu1 %3472 }
 0xc69   :  { %8259 = vmatmul.msk.bf16.vlgmr.msra.gmra.mxu2 %vm2095_vm12, %v3473_v25  ;;  %8260 = vmatmul.msk.bf16.vlgmr.msra.gmra.mxu3 %vm2095_vm12, %v3473_v25 }
 0xc82   :  { %v3208_v3 = vpop.permute.xlu0 %3207 }
 0xc83   :  { %8247 = vmatmul.msk.bf16.vlgmr.msrb.gmra.mxu0 %vm2095_vm12, %v3208_v3  ;;  %8248 = vmatmul.msk.bf16.vlgmr.msra.gmra.mxu1 %vm2095_vm12, %v3208_v3 }
 0xcec   :  { %v3486_v4 = vpop.f32.mrf.mxu2  ;;  %v3499_v47 = vpop.f32.mrf.mxu3 }
 0xced   :  { %v3503_v5 = vadd.f32 %v3486_v4, %v12281_v40  ;;  %v3504_v24 = vadd.f32 %v3499_v47, %v12282_v23 }
 0xcef   :  { %v8261_v2 = vmul.f32 -1.442695, %v3503_v5  ;;  %v8262_v50 = vmul.f32 -1.442695, %v3504_v24 }
 0xcf1   :  { %8804 = vpow2.f32 %v8261_v2 }
 0xcf4   :  { %v3488_v43 = vpop.f32.mrf.mxu2  ;;  %v3501_v32 = vpop.f32.mrf.mxu3 }
 0xcf7   :  { %v8805_v38 = vpop.eup %8804 }
 0xcf8   :  { %v3508_v53 = vadd.f32 1.0, %v8805_v38 }
 0xcfa   :  { %8806 = vrcp.f32 %v3508_v53  ;;  %v3520_v8 = vand.u32 2147483648, %v3508_v53  ;;  %v3518_v59 = vand.u32 2147483647, %v3508_v53  ;;  %vm3514_vm0 = vweird.f32 %v3508_v53 }
 0xcfb   :  { %8808 = vtanh.f32 %v3504_v24 }
 0xcfc   :  { %v3521_v22 = vor.u32 1.1754944e-38, %v3520_v8  ;;  %vm3519_vm2 = vcmp.eq.f32.partialorder %v3518_v59, 8.507059e+37 }
 0xd00   :  { %v8807_v21 = vpop.eup %8806  ;;  %v3221_v27 = vpop.f32.mrf.mxu0 }
 0xd01   :  { %v3234_v35 = vpop.f32.mrf.mxu1  ;;  %v3510_v63 = vmul.f32 %v8807_v21, %v3508_v53  ;;  %v3238_v46 = vadd.f32 %v3221_v27, %v12283_v30  ;;  %vm3515_vm15 = vweird.f32 %v8807_v21  ;;  %v8809_v58 = vpop.eup %8808 }
 0xd02   :  { %vm3516_vm1 = vmor %vm3514_vm0, %vm3515_vm15  ;;  %v3239_v55 = vadd.f32 %v3234_v35, %v12284_v6  ;;  %vm3760_vm0 = vcmask 1041408  }
 0xd03   :  { %v8249_v49 = vmul.f32 -1.442695, %v3238_v46  ;;  %v3511_v41 = vsub.f32 1.0, %v3510_v63 }
 0xd05   :  { %8810 = vpow2.f32 %v8249_v49  ;;  %v3512_v16 = vmul.f32 %v8807_v21, %v3511_v41 }
 0xd07   :  { %v3513_v36 = vadd.f32 %v8807_v21, %v3512_v16 }
 0xd08   :  { %v3223_v14 = vpop.f32.mrf.mxu0 }
 0xd09   :  { %v3236_v20 = vpop.f32.mrf.mxu1  ;;  %v3517_v48 = vsel %vm3516_vm1, %v8807_v21, %v3513_v36 }
 0xd0a   :  { %v3522_v45 = vsel %vm3519_vm2, %v3521_v22, %v3517_v48 }
 0xd0b   :  { %v8811_v10 = vpop.eup %8810  ;;  %v3545_v15 = vmul.f32 %v8809_v58, %v3522_v45  ;;  %v3544_v35 = vmul.f32 %v3522_v45, %v10206_v54 }
 0xd0c   :  { %v3243_v18 = vadd.f32 1.0, %v8811_v10 }
 0xd0d   :  { %3547 = vrot.lane.b32.xlu0 %v3545_v15, %s8946_s5 }
 0xd0e   :  { %8812 = vrcp.f32 %v3243_v18  ;;  %v3255_v52 = vand.u32 2147483648, %v3243_v18  ;;  %v3253_v37 = vand.u32 2147483647, %v3243_v18  ;;  %vm3249_vm4 = vweird.f32 %v3243_v18 }
 0xd0f   :  { %8814 = vtanh.f32 %v3239_v55 }
 0xd10   :  { %v3256_v9 = vor.u32 1.1754944e-38, %v3255_v52  ;;  %vm3254_vm6 = vcmp.eq.f32.partialorder %v3253_v37, 8.507059e+37  ;;  %v8551_v52 = vld [vmem:[%s12191_s7 + $0x10] sm:$0xff]  ;;  %v10274_v37 = vld [vmem:[%s12192_s8] sm:$0xff] }
 0xd14   :  { %v8813_v44 = vpop.eup %8812 }
 0xd15   :  { %v3245_v13 = vmul.f32 %v8813_v44, %v3243_v18  ;;  %2474 = vrot.lane.b32.xlu0 %v10033_v1, %s8946_s5  ;;  %vm3250_vm3 = vweird.f32 %v8813_v44  ;;  %v8815_v26 = vpop.eup %8814  ;;  %v8250_v1 = vmul.f32 -1.442695, %v3239_v55  ;;  %v8548_v55 = vld [vmem:[%s12190_s6 + $0x18] sm:$0xff] }
 0xd16   :  { %vm3251_vm5 = vmor %vm3249_vm4, %vm3250_vm3  ;;  %3708 = vmatpush.bf16.msra.mxu1 %v8548_v55 }
 0xd17   :  { %v3246_v12 = vsub.f32 1.0, %v3245_v13  ;;  %8816 = vpow2.f32 %v8250_v1  ;;  %v8552_v13 = vld [vmem:[%s12191_s7 + $0x18] sm:$0xff] }
 0xd18   :  { %8818 = vpow2.f32 %v8262_v50  ;;  %3643 = vmatpush.bf16.msrb.mxu0 %v8552_v13 }
 0xd19   :  { %v3247_v33 = vmul.f32 %v8813_v44, %v3246_v12 }
 0xd1b   :  { %v3248_v61 = vadd.f32 %v8813_v44, %v3247_v33 }
 0xd1c   :  { %3644 = vmatpush.bf16.msrb.mxu0 %v8551_v52 }
 0xd1d   :  { %v3252_v19 = vsel %vm3251_vm5, %v8813_v44, %v3248_v61  ;;  %v8817_v25 = vpop.eup %8816  ;;  %v3747_v44 = vld [vmem:[%s12192_s8 + $0x8] sm:$0x3] }
 0xd1e   :  { %v3257_v57 = vsel %vm3254_vm6, %v3256_v9, %v3252_v19  ;;  %v3263_v3 = vadd.f32 1.0, %v8817_v25  ;;  %v8819_v4 = vpop.eup %8818  ;;  %v3753_v6 = vunpack.c.l.b16 %v3747_v44  ;;  %v8546_v61 = vld [vmem:[%s12190_s6 + $0x8] sm:$0xff] }
 0xd1f   :  { %v3280_v51 = vmul.f32 %v8815_v26, %v3257_v57  ;;  %v3528_v47 = vadd.f32 1.0, %v8819_v4  ;;  %v3279_v21 = vmul.f32 %v3257_v57, %v10215_v0  ;;  %v8550_v9 = vld [vmem:[%s12191_s7 + $0x8] sm:$0xff]  ;;  %v8545_v26 = vld [vmem:[%s12190_s6] sm:$0xff] }
 0xd20   :  { %8820 = vrcp.f32 %v3263_v3  ;;  %v3275_v63 = vand.u32 2147483648, %v3263_v3  ;;  %vm3269_vm8 = vweird.f32 %v3263_v3  ;;  %v3273_v46 = vand.u32 2147483647, %v3263_v3  ;;  %3645 = vmatpush.bf16.msrb.mxu0 %v8550_v9  ;;  %v8549_v57 = vld [vmem:[%s12191_s7] sm:$0xff]  ;;  %s12288_s7 = sld [smem:[#allocation45_spill]] }
 0xd21   :  { %3282 = vrot.lane.b32.xlu2 %v3280_v51, %s8946_s5  ;;  %8822 = vrcp.f32 %v3528_v47  ;;  %v3540_v16 = vand.u32 2147483648, %v3528_v47  ;;  %vm3534_vm13 = vweird.f32 %v3528_v47  ;;  %v3538_v36 = vand.u32 2147483647, %v3528_v47 }
 0xd22   :  { %v3276_v0 = vor.u32 1.1754944e-38, %v3275_v63  ;;  %vm3274_vm11 = vcmp.eq.f32.partialorder %v3273_v46, 8.507059e+37  ;;  %v3755_v12 = vpack.c.b16 %v3753_v6, %v3753_v6  ;;  %v12285_v51 = vmov 0  }
 0xd23   :  { %v3541_v48 = vor.u32 1.1754944e-38, %v3540_v16  ;;  %vm3539_vm15 = vcmp.eq.f32.partialorder %v3538_v36, 8.507059e+37 }
 0xd24   :  { %v10268_v33 = vsel %vm3760_vm0, %v3755_v12, 0  ;;  %3646 = vmatpush.bf16.msrb.mxu0 %v8549_v57 }
 0xd25   :  { %3770 = vmatpush.bf16.msrb.mxu2 %v10268_v33  ;;  %3833 = vmatpush.bf16.msrb.mxu3 %v10268_v33 }
 0xd26   :  { %v8821_v40 = vpop.eup %8820 }
 0xd27   :  { %v3265_v5 = vmul.f32 %v8821_v40, %v3263_v3  ;;  %v8823_v2 = vpop.eup %8822  ;;  %vm3270_vm7 = vweird.f32 %v8821_v40 }
 0xd28   :  { %v3530_v32 = vmul.f32 %v8823_v2, %v3528_v47  ;;  %vm3271_vm9 = vmor %vm3269_vm8, %vm3270_vm7  ;;  %vm3535_vm10 = vweird.f32 %v8823_v2 }
 0xd29   :  { %2294 = vrot.lane.b32.xlu2 %v9978_v39, %s8946_s5  ;;  %v3266_v43 = vsub.f32 1.0, %v3265_v5  ;;  %vm3536_vm14 = vmor %vm3534_vm13, %vm3535_vm10  ;;  %3771 = vmatpush.bf16.msrb.mxu2 %v10274_v37 }
 0xd2a   :  { %v3531_v53 = vsub.f32 1.0, %v3530_v32  ;;  %3834 = vmatpush.bf16.msrb.mxu3 %v10274_v37 }
 0xd2b   :  { %v3267_v38 = vmul.f32 %v8821_v40, %v3266_v43 }
 0xd2c   :  { %v3532_v27 = vmul.f32 %v8823_v2, %v3531_v53  ;;  %3772 = vmatmul.bf16.vlgmr.msrb.gmra.mxu2 %v12285_v51  ;;  %v12286_v53 = vld [vmem:[#allocation15_spill] sm:$0xff] }
 0xd2d   :  { %v3268_v24 = vadd.f32 %v8821_v40, %v3267_v38  ;;  %3896 = vmatpush.bf16.msra.mxu2 %v10268_v33 }
 0xd2e   :  { %v3533_v8 = vadd.f32 %v8823_v2, %v3532_v27  ;;  %3959 = vmatpush.bf16.msra.mxu3 %v10268_v33 }
 0xd2f   :  { %v3272_v41 = vsel %vm3271_vm9, %v8821_v40, %v3268_v24  ;;  %vm12207_vm9 = vcmask 162816  }
 0xd30   :  { %v3277_v54 = vsel %vm3274_vm11, %v3276_v0, %v3272_v41  ;;  %v3537_v22 = vsel %vm3536_vm14, %v8823_v2, %v3533_v8 }
 0xd31   :  { %v3542_v15 = vsel %vm3539_vm15, %v3541_v48, %v3537_v22  ;;  %3897 = vmatpush.bf16.msra.mxu2 %v10274_v37 }
 0xd32   :  { %3960 = vmatpush.bf16.msra.mxu3 %v10274_v37 }
 0xd35   :  { %4022 = vmatpush.bf16.msrb.mxu2 %v10268_v33 }
 0xd39   :  { %4023 = vmatpush.bf16.msrb.mxu2 %v10274_v37 }
 0xd7b   :  { %v3283_v39 = vpop.permute.xlu2 %3282 }
 0xd7c   :  { %v10238_v23 = vadd.f32 %v3283_v39, %v3279_v21  ;;  %v12287_v39 = vld [vmem:[#allocation22_spill] sm:$0xff] }
 0xd7e   :  { %8824 = vtanh.f32 %v10238_v23 }
 0xd7f   :  { %v3548_v30 = vpop.permute.xlu0 %3547 }
 0xd80   :  { %v3550_v49 = vadd.f32 %v3548_v30, %v3544_v35 }
 0xd82   :  { %8826 = vtanh.f32 %v3550_v49  ;;  %v10311_v49 = vld [vmem:[%s12193_s9] ss:$0 sm:$0xff] }
 0xd83   :  { %v2295_v59 = vpop.permute.xlu2 %2294 }
 0xd84   :  { %v8825_v14 = vpop.eup %8824  ;;  %2297 = vst.msk [vmem:[#allocation3] sm:$0xff] %vm2095_vm12, %v2295_v59 }
 0xd85   :  { %v10243_v20 = vmul.f32 %v8825_v14, %v3277_v54 }
 0xd87   :  { %v2475_v58 = vpop.permute.xlu0 %2474  ;;  %v3385_v45 = vpack.c.bf16 %v10243_v20, %v10243_v20 }
 0xd88   :  { %v8827_v10 = vpop.eup %8826  ;;  %2477 = vst.msk [vmem:[#allocation3 + $0x8] sm:$0xff] %vm2095_vm12, %v2475_v58 }
 0xd89   :  { %3387 = vrot.lane.b32.xlu1 %v3385_v45, %s8946_s5  ;;  %v3552_v18 = vmul.f32 %v8827_v10, %v3542_v15 }
 0xd8b   :  { %3559 = vrot.lane.b32.xlu2 %v3552_v18, %s8946_s5  ;;  %v3563_v3 = vld [vmem:[#allocation3] sm:$0xff] }
 0xd8f   :  { %v3564_v25 = vld [vmem:[#allocation3 + $0x8] sm:$0xff] }
 0xd90   :  { %v3571_v4 = vpack.c.bf16 %v3564_v25, %v3563_v3 }
 0xd91   :  { %3379 = vrot.lane.b32.xlu1 %v10209_v28, %s8946_s5  ;;  %v8547_v28 = vld [vmem:[%s12190_s6 + $0x10] sm:$0xff] }
 0xd92   :  { %3709 = vmatpush.bf16.msra.mxu1 %v8547_v28 }
 0xd96   :  { %3710 = vmatpush.bf16.msra.mxu1 %v8546_v61 }
 0xd9a   :  { %3711 = vmatpush.bf16.msra.mxu1 %v8545_v26 }
 0xdaf   :  { %v3773_v2 = vpop.f32.mrf.mxu2 }
 0xdb7   :  { %v3775_v43 = vpop.f32.mrf.mxu2 }
 0xde5   :  { %v3560_v19 = vpop.permute.xlu2 %3559 }
 0xde6   :  { %3562 = vst.msk [vmem:[#allocation4] sm:$0xff] %vm2095_vm12, %v3560_v19 }
 0xded   :  { %v3583_v47 = vld [vmem:[#allocation4] sm:$0xff] }
 0xdfb   :  { %v3388_v1 = vpop.permute.xlu1 %3387 }
 0xdfc   :  { %8255 = vmatmul.msk.bf16.vlgmr.msra.gmra.mxu0 %vm2095_vm12, %v3388_v1  ;;  %8256 = vmatmul.msk.bf16.vlgmr.msrb.gmra.mxu1 %vm2095_vm12, %v3388_v1 }
 0xe03   :  { %v3380_v50 = vpop.permute.xlu1 %3379 }
 0xe04   :  { %3382 = vst.msk [vmem:[#allocation4 + $0x8] sm:$0xff] %vm2095_vm12, %v3380_v50 }
 0xe0b   :  { %v3584_v40 = vld [vmem:[#allocation4 + $0x8] sm:$0xff] }
 0xe0c   :  { %8299 = vmatmul.msk.bf16.vlgmr.msra.gmra.mxu1 %vm2095_vm12, %v3571_v4  ;;  %v3591_v5 = vpack.c.bf16 %v3584_v40, %v3583_v47 }
 0xe0e   :  { %8279 = vmatmul.msk.bf16.vlgmr.msrb.gmra.mxu0 %vm2095_vm12, %v3591_v5 }
 0xe79   :  { %v3401_v32 = vpop.f32.mrf.mxu0  ;;  %v3414_v38 = vpop.f32.mrf.mxu1 }
 0xe7a   :  { %v3418_v21 = vadd.f32 %v3401_v32, %v12286_v53  ;;  %v10306_v24 = vadd.f32 %v3414_v38, %v12287_v39 }
 0xe7c   :  { %v8257_v27 = vmul.f32 -1.442695, %v3418_v21 }
 0xe7e   :  { %8828 = vpow2.f32 %v8257_v27 }
 0xe81   :  { %v3403_v35 = vpop.f32.mrf.mxu0  ;;  %v3416_v63 = vpop.f32.mrf.mxu1 }
 0xe84   :  { %v8829_v30 = vpop.eup %8828 }
 0xe85   :  { %v3423_v46 = vadd.f32 1.0, %v8829_v30 }
 0xe87   :  { %8830 = vrcp.f32 %v3423_v46  ;;  %v3435_v22 = vand.u32 2147483648, %v3423_v46  ;;  %v3433_v58 = vand.u32 2147483647, %v3423_v46  ;;  %vm3429_vm2 = vweird.f32 %v3423_v46 }
 0xe88   :  { %8832 = vtanh.f32 %v10306_v24 }
 0xe89   :  { %v3713_v41 = vpop.f32.mrf.mxu1  ;;  %v3436_v10 = vor.u32 1.1754944e-38, %v3435_v22  ;;  %vm3434_vm4 = vcmp.eq.f32.partialorder %v3433_v58, 8.507059e+37 }
 0xe8b   :  { %v3648_v8 = vpop.f32.mrf.mxu0 }
 0xe8c   :  { %v3714_v0 = vadd.f32 %v3713_v41, %v3648_v8 }
 0xe8d   :  { %v8831_v16 = vpop.eup %8830 }
 0xe8e   :  { %v3425_v59 = vmul.f32 %v8831_v16, %v3423_v46  ;;  %v3737_v36 = vadd.f32 %v10311_v49, %v3714_v0  ;;  %vm3430_vm1 = vweird.f32 %v8831_v16  ;;  %v8833_v18 = vpop.eup %8832 }
 0xe8f   :  { %vm3431_vm3 = vmor %vm3429_vm2, %vm3430_vm1 }
 0xe90   :  { %v3777_v14 = vadd.f32 %v3773_v2, %v3737_v36  ;;  %v3426_v54 = vsub.f32 1.0, %v3425_v59 }
 0xe91   :  { %v3715_v27 = vpop.f32.mrf.mxu1 }
 0xe92   :  { %8834 = vtanh.f32 %v3777_v14  ;;  %v3427_v48 = vmul.f32 %v8831_v16, %v3426_v54  ;;  %v8307_v13 = vmul.f32 -1.442695, %v3777_v14 }
 0xe93   :  { %v3650_v39 = vpop.f32.mrf.mxu0 }
 0xe94   :  { %v3428_v45 = vadd.f32 %v8831_v16, %v3427_v48  ;;  %8836 = vpow2.f32 %v8307_v13  ;;  %v3716_v35 = vadd.f32 %v3715_v27, %v3650_v39 }
 0xe96   :  { %v3432_v15 = vsel %vm3431_vm3, %v8831_v16, %v3428_v45  ;;  %v3738_v63 = vadd.f32 %v10311_v49, %v3716_v35 }
 0xe97   :  { %v10315_v44 = vsel %vm3434_vm4, %v3436_v10, %v3432_v15 }
 0xe98   :  { %v8835_v6 = vpop.eup %8834  ;;  %v10318_v55 = vmul.f32 %v8833_v18, %v10315_v44 }
 0xe99   :  { %3800 = vrot.lane.b32.xlu0 %v8835_v6, %s8947_s3 }
 0xe9a   :  { %v8837_v12 = vpop.eup %8836 }
 0xe9b   :  { %v3781_v28 = vadd.f32 1.0, %v8837_v12 }
 0xe9d   :  { %8838 = vrcp.f32 %v3781_v28  ;;  %v3793_v57 = vand.u32 2147483648, %v3781_v28  ;;  %vm3787_vm6 = vweird.f32 %v3781_v28  ;;  %v3791_v1 = vand.u32 2147483647, %v3781_v28 }
 0xe9f   :  { %v3794_v25 = vor.u32 1.1754944e-38, %v3793_v57  ;;  %vm3792_vm8 = vcmp.eq.f32.partialorder %v3791_v1, 8.507059e+37 }
 0xea3   :  { %v8839_v52 = vpop.eup %8838 }
 0xea4   :  { %v3783_v61 = vmul.f32 %v8839_v52, %v3781_v28  ;;  %vm3788_vm5 = vweird.f32 %v8839_v52 }
 0xea5   :  { %vm3789_vm7 = vmor %vm3787_vm6, %vm3788_vm5 }
 0xea6   :  { %v3784_v9 = vsub.f32 1.0, %v3783_v61 }
 0xea8   :  { %v3785_v19 = vmul.f32 %v8839_v52, %v3784_v9 }
 0xeaa   :  { %v3786_v26 = vadd.f32 %v8839_v52, %v3785_v19 }
 0xeac   :  { %v3790_v50 = vsel %vm3789_vm7, %v8839_v52, %v3786_v26 }
 0xead   :  { %v3795_v4 = vsel %vm3792_vm8, %v3794_v25, %v3790_v50 }
 0xeae   :  { %v3798_v40 = vmul.f32 0.0, %v3795_v4 }
 0xf0b   :  { %v3801_v3 = vpop.permute.xlu0 %3800 }
 0xf0c   :  { %v3803_v47 = vmul.f32 %v3801_v3, %v3795_v4 }
 0xf0e   :  { %3805 = vrot.lane.b32.xlu1 %v3803_v47, %s8948_s22 }
 0xf80   :  { %v3806_v5 = vpop.permute.xlu1 %3805 }
 0xf81   :  { %v3808_v2 = vadd.f32 %v3806_v5, %v3798_v40 }
 0xf83   :  { %8840 = vtanh.f32 %v3808_v2 }
 0xf89   :  { %v8841_v43 = vpop.eup %8840 }
 0xf8a   :  { %3811 = vrot.lane.b32.xlu2 %v8841_v43, %s8949_s4 }
 0xfe4   :  { %v3812_v32 = vpop.permute.xlu2 %3811 }
 0xfe5   :  { %v10323_v38 = vmul.f32 %v3812_v32, %v3795_v4 }
 0xfe7   :  { %v3820_v53 = vpack.c.bf16 %v10323_v38, %v10323_v38 }
 0xfe9   :  { %3822 = vrot.lane.b32.xlu0 %v3820_v53, %s8950_s23 }
0x105b   :  { %v3823_v21 = vpop.permute.xlu0 %3822 }
0x105c   :  { %8308 = vmatmul.msk.bf16.vlgmr.msrb.gmra.mxu3 %vm12207_vm9, %v3823_v21 }
0x105d   :  { %4085 = vmatpush.bf16.msrb.mxu3 %v10268_v33 }
0x1061   :  { %4086 = vmatpush.bf16.msrb.mxu3 %v10274_v37 }
0x10df   :  { %v3836_v30 = vpop.f32.mrf.mxu3 }
0x10e0   :  { %v3840_v46 = vadd.f32 %v3836_v30, %v3738_v63 }
0x10e2   :  { %8842 = vtanh.f32 %v3840_v46  ;;  %v8309_v0 = vmul.f32 -1.442695, %v3840_v46 }
0x10e4   :  { %8844 = vpow2.f32 %v8309_v0 }
0x10e7   :  { %v3838_v41 = vpop.f32.mrf.mxu3 }
0x10e8   :  { %v8843_v8 = vpop.eup %8842 }
0x10e9   :  { %3863 = vrot.lane.b32.xlu1 %v8843_v8, %s8947_s3 }
0x10ea   :  { %v8845_v16 = vpop.eup %8844 }
0x10eb   :  { %v3844_v59 = vadd.f32 1.0, %v8845_v16 }
0x10ed   :  { %8846 = vrcp.f32 %v3844_v59  ;;  %v3856_v58 = vand.u32 2147483648, %v3844_v59  ;;  %vm3850_vm11 = vweird.f32 %v3844_v59  ;;  %v3854_v45 = vand.u32 2147483647, %v3844_v59 }
0x10ef   :  { %vm3855_vm14 = vcmp.eq.f32.partialorder %v3854_v45, 8.507059e+37 }
0x10f1   :  { %2654 = vrot.lane.b32.xlu1 %v10073_v62, %s8946_s5  ;;  %v3857_v62 = vor.u32 1.1754944e-38, %v3856_v58 }
0x10f3   :  { %v8847_v36 = vpop.eup %8846 }
0x10f4   :  { %v3846_v14 = vmul.f32 %v8847_v36, %v3844_v59  ;;  %vm3851_vm10 = vweird.f32 %v8847_v36 }
0x10f5   :  { %vm3852_vm13 = vmor %vm3850_vm11, %vm3851_vm10 }
0x10f6   :  { %v3847_v54 = vsub.f32 1.0, %v3846_v14 }
0x10f8   :  { %v3848_v22 = vmul.f32 %v8847_v36, %v3847_v54 }
0x10f9   :  { %3199 = vrot.lane.b32.xlu1 %v10174_v60, %s8946_s5 }
0x10fa   :  { %v3849_v48 = vadd.f32 %v8847_v36, %v3848_v22 }
0x10fc   :  { %v3853_v10 = vsel %vm3852_vm13, %v8847_v36, %v3849_v48 }
0x10fd   :  { %v3858_v60 = vsel %vm3855_vm14, %v3857_v62, %v3853_v10 }
0x10fe   :  { %v3861_v12 = vmul.f32 %v3858_v60, %v3808_v2 }
0x115b   :  { %v3864_v15 = vpop.permute.xlu1 %3863 }
0x115c   :  { %v3866_v18 = vmul.f32 %v3864_v15, %v3858_v60 }
0x115e   :  { %3868 = vrot.lane.b32.xlu2 %v3866_v18, %s8948_s22 }
0x1163   :  { %v2655_v6 = vpop.permute.xlu1 %2654 }
0x1164   :  { %2657 = vst.msk [vmem:[#allocation3 + $0x10] sm:$0xff] %vm2095_vm12, %v2655_v6 }
0x1166   :  { %2834 = vrot.lane.b32.xlu2 %v10130_v34, %s8946_s5 }
0x116b   :  { %v3200_v13 = vpop.permute.xlu1 %3199  ;;  %v3565_v19 = vld [vmem:[#allocation3 + $0x10] sm:$0xff] }
0x116c   :  { %3202 = vst.msk [vmem:[#allocation4 + $0x10] sm:$0xff] %vm2095_vm12, %v3200_v13 }
0x1173   :  { %v3585_v3 = vld [vmem:[#allocation4 + $0x10] sm:$0xff] }
0x11b8   :  { %v3869_v28 = vpop.permute.xlu2 %3868 }
0x11b9   :  { %v3871_v52 = vadd.f32 %v3869_v28, %v3861_v12 }
0x11bb   :  { %8848 = vtanh.f32 %v3871_v52 }
0x11c0   :  { %v2835_v61 = vpop.permute.xlu2 %2834 }
0x11c1   :  { %v8849_v9 = vpop.eup %8848  ;;  %2837 = vst.msk [vmem:[#allocation3 + $0x18] sm:$0xff] %vm2095_vm12, %v2835_v61 }
0x11c2   :  { %3874 = vrot.lane.b32.xlu0 %v8849_v9, %s8949_s4 }
0x11c8   :  { %v3566_v26 = vld [vmem:[#allocation3 + $0x18] sm:$0xff] }
0x11c9   :  { %v3572_v57 = vpack.c.bf16 %v3566_v26, %v3565_v19 }
0x11ca   :  { %3019 = vrot.lane.b32.xlu0 %v10121_v42, %s8946_s5 }
0x11cb   :  { %8300 = vmatmul.msk.bf16.gmra.mxu1 %vm2095_vm12, %v3572_v57 }
0x1234   :  { %v3875_v34 = vpop.permute.xlu0 %3874 }
0x1235   :  { %v10347_v1 = vmul.f32 %v3875_v34, %v3858_v60 }
0x1237   :  { %v3883_v50 = vpack.c.bf16 %v10347_v1, %v10347_v1 }
0x1239   :  { %3885 = vrot.lane.b32.xlu2 %v3883_v50, %s8950_s23 }
0x123c   :  { %v3020_v25 = vpop.permute.xlu0 %3019 }
0x123d   :  { %3022 = vst.msk [vmem:[#allocation4 + $0x18] sm:$0xff] %vm2095_vm12, %v3020_v25 }
0x1244   :  { %v3586_v4 = vld [vmem:[#allocation4 + $0x18] sm:$0xff] }
0x1245   :  { %v3592_v47 = vpack.c.bf16 %v3586_v4, %v3585_v3 }
0x1247   :  { %8280 = vmatmul.msk.bf16.gmra.mxu0 %vm2095_vm12, %v3592_v47 }
0x1248   :  { %v3718_v5 = vpop.f32.mrf.mxu1 }
0x1250   :  { %v3720_v12 = vpop.f32.mrf.mxu1 }
0x1293   :  { %v3886_v40 = vpop.permute.xlu2 %3885 }
0x1294   :  { %8310 = vmatmul.msk.bf16.vlgmr.msra.gmra.mxu2 %vm12207_vm9, %v3886_v40 }
0x1295   :  { %4148 = vmatpush.bf16.msra.mxu2 %v10268_v33 }
0x1299   :  { %4149 = vmatpush.bf16.msra.mxu2 %v10274_v37 }
0x12c4   :  { %v3653_v42 = vpop.f32.mrf.mxu0 }
0x12c5   :  { %v3719_v2 = vadd.f32 %v3718_v5, %v3653_v42 }
0x12c7   :  { %v3739_v43 = vadd.f32 %v10311_v49, %v3719_v2 }
0x12cc   :  { %v3655_v13 = vpop.f32.mrf.mxu0 }
0x12cd   :  { %v3721_v28 = vadd.f32 %v3720_v12, %v3655_v13 }
0x1317   :  { %v3899_v32 = vpop.f32.mrf.mxu2 }
0x1318   :  { %v3903_v53 = vadd.f32 %v3899_v32, %v3739_v43 }
0x131a   :  { %8850 = vtanh.f32 %v3903_v53  ;;  %v8311_v27 = vmul.f32 -1.442695, %v3903_v53 }
0x131c   :  { %8852 = vpow2.f32 %v8311_v27 }
0x131f   :  { %v3901_v21 = vpop.f32.mrf.mxu2 }
0x1320   :  { %v8851_v39 = vpop.eup %8850 }
0x1321   :  { %3926 = vrot.lane.b32.xlu0 %v8851_v39, %s8947_s3 }
0x1322   :  { %v8853_v35 = vpop.eup %8852 }
0x1323   :  { %v3907_v63 = vadd.f32 1.0, %v8853_v35 }
0x1325   :  { %8854 = vrcp.f32 %v3907_v63  ;;  %v3919_v16 = vand.u32 2147483648, %v3907_v63  ;;  %vm3913_vm1 = vweird.f32 %v3907_v63  ;;  %v3917_v59 = vand.u32 2147483647, %v3907_v63 }
0x1327   :  { %v3920_v14 = vor.u32 1.1754944e-38, %v3919_v16  ;;  %vm3918_vm3 = vcmp.eq.f32.partialorder %v3917_v59, 8.507059e+37 }
0x132b   :  { %v8855_v30 = vpop.eup %8854 }
0x132c   :  { %v3909_v46 = vmul.f32 %v8855_v30, %v3907_v63  ;;  %vm3914_vm15 = vweird.f32 %v8855_v30 }
0x132d   :  { %vm3915_vm2 = vmor %vm3913_vm1, %vm3914_vm15 }
0x132e   :  { %v3910_v41 = vsub.f32 1.0, %v3909_v46 }
0x1330   :  { %v3911_v8 = vmul.f32 %v8855_v30, %v3910_v41 }
0x1332   :  { %v3912_v0 = vadd.f32 %v8855_v30, %v3911_v8 }
0x1334   :  { %v3916_v36 = vsel %vm3915_vm2, %v8855_v30, %v3912_v0 }
0x1335   :  { %v3921_v22 = vsel %vm3918_vm3, %v3920_v14, %v3916_v36 }
0x1336   :  { %v3924_v58 = vmul.f32 %v3921_v22, %v3871_v52  ;;  %v3740_v52 = vadd.f32 %v10311_v49, %v3721_v28 }
0x1393   :  { %v3927_v54 = vpop.permute.xlu0 %3926 }
0x1394   :  { %v3929_v48 = vmul.f32 %v3927_v54, %v3921_v22 }
0x1396   :  { %3931 = vrot.lane.b32.xlu1 %v3929_v48, %s8948_s22 }
0x1408   :  { %v3932_v45 = vpop.permute.xlu1 %3931 }
0x1409   :  { %v3934_v10 = vadd.f32 %v3932_v45, %v3924_v58 }
0x140b   :  { %8856 = vtanh.f32 %v3934_v10 }
0x1411   :  { %v8857_v62 = vpop.eup %8856 }
0x1412   :  { %3937 = vrot.lane.b32.xlu2 %v8857_v62, %s8949_s4 }
0x146c   :  { %v3938_v15 = vpop.permute.xlu2 %3937 }
0x146d   :  { %v10361_v60 = vmul.f32 %v3938_v15, %v3921_v22 }
0x146f   :  { %v3946_v18 = vpack.c.bf16 %v10361_v60, %v10361_v60 }
0x1471   :  { %3948 = vrot.lane.b32.xlu0 %v3946_v18, %s8950_s23 }
0x14e3   :  { %v3949_v6 = vpop.permute.xlu0 %3948 }
0x14e4   :  { %8312 = vmatmul.msk.bf16.vlgmr.msra.gmra.mxu3 %vm12207_vm9, %v3949_v6 }
0x14e5   :  { %4211 = vmatpush.bf16.msra.mxu3 %v10268_v33 }
0x14e9   :  { %4212 = vmatpush.bf16.msra.mxu3 %v10274_v37 }
0x1567   :  { %v3962_v61 = vpop.f32.mrf.mxu3 }
0x1568   :  { %v3966_v9 = vadd.f32 %v3962_v61, %v3740_v52 }
0x156a   :  { %8858 = vtanh.f32 %v3966_v9  ;;  %v8313_v33 = vmul.f32 -1.442695, %v3966_v9 }
0x156c   :  { %8860 = vpow2.f32 %v8313_v33 }
0x156f   :  { %v3964_v19 = vpop.f32.mrf.mxu3 }
0x1570   :  { %v8859_v26 = vpop.eup %8858 }
0x1571   :  { %3989 = vrot.lane.b32.xlu1 %v8859_v26, %s8947_s3 }
0x1572   :  { %v8861_v37 = vpop.eup %8860 }
0x1573   :  { %v3970_v57 = vadd.f32 1.0, %v8861_v37 }
0x1575   :  { %8862 = vrcp.f32 %v3970_v57  ;;  %v3982_v47 = vand.u32 2147483648, %v3970_v57  ;;  %vm3976_vm5 = vweird.f32 %v3970_v57  ;;  %v3980_v40 = vand.u32 2147483647, %v3970_v57 }
0x1577   :  { %vm3981_vm7 = vcmp.eq.f32.partialorder %v3980_v40, 8.507059e+37 }
0x1579   :  { %2659 = vrot.lane.b32.xlu1 %v10029_v56, %s8946_s5  ;;  %v3983_v56 = vor.u32 1.1754944e-38, %v3982_v47 }
0x157b   :  { %v8863_v34 = vpop.eup %8862 }
0x157c   :  { %v3972_v50 = vmul.f32 %v8863_v34, %v3970_v57  ;;  %vm3977_vm4 = vweird.f32 %v8863_v34 }
0x157d   :  { %vm3978_vm6 = vmor %vm3976_vm5, %vm3977_vm4 }
0x157e   :  { %v3973_v25 = vsub.f32 1.0, %v3972_v50 }
0x1580   :  { %v3974_v3 = vmul.f32 %v8863_v34, %v3973_v25 }
0x1581   :  { %3194 = vrot.lane.b32.xlu1 %v10218_v17, %s8946_s5 }
0x1582   :  { %v3975_v4 = vadd.f32 %v8863_v34, %v3974_v3 }
0x1584   :  { %v3979_v42 = vsel %vm3978_vm6, %v8863_v34, %v3975_v4 }
0x1585   :  { %v3984_v17 = vsel %vm3981_vm7, %v3983_v56, %v3979_v42  ;;  %v8258_v56 = vmul.f32 -1.442695, %v10306_v24 }
0x1586   :  { %v3987_v53 = vmul.f32 %v3984_v17, %v3934_v10 }
0x15e3   :  { %v3990_v5 = vpop.permute.xlu1 %3989 }
0x15e4   :  { %v3992_v2 = vmul.f32 %v3990_v5, %v3984_v17 }
0x15e6   :  { %3994 = vrot.lane.b32.xlu2 %v3992_v2, %s8948_s22 }
0x15eb   :  { %v2660_v43 = vpop.permute.xlu1 %2659 }
0x15ec   :  { %2662 = vst.msk [vmem:[#allocation4 + $0x28] sm:$0xff] %vm2095_vm12, %v2660_v43 }
0x15ee   :  { %2839 = vrot.lane.b32.xlu2 %v10078_v11, %s8946_s5 }
0x15f3   :  { %v3195_v32 = vpop.permute.xlu1 %3194  ;;  %v3588_v30 = vld [vmem:[#allocation4 + $0x28] sm:$0xff] }
0x15f4   :  { %3197 = vst.msk [vmem:[#allocation3 + $0x28] sm:$0xff] %vm2095_vm12, %v3195_v32 }
0x15fb   :  { %v3568_v59 = vld [vmem:[#allocation3 + $0x28] sm:$0xff] }
0x1640   :  { %v3995_v21 = vpop.permute.xlu2 %3994 }
0x1641   :  { %v3997_v39 = vadd.f32 %v3995_v21, %v3987_v53 }
0x1643   :  { %8864 = vtanh.f32 %v3997_v39 }
0x1648   :  { %v2840_v27 = vpop.permute.xlu2 %2839 }
0x1649   :  { %v8865_v35 = vpop.eup %8864  ;;  %2842 = vst.msk [vmem:[#allocation4 + $0x20] sm:$0xff] %vm2095_vm12, %v2840_v27 }
0x164a   :  { %4000 = vrot.lane.b32.xlu0 %v8865_v35, %s8949_s4 }
0x1650   :  { %v3587_v63 = vld [vmem:[#allocation4 + $0x20] sm:$0xff] }
0x1651   :  { %v3593_v46 = vpack.c.bf16 %v3588_v30, %v3587_v63 }
0x1652   :  { %3014 = vrot.lane.b32.xlu0 %v10165_v7, %s8946_s5 }
0x1653   :  { %8281 = vmatmul.msk.bf16.gmra.mxu0 %vm2095_vm12, %v3593_v46 }
0x16bc   :  { %v4001_v11 = vpop.permute.xlu0 %4000 }
0x16bd   :  { %v10385_v41 = vmul.f32 %v4001_v11, %v3984_v17 }
0x16bf   :  { %v4009_v8 = vpack.c.bf16 %v10385_v41, %v10385_v41 }
0x16c1   :  { %4011 = vrot.lane.b32.xlu2 %v4009_v8, %s8950_s23 }
0x16c4   :  { %v3015_v0 = vpop.permute.xlu0 %3014 }
0x16c5   :  { %3017 = vst.msk [vmem:[#allocation3 + $0x20] sm:$0xff] %vm2095_vm12, %v3015_v0 }
0x16cc   :  { %v3567_v16 = vld [vmem:[#allocation3 + $0x20] sm:$0xff] }
0x16cd   :  { %v3573_v36 = vpack.c.bf16 %v3568_v59, %v3567_v16 }
0x16cf   :  { %8301 = vmatmul.msk.bf16.gmra.mxu1 %vm2095_vm12, %v3573_v36 }
0x16d0   :  { %v3658_v54 = vpop.f32.mrf.mxu0 }
0x171b   :  { %v4012_v14 = vpop.permute.xlu2 %4011 }
0x171c   :  { %8314 = vmatmul.msk.bf16.vlgmr.msrb.gmra.mxu2 %vm12207_vm9, %v4012_v14 }
0x174c   :  { %v3723_v7 = vpop.f32.mrf.mxu1 }
0x174d   :  { %v3724_v22 = vadd.f32 %v3723_v7, %v3658_v54 }
0x174f   :  { %v3741_v48 = vadd.f32 %v10311_v49, %v3724_v22 }
0x1754   :  { %v3725_v16 = vpop.f32.mrf.mxu1 }
0x179f   :  { %v4025_v58 = vpop.f32.mrf.mxu2 }
0x17a0   :  { %v4029_v45 = vadd.f32 %v4025_v58, %v3741_v48 }
0x17a2   :  { %8866 = vtanh.f32 %v4029_v45  ;;  %v8315_v15 = vmul.f32 -1.442695, %v4029_v45 }
0x17a4   :  { %8868 = vpow2.f32 %v8315_v15 }
0x17a7   :  { %v4027_v10 = vpop.f32.mrf.mxu2 }
0x17a8   :  { %v8867_v62 = vpop.eup %8866 }
0x17a9   :  { %4052 = vrot.lane.b32.xlu0 %v8867_v62, %s8947_s3 }
0x17aa   :  { %v8869_v18 = vpop.eup %8868 }
0x17ab   :  { %v4033_v6 = vadd.f32 1.0, %v8869_v18 }
0x17ad   :  { %8870 = vrcp.f32 %v4033_v6  ;;  %v4045_v9 = vand.u32 2147483648, %v4033_v6  ;;  %vm4039_vm10 = vweird.f32 %v4033_v6  ;;  %v4043_v19 = vand.u32 2147483647, %v4033_v6 }
0x17af   :  { %v4046_v33 = vor.u32 1.1754944e-38, %v4045_v9  ;;  %vm4044_vm13 = vcmp.eq.f32.partialorder %v4043_v19, 8.507059e+37 }
0x17b3   :  { %v8871_v13 = vpop.eup %8870 }
0x17b4   :  { %v4035_v12 = vmul.f32 %v8871_v13, %v4033_v6  ;;  %vm4040_vm8 = vweird.f32 %v8871_v13 }
0x17b5   :  { %vm4041_vm11 = vmor %vm4039_vm10, %vm4040_vm8  ;;  %vm12209_vm10 = vcmask 80896  }
0x17b6   :  { %v4036_v28 = vsub.f32 1.0, %v4035_v12 }
0x17b8   :  { %v4037_v52 = vmul.f32 %v8871_v13, %v4036_v28 }
0x17ba   :  { %v4038_v61 = vadd.f32 %v8871_v13, %v4037_v52 }
0x17bc   :  { %v4042_v26 = vsel %vm4041_vm11, %v8871_v13, %v4038_v61 }
0x17bd   :  { %v4047_v57 = vsel %vm4044_vm13, %v4046_v33, %v4042_v26  ;;  %vm12208_vm13 = vcmask 74752  }
0x17be   :  { %v4050_v50 = vmul.f32 %v4047_v57, %v3997_v39  ;;  %v3459_v39 = vmul.f32 %v10315_v44, %v10238_v23  ;;  %v3660_v23 = vpop.f32.mrf.mxu0 }
0x17bf   :  { %v3726_v44 = vadd.f32 %v3725_v16, %v3660_v23  ;;  %v8554_v16 = vld [vmem:[%s12196_s12] sm:$0xff] }
0x17c1   :  { %v3742_v59 = vadd.f32 %v10311_v49, %v3726_v44 }
0x181b   :  { %v4053_v37 = vpop.permute.xlu0 %4052 }
0x181c   :  { %v4055_v34 = vmul.f32 %v4053_v37, %v4047_v57 }
0x181e   :  { %4057 = vrot.lane.b32.xlu1 %v4055_v34, %s8948_s22 }
0x1890   :  { %v4058_v25 = vpop.permute.xlu1 %4057 }
0x1891   :  { %v10396_v3 = vadd.f32 %v4058_v25, %v4050_v50 }
0x1893   :  { %8872 = vtanh.f32 %v10396_v3 }
0x1894   :  { %8874 = vpow2.f32 %v8258_v56 }
0x1899   :  { %v8873_v4 = vpop.eup %8872 }
0x189a   :  { %4063 = vrot.lane.b32.xlu2 %v8873_v4, %s8949_s4  ;;  %v8875_v5 = vpop.eup %8874 }
0x189b   :  { %v3443_v17 = vadd.f32 1.0, %v8875_v5 }
0x189d   :  { %8876 = vrcp.f32 %v3443_v17  ;;  %vm3449_vm15 = vweird.f32 %v3443_v17  ;;  %v3453_v24 = vand.u32 2147483647, %v3443_v17 }
0x189f   :  { %vm3454_vm2 = vcmp.eq.f32.partialorder %v3453_v24, 8.507059e+37 }
0x18a3   :  { %v8877_v2 = vpop.eup %8876 }
0x18a4   :  { %v3445_v43 = vmul.f32 %v8877_v2, %v3443_v17  ;;  %vm3450_vm14 = vweird.f32 %v8877_v2 }
0x18a5   :  { %vm3451_vm1 = vmor %vm3449_vm15, %vm3450_vm14 }
0x18a6   :  { %v3446_v53 = vsub.f32 1.0, %v3445_v43 }
0x18a8   :  { %v3447_v21 = vmul.f32 %v8877_v2, %v3446_v53  ;;  %v4299_v53 = vld [vmem:[%s12196_s12 + $0x8] sm:$0x3] }
0x18aa   :  { %v3448_v35 = vadd.f32 %v8877_v2, %v3447_v21 }
0x18ac   :  { %v3452_v63 = vsel %vm3451_vm1, %v8877_v2, %v3448_v35 }
0x18f4   :  { %v4064_v47 = vpop.permute.xlu2 %4063 }
0x18f5   :  { %v10400_v40 = vmul.f32 %v4064_v47, %v4047_v57 }
0x18f7   :  { %v4072_v42 = vpack.c.bf16 %v10400_v40, %v10400_v40 }
0x18f9   :  { %4074 = vrot.lane.b32.xlu0 %v4072_v42, %s8950_s23 }
0x1901   :  { %3462 = vrot.lane.b32.xlu0 %v10318_v55, %s8946_s5 }
0x1909   :  { %2479 = vrot.lane.b32.xlu0 %v9972_v31, %s8946_s5  ;;  %v3455_v31 = vand.u32 2147483648, %v3443_v17 }
0x190b   :  { %v3456_v30 = vor.u32 1.1754944e-38, %v3455_v31 }
0x190d   :  { %v3457_v8 = vsel %vm3454_vm2, %v3456_v30, %v3452_v63 }
0x196b   :  { %v4075_v32 = vpop.permute.xlu0 %4074 }
0x196c   :  { %8316 = vmatmul.msk.bf16.vlgmr.msrb.gmra.mxu3 %vm12207_vm9, %v4075_v32 }
0x1973   :  { %v3463_v55 = vpop.permute.xlu0 %3462 }
0x1974   :  { %v3465_v27 = vadd.f32 %v3463_v55, %v3459_v39  ;;  %v4309_v39 = vunpack.c.l.b16 %v4299_v53 }
0x1976   :  { %8878 = vtanh.f32 %v3465_v27 }
0x197b   :  { %v2480_v46 = vpop.permute.xlu0 %2479 }
0x197c   :  { %v8879_v11 = vpop.eup %8878  ;;  %2482 = vst.msk [vmem:[#allocation4 + $0x30] sm:$0xff] %vm2095_vm12, %v2480_v46 }
0x197d   :  { %v3467_v0 = vmul.f32 %v8879_v11, %v3457_v8 }
0x1983   :  { %v3589_v50 = vld [vmem:[#allocation4 + $0x30] sm:$0xff] }
0x19ef   :  { %v4088_v36 = vpop.f32.mrf.mxu3 }
0x19f0   :  { %v4092_v14 = vadd.f32 %v4088_v36, %v3742_v59 }
0x19f2   :  { %8880 = vtanh.f32 %v4092_v14  ;;  %v8317_v22 = vmul.f32 -1.442695, %v4092_v14 }
0x19f4   :  { %8882 = vpow2.f32 %v8317_v22 }
0x19f7   :  { %v4090_v7 = vpop.f32.mrf.mxu3 }
0x19f8   :  { %v8881_v54 = vpop.eup %8880 }
0x19f9   :  { %4115 = vrot.lane.b32.xlu1 %v8881_v54, %s8947_s3 }
0x19fa   :  { %v8883_v48 = vpop.eup %8882 }
0x19fb   :  { %v4096_v58 = vadd.f32 1.0, %v8883_v48  ;;  %v10459_v48 = vld [vmem:[%s12194_s10] ss:$0 sm:$0xff] }
0x19fd   :  { %8884 = vrcp.f32 %v4096_v58  ;;  %v4108_v6 = vand.u32 2147483648, %v4096_v58  ;;  %vm4102_vm4 = vweird.f32 %v4096_v58  ;;  %v4106_v13 = vand.u32 2147483647, %v4096_v58 }
0x19ff   :  { %v4109_v28 = vor.u32 1.1754944e-38, %v4108_v6  ;;  %vm4107_vm6 = vcmp.eq.f32.partialorder %v4106_v13, 8.507059e+37 }
0x1a03   :  { %v8885_v45 = vpop.eup %8884 }
0x1a04   :  { %v4098_v10 = vmul.f32 %v8885_v45, %v4096_v58  ;;  %vm4103_vm3 = vweird.f32 %v8885_v45 }
0x1a05   :  { %vm4104_vm5 = vmor %vm4102_vm4, %vm4103_vm3 }
0x1a06   :  { %v4099_v62 = vsub.f32 1.0, %v4098_v10  ;;  %v10465_v10 = vld [vmem:[%s12195_s11] ss:$0 sm:$0xff] }
0x1a08   :  { %v4100_v15 = vmul.f32 %v8885_v45, %v4099_v62 }
0x1a0a   :  { %v4101_v18 = vadd.f32 %v8885_v45, %v4100_v15 }
0x1a0c   :  { %v4105_v12 = vsel %vm4104_vm5, %v8885_v45, %v4101_v18 }
0x1a0d   :  { %v4110_v61 = vsel %vm4107_vm6, %v4109_v28, %v4105_v12  ;;  %v4368_v28 = vlaneseq }
0x1a0e   :  { %v4113_v19 = vmul.f32 %v4110_v61, %v10396_v3 }
0x1a6b   :  { %v4116_v52 = vpop.permute.xlu1 %4115 }
0x1a6c   :  { %v4118_v9 = vmul.f32 %v4116_v52, %v4110_v61  ;;  %v10473_v52 = vshrl.u32 %v4368_v28, 7 }
0x1a6e   :  { %4120 = vrot.lane.b32.xlu2 %v4118_v9, %s8948_s22  ;;  %8572 = vset.pattern.permute.xlu0 %v10473_v52 }
0x1a6f   :  { %8574 = vset.pattern.permute.xlu2 %v10473_v52 }
0x1a76   :  { %2299 = vrot.lane.b32.xlu2 %v9944_v29, %s8946_s5 }
0x1a7e   :  { %3554 = vrot.lane.b32.xlu2 %v3467_v0, %s8946_s5 }
0x1ac8   :  { %v4121_v26 = vpop.permute.xlu2 %4120 }
0x1ac9   :  { %v10421_v33 = vadd.f32 %v4121_v26, %v4113_v19 }
0x1acb   :  { %8886 = vtanh.f32 %v10421_v33 }
0x1ad0   :  { %v2300_v37 = vpop.permute.xlu2 %2299 }
0x1ad1   :  { %v8887_v57 = vpop.eup %8886  ;;  %2302 = vst.msk [vmem:[#allocation4 + $0x38] sm:$0xff] %vm2095_vm12, %v2300_v37 }
0x1ad2   :  { %4126 = vrot.lane.b32.xlu1 %v8887_v57, %s8949_s4 }
0x1ad8   :  { %v3555_v34 = vpop.permute.xlu2 %3554  ;;  %v3590_v25 = vld [vmem:[#allocation4 + $0x38] sm:$0xff] }
0x1ad9   :  { %3557 = vst.msk [vmem:[#allocation3 + $0x38] sm:$0xff] %vm2095_vm12, %v3555_v34  ;;  %v3594_v29 = vpack.c.bf16 %v3590_v25, %v3589_v50  ;;  %v10493_v34 = vld [vmem:[%s12197_s13] ss:$0 sm:$0xff] }
0x1ada   :  { %3374 = vrot.lane.b32.xlu1 %v10243_v20, %s8946_s5 }
0x1adb   :  { %8282 = vmatmul.msk.bf16.gmra.mxu0 %vm2095_vm12, %v3594_v29 }
0x1ae0   :  { %v3570_v5 = vld [vmem:[#allocation3 + $0x38] sm:$0xff] }
0x1b44   :  { %v4127_v3 = vpop.permute.xlu1 %4126 }
0x1b45   :  { %v10430_v4 = vmul.f32 %v4127_v3, %v4110_v61  ;;  %v10477_v61 = vadd.s32 8, %v10473_v52 }
0x1b47   :  { %v4135_v47 = vpack.c.bf16 %v10430_v4, %v10430_v4  ;;  %8573 = vset.pattern.permute.xlu1 %v10477_v61 }
0x1b49   :  { %4137 = vrot.lane.b32.xlu0 %v4135_v47, %s8950_s23 }
0x1b4c   :  { %v3375_v42 = vpop.permute.xlu1 %3374 }
0x1b4d   :  { %3377 = vst.msk [vmem:[#allocation3 + $0x30] sm:$0xff] %vm2095_vm12, %v3375_v42 }
0x1b51   :  { %3816 = vrot.lane.b32.xlu0 %v10323_v38, %s8950_s23  ;;  %v4311_v38 = vpack.c.b16 %v4309_v39, %v4309_v39 }
0x1b53   :  { %v4326_v27 = vsel %vm3760_vm0, %v4311_v38, 0 }
0x1b54   :  { %v3569_v56 = vld [vmem:[#allocation3 + $0x30] sm:$0xff]  ;;  %4334 = vmatpush.bf16.msra.mxu0 %v4326_v27 }
0x1b55   :  { %v3574_v17 = vpack.c.bf16 %v3570_v5, %v3569_v56 }
0x1b57   :  { %8302 = vmatmul.msk.bf16.gmra.mxu1 %vm2095_vm12, %v3574_v17 }
0x1b58   :  { %v3663_v32 = vpop.f32.mrf.mxu0  ;;  %4335 = vmatpush.bf16.msra.mxu0 %v8554_v16 }
0x1b60   :  { %v10488_v57 = vpop.f32.mrf.mxu0 }
0x1bbb   :  { %v4138_v20 = vpop.permute.xlu0 %4137 }
0x1bbc   :  { %8318 = vmatmul.msk.bf16.vlgmr.msra.gmra.mxu2 %vm12207_vm9, %v4138_v20 }
0x1bc3   :  { %v3817_v2 = vpop.permute.xlu0 %3816 }
0x1bc4   :  { %3819 = vst.msk [vmem:[#allocation5] sm:$0xff] %vm12207_vm9, %v3817_v2 }
0x1bcb   :  { %v4261_v58 = vld [vmem:[#allocation5] sm:$0xff] }
0x1bcc   :  { %v4273_v45 = vmul.f32 %v10459_v48, %v4261_v58 }
0x1bce   :  { %v4285_v6 = vadd.f32 %v10465_v10, %v4273_v45 }
0x1bd4   :  { %v3728_v43 = vpop.f32.mrf.mxu1 }
0x1bd5   :  { %v3729_v21 = vadd.f32 %v3728_v43, %v3663_v32 }
0x1bd7   :  { %v3743_v55 = vadd.f32 %v10311_v49, %v3729_v21 }
0x1c3f   :  { %v4151_v35 = vpop.f32.mrf.mxu2 }
0x1c40   :  { %v4155_v31 = vadd.f32 %v4151_v35, %v3743_v55 }
0x1c42   :  { %8888 = vtanh.f32 %v4155_v31  ;;  %v8319_v30 = vmul.f32 -1.442695, %v4155_v31  ;;  %v8330_v31 = vld [vmem:[%s12288_s7 + $0x8] sm:$0xff] }
0x1c43   :  { %vm4380_vm11 = vcmp.gt.f32.partialorder %v8330_v31, 0.5 }
0x1c44   :  { %8890 = vpow2.f32 %v8319_v30 }
0x1c47   :  { %v4153_v24 = vpop.f32.mrf.mxu2 }
0x1c48   :  { %v8889_v63 = vpop.eup %8888 }
0x1c49   :  { %4178 = vrot.lane.b32.xlu1 %v8889_v63, %s8947_s3 }
0x1c4a   :  { %v8891_v46 = vpop.eup %8890 }
0x1c4b   :  { %v4159_v49 = vadd.f32 1.0, %v8891_v46  ;;  %v4750_v46 = vsel %vm4380_vm11, 1, %v12285_v51 }
0x1c4d   :  { %8892 = vrcp.f32 %v4159_v49  ;;  %vm4165_vm0 = vweird.f32 %v4159_v49  ;;  %v4169_v59 = vand.u32 2147483647, %v4159_v49 }
0x1c4f   :  { %vm4170_vm8 = vcmp.eq.f32.partialorder %v4169_v59, 8.507059e+37 }
0x1c51   :  { %3879 = vrot.lane.b32.xlu1 %v10347_v1, %s8950_s23  ;;  %v4171_v1 = vand.u32 2147483648, %v4159_v49 }
0x1c53   :  { %v8893_v11 = vpop.eup %8892  ;;  %v4172_v36 = vor.u32 1.1754944e-38, %v4171_v1 }
0x1c54   :  { %v4161_v8 = vmul.f32 %v8893_v11, %v4159_v49  ;;  %vm4166_vm12 = vweird.f32 %v8893_v11 }
0x1c55   :  { %vm4167_vm7 = vmor %vm4165_vm0, %vm4166_vm12 }
0x1c56   :  { %v4162_v0 = vsub.f32 1.0, %v4161_v8 }
0x1c58   :  { %v4163_v23 = vmul.f32 %v8893_v11, %v4162_v0 }
0x1c59   :  { %3942 = vrot.lane.b32.xlu1 %v10361_v60, %s8950_s23 }
0x1c5a   :  { %v4164_v44 = vadd.f32 %v8893_v11, %v4163_v23  ;;  %v10554_v23 = vld [vmem:[%s12200_s16] sm:$0xff] }
0x1c5c   :  { %v4168_v60 = vsel %vm4167_vm7, %v8893_v11, %v4164_v44 }
0x1c5d   :  { %v4173_v7 = vsel %vm4170_vm8, %v4172_v36, %v4168_v60 }
0x1c5e   :  { %v4176_v9 = vmul.f32 %v4173_v7, %v10421_v33  ;;  %v8646_v33 = vld [vmem:[%s12198_s14] ss:$0 sm:$0xff] }
0x1cbb   :  { %v4179_v14 = vpop.permute.xlu1 %4178 }
0x1cbc   :  { %v4181_v54 = vmul.f32 %v4179_v14, %v4173_v7 }
0x1cbe   :  { %4183 = vrot.lane.b32.xlu2 %v4181_v54, %s8948_s22 }
0x1cc3   :  { %v3880_v22 = vpop.permute.xlu1 %3879 }
0x1cc4   :  { %3882 = vst.msk [vmem:[#allocation5 + $0x8] sm:$0xff] %vm12207_vm9, %v3880_v22 }
0x1ccb   :  { %v3943_v62 = vpop.permute.xlu1 %3942  ;;  %v4262_v15 = vld [vmem:[#allocation5 + $0x8] sm:$0xff] }
0x1ccc   :  { %3945 = vst.msk [vmem:[#allocation5 + $0x10] sm:$0xff] %vm12207_vm9, %v3943_v62  ;;  %v4274_v18 = vmul.f32 %v10459_v48, %v4262_v15 }
0x1cce   :  { %v4286_v13 = vadd.f32 %v10465_v10, %v4274_v18 }
0x1cd0   :  { %v4293_v12 = vpack.c.bf16 %v4286_v13, %v4285_v6 }
0x1cd2   :  { %8326 = vmatmul.msk.bf16.vlgmr.msra.gmra.mxu0 %vm12207_vm9, %v4293_v12 }
0x1cd3   :  { %v4263_v39 = vld [vmem:[#allocation5 + $0x10] sm:$0xff] }
0x1cd4   :  { %v4275_v38 = vmul.f32 %v10459_v48, %v4263_v39 }
0x1cd6   :  { %v4287_v24 = vadd.f32 %v10465_v10, %v4275_v38 }
0x1d18   :  { %v4184_v19 = vpop.permute.xlu2 %4183 }
0x1d19   :  { %v10482_v26 = vadd.f32 %v4184_v19, %v4176_v9 }
0x1d1b   :  { %8894 = vtanh.f32 %v10482_v26 }
0x1d21   :  { %v8895_v37 = vpop.eup %8894 }
0x1d22   :  { %4189 = vrot.lane.b32.xlu2 %v8895_v37, %s8949_s4 }
0x1d2a   :  { %4005 = vrot.lane.b32.xlu2 %v10385_v41, %s8950_s23 }
0x1d4f   :  { %v4337_v50 = vpop.f32.mrf.mxu0 }
0x1d50   :  { %v4338_v25 = vadd.f32 %v10493_v34, %v4337_v50 }
0x1d52   :  { %4358 = vst.msk [vmem:[%s12201_s17] sm:$0xff] %vm12209_vm10, %v4338_v25  ;;  %v10503_v41 = vadd.f32 %v8646_v33, %v4338_v25 }
0x1d54   :  { %v4381_v29 = vperm.slane %v10503_v41, 0  ;;  %v4394_v3 = vperm.slane %v10503_v41, 1  ;;  %v4407_v56 = vperm.slane %v10503_v41, 2  ;;  %v4420_v5 = vperm.slane %v10503_v41, 3 }
0x1d55   :  { %v4433_v17 = vperm.slane %v10503_v41, 4  ;;  %v4446_v53 = vperm.slane %v10503_v41, 5  ;;  %v4459_v21 = vperm.slane %v10503_v41, 6  ;;  %v4472_v55 = vperm.slane %v10503_v41, 7 }
0x1d56   :  { %4392 = vperm.xlu1 %8573, %v4381_v29   ;;  %4399 = vperm.xlu2 %8574, %v4394_v3  }
0x1d57   :  { %v4339_v47 = vpop.f32.mrf.mxu0 }
0x1d58   :  { %v10508_v42 = vadd.f32 %v10493_v34, %v4339_v47 }
0x1d5a   :  { %4359 = vst.msk [vmem:[%s12201_s17 + $0x8] sm:$0xff] %vm12209_vm10, %v10508_v42  ;;  %v4504_v14 = vrot.slane %v10508_v42, 3  ;;  %v4505_v12 = vrot.slane %v10508_v42, 4 }
0x1d5c   :  { %v4512_v58 = vperm.slane %v4504_v14, 0 }
0x1d5e   :  { %4405 = vperm.xlu1 %8573, %v4394_v3   ;;  %4412 = vperm.xlu2 %8574, %v4407_v56  }
0x1d66   :  { %8575 = vset.pattern.permute.xlu1 %v10473_v52  ;;  %8576 = vset.pattern.permute.xlu2 %v10477_v61 }
0x1d6e   :  { %4425 = vperm.xlu1 %8575, %v4420_v5   ;;  %4431 = vperm.xlu2 %8576, %v4420_v5  }
0x1d76   :  { %4438 = vperm.xlu1 %8575, %v4433_v17   ;;  %4444 = vperm.xlu2 %8576, %v4433_v17  }
0x1d7c   :  { %v4190_v20 = vpop.permute.xlu2 %4189 }
0x1d7d   :  { %v10520_v2 = vmul.f32 %v4190_v20, %v4173_v7 }
0x1d7e   :  { %8578 = vset.pattern.permute.xlu1 %v10477_v61  ;;  %8579 = vset.pattern.permute.xlu2 %v10473_v52 }
0x1d7f   :  { %v4198_v43 = vpack.c.bf16 %v10520_v2, %v10520_v2 }
0x1d81   :  { %4200 = vrot.lane.b32.xlu0 %v4198_v43, %s8950_s23 }
0x1d84   :  { %v4006_v32 = vpop.permute.xlu2 %4005 }
0x1d85   :  { %4008 = vst.msk [vmem:[#allocation5 + $0x18] sm:$0xff] %vm12207_vm9, %v4006_v32 }
0x1d86   :  { %4457 = vperm.xlu1 %8578, %v4446_v53   ;;  %4464 = vperm.xlu2 %8579, %v4459_v21  }
0x1d89   :  { %4386 = vperm.xlu0 %8572, %v4381_v29   ;;  %v4513_v29 = vperm.slane %v4505_v12, 0 }
0x1d8c   :  { %v4264_v27 = vld [vmem:[#allocation5 + $0x18] sm:$0xff] }
0x1d8d   :  { %v4276_v35 = vmul.f32 %v10459_v48, %v4264_v27 }
0x1d8e   :  { %4470 = vperm.xlu1 %8578, %v4459_v21   ;;  %4477 = vperm.xlu2 %8579, %v4472_v55  }
0x1d8f   :  { %v4288_v63 = vadd.f32 %v10465_v10, %v4276_v35 }
0x1d91   :  { %4451 = vperm.xlu0 %8572, %v4446_v53   ;;  %v4294_v30 = vpack.c.bf16 %v4288_v63, %v4287_v24 }
0x1d93   :  { %8327 = vmatmul.msk.bf16.gmra.mxu0 %vm12207_vm9, %v4294_v30 }
0x1d96   :  { %8580 = vset.pattern.permute.xlu1 %v12285_v51  ;;  %4068 = vrot.lane.b32.xlu2 %v10400_v40, %s8950_s23  ;;  %v4502_v40 = vrot.slane %v10508_v42, 1 }
0x1d97   :  { %4752 = vperm.xlu1 %8580, %v4750_v46  }
0x1d98   :  { %v4510_v1 = vperm.slane %v4502_v40, 0  ;;  %v4509_v40 = vperm.slane %v10508_v42, 0 }
0x1d99   :  { %8577 = vset.pattern.permute.xlu0 %v10477_v61 }
0x1d9f   :  { %4131 = vrot.lane.b32.xlu1 %v10430_v4, %s8950_s23  ;;  %v10559_v4 = vld [vmem:[%s12200_s16 + $0x8] sm:$0x3] }
0x1da0   :  { %8582 = vset.pattern.permute.xlu1 %v10477_v61 }
0x1da1   :  { %4418 = vperm.xlu0 %8577, %v4407_v56  }
0x1da9   :  { %4483 = vperm.xlu0 %8577, %v4472_v55  }
0x1db0   :  { %v4400_v49 = vpop.permute.xlu2 %4399 }
0x1db1   :  { %8581 = vset.pattern.permute.xlu0 %v10473_v52  ;;  %v4487_v59 = vadd.f32 %v4400_v49, %v10554_v23 }
0x1db3   :  { %v4527_v7 = vadd.f32 %v4510_v1, %v4487_v59 }
0x1db5   :  { %v4551_v45 = vsel %vm12209_vm10, %v4527_v7, -inf }
0x1db8   :  { %v10548_v11 = vpop.permute.xlu2 %4412 }
0x1dc8   :  { %v4393_v8 = vpop.permute.xlu1 %4392  ;;  %v4432_v0 = vpop.permute.xlu2 %4431 }
0x1dc9   :  { %v4492_v54 = vadd.f32 %v4432_v0, %v10559_v4  ;;  %v4486_v49 = vadd.f32 %v4393_v8, %v10559_v4  ;;  %v4507_v0 = vrot.slane %v10508_v42, 6 }
0x1dcb   :  { %v10570_v18 = vadd.f32 %v4512_v58, %v4492_v54 }
0x1dcd   :  { %v4570_v19 = vsel %vm12208_vm13, %v10570_v18, -inf }
0x1dd0   :  { %v4406_v16 = vpop.permute.xlu1 %4405  ;;  %v4445_v60 = vpop.permute.xlu2 %4444 }
0x1dd1   :  { %v4488_v44 = vadd.f32 %v4406_v16, %v10559_v4  ;;  %v4494_v33 = vadd.f32 %v4445_v60, %v10559_v4  ;;  %v10599_v60 = vadd.f32 %v4509_v40, %v4486_v49 }
0x1dd3   :  { %v10563_v36 = vadd.f32 %v4510_v1, %v4488_v44  ;;  %v10583_v5 = vadd.f32 %v4513_v29, %v4494_v33 }
0x1dd5   :  { %v4552_v22 = vsel %vm12208_vm13, %v10563_v36, -inf  ;;  %v4579_v53 = vsel %vm12208_vm13, %v10583_v5, -inf }
0x1dd6   :  { %v4553_v6 = vmax.f32 %v4551_v45, %v4552_v22  ;;  %v4515_v22 = vperm.slane %v4507_v0, 0 }
0x1dd8   :  { %v4554_v37 = vrot.slane %v4553_v6, 4 }
0x1dda   :  { %v4555_v56 = vmax.f32 %v4553_v6, %v4554_v37 }
0x1ddc   :  { %v4556_v32 = vrot.slane %v4555_v56, 2 }
0x1dde   :  { %v4557_v27 = vmax.f32 %v4555_v56, %v4556_v32 }
0x1de0   :  { %v4426_v62 = vpop.permute.xlu1 %4425  ;;  %v4465_v15 = vpop.permute.xlu2 %4464  ;;  %v4558_v63 = vrot.slane %v4557_v27, 1 }
0x1de1   :  { %v4491_v13 = vadd.f32 %v4426_v62, %v10554_v23  ;;  %v4497_v14 = vadd.f32 %v4465_v15, %v10554_v23  ;;  %v4506_v62 = vrot.slane %v10508_v42, 5 }
0x1de2   :  { %v10597_v44 = vmax.f32 %v4557_v27, %v4558_v63 }
0x1de3   :  { %v10574_v9 = vadd.f32 %v4512_v58, %v4491_v13  ;;  %v4543_v13 = vsel %vm12208_vm13, %v10599_v60, -inf  ;;  %v10613_v15 = vadd.f32 %v4515_v22, %v4497_v14 }
0x1de4   :  { %vm4616_vm14 = vcmp.ge.f32.partialorder %v4527_v7, %v10597_v44  ;;  %vm4617_vm15 = vcmp.ge.f32.partialorder %v10563_v36, %v10597_v44 }
0x1de5   :  { %v4569_v50 = vsel %vm12209_vm10, %v10574_v9, -inf  ;;  %v4632_v12 = vsel %vm4616_vm14, %v10473_v52, 10  ;;  %v4596_v56 = vsel %vm12209_vm10, %v10613_v15, -inf }
0x1de6   :  { %v4571_v25 = vmax.f32 %v4569_v50, %v4570_v19  ;;  %v4633_v19 = vsel %vm4617_vm15, %v10477_v61, 10 }
0x1de8   :  { %v4439_v3 = vpop.permute.xlu1 %4438  ;;  %v10581_v47 = vpop.permute.xlu2 %4477  ;;  %v4572_v17 = vrot.slane %v4571_v25, 4 }
0x1de9   :  { %v4493_v20 = vadd.f32 %v4439_v3, %v10554_v23  ;;  %v4659_v3 = vsel %vm12209_vm10, %v4632_v12, 2147483647 }
0x1dea   :  { %v4573_v21 = vmax.f32 %v4571_v25, %v4572_v17 }
0x1deb   :  { %v10586_v43 = vadd.f32 %v4513_v29, %v4493_v20  ;;  %v4514_v29 = vperm.slane %v4506_v62, 0  ;;  %v4508_v62 = vrot.slane %v10508_v42, 7 }
0x1dec   :  { %v4574_v35 = vrot.slane %v4573_v21, 2 }
0x1ded   :  { %v4578_v39 = vsel %vm12209_vm10, %v10586_v43, -inf }
0x1dee   :  { %v4580_v38 = vmax.f32 %v4578_v39, %v4579_v53  ;;  %v4575_v30 = vmax.f32 %v4573_v21, %v4574_v35  ;;  %v4660_v53 = vsel %vm12208_vm13, %v4633_v19, 2147483647 }
0x1def   :  { %vm4661_vm3 = vcmp.lt.s32.totalorder %v4659_v3, %v4660_v53 }
0x1df0   :  { %v4069_v55 = vpop.permute.xlu2 %4068  ;;  %v4581_v31 = vrot.slane %v4580_v38, 4  ;;  %v4576_v1 = vrot.slane %v4575_v30, 1 }
0x1df1   :  { %4071 = vst.msk [vmem:[#allocation5 + $0x20] sm:$0xff] %vm12207_vm9, %v4069_v55 }
0x1df2   :  { %v4582_v46 = vmax.f32 %v4580_v38, %v4581_v31  ;;  %v10606_v8 = vmax.f32 %v4575_v30, %v4576_v1 }
0x1df3   :  { %v4201_v24 = vpop.permute.xlu0 %4200 }
0x1df4   :  { %8320 = vmatmul.msk.bf16.vlgmr.msra.gmra.mxu3 %vm12207_vm9, %v4201_v24  ;;  %v4583_v59 = vrot.slane %v4582_v46, 2  ;;  %vm4620_vm1 = vcmp.ge.f32.partialorder %v10574_v9, %v10606_v8  ;;  %vm4621_vm2 = vcmp.ge.f32.partialorder %v10570_v18, %v10606_v8 }
0x1df5   :  { %v4636_v9 = vsel %vm4620_vm1, %v10473_v52, 10  ;;  %v4637_v18 = vsel %vm4621_vm2, %v10477_v61, 10 }
0x1df6   :  { %v4584_v45 = vmax.f32 %v4582_v46, %v4583_v59  ;;  %v4685_v24 = vsel %vm12209_vm10, %v4636_v9, 2147483647  ;;  %v4686_v30 = vsel %vm12208_vm13, %v4637_v18, 2147483647 }
0x1df7   :  { %vm4687_vm6 = vcmp.lt.s32.totalorder %v4685_v24, %v4686_v30 }
0x1df8   :  { %v4458_v16 = vpop.permute.xlu1 %4457  ;;  %v4585_v33 = vrot.slane %v4584_v45, 1 }
0x1df9   :  { %v4496_v7 = vadd.f32 %v4458_v16, %v10559_v4  ;;  %v4503_v16 = vrot.slane %v10508_v42, 2 }
0x1dfa   :  { %v10636_v38 = vmax.f32 %v4584_v45, %v4585_v33 }
0x1dfb   :  { %v4387_v54 = vpop.permute.xlu0 %4386  ;;  %v10632_v21 = vadd.f32 %v4514_v29, %v4496_v7  ;;  %v4511_v12 = vperm.slane %v4503_v16, 0 }
0x1dfc   :  { %v4485_v58 = vadd.f32 %v4387_v54, %v10554_v23  ;;  %vm4622_vm4 = vcmp.ge.f32.partialorder %v10586_v43, %v10636_v38  ;;  %vm4623_vm5 = vcmp.ge.f32.partialorder %v10583_v5, %v10636_v38  ;;  %v4662_v54 = vsel %vm4661_vm3, %v4659_v3, %v4660_v53 }
0x1dfd   :  { %v4588_v46 = vsel %vm12208_vm13, %v10632_v21, -inf  ;;  %v4638_v45 = vsel %vm4622_vm4, %v10473_v52, 10  ;;  %v4639_v43 = vsel %vm4623_vm5, %v10477_v61, 10  ;;  %v4663_v5 = vrot.slane %v4662_v54, 4 }
0x1dfe   :  { %v10609_v6 = vadd.f32 %v4509_v40, %v4485_v58 }
0x1dff   :  { %vm4664_vm8 = vcmp.lt.s32.totalorder %v4662_v54, %v4663_v5 }
0x1e00   :  { %v4541_v36 = vsel %vm12209_vm10, %v10609_v6, -inf  ;;  %v4471_v37 = vpop.permute.xlu1 %4470 }
0x1e01   :  { %v4544_v50 = vmax.f32 %v4541_v36, %v4543_v13  ;;  %v4498_v25 = vadd.f32 %v4471_v37, %v10559_v4  ;;  %v4489_v36 = vadd.f32 %v10548_v11, %v10554_v23  ;;  %v4688_v37 = vsel %vm4687_vm6, %v4685_v24, %v4686_v30 }
0x1e03   :  { %v4545_v17 = vrot.slane %v4544_v50, 4  ;;  %v10628_v20 = vadd.f32 %v4515_v22, %v4498_v25  ;;  %v4452_v32 = vpop.permute.xlu0 %4451  ;;  %v4699_v25 = vsel %vm12208_vm13, %v4639_v43, 2147483647 }
0x1e04   :  { %v4495_v39 = vadd.f32 %v4452_v32, %v10554_v23 }
0x1e05   :  { %v4546_v55 = vmax.f32 %v4544_v50, %v4545_v17  ;;  %v4597_v27 = vsel %vm12208_vm13, %v10628_v20, -inf  ;;  %v4698_v50 = vsel %vm12209_vm10, %v4638_v45, 2147483647 }
0x1e06   :  { %v4598_v35 = vmax.f32 %v4596_v56, %v4597_v27  ;;  %v10640_v31 = vadd.f32 %v4514_v29, %v4495_v39  ;;  %v10675_v39 = vadd.f32 %v4511_v12, %v4489_v36  ;;  %vm4700_vm11 = vcmp.lt.s32.totalorder %v4698_v50, %v4699_v25 }
0x1e07   :  { %v4547_v63 = vrot.slane %v4546_v55, 2 }
0x1e08   :  { %v4599_v49 = vrot.slane %v4598_v35, 4  ;;  %v4587_v0 = vsel %vm12209_vm10, %v10640_v31, -inf  ;;  %v4560_v16 = vsel %vm12209_vm10, %v10675_v39, -inf }
0x1e09   :  { %v4548_v40 = vmax.f32 %v4546_v55, %v4547_v63  ;;  %v4589_v1 = vmax.f32 %v4587_v0, %v4588_v46  ;;  %v10651_v59 = vpop.permute.xlu1 %4752  ;;  %v4689_v55 = vrot.slane %v4688_v37, 4 }
0x1e0a   :  { %v4600_v14 = vmax.f32 %v4598_v35, %v4599_v49 }
0x1e0b   :  { %v4549_v22 = vrot.slane %v4548_v40, 1  ;;  %v4590_v58 = vrot.slane %v4589_v1, 4  ;;  %vm4690_vm3 = vcmp.lt.s32.totalorder %v4688_v37, %v4689_v55 }
0x1e0c   :  { %v4601_v13 = vrot.slane %v4600_v14, 2  ;;  %v4691_v36 = vsel %vm4690_vm3, %v4688_v37, %v4689_v55  ;;  %vm12213_vm3 = vcmask 1044484  }
0x1e0d   :  { %v10658_v19 = vmax.f32 %v4548_v40, %v4549_v22  ;;  %v4591_v7 = vmax.f32 %v4589_v1, %v4590_v58  ;;  %v4665_v40 = vsel %vm4664_vm8, %v4662_v54, %v4663_v5  ;;  %v4499_v1 = vadd.f32 %v10581_v47, %v10554_v23 }
0x1e0e   :  { %v4602_v33 = vmax.f32 %v4600_v14, %v4601_v13  ;;  %v4701_v22 = vsel %vm4700_vm11, %v4698_v50, %v4699_v25  ;;  %v4666_v25 = vrot.slane %v4665_v40, 2  ;;  %vm4755_vm11 = vcmask 1041409  }
0x1e0f   :  { %vm4614_vm12 = vcmp.ge.f32.partialorder %v10609_v6, %v10658_v19  ;;  %vm4615_vm0 = vcmp.ge.f32.partialorder %v10599_v60, %v10658_v19  ;;  %v4592_v42 = vrot.slane %v4591_v7, 2  ;;  %v4516_v60 = vperm.slane %v4508_v62, 0 }
0x1e10   :  { %v4630_v29 = vsel %vm4614_vm12, %v10473_v52, 10  ;;  %v4631_v3 = vsel %vm4615_vm0, %v10477_v61, 10  ;;  %v4603_v56 = vrot.slane %v4602_v33, 1  ;;  %v4342_v11 = vpop.f32.mrf.mxu0  ;;  %v4702_v5 = vrot.slane %v4701_v22, 4 }
0x1e11   :  { %v4646_v17 = vsel %vm12209_vm10, %v4630_v29, 2147483647  ;;  %v4647_v32 = vsel %vm12208_vm13, %v4631_v3, 2147483647  ;;  %v4593_v53 = vmax.f32 %v4591_v7, %v4592_v42  ;;  %v10673_v9 = vadd.f32 %v10493_v34, %v4342_v11  ;;  %v4132_v6 = vpop.permute.xlu1 %4131 }
0x1e12   :  { %vm4648_vm7 = vcmp.lt.s32.totalorder %v4646_v17, %v4647_v32  ;;  %v10677_v18 = vmax.f32 %v4602_v33, %v4603_v56  ;;  %4134 = vst.msk [vmem:[#allocation5 + $0x28] sm:$0xff] %vm12207_vm9, %v4132_v6  ;;  %v10720_v33 = vadd.f32 %v4516_v60, %v4499_v1  ;;  %vm4703_vm12 = vcmp.lt.s32.totalorder %v4701_v22, %v4702_v5 }
0x1e13   :  { %v4649_v27 = vsel %vm4648_vm7, %v4646_v17, %v4647_v32  ;;  %v4594_v35 = vrot.slane %v4593_v53, 1  ;;  %4360 = vst.msk [vmem:[%s12201_s17 + $0x10] sm:$0xff] %vm12209_vm10, %v10673_v9  ;;  %v4419_v24 = vpop.permute.xlu0 %4418  ;;  %vm4667_vm0 = vcmp.lt.s32.totalorder %v4665_v40, %v4666_v25 }
0x1e14   :  { %vm4626_vm14 = vcmp.ge.f32.partialorder %v10613_v15, %v10677_v18  ;;  %vm4627_vm15 = vcmp.ge.f32.partialorder %v10628_v20, %v10677_v18  ;;  %v4490_v63 = vadd.f32 %v4419_v24, %v10559_v4  ;;  %v4650_v30 = vrot.slane %v4649_v27, 4 }
0x1e15   :  { %v4642_v46 = vsel %vm4626_vm14, %v10473_v52, 10  ;;  %v4643_v49 = vsel %vm4627_vm15, %v10477_v61, 10  ;;  %v10692_v0 = vmax.f32 %v4593_v53, %v4594_v35  ;;  %v4692_v53 = vrot.slane %v4691_v36, 2 }
0x1e16   :  { %v10698_v15 = vadd.f32 %v4511_v12, %v4490_v63  ;;  %v4724_v20 = vsel %vm12209_vm10, %v4642_v46, 2147483647  ;;  %v4725_v14 = vsel %vm12208_vm13, %v4643_v49, 2147483647  ;;  %vm10709_vm4 = vcmp.lt.s32.totalorder %v4649_v27, %v4650_v30 }
0x1e17   :  { %vm4624_vm1 = vcmp.ge.f32.partialorder %v10640_v31, %v10692_v0  ;;  %vm4625_vm2 = vcmp.ge.f32.partialorder %v10632_v21, %v10692_v0  ;;  %v4265_v21 = vld [vmem:[#allocation5 + $0x20] sm:$0xff]  ;;  %vm4726_vm5 = vcmp.lt.s32.totalorder %v4724_v20, %v4725_v14  ;;  %v4652_v29 = vsel %vm10709_vm4, %v4649_v27, %v4650_v30 }
0x1e18   :  { %v4640_v54 = vsel %vm4624_vm1, %v10473_v52, 10  ;;  %v4641_v58 = vsel %vm4625_vm2, %v10477_v61, 10  ;;  %v4344_v47 = vpop.f32.mrf.mxu0  ;;  %v4561_v31 = vsel %vm12208_vm13, %v10698_v15, -inf  ;;  %v4277_v56 = vmul.f32 %v10459_v48, %v4265_v21 }
0x1e19   :  { %v4711_v62 = vsel %vm12209_vm10, %v4640_v54, 2147483647  ;;  %v4712_v13 = vsel %vm12208_vm13, %v4641_v58, 2147483647  ;;  %v4562_v12 = vmax.f32 %v4560_v16, %v4561_v31  ;;  %v10718_v43 = vadd.f32 %v10493_v34, %v4344_v47  ;;  %v4266_v7 = vld [vmem:[#allocation5 + $0x28] sm:$0xff] }
0x1e1a   :  { %vm4713_vm6 = vcmp.lt.s32.totalorder %v4711_v62, %v4712_v13  ;;  %v4727_v11 = vsel %vm4726_vm5, %v4724_v20, %v4725_v14  ;;  %v4278_v32 = vmul.f32 %v10459_v48, %v4266_v7  ;;  %v4653_v55 = vrot.slane %v4652_v29, 2 }
0x1e1b   :  { %v4714_v50 = vsel %vm4713_vm6, %v4711_v62, %v4712_v13  ;;  %v4484_v42 = vpop.permute.xlu0 %4483  ;;  %v4563_v3 = vrot.slane %v4562_v12, 4  ;;  %4361 = vst.msk [vmem:[%s12201_s17 + $0x18] sm:$0xff] %vm12209_vm10, %v10718_v43  ;;  %v4605_v35 = vsel %vm12209_vm10, %v10720_v33, -inf  ;;  %v4728_v24 = vrot.slane %v4727_v11, 4 }
0x1e1c   :  { %v4715_v37 = vrot.slane %v4714_v50, 4  ;;  %v4500_v17 = vadd.f32 %v4484_v42, %v10559_v4  ;;  %v4289_v46 = vadd.f32 %v10465_v10, %v4277_v56  ;;  %v4290_v48 = vadd.f32 %v10465_v10, %v4278_v32 }
0x1e1d   :  { %v4564_v6 = vmax.f32 %v4562_v12, %v4563_v3  ;;  %vm4693_vm8 = vcmp.lt.s32.totalorder %v4691_v36, %v4692_v53  ;;  %v4704_v49 = vsel %vm4703_vm12, %v4701_v22, %v4702_v5  ;;  %vm4654_vm14 = vcmp.lt.s32.totalorder %v4652_v29, %v4653_v55 }
0x1e1e   :  { %v10732_v27 = vadd.f32 %v4516_v60, %v4500_v17  ;;  %vm4716_vm7 = vcmp.lt.s32.totalorder %v4714_v50, %v4715_v37  ;;  %v10740_v60 = vsel %vm4667_vm0, %v4665_v40, %v4666_v25  ;;  %v4295_v20 = vpack.c.bf16 %v4290_v48, %v4289_v46 }
0x1e1f   :  { %v4565_v63 = vrot.slane %v4564_v6, 2  ;;  %vm4729_vm15 = vcmp.lt.s32.totalorder %v4727_v11, %v4728_v24  ;;  %v4717_v14 = vsel %vm4716_vm7, %v4714_v50, %v4715_v37  ;;  %v10742_v47 = vsel %vm4693_vm8, %v4691_v36, %v4692_v53 }
0x1e20   :  { %v4606_v30 = vsel %vm12208_vm13, %v10732_v27, -inf  ;;  %v4705_v45 = vrot.slane %v4704_v49, 2  ;;  %vm4757_vm1 = vcmask 1042434   ;;  %vm4759_vm2 = vcmask 1043459   ;;  %8328 = vmatmul.msk.bf16.gmra.mxu0 %vm12207_vm9, %v4295_v20 }
0x1e21   :  { %v4566_v16 = vmax.f32 %v4564_v6, %v4565_v63  ;;  %v4607_v1 = vmax.f32 %v4605_v35, %v4606_v30  ;;  %v4655_v10 = vsel %vm4654_vm14, %v4652_v29, %v4653_v55  ;;  %v4780_v40 = vsel %vm4755_vm11, %v10597_v44, %v10658_v19 }
0x1e22   :  { %v4730_v13 = vsel %vm4729_vm15, %v4727_v11, %v4728_v24  ;;  %v4718_v31 = vrot.slane %v4717_v14, 2  ;;  %vm12212_vm4 = vcmask 1045509   ;;  %v4656_v7 = vrot.slane %v4655_v10, 1 }
0x1e23   :  { %v4567_v54 = vrot.slane %v4566_v16, 1  ;;  %v4608_v58 = vrot.slane %v4607_v1, 4  ;;  %vm4706_vm12 = vcmp.lt.s32.totalorder %v4704_v49, %v4705_v45  ;;  %vm4765_vm7 = vcmask 1046534  }
0x1e24   :  { %vm4719_vm8 = vcmp.lt.s32.totalorder %v4717_v14, %v4718_v31  ;;  %v4695_v56 = vrot.slane %v10742_v47, 1  ;;  %vm12211_vm14 = vcmask 1047559   ;;  %v4707_v37 = vsel %vm4706_vm12, %v4704_v49, %v4705_v45 }
0x1e25   :  { %v4568_v22 = vmax.f32 %v4566_v16, %v4567_v54  ;;  %v4609_v62 = vmax.f32 %v4607_v1, %v4608_v58  ;;  %vm10763_vm15 = vcmp.lt.s32.totalorder %v4655_v10, %v4656_v7  ;;  %v4720_v53 = vsel %vm4719_vm8, %v4717_v14, %v4718_v31 }
0x1e26   :  { %v4708_v48 = vrot.slane %v4707_v37, 1  ;;  %v4658_v49 = vsel %vm10763_vm15, %v4655_v10, %v4656_v7  ;;  %v4721_v20 = vrot.slane %v4720_v53, 1 }
0x1e27   :  { %vm4618_vm5 = vcmp.ge.f32.partialorder %v10675_v39, %v4568_v22  ;;  %vm4619_vm6 = vcmp.ge.f32.partialorder %v10698_v15, %v4568_v22  ;;  %v4781_v21 = vsel %vm4757_vm1, %v4568_v22, %v4780_v40  ;;  %v4610_v12 = vrot.slane %v4609_v62, 2 }
0x1e28   :  { %v4634_v36 = vsel %vm4618_vm5, %v10473_v52, 10  ;;  %v4635_v5 = vsel %vm4619_vm6, %v10477_v61, 10  ;;  %v4782_v50 = vsel %vm4759_vm2, %v10606_v8, %v4781_v21  ;;  %v4731_v15 = vrot.slane %v4730_v13, 2 }
0x1e29   :  { %v4672_v44 = vsel %vm12209_vm10, %v4634_v36, 2147483647  ;;  %v4673_v19 = vsel %vm12208_vm13, %v4635_v5, 2147483647  ;;  %v4783_v39 = vsel %vm12213_vm3, %v10636_v38, %v4782_v50  ;;  %v4611_v42 = vmax.f32 %v4609_v62, %v4610_v12 }
0x1e2a   :  { %vm4674_vm0 = vcmp.lt.s32.totalorder %v4672_v44, %v4673_v19  ;;  %v4784_v3 = vsel %vm12212_vm4, %v10692_v0, %v4783_v39  ;;  %v4669_v8 = vrot.slane %v10740_v60, 1  ;;  %vm12210_vm5 = vcmp.eq.s32.totalorder %v10651_v59, 1 }
0x1e2b   :  { %v4675_v25 = vsel %vm4674_vm0, %v4672_v44, %v4673_v19  ;;  %v4612_v29 = vrot.slane %v4611_v42, 1  ;;  %vm10768_vm6 = vcmp.lt.s32.totalorder %v4730_v13, %v4731_v15  ;;  %v4785_v0 = vsel %vm4765_vm7, %v10677_v18, %v4784_v3 }
0x1e2c   :  { %v4676_v11 = vrot.slane %v4675_v25, 4  ;;  %vm4670_vm8 = vcmp.lt.s32.totalorder %v10740_v60, %v4669_v8  ;;  %vm4722_vm15 = vcmp.lt.s32.totalorder %v4720_v53, %v4721_v20  ;;  %v10804_v19 = vand.u32 127, %v4368_v28 }
0x1e2d   :  { %v4613_v17 = vmax.f32 %v4611_v42, %v4612_v29  ;;  %v4671_v58 = vsel %vm4670_vm8, %v10740_v60, %v4669_v8  ;;  %v4723_v5 = vsel %vm4722_vm15, %v4720_v53, %v4721_v20 }
0x1e2e   :  { %vm4677_vm0 = vcmp.lt.s32.totalorder %v4675_v25, %v4676_v11  ;;  %v4756_v45 = vsel %vm4755_vm11, %v4671_v58, %v4658_v49 }
0x1e2f   :  { %v4678_v6 = vsel %vm4677_vm0, %v4675_v25, %v4676_v11  ;;  %vm4628_vm9 = vcmp.ge.f32.partialorder %v10720_v33, %v4613_v17  ;;  %vm4629_vm12 = vcmp.ge.f32.partialorder %v10732_v27, %v4613_v17  ;;  %v4786_v55 = vsel %vm12211_vm14, %v4613_v17, %v4785_v0  ;;  %v3730_v11 = vpop.f32.mrf.mxu1  ;;  %v8905_v17 = vld [vmem:[%s12193_s9] ss:$0 sm:$0xff] }
0x1e30   :  { %v4679_v35 = vrot.slane %v4678_v6, 2  ;;  %v4644_v24 = vsel %vm4628_vm9, %v10473_v52, 10  ;;  %v4645_v63 = vsel %vm4629_vm12, %v10477_v61, 10  ;;  %v10782_v30 = vsel %vm12210_vm5, %v4786_v55, %v10503_v41 }
0x1e31   :  { %v4737_v46 = vsel %vm12209_vm10, %v4644_v24, 2147483647  ;;  %v4738_v18 = vsel %vm12208_vm13, %v4645_v63, 2147483647  ;;  %v4805_v33 = vperm.slane %v10782_v30, 1  ;;  %v4792_v27 = vperm.slane %v10782_v30, 0 }
0x1e32   :  { %vm4680_vm0 = vcmp.lt.s32.totalorder %v4678_v6, %v4679_v35  ;;  %vm4739_vm9 = vcmp.lt.s32.totalorder %v4737_v46, %v4738_v18  ;;  %v4733_v41 = vsel %vm10768_vm6, %v4730_v13, %v4731_v15  ;;  %vm4696_vm12 = vcmp.lt.s32.totalorder %v10742_v47, %v4695_v56 }
0x1e33   :  { %v4681_v16 = vsel %vm4680_vm0, %v4678_v6, %v4679_v35  ;;  %v4740_v1 = vsel %vm4739_vm9, %v4737_v46, %v4738_v18  ;;  %4810 = vperm.xlu2 %8579, %v4805_v33   ;;  %4803 = vperm.xlu1 %8582, %v4792_v27   ;;  %vm4709_vm13 = vcmp.lt.s32.totalorder %v4707_v37, %v4708_v48  ;;  %v4734_v10 = vrot.slane %v4733_v41, 1 }
0x1e34   :  { %v4682_v14 = vrot.slane %v4681_v16, 1  ;;  %v4741_v54 = vrot.slane %v4740_v1, 4  ;;  %4797 = vperm.xlu0 %8581, %v4792_v27   ;;  %v4697_v40 = vsel %vm4696_vm12, %v10742_v47, %v4695_v56  ;;  %v4710_v21 = vsel %vm4709_vm13, %v4707_v37, %v4708_v48  ;;  %v8331_v56 = vld [vmem:[%s12288_s7 + $0x10] sm:$0xff] }
0x1e35   :  { %v4818_v7 = vperm.slane %v10782_v30, 2  ;;  %v4857_v36 = vperm.slane %v10782_v30, 5  ;;  %vm4735_vm8 = vcmp.lt.s32.totalorder %v4733_v41, %v4734_v10  ;;  %vm12295_vm13 = vcmp.eq.s32.totalorder %v10651_v59, 1 }
0x1e36   :  { %vm4683_vm10 = vcmp.lt.s32.totalorder %v4681_v16, %v4682_v14  ;;  %vm4742_vm5 = vcmp.lt.s32.totalorder %v4740_v1, %v4741_v54  ;;  %v4736_v39 = vsel %vm4735_vm8, %v4733_v41, %v4734_v10  ;;  %v4831_v28 = vperm.slane %v10782_v30, 3 }
0x1e37   :  { %v4684_v22 = vsel %vm4683_vm10, %v4681_v16, %v4682_v14  ;;  %v4743_v62 = vsel %vm4742_vm5, %v4740_v1, %v4741_v54  ;;  %vm12296_vm5 = vcmask 80896   ;;  %v4844_v3 = vperm.slane %v10782_v30, 4 }
0x1e38   :  { %v4758_v13 = vsel %vm4757_vm1, %v4684_v22, %v4756_v45  ;;  %v4744_v31 = vrot.slane %v4743_v62, 2  ;;  %v4883_v8 = vperm.slane %v10782_v30, 7  ;;  %v4870_v59 = vperm.slane %v10782_v30, 6  ;;  %vm12297_vm9 = vmmov %vm12296_vm5 }
0x1e39   :  { %v4760_v12 = vsel %vm4759_vm2, %v4697_v40, %v4758_v13  ;;  %vm4791_vm0 = vcmp.gt.f32.partialorder %v8331_v56, 0.5  ;;  %v3731_v37 = vadd.f32 %v3730_v11, %v10488_v57  ;;  %v4920_v46 = vperm.slane %v10673_v9, 0  ;;  %vm12299_vm15 = vmmov %vm12296_vm5 }
0x1e3a   :  { %v4762_v60 = vsel %vm12213_vm3, %v4710_v21, %v4760_v12  ;;  %vm4745_vm6 = vcmp.lt.s32.totalorder %v4743_v62, %v4744_v31  ;;  %v5160_v38 = vsel %vm4791_vm0, 1, %v12285_v51  ;;  %v4913_v48 = vrot.slane %v10673_v9, 1  ;;  %vm12301_vm8 = vmmov %vm12296_vm5 }
0x1e3b   :  { %v4746_v50 = vsel %vm4745_vm6, %v4743_v62, %v4744_v31  ;;  %4823 = vperm.xlu2 %8579, %v4818_v7   ;;  %4816 = vperm.xlu1 %8582, %v4805_v33   ;;  %v4764_v44 = vsel %vm12212_vm4, %v4723_v5, %v4762_v60  ;;  %v3744_v32 = vadd.f32 %v8905_v17, %v3731_v37  ;;  %vm12298_vm12 = vcmask 74752   ;;  %vm12300_vm6 = vmmov %vm12296_vm5 }
0x1e3c   :  { %v4747_v47 = vrot.slane %v4746_v50, 1  ;;  %4862 = vperm.xlu0 %8581, %v4857_v36   ;;  %v4766_v15 = vsel %vm4765_vm7, %v4736_v39, %v4764_v44  ;;  %v4921_v58 = vperm.slane %v4913_v48, 0  ;;  %v4915_v39 = vrot.slane %v10673_v9, 3 }
0x1e3d   :  { %v4916_v17 = vrot.slane %v10673_v9, 4 }
0x1e3e   :  { %vm4748_vm10 = vcmp.lt.s32.totalorder %v4746_v50, %v4747_v47 }
0x1e3f   :  { %v4749_v42 = vsel %vm4748_vm10, %v4746_v50, %v4747_v47  ;;  %vm12302_vm10 = vmmov %vm12298_vm12 }
0x1e40   :  { %v4768_v25 = vsel %vm12211_vm14, %v4749_v42, %v4766_v15 }
0x1e41   :  { %v4769_v29 = vsel %vm12295_vm13, %v4768_v25, %v10804_v19  ;;  %v4914_v25 = vrot.slane %v10673_v9, 2  ;;  %vm12303_vm13 = vmmov %vm12302_vm10 }
0x1e42   :  { %4771 = vst.msk [vmem:[#allocation6 + $0x8] sm:$0xff] %vm12296_vm5, %v4769_v29 }
0x1e43   :  { %8584 = vset.pattern.permute.xlu2 %v10477_v61  ;;  %8583 = vset.pattern.permute.xlu1 %v10473_v52 }
0x1e44   :  { %8585 = vset.pattern.permute.xlu0 %v10477_v61 }
0x1e4b   :  { %4842 = vperm.xlu2 %8584, %v4831_v28   ;;  %4836 = vperm.xlu1 %8583, %v4831_v28   ;;  %v4923_v28 = vperm.slane %v4915_v39, 0 }
0x1e4c   :  { %4829 = vperm.xlu0 %8585, %v4818_v7  }
0x1e53   :  { %4855 = vperm.xlu2 %8584, %v4844_v3   ;;  %4849 = vperm.xlu1 %8583, %v4844_v3  }
0x1e54   :  { %4894 = vperm.xlu0 %8585, %v4883_v8  }
0x1e5b   :  { %8587 = vset.pattern.permute.xlu2 %v10473_v52  ;;  %8586 = vset.pattern.permute.xlu1 %v10477_v61 }
0x1e63   :  { %4875 = vperm.xlu2 %8587, %v4870_v59   ;;  %4868 = vperm.xlu1 %8586, %v4857_v36  }
0x1e6b   :  { %4881 = vperm.xlu1 %8586, %v4870_v59  }
0x1e73   :  { %8588 = vset.pattern.permute.xlu1 %v12285_v51 }
0x1e74   :  { %5162 = vperm.xlu1 %8588, %v5160_v38   ;;  %v4922_v38 = vperm.slane %v4914_v25, 0 }
0x1e77   :  { %v4214_v53 = vpop.f32.mrf.mxu3 }
0x1e78   :  { %v10830_v0 = vadd.f32 %v4214_v53, %v3744_v32 }
0x1e7a   :  { %8896 = vtanh.f32 %v10830_v0 }
0x1e7c   :  { %8589 = vset.pattern.permute.xlu1 %v10473_v52 }
0x1e7f   :  { %v4216_v6 = vpop.f32.mrf.mxu3 }
0x1e80   :  { %v8897_v55 = vpop.eup %8896 }
0x1e81   :  { %4241 = vrot.lane.b32.xlu2 %v8897_v55, %s8947_s3 }
0x1e89   :  { %4888 = vperm.xlu2 %8587, %v4883_v8  }
0x1e8d   :  { %v4811_v24 = vpop.permute.xlu2 %4810 }
0x1e8e   :  { %v4898_v41 = vadd.f32 %v4811_v24, %v10554_v23  ;;  %v8321_v24 = vmul.f32 -1.442695, %v10830_v0 }
0x1e90   :  { %v10865_v62 = vadd.f32 %v4921_v58, %v4898_v41  ;;  %8898 = vpow2.f32 %v8321_v24 }
0x1e91   :  { %8590 = vset.pattern.permute.xlu2 %v10477_v61 }
0x1e92   :  { %v4961_v21 = vsel %vm12301_vm8, %v10865_v62, -inf }
0x1e95   :  { %v4824_v10 = vpop.permute.xlu2 %4823 }
0x1e96   :  { %v4900_v59 = vadd.f32 %v4824_v10, %v10554_v23 }
0x1e9d   :  { %v4347_v57 = vpop.f32.mrf.mxu0 }
0x1e9e   :  { %v10837_v35 = vadd.f32 %v10493_v34, %v4347_v57 }
0x1ea0   :  { %4362 = vst.msk [vmem:[%s12201_s17 + $0x20] sm:$0xff] %vm12297_vm9, %v10837_v35 }
0x1ea5   :  { %v4804_v63 = vpop.permute.xlu1 %4803  ;;  %v4349_v1 = vpop.f32.mrf.mxu0 }
0x1ea6   :  { %v4897_v18 = vadd.f32 %v4804_v63, %v10559_v4  ;;  %v4798_v33 = vpop.permute.xlu0 %4797  ;;  %v10856_v14 = vadd.f32 %v10493_v34, %v4349_v1  ;;  %v4843_v36 = vpop.permute.xlu2 %4842  ;;  %v10888_v63 = vadd.f32 %v4922_v38, %v4900_v59 }
0x1ea7   :  { %v4896_v27 = vadd.f32 %v4798_v33, %v10554_v23  ;;  %v4903_v15 = vadd.f32 %v4843_v36, %v10559_v4 }
0x1ea8   :  { %v10848_v49 = vadd.f32 %v4920_v46, %v4897_v18  ;;  %4363 = vst.msk [vmem:[%s12201_s17 + $0x28] sm:$0xff] %vm12300_vm6, %v10856_v14 }
0x1ea9   :  { %v10850_v16 = vadd.f32 %v4920_v46, %v4896_v27  ;;  %v10880_v56 = vadd.f32 %v4923_v28, %v4903_v15  ;;  %v4924_v27 = vperm.slane %v4916_v17, 0 }
0x1eaa   :  { %v4953_v20 = vsel %vm12298_vm12, %v10848_v49, -inf  ;;  %vm12304_vm12 = vmmov %vm12296_vm5 }
0x1eab   :  { %v4952_v54 = vsel %vm12299_vm15, %v10850_v16, -inf  ;;  %v4980_v46 = vsel %vm12303_vm13, %v10880_v56, -inf  ;;  %vm12305_vm15 = vmmov %vm12302_vm10 }
0x1eac   :  { %v4954_v45 = vmax.f32 %v4952_v54, %v4953_v20  ;;  %v4970_v54 = vsel %vm12304_vm12, %v10888_v63, -inf }
0x1ead   :  { %v4817_v22 = vpop.permute.xlu1 %4816 }
0x1eae   :  { %v4955_v40 = vrot.slane %v4954_v45, 4  ;;  %v4899_v13 = vadd.f32 %v4817_v22, %v10559_v4  ;;  %v10874_v50 = vpop.permute.xlu0 %4862  ;;  %v4856_v32 = vpop.permute.xlu2 %4855 }
0x1eaf   :  { %v4905_v18 = vadd.f32 %v4856_v32, %v10559_v4 }
0x1eb0   :  { %v4956_v34 = vmax.f32 %v4954_v45, %v4955_v40  ;;  %v10868_v31 = vadd.f32 %v4921_v58, %v4899_v13 }
0x1eb1   :  { %v10902_v58 = vadd.f32 %v4924_v27, %v4905_v18  ;;  %v4918_v18 = vrot.slane %v10673_v9, 6 }
0x1eb2   :  { %v4962_v12 = vsel %vm12302_vm10, %v10868_v31, -inf  ;;  %v4957_v60 = vrot.slane %v4956_v34, 2  ;;  %vm12306_vm10 = vmmov %vm12296_vm5 }
0x1eb3   :  { %v4963_v7 = vmax.f32 %v4961_v21, %v4962_v12 }
0x1eb4   :  { %v4958_v44 = vmax.f32 %v4956_v34, %v4957_v60 }
0x1eb5   :  { %v4964_v5 = vrot.slane %v4963_v7, 4 }
0x1eb6   :  { %v4959_v29 = vrot.slane %v4958_v44, 1 }
0x1eb7   :  { %v4965_v47 = vmax.f32 %v4963_v7, %v4964_v5  ;;  %v8899_v5 = vpop.eup %8898 }
0x1eb8   :  { %v10884_v53 = vmax.f32 %v4958_v44, %v4959_v29 }
0x1eb9   :  { %v4966_v42 = vrot.slane %v4965_v47, 2 }
0x1eba   :  { %vm5024_vm0 = vcmp.ge.f32.partialorder %v10850_v16, %v10884_v53  ;;  %vm5025_vm9 = vcmp.ge.f32.partialorder %v10848_v49, %v10884_v53 }
0x1ebb   :  { %v4967_v3 = vmax.f32 %v4965_v47, %v4966_v42  ;;  %v5040_v16 = vsel %vm5024_vm0, %v10473_v52, 10  ;;  %v5041_v22 = vsel %vm5025_vm9, %v10477_v61, 10  ;;  %vm12308_vm0 = vmmov %vm12306_vm10 }
0x1ebc   :  { %v5056_v12 = vsel %vm12306_vm10, %v5040_v16, 2147483647  ;;  %v5057_v7 = vsel %vm12303_vm13, %v5041_v22, 2147483647  ;;  %vm12309_vm12 = vmmov %vm12308_vm0 }
0x1ebd   :  { %v4837_v8 = vpop.permute.xlu1 %4836  ;;  %v4968_v6 = vrot.slane %v4967_v3, 1  ;;  %vm5058_vm9 = vcmp.lt.s32.totalorder %v5056_v12, %v5057_v7  ;;  %v4876_v32 = vpop.permute.xlu2 %4875 }
0x1ebe   :  { %v4902_v11 = vadd.f32 %v4837_v8, %v10554_v23  ;;  %v4830_v37 = vpop.permute.xlu0 %4829  ;;  %v5059_v17 = vsel %vm5058_vm9, %v5056_v12, %v5057_v7 }
0x1ebf   :  { %v4901_v57 = vadd.f32 %v4830_v37, %v10559_v4  ;;  %v10898_v1 = vmax.f32 %v4967_v3, %v4968_v6  ;;  %v10927_v37 = vadd.f32 1.0, %v8899_v5 }
0x1ec0   :  { %v4942_v55 = vadd.f32 %v4923_v28, %v4902_v11  ;;  %v4917_v28 = vrot.slane %v10673_v9, 5 }
0x1ec1   :  { %v4941_v0 = vadd.f32 %v4922_v38, %v4901_v57  ;;  %vm5026_vm6 = vcmp.ge.f32.partialorder %v10865_v62, %v10898_v1  ;;  %vm5027_vm8 = vcmp.ge.f32.partialorder %v10868_v31, %v10898_v1  ;;  %8900 = vrcp.f32 %v10927_v37 }
0x1ec2   :  { %v4979_v33 = vsel %vm12296_vm5, %v4942_v55, -inf  ;;  %vm12307_vm5 = vmmov %vm12303_vm13  ;;  %v5042_v62 = vsel %vm5026_vm6, %v10473_v52, 10  ;;  %v5043_v31 = vsel %vm5027_vm8, %v10477_v61, 10  ;;  %v4925_v57 = vperm.slane %v4917_v28, 0 }
0x1ec3   :  { %v4981_v48 = vmax.f32 %v4979_v33, %v4980_v46  ;;  %v4971_v45 = vsel %vm12305_vm15, %v4941_v0, -inf  ;;  %v4989_v60 = vsel %vm12307_vm5, %v10902_v58, -inf  ;;  %v5069_v29 = vsel %vm12309_vm12, %v5042_v62, 2147483647  ;;  %vm12310_vm15 = vmmov %vm12307_vm5 }
0x1ec4   :  { %v4972_v40 = vmax.f32 %v4970_v54, %v4971_v45  ;;  %v5070_v3 = vsel %vm12310_vm15, %v5043_v31, 2147483647  ;;  %vm12311_vm9 = vmmov %vm12310_vm15 }
0x1ec5   :  { %v4982_v41 = vrot.slane %v4981_v48, 4  ;;  %v4850_v20 = vpop.permute.xlu1 %4849  ;;  %vm5071_vm10 = vcmp.lt.s32.totalorder %v5069_v29, %v5070_v3  ;;  %vm12312_vm12 = vmmov %vm12308_vm0 }
0x1ec6   :  { %v4904_v10 = vadd.f32 %v4850_v20, %v10554_v23  ;;  %v4973_v21 = vrot.slane %v4972_v40, 4  ;;  %vm12313_vm15 = vmmov %vm12311_vm9 }
0x1ec7   :  { %v4983_v49 = vmax.f32 %v4981_v48, %v4982_v41  ;;  %v5072_v48 = vsel %vm5071_vm10, %v5069_v29, %v5070_v3  ;;  %v10957_v7 = vpop.eup %8900  ;;  %v10979_v29 = vld [vmem:[%s12200_s16 + $0x8] sm:$0x3] }
0x1ec8   :  { %v10910_v13 = vadd.f32 %v4924_v27, %v4904_v10  ;;  %v4974_v44 = vmax.f32 %v4972_v40, %v4973_v21  ;;  %v5060_v27 = vrot.slane %v5059_v17, 4  ;;  %v5073_v40 = vrot.slane %v5072_v48, 4 }
0x1ec9   :  { %v4984_v34 = vrot.slane %v4983_v49, 2  ;;  %v4908_v21 = vadd.f32 %v4876_v32, %v10554_v23 }
0x1eca   :  { %v4988_v36 = vsel %vm12308_vm0, %v10910_v13, -inf  ;;  %v4975_v15 = vrot.slane %v4974_v44, 2 }
0x1ecb   :  { %v4985_v47 = vmax.f32 %v4983_v49, %v4984_v34  ;;  %v4990_v39 = vmax.f32 %v4988_v36, %v4989_v60  ;;  %v4926_v34 = vperm.slane %v4918_v18, 0 }
0x1ecc   :  { %v4976_v59 = vmax.f32 %v4974_v44, %v4975_v15  ;;  %v4919_v44 = vrot.slane %v10673_v9, 7 }
0x1ecd   :  { %v4986_v42 = vrot.slane %v4985_v47, 1  ;;  %v4991_v25 = vrot.slane %v4990_v39, 4 }
0x1ece   :  { %v4977_v38 = vrot.slane %v4976_v59, 1 }
0x1ecf   :  { %v10925_v8 = vmax.f32 %v4985_v47, %v4986_v42  ;;  %v4992_v11 = vmax.f32 %v4990_v39, %v4991_v25  ;;  %v4895_v39 = vpop.permute.xlu0 %4894  ;;  %v10974_v25 = vadd.f32 %v4926_v34, %v4908_v21 }
0x1ed0   :  { %v10933_v46 = vmax.f32 %v4976_v59, %v4977_v38  ;;  %v4911_v32 = vadd.f32 %v10979_v29, %v4895_v39 }
0x1ed1   :  { %vm5030_vm6 = vcmp.ge.f32.partialorder %v4942_v55, %v10925_v8  ;;  %vm5031_vm8 = vcmp.ge.f32.partialorder %v10880_v56, %v10925_v8  ;;  %v4993_v6 = vrot.slane %v4992_v11, 2  ;;  %v4906_v55 = vadd.f32 %v10874_v50, %v10554_v23 }
0x1ed2   :  { %v5046_v24 = vsel %vm5030_vm6, %v10473_v52, 10  ;;  %v5047_v33 = vsel %vm5031_vm8, %v10477_v61, 10  ;;  %vm5028_vm13 = vcmp.ge.f32.partialorder %v10888_v63, %v10933_v46  ;;  %vm5029_vm5 = vcmp.ge.f32.partialorder %v4941_v0, %v10933_v46 }
0x1ed3   :  { %v4994_v56 = vmax.f32 %v4992_v11, %v4993_v6  ;;  %v5095_v20 = vsel %vm12308_vm0, %v5046_v24, 2147483647  ;;  %v5044_v54 = vsel %vm5028_vm13, %v10473_v52, 10  ;;  %v5045_v45 = vsel %vm5029_vm5, %v10477_v61, 10  ;;  %vm12314_vm0 = vmmov %vm12311_vm9 }
0x1ed4   :  { %v5096_v50 = vsel %vm12311_vm9, %v5047_v33, 2147483647  ;;  %v5082_v16 = vsel %vm12312_vm12, %v5044_v54, 2147483647  ;;  %v5083_v22 = vsel %vm12313_vm15, %v5045_v45, 2147483647  ;;  %v10950_v63 = vadd.f32 %v4925_v57, %v4906_v55  ;;  %vm12315_vm15 = vmmov %vm12312_vm12 }
0x1ed5   :  { %v4869_v41 = vpop.permute.xlu1 %4868  ;;  %v4995_v10 = vrot.slane %v4994_v56, 1  ;;  %vm5097_vm6 = vcmp.lt.s32.totalorder %v5095_v20, %v5096_v50  ;;  %vm5084_vm8 = vcmp.lt.s32.totalorder %v5082_v16, %v5083_v22  ;;  %vm5061_vm5 = vcmp.lt.s32.totalorder %v5059_v17, %v5060_v27  ;;  %vm12316_vm14 = vmmov %vm12314_vm0 }
0x1ed6   :  { %v4907_v49 = vadd.f32 %v4869_v41, %v10559_v4  ;;  %vm5074_vm9 = vcmp.lt.s32.totalorder %v5072_v48, %v5073_v40  ;;  %v4997_v5 = vsel %vm12312_vm12, %v10950_v63, -inf  ;;  %v5098_v47 = vsel %vm5097_vm6, %v5095_v20, %v5096_v50  ;;  %vm12318_vm6 = vmmov %vm12314_vm0  ;;  %v10994_v20 = vld [vmem:[%s12200_s16] sm:$0xff] }
0x1ed7   :  { %v10952_v0 = vmax.f32 %v4994_v56, %v4995_v10  ;;  %v5062_v15 = vsel %vm5061_vm5, %v5059_v17, %v5060_v27  ;;  %v5075_v3 = vsel %vm5074_vm9, %v5072_v48, %v5073_v40  ;;  %v4224_v11 = vmul.f32 %v10957_v7, %v10927_v37  ;;  %vm12319_vm9 = vmmov %vm12318_vm6 }
0x1ed8   :  { %v10955_v12 = vadd.f32 %v4925_v57, %v4907_v49  ;;  %v5099_v9 = vrot.slane %v5098_v47, 4  ;;  %v5063_v6 = vrot.slane %v5062_v15, 2  ;;  %v4927_v57 = vperm.slane %v4919_v44, 0 }
0x1ed9   :  { %vm5032_vm10 = vcmp.ge.f32.partialorder %v10910_v13, %v10952_v0  ;;  %vm5033_vm13 = vcmp.ge.f32.partialorder %v10902_v58, %v10952_v0  ;;  %v5085_v58 = vsel %vm5084_vm8, %v5082_v16, %v5083_v22  ;;  %v5076_v18 = vrot.slane %v5075_v3, 2 }
0x1eda   :  { %v5048_v60 = vsel %vm5032_vm10, %v10473_v52, 10  ;;  %v5049_v36 = vsel %vm5033_vm13, %v10477_v61, 10  ;;  %v4998_v23 = vsel %vm12314_vm0, %v10955_v12, -inf  ;;  %v5086_v38 = vrot.slane %v5085_v58, 4 }
0x1edb   :  { %v10963_v4 = vpop.permute.xlu2 %4241  ;;  %v5108_v62 = vsel %vm12315_vm15, %v5048_v60, 2147483647  ;;  %v5109_v13 = vsel %vm12316_vm14, %v5049_v36, 2147483647  ;;  %v4999_v31 = vmax.f32 %v4997_v5, %v4998_v23  ;;  %vm12317_vm14 = vmmov %vm12312_vm12  ;;  %vm5100_vm8 = vcmp.lt.s32.totalorder %v5098_v47, %v5099_v9 }
0x1edc   :  { %vm5110_vm10 = vcmp.lt.s32.totalorder %v5108_v62, %v5109_v13  ;;  %v5006_v55 = vsel %vm12317_vm14, %v10974_v25, -inf  ;;  %vm5087_vm13 = vcmp.lt.s32.totalorder %v5085_v58, %v5086_v38  ;;  %v10997_v45 = vadd.f32 %v4927_v57, %v4911_v32 }
0x1edd   :  { %v4882_v42 = vpop.permute.xlu1 %4881  ;;  %v5000_v59 = vrot.slane %v4999_v31, 4  ;;  %v5111_v33 = vsel %vm5110_vm10, %v5108_v62, %v5109_v13  ;;  %v4225_v10 = vsub.f32 1.0, %v4224_v11  ;;  %vm5064_vm5 = vcmp.lt.s32.totalorder %v5062_v15, %v5063_v6 }
0x1ede   :  { %v4909_v28 = vadd.f32 %v10979_v29, %v4882_v42  ;;  %v5112_v50 = vrot.slane %v5111_v33, 4  ;;  %vm5077_vm0 = vcmp.lt.s32.totalorder %v5075_v3, %v5076_v18  ;;  %v5101_v40 = vsel %vm5100_vm8, %v5098_v47, %v5099_v9  ;;  %vm12321_vm8 = vmmov %vm12319_vm9 }
0x1edf   :  { %v5001_v24 = vmax.f32 %v4999_v31, %v5000_v59  ;;  %v5183_v36 = vsel %vm4755_vm11, %v10898_v1, %v10884_v53  ;;  %v5016_v23 = vsel %vm12319_vm9, %v10997_v45, -inf  ;;  %v4226_v5 = vmul.f32 %v10957_v7, %v4225_v10 }
0x1ee0   :  { %v10985_v17 = vadd.f32 %v4926_v34, %v4909_v28  ;;  %v5088_v34 = vsel %vm5087_vm13, %v5085_v58, %v5086_v38  ;;  %vm5113_vm15 = vcmp.lt.s32.totalorder %v5111_v33, %v5112_v50  ;;  %v11009_v47 = vsel %vm5064_vm5, %v5062_v15, %v5063_v6 }
0x1ee1   :  { %v5002_v48 = vrot.slane %v5001_v24, 2  ;;  %v11011_v58 = vsel %vm5077_vm0, %v5075_v3, %v5076_v18  ;;  %v5102_v31 = vrot.slane %v5101_v40, 2  ;;  %v5089_v42 = vrot.slane %v5088_v34, 2 }
0x1ee2   :  { %v5007_v56 = vsel %vm12318_vm6, %v10985_v17, -inf  ;;  %v5184_v28 = vsel %vm4757_vm1, %v10933_v46, %v5183_v36  ;;  %v5114_v59 = vsel %vm5113_vm15, %v5111_v33, %v5112_v50  ;;  %vm12320_vm6 = vmmov %vm12312_vm12 }
0x1ee3   :  { %v4889_v27 = vpop.permute.xlu2 %4888  ;;  %v5008_v41 = vmax.f32 %v5006_v55, %v5007_v56  ;;  %v5003_v16 = vmax.f32 %v5001_v24, %v5002_v48  ;;  %vm5103_vm13 = vcmp.lt.s32.totalorder %v5101_v40, %v5102_v31  ;;  %vm5090_vm0 = vcmp.lt.s32.totalorder %v5088_v34, %v5089_v42 }
0x1ee4   :  { %v4910_v54 = vadd.f32 %v10994_v20, %v4889_v27  ;;  %v5066_v24 = vrot.slane %v11009_v47, 1  ;;  %v5115_v18 = vrot.slane %v5114_v59, 2  ;;  %v5185_v33 = vsel %vm4759_vm2, %v10925_v8, %v5184_v28 }
0x1ee5   :  { %v5009_v22 = vrot.slane %v5008_v41, 4  ;;  %v5004_v21 = vrot.slane %v5003_v16, 1  ;;  %v11028_v56 = vsel %vm5103_vm13, %v5101_v40, %v5102_v31  ;;  %vm4229_vm13 = vweird.f32 %v10957_v7 }
0x1ee6   :  { %v10999_v49 = vadd.f32 %v4927_v57, %v4910_v54  ;;  %v5186_v40 = vsel %vm12213_vm3, %v10952_v0, %v5185_v33  ;;  %vm12328_vm3 = vcmask 74752  }
0x1ee7   :  { %v5010_v60 = vmax.f32 %v5008_v41, %v5009_v22  ;;  %v5005_v13 = vmax.f32 %v5003_v16, %v5004_v21  ;;  %v5091_v41 = vsel %vm5090_vm0, %v5088_v34, %v5089_v42  ;;  %v11043_v16 = vpop.permute.xlu1 %5162 }
0x1ee8   :  { %v5015_v62 = vsel %vm12312_vm12, %v10999_v49, -inf  ;;  %v5092_v34 = vrot.slane %v5091_v41, 1 }
0x1ee9   :  { %v5011_v44 = vrot.slane %v5010_v60, 2  ;;  %v5017_v39 = vmax.f32 %v5015_v62, %v5016_v23  ;;  %vm5034_vm10 = vcmp.ge.f32.partialorder %v10950_v63, %v5005_v13  ;;  %vm5035_vm14 = vcmp.ge.f32.partialorder %v10955_v12, %v5005_v13 }
0x1eea   :  { %v5050_v11 = vsel %vm5034_vm10, %v10473_v52, 10  ;;  %v5051_v9 = vsel %vm5035_vm14, %v10477_v61, 10  ;;  %v5079_v63 = vrot.slane %v11011_v58, 1  ;;  %v11023_v12 = vadd.f32 %v10957_v7, %v4226_v5  ;;  %vm12324_vm14 = vmmov %vm12320_vm6 }
0x1eeb   :  { %v5012_v53 = vmax.f32 %v5010_v60, %v5011_v44  ;;  %v5018_v1 = vrot.slane %v5017_v39, 4  ;;  %v5121_v15 = vsel %vm12320_vm6, %v5050_v11, 2147483647  ;;  %v5122_v3 = vsel %vm12321_vm8, %v5051_v9, 2147483647  ;;  %vm12325_vm6 = vmmov %vm12321_vm8 }
0x1eec   :  { %vm5123_vm5 = vcmp.lt.s32.totalorder %v5121_v15, %v5122_v3  ;;  %vm11035_vm15 = vcmp.lt.s32.totalorder %v11011_v58, %v5079_v63  ;;  %vm5116_vm8 = vcmp.lt.s32.totalorder %v5114_v59, %v5115_v18  ;;  %v5187_v36 = vsel %vm12212_vm4, %v5005_v13, %v5186_v40 }
0x1eed   :  { %v5013_v38 = vrot.slane %v5012_v53, 1  ;;  %v5019_v32 = vmax.f32 %v5017_v39, %v5018_v1  ;;  %v5124_v46 = vsel %vm5123_vm5, %v5121_v15, %v5122_v3  ;;  %v5117_v62 = vsel %vm5116_vm8, %v5114_v59, %v5115_v18 }
0x1eee   :  { %v5125_v55 = vrot.slane %v5124_v46, 4  ;;  %vm12327_vm4 = vcmask 80896   ;;  %v5118_v11 = vrot.slane %v5117_v62, 1 }
0x1eef   :  { %v5014_v6 = vmax.f32 %v5012_v53, %v5013_v38  ;;  %v5020_v57 = vrot.slane %v5019_v32, 2  ;;  %v5081_v38 = vsel %vm11035_vm15, %v11011_v58, %v5079_v63 }
0x1ef0   :  { %vm5126_vm10 = vcmp.lt.s32.totalorder %v5124_v46, %v5125_v55 }
0x1ef1   :  { %vm5036_vm9 = vcmp.ge.f32.partialorder %v10974_v25, %v5014_v6  ;;  %vm5037_vm12 = vcmp.ge.f32.partialorder %v10985_v17, %v5014_v6  ;;  %v5021_v27 = vmax.f32 %v5019_v32, %v5020_v57  ;;  %v5127_v10 = vsel %vm5126_vm10, %v5124_v46, %v5125_v55 }
0x1ef2   :  { %v5052_v54 = vsel %vm5036_vm9, %v10473_v52, 10  ;;  %v5053_v8 = vsel %vm5037_vm12, %v10477_v61, 10  ;;  %v5128_v22 = vrot.slane %v5127_v10, 2  ;;  %vm4228_vm9 = vweird.f32 %v10927_v37 }
0x1ef3   :  { %v5134_v50 = vsel %vm12324_vm14, %v5052_v54, 2147483647  ;;  %v5135_v25 = vsel %vm12325_vm6, %v5053_v8, 2147483647  ;;  %v5022_v17 = vrot.slane %v5021_v27, 1  ;;  %vm5164_vm12 = vcmp.eq.s32.totalorder %v11043_v16, 1  ;;  %vm4230_vm15 = vmor %vm4228_vm9, %vm4229_vm13 }
0x1ef4   :  { %vm5136_vm5 = vcmp.lt.s32.totalorder %v5134_v50, %v5135_v25  ;;  %vm5129_vm0 = vcmp.lt.s32.totalorder %v5127_v10, %v5128_v22  ;;  %v5188_v5 = vsel %vm4765_vm7, %v5014_v6, %v5187_v36  ;;  %vm12326_vm6 = vcmask 1047559  }
0x1ef5   :  { %v5137_v21 = vsel %vm5136_vm5, %v5134_v50, %v5135_v25  ;;  %v5023_v60 = vmax.f32 %v5021_v27, %v5022_v17  ;;  %v5130_v44 = vsel %vm5129_vm0, %v5127_v10, %v5128_v22  ;;  %vm11066_vm0 = vcmp.lt.s32.totalorder %v5091_v41, %v5092_v34 }
0x1ef6   :  { %v5138_v23 = vrot.slane %v5137_v21, 4  ;;  %v4232_v32 = vand.u32 2147483647, %v10927_v37  ;;  %v4234_v46 = vand.u32 2147483648, %v10927_v37  ;;  %v5094_v57 = vsel %vm11066_vm0, %v5091_v41, %v5092_v34 }
0x1ef7   :  { %vm5038_vm10 = vcmp.ge.f32.partialorder %v10999_v49, %v5023_v60  ;;  %vm5039_vm14 = vcmp.ge.f32.partialorder %v10997_v45, %v5023_v60  ;;  %v5189_v0 = vsel %vm12326_vm6, %v5023_v60, %v5188_v5  ;;  %v5105_v45 = vrot.slane %v11028_v56, 1  ;;  %v8332_v5 = vld [vmem:[%s12288_s7 + $0x18] sm:$0xff] }
0x1ef8   :  { %vm5139_vm5 = vcmp.lt.s32.totalorder %v5137_v21, %v5138_v23  ;;  %v5054_v39 = vsel %vm5038_vm10, %v10473_v52, 10  ;;  %v5055_v13 = vsel %vm5039_vm14, %v10477_v61, 10  ;;  %v11062_v1 = vsel %vm5164_vm12, %v5189_v0, %v10782_v30 }
0x1ef9   :  { %v5140_v31 = vsel %vm5139_vm5, %v5137_v21, %v5138_v23  ;;  %v5147_v42 = vsel %vm12327_vm4, %v5054_v39, 2147483647  ;;  %v5148_v53 = vsel %vm12328_vm3, %v5055_v13, 2147483647  ;;  %v5234_v28 = vperm.slane %v11062_v1, 3 }
0x1efa   :  { %v5141_v49 = vrot.slane %v5140_v31, 2  ;;  %vm5149_vm8 = vcmp.lt.s32.totalorder %v5147_v42, %v5148_v53  ;;  %v5195_v15 = vperm.slane %v11062_v1, 0  ;;  %vm5067_vm3 = vcmp.lt.s32.totalorder %v11009_v47, %v5066_v24 }
0x1efb   :  { %v5150_v9 = vsel %vm5149_vm8, %v5147_v42, %v5148_v53  ;;  %v5131_v30 = vrot.slane %v5130_v44, 1  ;;  %5245 = vperm.xlu0 %8585, %v5234_v28   ;;  %vm5106_vm10 = vcmp.lt.s32.totalorder %v11028_v56, %v5105_v45  ;;  %v5068_v55 = vsel %vm5067_vm3, %v11009_v47, %v5066_v24 }
0x1efc   :  { %vm5142_vm4 = vcmp.lt.s32.totalorder %v5140_v31, %v5141_v49  ;;  %v5151_v3 = vrot.slane %v5150_v9, 4  ;;  %5206 = vperm.xlu2 %8590, %v5195_v15   ;;  %5200 = vperm.xlu1 %8589, %v5195_v15   ;;  %vm5119_vm6 = vcmp.lt.s32.totalorder %v5117_v62, %v5118_v11  ;;  %v5165_v63 = vsel %vm4755_vm11, %v5081_v38, %v5068_v55 }
0x1efd   :  { %v5143_v6 = vsel %vm5142_vm4, %v5140_v31, %v5141_v49  ;;  %v4231_v33 = vsel %vm4230_vm15, %v10957_v7, %v11023_v12  ;;  %vm5132_vm5 = vcmp.lt.s32.totalorder %v5130_v44, %v5131_v30  ;;  %v5107_v48 = vsel %vm5106_vm10, %v11028_v56, %v5105_v45 }
0x1efe   :  { %vm5152_vm14 = vcmp.lt.s32.totalorder %v5150_v9, %v5151_v3  ;;  %v5144_v18 = vrot.slane %v5143_v6, 1  ;;  %v4235_v41 = vor.u32 1.1754944e-38, %v4234_v46  ;;  %v5166_v47 = vsel %vm4757_vm1, %v5094_v57, %v5165_v63 }
0x1eff   :  { %v5153_v58 = vsel %vm5152_vm14, %v5150_v9, %v5151_v3  ;;  %vm4233_vm0 = vcmp.eq.f32.partialorder %v4232_v32, 8.507059e+37  ;;  %v5120_v24 = vsel %vm5119_vm6, %v5117_v62, %v5118_v11  ;;  %v5133_v37 = vsel %vm5132_vm5, %v5130_v44, %v5131_v30 }
0x1f00   :  { %v5154_v27 = vrot.slane %v5153_v58, 2  ;;  %vm5145_vm8 = vcmp.lt.s32.totalorder %v5143_v6, %v5144_v18  ;;  %v11096_v54 = vsel %vm4233_vm0, %v4235_v41, %v4231_v33  ;;  %v5167_v12 = vsel %vm4759_vm2, %v5107_v48, %v5166_v47 }
0x1f01   :  { %v4244_v10 = vmul.f32 %v10963_v4, %v11096_v54  ;;  %v5146_v50 = vsel %vm5145_vm8, %v5143_v6, %v5144_v18  ;;  %vm12331_vm13 = vcmask 1044484   ;;  %vm12332_vm4 = vcmask 1045509  }
0x1f02   :  { %vm5155_vm3 = vcmp.lt.s32.totalorder %v5153_v58, %v5154_v27  ;;  %v5168_v56 = vsel %vm12331_vm13, %v5120_v24, %v5167_v12  ;;  %vm12333_vm10 = vcmask 1047559   ;;  %vm12334_vm14 = vcmask 80896  }
0x1f03   :  { %v5156_v8 = vsel %vm5155_vm3, %v5153_v58, %v5154_v27  ;;  %8593 = vset.pattern.permute.xlu0 %v10473_v52  ;;  %v5169_v25 = vsel %vm12332_vm4, %v5133_v37, %v5168_v56  ;;  %v5208_v34 = vperm.slane %v11062_v1, 1  ;;  %v5221_v21 = vperm.slane %v11062_v1, 2  ;;  %vm12337_vm5 = vmmov %vm12334_vm14 }
0x1f04   :  { %v5157_v7 = vrot.slane %v5156_v8, 1  ;;  %8592 = vset.pattern.permute.xlu2 %v10473_v52  ;;  %8591 = vset.pattern.permute.xlu1 %v10477_v61  ;;  %v5170_v4 = vsel %vm4765_vm7, %v5146_v50, %v5169_v25  ;;  %v5273_v60 = vperm.slane %v11062_v1, 6  ;;  %v5247_v16 = vperm.slane %v11062_v1, 4  ;;  %vm12338_vm8 = vmmov %vm12337_vm5 }
0x1f05   :  { %4246 = vrot.lane.b32.xlu2 %v4244_v10, %s8948_s22  ;;  %v5260_v36 = vperm.slane %v11062_v1, 5  ;;  %v5286_v23 = vperm.slane %v11062_v1, 7  ;;  %v5323_v44 = vperm.slane %v10718_v43, 0  ;;  %v4239_v31 = vmul.f32 %v11096_v54, %v10482_v26  ;;  %vm12339_vm13 = vmmov %vm12337_vm5 }
0x1f06   :  { %vm5158_vm9 = vcmp.lt.s32.totalorder %v5156_v8, %v5157_v7  ;;  %vm12335_vm6 = vcmask 74752   ;;  %v5316_v47 = vrot.slane %v10718_v43, 1 }
0x1f07   :  { %v5159_v17 = vsel %vm5158_vm9, %v5156_v8, %v5157_v7  ;;  %vm12336_vm15 = vmmov %vm12335_vm6 }
0x1f08   :  { %v5171_v22 = vsel %vm12333_vm10, %v5159_v17, %v5170_v4  ;;  %v5324_v7 = vperm.slane %v5316_v47, 0  ;;  %vm12340_vm10 = vmmov %vm12337_vm5 }
0x1f09   :  { %v5172_v40 = vsel %vm5164_vm12, %v5171_v22, %v10804_v19  ;;  %vm5194_vm12 = vcmp.gt.f32.partialorder %v8332_v5, 0.5 }
0x1f0a   :  { %5174 = vst.msk [vmem:[#allocation6 + $0x10] sm:$0xff] %vm12334_vm14, %v5172_v40  ;;  %v5563_v62 = vsel %vm5194_vm12, 1, %v12285_v51  ;;  %v5317_v40 = vrot.slane %v10718_v43, 2  ;;  %vm12341_vm14 = vmmov %vm12335_vm6 }
0x1f0b   :  { %5213 = vperm.xlu0 %8593, %v5208_v34   ;;  %vm12342_vm12 = vmmov %vm12337_vm5 }
0x1f0c   :  { %5219 = vperm.xlu1 %8591, %v5208_v34  }
0x1f0d   :  { %5226 = vperm.xlu2 %8592, %v5221_v21  }
0x1f13   :  { %5278 = vperm.xlu0 %8593, %v5273_v60  }
0x1f14   :  { %5232 = vperm.xlu1 %8591, %v5221_v21  }
0x1f15   :  { %5239 = vperm.xlu2 %8592, %v5234_v28  }
0x1f1b   :  { %8598 = vset.pattern.permute.xlu0 %v12285_v51 }
0x1f1c   :  { %8594 = vset.pattern.permute.xlu1 %v10473_v52  ;;  %5565 = vperm.xlu0 %8598, %v5563_v62  }
0x1f1d   :  { %8595 = vset.pattern.permute.xlu2 %v10477_v61 }
0x1f24   :  { %5252 = vperm.xlu1 %8594, %v5247_v16   ;;  %8603 = vset.pattern.permute.xlu0 %v10477_v61 }
0x1f25   :  { %5258 = vperm.xlu2 %8595, %v5247_v16  }
0x1f2c   :  { %5265 = vperm.xlu1 %8594, %v5260_v36  }
0x1f2d   :  { %5271 = vperm.xlu2 %8595, %v5260_v36  }
0x1f34   :  { %8596 = vset.pattern.permute.xlu1 %v10477_v61 }
0x1f35   :  { %8597 = vset.pattern.permute.xlu2 %v10473_v52 }
0x1f3c   :  { %5284 = vperm.xlu1 %8596, %v5273_v60  }
0x1f3d   :  { %5291 = vperm.xlu2 %8597, %v5286_v23  }
0x1f44   :  { %5297 = vperm.xlu1 %8596, %v5286_v23  }
0x1f45   :  { %8600 = vset.pattern.permute.xlu2 %v10477_v61 }
0x1f4c   :  { %4194 = vrot.lane.b32.xlu1 %v10520_v2, %s8950_s23  ;;  %v5318_v2 = vrot.slane %v10718_v43, 3 }
0x1f4d   :  { %8599 = vset.pattern.permute.xlu1 %v10473_v52 }
0x1f4e   :  { %v5326_v59 = vperm.slane %v5318_v2, 0 }
0x1f56   :  { %v5207_v0 = vpop.permute.xlu2 %5206 }
0x1f57   :  { %v5300_v39 = vadd.f32 %v10979_v29, %v5207_v0 }
0x1f59   :  { %v5340_v13 = vadd.f32 %v5323_v44, %v5300_v39  ;;  %v5325_v39 = vperm.slane %v5317_v40, 0 }
0x1f5b   :  { %v5356_v6 = vsel %vm12336_vm15, %v5340_v13, -inf }
0x1f5f   :  { %v4247_v42 = vpop.permute.xlu2 %4246 }
0x1f60   :  { %v4249_v53 = vadd.f32 %v4247_v42, %v4239_v31 }
0x1f62   :  { %8902 = vtanh.f32 %v4249_v53 }
0x1f67   :  { %v5227_v45 = vpop.permute.xlu2 %5226 }
0x1f68   :  { %v8903_v49 = vpop.eup %8902  ;;  %v5303_v34 = vadd.f32 %v10994_v20, %v5227_v45 }
0x1f69   :  { %4252 = vrot.lane.b32.xlu2 %v8903_v49, %s8949_s4 }
0x1f6a   :  { %v5343_v49 = vadd.f32 %v5325_v39, %v5303_v34 }
0x1f6d   :  { %v5246_v28 = vpop.permute.xlu0 %5245 }
0x1f6e   :  { %v5306_v11 = vadd.f32 %v10979_v29, %v5246_v28  ;;  %v5201_v9 = vpop.permute.xlu1 %5200 }
0x1f6f   :  { %v5240_v15 = vpop.permute.xlu2 %5239  ;;  %v5299_v30 = vadd.f32 %v10994_v20, %v5201_v9 }
0x1f70   :  { %v5346_v3 = vadd.f32 %v5326_v59, %v5306_v11  ;;  %v5305_v26 = vadd.f32 %v10994_v20, %v5240_v15 }
0x1f71   :  { %v5339_v38 = vadd.f32 %v5323_v44, %v5299_v30 }
0x1f72   :  { %v5383_v32 = vsel %vm12335_vm6, %v5346_v3, -inf  ;;  %v5345_v46 = vadd.f32 %v5326_v59, %v5305_v26 }
0x1f73   :  { %v5355_v57 = vsel %vm12337_vm5, %v5339_v38, -inf }
0x1f74   :  { %v5382_v18 = vsel %vm12338_vm8, %v5345_v46, -inf  ;;  %v5357_v55 = vmax.f32 %v5355_v57, %v5356_v6  ;;  %vm12343_vm8 = vmmov %vm12335_vm6  ;;  %v5319_v57 = vrot.slane %v10718_v43, 4 }
0x1f75   :  { %v5384_v58 = vmax.f32 %v5382_v18, %v5383_v32 }
0x1f76   :  { %v5358_v63 = vrot.slane %v5357_v55, 4 }
0x1f77   :  { %v5385_v33 = vrot.slane %v5384_v58, 4 }
0x1f78   :  { %v5359_v27 = vmax.f32 %v5357_v55, %v5358_v63 }
0x1f79   :  { %v5386_v48 = vmax.f32 %v5384_v58, %v5385_v33 }
0x1f7a   :  { %v5360_v41 = vrot.slane %v5359_v27, 2 }
0x1f7b   :  { %v5387_v24 = vrot.slane %v5386_v48, 2 }
0x1f7c   :  { %v5361_v37 = vmax.f32 %v5359_v27, %v5360_v41  ;;  %v5327_v41 = vperm.slane %v5319_v57, 0 }
0x1f7d   :  { %v5388_v8 = vmax.f32 %v5386_v48, %v5387_v24  ;;  %v5214_v10 = vpop.permute.xlu0 %5213 }
0x1f7e   :  { %v5362_v50 = vrot.slane %v5361_v37, 1  ;;  %v5301_v12 = vadd.f32 %v10994_v20, %v5214_v10  ;;  %v5220_v56 = vpop.permute.xlu1 %5219 }
0x1f7f   :  { %v5389_v25 = vrot.slane %v5388_v8, 1  ;;  %v5302_v17 = vadd.f32 %v10979_v29, %v5220_v56  ;;  %v5259_v32 = vpop.permute.xlu2 %5258 }
0x1f80   :  { %v5363_v4 = vmax.f32 %v5361_v37, %v5362_v50  ;;  %v5341_v22 = vadd.f32 %v5324_v7, %v5301_v12  ;;  %v5308_v58 = vadd.f32 %v10979_v29, %v5259_v32  ;;  %v5320_v37 = vrot.slane %v10718_v43, 5 }
0x1f81   :  { %v11151_v21 = vmax.f32 %v5388_v8, %v5389_v25  ;;  %v5342_v16 = vadd.f32 %v5324_v7, %v5302_v17 }
0x1f82   :  { %vm5427_vm0 = vcmp.ge.f32.partialorder %v5339_v38, %v5363_v4  ;;  %vm5428_vm3 = vcmp.ge.f32.partialorder %v5340_v13, %v5363_v4  ;;  %v5364_v60 = vsel %vm12339_vm13, %v5341_v22, -inf  ;;  %v11171_v10 = vadd.f32 %v5327_v41, %v5308_v58 }
0x1f83   :  { %vm5433_vm9 = vcmp.ge.f32.partialorder %v5345_v46, %v11151_v21  ;;  %vm5434_vm4 = vcmp.ge.f32.partialorder %v5346_v3, %v11151_v21  ;;  %v5443_v36 = vsel %vm5427_vm0, %v10473_v52, 10  ;;  %v5444_v23 = vsel %vm5428_vm3, %v10477_v61, 10  ;;  %vm12344_vm0 = vmmov %vm12340_vm10 }
0x1f84   :  { %v5449_v5 = vsel %vm5433_vm9, %v10473_v52, 10  ;;  %v5450_v62 = vsel %vm5434_vm4, %v10477_v61, 10  ;;  %v5459_v0 = vsel %vm12340_vm10, %v5443_v36, 2147483647  ;;  %v5460_v44 = vsel %vm12341_vm14, %v5444_v23, 2147483647  ;;  %vm12345_vm3 = vmmov %vm12335_vm6 }
0x1f85   :  { %v5498_v13 = vsel %vm12342_vm12, %v5449_v5, 2147483647  ;;  %v5499_v31 = vsel %vm12335_vm6, %v5450_v62, 2147483647  ;;  %vm5461_vm15 = vcmp.lt.s32.totalorder %v5459_v0, %v5460_v44  ;;  %v5365_v53 = vsel %vm12343_vm8, %v5342_v16, -inf  ;;  %vm12346_vm14 = vmmov %vm12344_vm0 }
0x1f86   :  { %vm5500_vm5 = vcmp.lt.s32.totalorder %v5498_v13, %v5499_v31  ;;  %v5462_v42 = vsel %vm5461_vm15, %v5459_v0, %v5460_v44  ;;  %v5233_v45 = vpop.permute.xlu1 %5232  ;;  %v5366_v2 = vmax.f32 %v5364_v60, %v5365_v53  ;;  %v5373_v30 = vsel %vm12344_vm0, %v5343_v49, -inf  ;;  %vm12347_vm12 = vmmov %vm12345_vm3 }
0x1f87   :  { %v5304_v28 = vadd.f32 %v10979_v29, %v5233_v45  ;;  %v5501_v59 = vsel %vm5500_vm5, %v5498_v13, %v5499_v31  ;;  %v5463_v15 = vrot.slane %v5462_v42, 4  ;;  %v5272_v17 = vpop.permute.xlu2 %5271  ;;  %v5328_v23 = vperm.slane %v5320_v37, 0  ;;  %vm12348_vm15 = vmmov %vm12345_vm3 }
0x1f88   :  { %v5367_v11 = vrot.slane %v5366_v2, 4  ;;  %v5502_v3 = vrot.slane %v5501_v59, 4  ;;  %v5310_v0 = vadd.f32 %v10979_v29, %v5272_v17 }
0x1f89   :  { %v5344_v9 = vadd.f32 %v5325_v39, %v5304_v28  ;;  %vm5464_vm13 = vcmp.lt.s32.totalorder %v5462_v42, %v5463_v15 }
0x1f8a   :  { %v5368_v26 = vmax.f32 %v5366_v2, %v5367_v11  ;;  %vm5503_vm9 = vcmp.lt.s32.totalorder %v5501_v59, %v5502_v3  ;;  %v5465_v33 = vsel %vm5464_vm13, %v5462_v42, %v5463_v15  ;;  %vm12351_vm13 = vmmov %vm12346_vm14  ;;  %v11199_v32 = vadd.f32 %v5328_v23, %v5310_v0 }
0x1f8b   :  { %v5374_v38 = vsel %vm12345_vm3, %v5344_v9, -inf  ;;  %v5504_v48 = vsel %vm5503_vm9, %v5501_v59, %v5502_v3  ;;  %v5466_v8 = vrot.slane %v5465_v33, 2 }
0x1f8c   :  { %v5375_v46 = vmax.f32 %v5373_v30, %v5374_v38  ;;  %v5369_v6 = vrot.slane %v5368_v26, 2  ;;  %v5505_v7 = vrot.slane %v5504_v48, 2 }
0x1f8d   :  { %vm5467_vm6 = vcmp.lt.s32.totalorder %v5465_v33, %v5466_v8 }
0x1f8e   :  { %v5376_v18 = vrot.slane %v5375_v46, 4  ;;  %v5370_v55 = vmax.f32 %v5368_v26, %v5369_v6  ;;  %vm11181_vm8 = vcmp.lt.s32.totalorder %v5504_v48, %v5505_v7  ;;  %v5468_v31 = vsel %vm5467_vm6, %v5465_v33, %v5466_v8 }
0x1f8f   :  { %v5469_v15 = vrot.slane %v5468_v31, 1 }
0x1f90   :  { %v5377_v63 = vmax.f32 %v5375_v46, %v5376_v18  ;;  %v5371_v27 = vrot.slane %v5370_v55, 1 }
0x1f92   :  { %v5378_v47 = vrot.slane %v5377_v63, 2  ;;  %v5372_v24 = vmax.f32 %v5370_v55, %v5371_v27 }
0x1f94   :  { %v5379_v50 = vmax.f32 %v5377_v63, %v5378_v47  ;;  %vm5429_vm4 = vcmp.ge.f32.partialorder %v5341_v22, %v5372_v24  ;;  %vm5430_vm10 = vcmp.ge.f32.partialorder %v5342_v16, %v5372_v24  ;;  %v5586_v12 = vsel %vm4755_vm11, %v5372_v24, %v5363_v4 }
0x1f95   :  { %v5445_v56 = vsel %vm5429_vm4, %v10473_v52, 10  ;;  %v5446_v25 = vsel %vm5430_vm10, %v10477_v61, 10  ;;  %v5392_v22 = vsel %vm12348_vm15, %v11171_v10, -inf  ;;  %vm12352_vm4 = vmmov %vm12351_vm13  ;;  %vm5470_vm15 = vcmp.lt.s32.totalorder %v5468_v31, %v5469_v15 }
0x1f96   :  { %v5380_v40 = vrot.slane %v5379_v50, 1  ;;  %v5253_v34 = vpop.permute.xlu1 %5252  ;;  %v5472_v60 = vsel %vm12346_vm14, %v5445_v56, 2147483647  ;;  %v5473_v36 = vsel %vm12347_vm12, %v5446_v25, 2147483647  ;;  %vm12353_vm10 = vmmov %vm12347_vm12  ;;  %v5321_v47 = vrot.slane %v10718_v43, 6 }
0x1f97   :  { %v5307_v5 = vadd.f32 %v10994_v20, %v5253_v34  ;;  %vm5474_vm5 = vcmp.lt.s32.totalorder %v5472_v60, %v5473_v36  ;;  %v5471_v8 = vsel %vm5470_vm15, %v5468_v31, %v5469_v15 }
0x1f98   :  { %v5381_v4 = vmax.f32 %v5379_v50, %v5380_v40  ;;  %v5475_v62 = vsel %vm5474_vm5, %v5472_v60, %v5473_v36  ;;  %vm12354_vm5 = vmmov %vm12353_vm10 }
0x1f99   :  { %v11186_v44 = vadd.f32 %v5327_v41, %v5307_v5  ;;  %v5476_v39 = vrot.slane %v5475_v62, 4  ;;  %v5401_v27 = vsel %vm12354_vm5, %v11199_v32, -inf }
0x1f9a   :  { %vm5431_vm0 = vcmp.ge.f32.partialorder %v5343_v49, %v5381_v4  ;;  %vm5432_vm3 = vcmp.ge.f32.partialorder %v5344_v9, %v5381_v4  ;;  %v5587_v13 = vsel %vm4757_vm1, %v5381_v4, %v5586_v12  ;;  %v5507_v49 = vsel %vm11181_vm8, %v5504_v48, %v5505_v7  ;;  %vm12355_vm8 = vmmov %vm12352_vm4  ;;  %v5279_v12 = vpop.permute.xlu0 %5278 }
0x1f9b   :  { %v5447_v42 = vsel %vm5431_vm0, %v10473_v52, 10  ;;  %v5448_v53 = vsel %vm5432_vm3, %v10477_v61, 10  ;;  %v5391_v45 = vsel %vm12351_vm13, %v11186_v44, -inf  ;;  %vm5477_vm9 = vcmp.lt.s32.totalorder %v5475_v62, %v5476_v39 }
0x1f9c   :  { %v5485_v2 = vsel %vm12352_vm4, %v5447_v42, 2147483647  ;;  %v5486_v28 = vsel %vm12353_vm10, %v5448_v53, 2147483647  ;;  %v5393_v59 = vmax.f32 %v5391_v45, %v5392_v22  ;;  %v5478_v11 = vsel %vm5477_vm9, %v5475_v62, %v5476_v39 }
0x1f9d   :  { %vm5487_vm14 = vcmp.lt.s32.totalorder %v5485_v2, %v5486_v28  ;;  %v5588_v9 = vsel %vm4759_vm2, %v11151_v21, %v5587_v13  ;;  %v5479_v30 = vrot.slane %v5478_v11, 2  ;;  %v5508_v18 = vrot.slane %v5507_v49, 1 }
0x1f9e   :  { %v5488_v3 = vsel %vm5487_vm14, %v5485_v2, %v5486_v28  ;;  %v5394_v26 = vrot.slane %v5393_v59, 4  ;;  %v5266_v38 = vpop.permute.xlu1 %5265  ;;  %v5311_v5 = vadd.f32 %v10994_v20, %v5279_v12  ;;  %vm12356_vm14 = vcmask 1044484  }
0x1f9f   :  { %v5489_v46 = vrot.slane %v5488_v3, 4  ;;  %v5309_v6 = vadd.f32 %v10994_v20, %v5266_v38  ;;  %vm5480_vm12 = vcmp.lt.s32.totalorder %v5478_v11, %v5479_v30  ;;  %vm5509_vm3 = vcmp.lt.s32.totalorder %v5507_v49, %v5508_v18 }
0x1fa0   :  { %v5395_v57 = vmax.f32 %v5393_v59, %v5394_v26  ;;  %v5481_v55 = vsel %vm5480_vm12, %v5478_v11, %v5479_v30  ;;  %v5510_v36 = vsel %vm5509_vm3, %v5507_v49, %v5508_v18  ;;  %vm12357_vm12 = vmmov %vm12355_vm8  ;;  %v5322_v11 = vrot.slane %v10718_v43, 7 }
0x1fa1   :  { %vm5490_vm6 = vcmp.lt.s32.totalorder %v5488_v3, %v5489_v46  ;;  %v5349_v58 = vadd.f32 %v5328_v23, %v5309_v6  ;;  %v5482_v63 = vrot.slane %v5481_v55, 1  ;;  %v5329_v23 = vperm.slane %v5321_v47, 0 }
0x1fa2   :  { %v5491_v33 = vsel %vm5490_vm6, %v5488_v3, %v5489_v46  ;;  %v5396_v21 = vrot.slane %v5395_v57, 2  ;;  %vm12358_vm6 = vmmov %vm12354_vm5 }
0x1fa3   :  { %v5492_v48 = vrot.slane %v5491_v33, 2  ;;  %v5400_v41 = vsel %vm12355_vm8, %v5349_v58, -inf  ;;  %vm5483_vm0 = vcmp.lt.s32.totalorder %v5481_v55, %v5482_v63  ;;  %v11217_v45 = vadd.f32 %v5329_v23, %v5311_v5  ;;  %vm12359_vm5 = vmmov %vm12355_vm8 }
0x1fa4   :  { %v5397_v24 = vmax.f32 %v5395_v57, %v5396_v21  ;;  %v5402_v37 = vmax.f32 %v5400_v41, %v5401_v27  ;;  %v5484_v50 = vsel %vm5483_vm0, %v5481_v55, %v5482_v63  ;;  %v5330_v63 = vperm.slane %v5322_v11, 0 }
0x1fa5   :  { %vm5493_vm13 = vcmp.lt.s32.totalorder %v5491_v33, %v5492_v48  ;;  %v5568_v7 = vsel %vm4755_vm11, %v5484_v50, %v5471_v8  ;;  %v5409_v15 = vsel %vm12359_vm5, %v11217_v45, -inf }
0x1fa6   :  { %v5494_v56 = vsel %vm5493_vm13, %v5491_v33, %v5492_v48  ;;  %v5398_v25 = vrot.slane %v5397_v24, 1  ;;  %v5403_v17 = vrot.slane %v5402_v37, 4  ;;  %vm12360_vm13 = vcmask 1045509  }
0x1fa7   :  { %v5495_v40 = vrot.slane %v5494_v56, 1 }
0x1fa8   :  { %v5399_v34 = vmax.f32 %v5397_v24, %v5398_v25  ;;  %v5404_v60 = vmax.f32 %v5402_v37, %v5403_v17 }
0x1fa9   :  { %vm5496_vm9 = vcmp.lt.s32.totalorder %v5494_v56, %v5495_v40 }
0x1faa   :  { %v5497_v22 = vsel %vm5496_vm9, %v5494_v56, %v5495_v40  ;;  %vm5435_vm4 = vcmp.ge.f32.partialorder %v11186_v44, %v5399_v34  ;;  %vm5436_vm10 = vcmp.ge.f32.partialorder %v11171_v10, %v5399_v34  ;;  %v5405_v4 = vrot.slane %v5404_v60, 2  ;;  %v5292_v10 = vpop.permute.xlu2 %5291  ;;  %vm12361_vm9 = vmmov %vm12358_vm6 }
0x1fab   :  { %v5451_v16 = vsel %vm5435_vm4, %v10473_v52, 10  ;;  %v5452_v62 = vsel %vm5436_vm10, %v10477_v61, 10  ;;  %v5569_v0 = vsel %vm4757_vm1, %v5497_v22, %v5568_v7  ;;  %v5589_v39 = vsel %vm12356_vm14, %v5399_v34, %v5588_v9  ;;  %vm12362_vm4 = vmmov %vm12359_vm5 }
0x1fac   :  { %v5511_v13 = vsel %vm12357_vm12, %v5451_v16, 2147483647  ;;  %v5512_v31 = vsel %vm12358_vm6, %v5452_v62, 2147483647  ;;  %v5406_v42 = vmax.f32 %v5404_v60, %v5405_v4  ;;  %v5570_v53 = vsel %vm4759_vm2, %v5510_v36, %v5569_v0  ;;  %vm12363_vm10 = vmmov %vm12358_vm6 }
0x1fad   :  { %vm5513_vm15 = vcmp.lt.s32.totalorder %v5511_v13, %v5512_v31  ;;  %v5313_v30 = vadd.f32 %v10994_v20, %v5292_v10  ;;  %vm12364_vm5 = vmmov %vm12362_vm4 }
0x1fae   :  { %v5514_v44 = vsel %vm5513_vm15, %v5511_v13, %v5512_v31  ;;  %v5407_v2 = vrot.slane %v5406_v42, 1  ;;  %v5285_v28 = vpop.permute.xlu1 %5284 }
0x1faf   :  { %v5515_v59 = vrot.slane %v5514_v44, 4  ;;  %v5312_v49 = vadd.f32 %v10979_v29, %v5285_v28  ;;  %v5353_v27 = vadd.f32 %v5330_v63, %v5313_v30 }
0x1fb0   :  { %v5408_v9 = vmax.f32 %v5406_v42, %v5407_v2 }
0x1fb1   :  { %vm5516_vm8 = vcmp.lt.s32.totalorder %v5514_v44, %v5515_v59  ;;  %v5352_v3 = vadd.f32 %v5329_v23, %v5312_v49  ;;  %v5418_v12 = vsel %vm12364_vm5, %v5353_v27, -inf }
0x1fb2   :  { %v5517_v26 = vsel %vm5516_vm8, %v5514_v44, %v5515_v59  ;;  %vm5437_vm0 = vcmp.ge.f32.partialorder %v5349_v58, %v5408_v9  ;;  %vm5438_vm3 = vcmp.ge.f32.partialorder %v11199_v32, %v5408_v9  ;;  %v5590_v38 = vsel %vm12360_vm13, %v5408_v9, %v5589_v39  ;;  %vm12365_vm8 = vmmov %vm12361_vm9  ;;  %v5566_v44 = vpop.permute.xlu0 %5565 }
0x1fb3   :  { %v5518_v46 = vrot.slane %v5517_v26, 2  ;;  %v5453_v6 = vsel %vm5437_vm0, %v10473_v52, 10  ;;  %v5454_v57 = vsel %vm5438_vm3, %v10477_v61, 10  ;;  %v5410_v43 = vsel %vm12361_vm9, %v5352_v3, -inf }
0x1fb4   :  { %v5524_v18 = vsel %vm12362_vm4, %v5453_v6, 2147483647  ;;  %v5525_v55 = vsel %vm12363_vm10, %v5454_v57, 2147483647  ;;  %v5411_v20 = vmax.f32 %v5409_v15, %v5410_v43  ;;  %vm12366_vm0 = vcmask 1044484  }
0x1fb5   :  { %vm5519_vm14 = vcmp.lt.s32.totalorder %v5517_v26, %v5518_v46  ;;  %vm5526_vm12 = vcmp.lt.s32.totalorder %v5524_v18, %v5525_v55  ;;  %vm12367_vm13 = vcmask 162816  }
0x1fb6   :  { %v5520_v58 = vsel %vm5519_vm14, %v5517_v26, %v5518_v46  ;;  %v5527_v33 = vsel %vm5526_vm12, %v5524_v18, %v5525_v55  ;;  %v5412_v32 = vrot.slane %v5411_v20, 4  ;;  %v5298_v21 = vpop.permute.xlu1 %5297  ;;  %vm12368_vm14 = vcmask 1045509   ;;  %vm12369_vm12 = vmmov %vm12364_vm5 }
0x1fb7   :  { %v5521_v48 = vrot.slane %v5520_v58, 1  ;;  %v5528_v41 = vrot.slane %v5527_v33, 4  ;;  %v5314_v47 = vadd.f32 %v10979_v29, %v5298_v21  ;;  %vm5567_vm5 = vcmp.eq.s32.totalorder %v5566_v44, 1 }
0x1fb8   :  { %v5413_v24 = vmax.f32 %v5411_v20, %v5412_v32 }
0x1fb9   :  { %vm5522_vm6 = vcmp.lt.s32.totalorder %v5520_v58, %v5521_v48  ;;  %vm5529_vm15 = vcmp.lt.s32.totalorder %v5527_v33, %v5528_v41  ;;  %v5354_v37 = vadd.f32 %v5330_v63, %v5314_v47 }
0x1fba   :  { %v5530_v8 = vsel %vm5529_vm15, %v5527_v33, %v5528_v41  ;;  %v5414_v50 = vrot.slane %v5413_v24, 2  ;;  %v5523_v7 = vsel %vm5522_vm6, %v5520_v58, %v5521_v48  ;;  %vm12370_vm6 = vmmov %vm12365_vm8 }
0x1fbb   :  { %v5531_v56 = vrot.slane %v5530_v8, 2  ;;  %v5419_v25 = vsel %vm12365_vm8, %v5354_v37, -inf  ;;  %v5571_v17 = vsel %vm12366_vm0, %v5523_v7, %v5570_v53 }
0x1fbc   :  { %v5415_v40 = vmax.f32 %v5413_v24, %v5414_v50  ;;  %v5420_v34 = vmax.f32 %v5418_v12, %v5419_v25  ;;  %v11279_v25 = vld [vmem:[%s12200_s16 + $0x8] sm:$0x3] }
0x1fbd   :  { %vm5532_vm3 = vcmp.lt.s32.totalorder %v5530_v8, %v5531_v56 }
0x1fbe   :  { %v5533_v60 = vsel %vm5532_vm3, %v5530_v8, %v5531_v56  ;;  %v5416_v36 = vrot.slane %v5415_v40, 1  ;;  %v5421_v29 = vrot.slane %v5420_v34, 4  ;;  %v4195_v23 = vpop.permute.xlu1 %4194 }
0x1fbf   :  { %v5534_v5 = vrot.slane %v5533_v60, 1  ;;  %4197 = vst.msk [vmem:[#allocation5 + $0x30] sm:$0xff] %vm12367_vm13, %v4195_v23  ;;  %vm12371_vm13 = vcmask 1047559  }
0x1fc0   :  { %v5417_v22 = vmax.f32 %v5415_v40, %v5416_v36  ;;  %v5422_v4 = vmax.f32 %v5420_v34, %v5421_v29  ;;  %v8333_v34 = vld [vmem:[%s12288_s7 + $0x20] sm:$0xff] }
0x1fc1   :  { %vm5535_vm9 = vcmp.lt.s32.totalorder %v5533_v60, %v5534_v5 }
0x1fc2   :  { %vm5439_vm4 = vcmp.ge.f32.partialorder %v11217_v45, %v5417_v22  ;;  %vm5440_vm10 = vcmp.ge.f32.partialorder %v5352_v3, %v5417_v22  ;;  %v5423_v16 = vrot.slane %v5422_v4, 2  ;;  %v5536_v62 = vsel %vm5535_vm9, %v5533_v60, %v5534_v5  ;;  %vm12372_vm9 = vmmov %vm12369_vm12  ;;  %v11292_v5 = vld [vmem:[%s12200_s16] sm:$0xff] }
0x1fc3   :  { %v5455_v0 = vsel %vm5439_vm4, %v10473_v52, 10  ;;  %v5456_v39 = vsel %vm5440_vm10, %v10477_v61, 10  ;;  %v5572_v13 = vsel %vm12368_vm14, %v5536_v62, %v5571_v17  ;;  %v5591_v31 = vsel %vm4765_vm7, %v5417_v22, %v5590_v38  ;;  %vm12373_vm4 = vmmov %vm12370_vm6  ;;  %v4253_v8 = vpop.permute.xlu2 %4252 }
0x1fc4   :  { %v5537_v42 = vsel %vm12369_vm12, %v5455_v0, 2147483647  ;;  %v5538_v53 = vsel %vm12370_vm6, %v5456_v39, 2147483647  ;;  %v5424_v10 = vmax.f32 %v5422_v4, %v5423_v16  ;;  %v4255_v50 = vmul.f32 %v4253_v8, %v11096_v54 }
0x1fc5   :  { %vm5539_vm15 = vcmp.lt.s32.totalorder %v5537_v42, %v5538_v53  ;;  %v5726_v54 = vperm.slane %v10837_v35, 0  ;;  %v5720_v60 = vrot.slane %v10837_v35, 2  ;;  %v5721_v16 = vrot.slane %v10837_v35, 3 }
0x1fc6   :  { %v5540_v2 = vsel %vm5539_vm15, %v5537_v42, %v5538_v53  ;;  %v5425_v45 = vrot.slane %v5424_v10, 1 }
0x1fc7   :  { %v5541_v28 = vrot.slane %v5540_v2, 4  ;;  %v11287_v23 = vperm.slane %v5720_v60, 0  ;;  %v5729_v39 = vperm.slane %v5721_v16, 0 }
0x1fc8   :  { %v5426_v59 = vmax.f32 %v5424_v10, %v5425_v45 }
0x1fc9   :  { %vm5542_vm8 = vcmp.lt.s32.totalorder %v5540_v2, %v5541_v28 }
0x1fca   :  { %v5543_v49 = vsel %vm5542_vm8, %v5540_v2, %v5541_v28  ;;  %vm5441_vm0 = vcmp.ge.f32.partialorder %v5353_v27, %v5426_v59  ;;  %vm5442_vm3 = vcmp.ge.f32.partialorder %v5354_v37, %v5426_v59  ;;  %v5592_v11 = vsel %vm12371_vm13, %v5426_v59, %v5591_v31 }
0x1fcb   :  { %v5544_v9 = vrot.slane %v5543_v49, 2  ;;  %v5457_v15 = vsel %vm5441_vm0, %v10473_v52, 10  ;;  %v5458_v30 = vsel %vm5442_vm3, %v10477_v61, 10  ;;  %v11248_v3 = vsel %vm5567_vm5, %v5592_v11, %v11062_v1  ;;  %vm12374_vm0 = vmmov %vm12371_vm13 }
0x1fcc   :  { %v5550_v26 = vsel %vm12372_vm9, %v5457_v15, 2147483647  ;;  %v5551_v38 = vsel %vm12373_vm4, %v5458_v30, 2147483647  ;;  %v5637_v46 = vperm.slane %v11248_v3, 3  ;;  %v5598_v6 = vperm.slane %v11248_v3, 0  ;;  %vm12375_vm3 = vmmov %vm12372_vm9 }
0x1fcd   :  { %vm5545_vm10 = vcmp.lt.s32.totalorder %v5543_v49, %v5544_v9  ;;  %vm5552_vm14 = vcmp.lt.s32.totalorder %v5550_v26, %v5551_v38  ;;  %v5611_v41 = vperm.slane %v11248_v3, 1  ;;  %v5624_v47 = vperm.slane %v11248_v3, 2  ;;  %vm12376_vm13 = vmmov %vm12373_vm4 }
0x1fce   :  { %v5553_v57 = vsel %vm5552_vm14, %v5550_v26, %v5551_v38  ;;  %v5546_v43 = vsel %vm5545_vm10, %v5543_v49, %v5544_v9  ;;  %5648 = vperm.xlu0 %8603, %v5637_v46   ;;  %5609 = vperm.xlu2 %8600, %v5598_v6   ;;  %v5676_v24 = vperm.slane %v11248_v3, 6  ;;  %v5650_v37 = vperm.slane %v11248_v3, 4  ;;  %vm12377_vm9 = vmmov %vm12375_vm3 }
0x1fcf   :  { %v5554_v18 = vrot.slane %v5553_v57, 4  ;;  %v5547_v55 = vrot.slane %v5546_v43, 1  ;;  %5603 = vperm.xlu1 %8599, %v5598_v6   ;;  %v5663_v7 = vperm.slane %v11248_v3, 5  ;;  %v5689_v12 = vperm.slane %v11248_v3, 7  ;;  %vm12378_vm10 = vmmov %vm12375_vm3 }
0x1fd1   :  { %vm5555_vm12 = vcmp.lt.s32.totalorder %v5553_v57, %v5554_v18  ;;  %vm5548_vm6 = vcmp.lt.s32.totalorder %v5546_v43, %v5547_v55 }
0x1fd2   :  { %v5556_v1 = vsel %vm5555_vm12, %v5553_v57, %v5554_v18  ;;  %v5549_v20 = vsel %vm5548_vm6, %v5546_v43, %v5547_v55  ;;  %v5719_v57 = vrot.slane %v10837_v35, 1 }
0x1fd3   :  { %v5557_v63 = vrot.slane %v5556_v1, 2  ;;  %v5573_v58 = vsel %vm4765_vm7, %v5549_v20, %v5572_v13 }
0x1fd5   :  { %vm5558_vm15 = vcmp.lt.s32.totalorder %v5556_v1, %v5557_v63 }
0x1fd6   :  { %v5559_v33 = vsel %vm5558_vm15, %v5556_v1, %v5557_v63  ;;  %8604 = vset.pattern.permute.xlu0 %v10473_v52  ;;  %8602 = vset.pattern.permute.xlu2 %v10473_v52 }
0x1fd7   :  { %v5560_v32 = vrot.slane %v5559_v33, 1  ;;  %8601 = vset.pattern.permute.xlu1 %v10477_v61 }
0x1fd9   :  { %vm5561_vm8 = vcmp.lt.s32.totalorder %v5559_v33, %v5560_v32 }
0x1fda   :  { %v5562_v21 = vsel %vm5561_vm8, %v5559_v33, %v5560_v32  ;;  %vm12379_vm8 = vmmov %vm12375_vm3 }
0x1fdb   :  { %v5574_v27 = vsel %vm12374_vm0, %v5562_v21, %v5573_v58  ;;  %v5727_v58 = vperm.slane %v5719_v57, 0  ;;  %vm12380_vm0 = vmmov %vm12373_vm4 }
0x1fdc   :  { %v5575_v48 = vsel %vm5567_vm5, %v5574_v27, %v10804_v19  ;;  %vm5597_vm5 = vcmp.gt.f32.partialorder %v8333_v34, 0.5 }
0x1fdd   :  { %5577 = vst.msk [vmem:[#allocation6 + $0x18] sm:$0xff] %vm12375_vm3, %v5575_v48  ;;  %v5966_v36 = vsel %vm5597_vm5, 1, %v12285_v51  ;;  %vm12381_vm5 = vmmov %vm12380_vm0 }
0x1fde   :  { %5616 = vperm.xlu0 %8604, %v5611_v41   ;;  %5629 = vperm.xlu2 %8602, %v5624_v47  }
0x1fdf   :  { %5622 = vperm.xlu1 %8601, %v5611_v41  }
0x1fe6   :  { %5681 = vperm.xlu0 %8604, %v5676_v24   ;;  %5642 = vperm.xlu2 %8602, %v5637_v46  }
0x1fe7   :  { %5635 = vperm.xlu1 %8601, %v5624_v47  }
0x1fee   :  { %8606 = vset.pattern.permute.xlu2 %v10477_v61 }
0x1fef   :  { %8605 = vset.pattern.permute.xlu1 %v10473_v52 }
0x1ff6   :  { %5661 = vperm.xlu2 %8606, %v5650_v37  }
0x1ff7   :  { %5655 = vperm.xlu1 %8605, %v5650_v37  }
0x1ffe   :  { %4257 = vrot.lane.b32.xlu2 %v4255_v50, %s8950_s23 }
0x1fff   :  { %5668 = vperm.xlu1 %8605, %v5663_v7  }
0x2006   :  { %5674 = vperm.xlu2 %8606, %v5663_v7  }
0x2007   :  { %8607 = vset.pattern.permute.xlu1 %v10477_v61 }
0x200e   :  { %8608 = vset.pattern.permute.xlu2 %v10473_v52 }
0x200f   :  { %5687 = vperm.xlu1 %8607, %v5676_v24  }
0x2016   :  { %5694 = vperm.xlu2 %8608, %v5689_v12  }
0x2017   :  { %5700 = vperm.xlu1 %8607, %v5689_v12  }
0x201e   :  { %8609 = vset.pattern.permute.xlu2 %v12285_v51 }
0x201f   :  { %5968 = vperm.xlu2 %8609, %v5966_v36  }
0x2027   :  { %8610 = vset.pattern.permute.xlu2 %v10473_v52 }
0x2028   :  { %v5610_v56 = vpop.permute.xlu2 %5609 }
0x2029   :  { %v5703_v17 = vadd.f32 %v11279_v25, %v5610_v56 }
0x202b   :  { %v5743_v40 = vadd.f32 %v5726_v54, %v5703_v17 }
0x202d   :  { %v5759_v59 = vsel %vm12373_vm4, %v5743_v40, -inf }
0x2038   :  { %v5630_v29 = vpop.permute.xlu2 %5629 }
0x2039   :  { %v5706_v22 = vadd.f32 %v11292_v5, %v5630_v29 }
0x203b   :  { %v11296_v4 = vadd.f32 %v11287_v23, %v5706_v22 }
0x2040   :  { %v5649_v62 = vpop.permute.xlu0 %5648  ;;  %v5643_v0 = vpop.permute.xlu2 %5642 }
0x2041   :  { %v5709_v13 = vadd.f32 %v11279_v25, %v5649_v62  ;;  %v5708_v31 = vadd.f32 %v11292_v5, %v5643_v0  ;;  %v5604_v42 = vpop.permute.xlu1 %5603 }
0x2042   :  { %v5702_v53 = vadd.f32 %v11292_v5, %v5604_v42 }
0x2043   :  { %v5749_v10 = vadd.f32 %v5729_v39, %v5709_v13  ;;  %v5748_v44 = vadd.f32 %v5729_v39, %v5708_v31  ;;  %v4267_v31 = vld [vmem:[#allocation5 + $0x30] sm:$0xff] }
0x2044   :  { %v5742_v2 = vadd.f32 %v5726_v54, %v5702_v53 }
0x2045   :  { %v5786_v45 = vsel %vm12376_vm13, %v5749_v10, -inf  ;;  %v5785_v28 = vsel %vm12377_vm9, %v5748_v44, -inf  ;;  %vm12382_vm13 = vmmov %vm12375_vm3 }
0x2046   :  { %v5787_v49 = vmax.f32 %v5785_v28, %v5786_v45  ;;  %v5758_v11 = vsel %vm12378_vm10, %v5742_v2, -inf  ;;  %vm12383_vm10 = vmmov %vm12380_vm0  ;;  %v5722_v45 = vrot.slane %v10837_v35, 4 }
0x2047   :  { %v5760_v9 = vmax.f32 %v5758_v11, %v5759_v59 }
0x2048   :  { %v5788_v15 = vrot.slane %v5787_v49, 4 }
0x2049   :  { %v5761_v30 = vrot.slane %v5760_v9, 4 }
0x204a   :  { %v5789_v26 = vmax.f32 %v5787_v49, %v5788_v15 }
0x204b   :  { %v5762_v38 = vmax.f32 %v5760_v9, %v5761_v30 }
0x204c   :  { %v5790_v46 = vrot.slane %v5789_v26, 2 }
0x204d   :  { %v5763_v6 = vrot.slane %v5762_v38, 2 }
0x204e   :  { %v5791_v43 = vmax.f32 %v5789_v26, %v5790_v46  ;;  %v5730_v46 = vperm.slane %v5722_v45, 0 }
0x204f   :  { %v5764_v18 = vmax.f32 %v5762_v38, %v5763_v6  ;;  %v8911_v6 = vld [vmem:[%s12195_s11] ss:$0 sm:$0xff] }
0x2050   :  { %v5792_v55 = vrot.slane %v5791_v43, 1  ;;  %v5617_v1 = vpop.permute.xlu0 %5616  ;;  %v5662_v20 = vpop.permute.xlu2 %5661 }
0x2051   :  { %v5765_v63 = vrot.slane %v5764_v18, 1  ;;  %v5704_v33 = vadd.f32 %v11292_v5, %v5617_v1  ;;  %v5623_v32 = vpop.permute.xlu1 %5622  ;;  %v5711_v15 = vadd.f32 %v11279_v25, %v5662_v20 }
0x2052   :  { %v11309_v21 = vmax.f32 %v5791_v43, %v5792_v55  ;;  %v5705_v27 = vadd.f32 %v11279_v25, %v5623_v32 }
0x2053   :  { %v11312_v48 = vmax.f32 %v5764_v18, %v5765_v63  ;;  %v11314_v41 = vadd.f32 %v5727_v58, %v5704_v33  ;;  %v5723_v33 = vrot.slane %v10837_v35, 5 }
0x2054   :  { %vm5836_vm14 = vcmp.ge.f32.partialorder %v5748_v44, %v11309_v21  ;;  %vm5837_vm12 = vcmp.ge.f32.partialorder %v5749_v10, %v11309_v21  ;;  %v11318_v47 = vadd.f32 %v5727_v58, %v5705_v27  ;;  %v11351_v58 = vadd.f32 %v5730_v46, %v5711_v15 }
0x2055   :  { %v5852_v24 = vsel %vm5836_vm14, %v10473_v52, 10  ;;  %v5853_v37 = vsel %vm5837_vm12, %v10477_v61, 10  ;;  %vm5830_vm6 = vcmp.ge.f32.partialorder %v5742_v2, %v11312_v48  ;;  %vm5831_vm15 = vcmp.ge.f32.partialorder %v5743_v40, %v11312_v48  ;;  %vm12385_vm12 = vmmov %vm12375_vm3 }
0x2056   :  { %v5901_v8 = vsel %vm12379_vm8, %v5852_v24, 2147483647  ;;  %v5902_v50 = vsel %vm12380_vm0, %v5853_v37, 2147483647  ;;  %v5846_v7 = vsel %vm5830_vm6, %v10473_v52, 10  ;;  %v5847_v12 = vsel %vm5831_vm15, %v10477_v61, 10  ;;  %vm12386_vm6 = vmmov %vm12380_vm0 }
0x2057   :  { %v5862_v56 = vsel %vm12375_vm3, %v5846_v7, 2147483647  ;;  %v5863_v54 = vsel %vm12381_vm5, %v5847_v12, 2147483647  ;;  %v5767_v17 = vsel %vm12382_vm13, %v11314_v41, -inf  ;;  %vm5903_vm9 = vcmp.lt.s32.totalorder %v5901_v8, %v5902_v50 }
0x2058   :  { %vm5864_vm4 = vcmp.lt.s32.totalorder %v5862_v56, %v5863_v54  ;;  %v5768_v40 = vsel %vm12383_vm10, %v11318_v47, -inf  ;;  %v4258_v34 = vpop.permute.xlu2 %4257  ;;  %vm12384_vm14 = vcmask 162816   ;;  %v5904_v16 = vsel %vm5903_vm9, %v5901_v8, %v5902_v50  ;;  %vm12388_vm9 = vmmov %vm12385_vm12 }
0x2059   :  { %v5865_v60 = vsel %vm5864_vm4, %v5862_v56, %v5863_v54  ;;  %v5769_v36 = vmax.f32 %v5767_v17, %v5768_v40  ;;  %4260 = vst.msk [vmem:[#allocation5 + $0x38] sm:$0xff] %vm12384_vm14, %v4258_v34  ;;  %v5636_v29 = vpop.permute.xlu1 %5635  ;;  %v5776_v42 = vsel %vm12385_vm12, %v11296_v4, -inf  ;;  %v5905_v53 = vrot.slane %v5904_v16, 4  ;;  %vm12387_vm5 = vmmov %vm12384_vm14 }
0x205a   :  { %v5707_v22 = vadd.f32 %v11279_v25, %v5636_v29  ;;  %v5866_v62 = vrot.slane %v5865_v60, 4  ;;  %vm12389_vm4 = vmmov %vm12386_vm6  ;;  %v5731_v40 = vperm.slane %v5723_v33, 0 }
0x205b   :  { %v5770_v0 = vrot.slane %v5769_v36, 4  ;;  %vm5906_vm8 = vcmp.lt.s32.totalorder %v5904_v16, %v5905_v53  ;;  %vm12390_vm14 = vmmov %vm12389_vm4 }
0x205c   :  { %v11337_v39 = vadd.f32 %v11287_v23, %v5707_v22  ;;  %vm5867_vm15 = vcmp.lt.s32.totalorder %v5865_v60, %v5866_v62  ;;  %v8910_v23 = vld [vmem:[%s12194_s10] ss:$0 sm:$0xff]  ;;  %v5907_v18 = vsel %vm5906_vm8, %v5904_v16, %v5905_v53 }
0x205d   :  { %v5771_v13 = vmax.f32 %v5769_v36, %v5770_v0  ;;  %v4279_v59 = vmul.f32 %v8910_v23, %v4267_v31  ;;  %v5868_v9 = vsel %vm5867_vm15, %v5865_v60, %v5866_v62  ;;  %v5908_v24 = vrot.slane %v5907_v18, 2 }
0x205e   :  { %v5777_v10 = vsel %vm12386_vm6, %v11337_v39, -inf  ;;  %v5869_v55 = vrot.slane %v5868_v9, 2 }
0x205f   :  { %v5772_v44 = vrot.slane %v5771_v13, 2  ;;  %v5778_v2 = vmax.f32 %v5776_v42, %v5777_v10  ;;  %v4291_v57 = vadd.f32 %v8911_v6, %v4279_v59  ;;  %vm11366_vm12 = vcmp.lt.s32.totalorder %v5907_v18, %v5908_v24 }
0x2060   :  { %v4268_v28 = vld [vmem:[#allocation5 + $0x38] sm:$0xff]  ;;  %vm5870_vm13 = vcmp.lt.s32.totalorder %v5868_v9, %v5869_v55 }
0x2061   :  { %v5773_v49 = vmax.f32 %v5771_v13, %v5772_v44  ;;  %v5779_v11 = vrot.slane %v5778_v2, 4  ;;  %v4280_v30 = vmul.f32 %v8910_v23, %v4268_v28  ;;  %v5871_v60 = vsel %vm5870_vm13, %v5868_v9, %v5869_v55 }
0x2063   :  { %v5774_v26 = vrot.slane %v5773_v49, 1  ;;  %v5780_v38 = vmax.f32 %v5778_v2, %v5779_v11  ;;  %v4292_v43 = vadd.f32 %v8911_v6, %v4280_v30  ;;  %v5910_v2 = vsel %vm11366_vm12, %v5907_v18, %v5908_v24 }
0x2065   :  { %v5775_v1 = vmax.f32 %v5773_v49, %v5774_v26  ;;  %v5781_v63 = vrot.slane %v5780_v38, 2  ;;  %v4296_v32 = vpack.c.bf16 %v4292_v43, %v4291_v57 }
0x2067   :  { %vm5832_vm0 = vcmp.ge.f32.partialorder %v11314_v41, %v5775_v1  ;;  %vm5833_vm3 = vcmp.ge.f32.partialorder %v11318_v47, %v5775_v1  ;;  %v5989_v20 = vsel %vm4755_vm11, %v5775_v1, %v11312_v48  ;;  %v5782_v27 = vmax.f32 %v5780_v38, %v5781_v63  ;;  %8329 = vmatmul.msk.bf16.gmra.mxu0 %vm12387_vm5, %v4296_v32  ;;  %v5675_v47 = vpop.permute.xlu2 %5674  ;;  %vm12395_vm5 = vmmov %vm12389_vm4 }
0x2068   :  { %v5848_v37 = vsel %vm5832_vm0, %v10473_v52, 10  ;;  %v5849_v8 = vsel %vm5833_vm3, %v10477_v61, 10  ;;  %v5795_v48 = vsel %vm12390_vm14, %v11351_v58, -inf  ;;  %v5713_v16 = vadd.f32 %v11279_v25, %v5675_v47  ;;  %vm12393_vm0 = vmmov %vm12388_vm9 }
0x2069   :  { %v5875_v50 = vsel %vm12388_vm9, %v5848_v37, 2147483647  ;;  %v5876_v7 = vsel %vm12389_vm4, %v5849_v8, 2147483647  ;;  %v5783_v12 = vrot.slane %v5782_v27, 1  ;;  %v5656_v41 = vpop.permute.xlu1 %5655  ;;  %vm12394_vm3 = vmmov %vm12393_vm0  ;;  %v5911_v38 = vrot.slane %v5910_v2, 1 }
0x206a   :  { %vm5877_vm10 = vcmp.lt.s32.totalorder %v5875_v50, %v5876_v7  ;;  %v5710_v56 = vadd.f32 %v11292_v5, %v5656_v41  ;;  %v11383_v49 = vadd.f32 %v5731_v40, %v5713_v16  ;;  %vm12396_vm12 = vmmov %vm12395_vm5  ;;  %v5724_v32 = vrot.slane %v10837_v35, 6 }
0x206b   :  { %v5878_v54 = vsel %vm5877_vm10, %v5875_v50, %v5876_v7  ;;  %v5784_v17 = vmax.f32 %v5782_v27, %v5783_v12 }
0x206c   :  { %v5879_v36 = vrot.slane %v5878_v54, 4  ;;  %v5750_v29 = vadd.f32 %v5730_v46, %v5710_v56  ;;  %v5804_v57 = vsel %vm12396_vm12, %v11383_v49, -inf  ;;  %v5732_v41 = vperm.slane %v5724_v32, 0 }
0x206d   :  { %vm5834_vm6 = vcmp.ge.f32.partialorder %v11296_v4, %v5784_v17  ;;  %vm5835_vm15 = vcmp.ge.f32.partialorder %v11337_v39, %v5784_v17  ;;  %v5990_v22 = vsel %vm4757_vm1, %v5784_v17, %v5989_v20  ;;  %v5872_v4 = vrot.slane %v5871_v60, 1  ;;  %v5682_v20 = vpop.permute.xlu0 %5681 }
0x206e   :  { %vm5880_vm8 = vcmp.lt.s32.totalorder %v5878_v54, %v5879_v36  ;;  %v5850_v62 = vsel %vm5834_vm6, %v10473_v52, 10  ;;  %v5851_v0 = vsel %vm5835_vm15, %v10477_v61, 10  ;;  %v5794_v13 = vsel %vm12393_vm0, %v5750_v29, -inf  ;;  %vm12397_vm6 = vmmov %vm12393_vm0 }
0x206f   :  { %v5881_v31 = vsel %vm5880_vm8, %v5878_v54, %v5879_v36  ;;  %v5888_v42 = vsel %vm12394_vm3, %v5850_v62, 2147483647  ;;  %v5889_v53 = vsel %vm12395_vm5, %v5851_v0, 2147483647  ;;  %v5796_v10 = vmax.f32 %v5794_v13, %v5795_v48 }
0x2070   :  { %v5882_v44 = vrot.slane %v5881_v31, 2  ;;  %vm5890_vm13 = vcmp.lt.s32.totalorder %v5888_v42, %v5889_v53  ;;  %v5991_v39 = vsel %vm4759_vm2, %v11309_v21, %v5990_v22  ;;  %vm5873_vm4 = vcmp.lt.s32.totalorder %v5871_v60, %v5872_v4 }
0x2071   :  { %v5891_v45 = vsel %vm5890_vm13, %v5888_v42, %v5889_v53  ;;  %v5797_v28 = vrot.slane %v5796_v10, 4  ;;  %v5669_v23 = vpop.permute.xlu1 %5668  ;;  %v5874_v18 = vsel %vm5873_vm4, %v5871_v60, %v5872_v4  ;;  %vm5912_vm8 = vcmp.lt.s32.totalorder %v5910_v2, %v5911_v38  ;;  %vm12400_vm4 = vmmov %vm12396_vm12 }
0x2072   :  { %vm5883_vm9 = vcmp.lt.s32.totalorder %v5881_v31, %v5882_v44  ;;  %v5892_v59 = vrot.slane %v5891_v45, 4  ;;  %v5712_v11 = vadd.f32 %v11292_v5, %v5669_v23  ;;  %v5913_v12 = vsel %vm5912_vm8, %v5910_v2, %v5911_v38 }
0x2073   :  { %v5884_v9 = vsel %vm5883_vm9, %v5881_v31, %v5882_v44  ;;  %v5798_v15 = vmax.f32 %v5796_v10, %v5797_v28  ;;  %v5714_v47 = vadd.f32 %v11292_v5, %v5682_v20  ;;  %vm12398_vm13 = vcmask 1044484   ;;  %vm12399_vm9 = vmmov %vm12397_vm6 }
0x2074   :  { %v5885_v30 = vrot.slane %v5884_v9, 1  ;;  %vm5893_vm10 = vcmp.lt.s32.totalorder %v5891_v45, %v5892_v59  ;;  %v5752_v26 = vadd.f32 %v5731_v40, %v5712_v11  ;;  %v5725_v53 = vrot.slane %v10837_v35, 7 }
0x2075   :  { %v5894_v21 = vsel %vm5893_vm10, %v5891_v45, %v5892_v59  ;;  %v5799_v46 = vrot.slane %v5798_v15, 2  ;;  %v5754_v62 = vadd.f32 %v5732_v41, %v5714_v47  ;;  %vm12402_vm8 = vcmask 1045509  }
0x2076   :  { %vm5886_vm14 = vcmp.lt.s32.totalorder %v5884_v9, %v5885_v30  ;;  %v5895_v6 = vrot.slane %v5894_v21, 2  ;;  %v5803_v43 = vsel %vm12397_vm6, %v5752_v26, -inf }
0x2077   :  { %v5887_v55 = vsel %vm5886_vm14, %v5884_v9, %v5885_v30  ;;  %v5800_v1 = vmax.f32 %v5798_v15, %v5799_v46  ;;  %v5805_v63 = vmax.f32 %v5803_v43, %v5804_v57  ;;  %vm12401_vm14 = vmmov %vm12397_vm6  ;;  %v5733_v30 = vperm.slane %v5725_v53, 0 }
0x2078   :  { %v5971_v33 = vsel %vm4755_vm11, %v5887_v55, %v5874_v18  ;;  %vm5896_vm15 = vcmp.lt.s32.totalorder %v5894_v21, %v5895_v6  ;;  %v5812_v4 = vsel %vm12401_vm14, %v5754_v62, -inf }
0x2079   :  { %v5897_v27 = vsel %vm5896_vm15, %v5894_v21, %v5895_v6  ;;  %v5801_v24 = vrot.slane %v5800_v1, 1  ;;  %v5806_v37 = vrot.slane %v5805_v63, 4 }
0x207a   :  { %v5898_v8 = vrot.slane %v5897_v27, 1 }
0x207b   :  { %v5802_v50 = vmax.f32 %v5800_v1, %v5801_v24  ;;  %v5807_v7 = vmax.f32 %v5805_v63, %v5806_v37 }
0x207c   :  { %vm5899_vm0 = vcmp.lt.s32.totalorder %v5897_v27, %v5898_v8 }
0x207d   :  { %v5900_v56 = vsel %vm5899_vm0, %v5897_v27, %v5898_v8  ;;  %vm5838_vm3 = vcmp.ge.f32.partialorder %v5750_v29, %v5802_v50  ;;  %vm5839_vm5 = vcmp.ge.f32.partialorder %v11351_v58, %v5802_v50  ;;  %v5808_v48 = vrot.slane %v5807_v7, 2  ;;  %v5695_v58 = vpop.permute.xlu2 %5694  ;;  %vm12403_vm0 = vmmov %vm12400_vm4 }
0x207e   :  { %v5854_v54 = vsel %vm5838_vm3, %v10473_v52, 10  ;;  %v5855_v17 = vsel %vm5839_vm5, %v10477_v61, 10  ;;  %v5972_v40 = vsel %vm4757_vm1, %v5900_v56, %v5971_v33  ;;  %v5992_v34 = vsel %vm12398_vm13, %v5802_v50, %v5991_v39  ;;  %vm12404_vm3 = vmmov %vm12399_vm9 }
0x207f   :  { %v5914_v60 = vsel %vm12399_vm9, %v5854_v54, 2147483647  ;;  %v5915_v36 = vsel %vm12400_vm4, %v5855_v17, 2147483647  ;;  %v5809_v22 = vmax.f32 %v5807_v7, %v5808_v48  ;;  %v5973_v16 = vsel %vm4759_vm2, %v5913_v12, %v5972_v40  ;;  %vm12405_vm5 = vmmov %vm12403_vm0 }
0x2080   :  { %vm5916_vm10 = vcmp.lt.s32.totalorder %v5914_v60, %v5915_v36  ;;  %v5716_v44 = vadd.f32 %v11292_v5, %v5695_v58  ;;  %vm12406_vm14 = vmmov %vm12404_vm3 }
0x2081   :  { %v5917_v29 = vsel %vm5916_vm10, %v5914_v60, %v5915_v36  ;;  %v5810_v0 = vrot.slane %v5809_v22, 1  ;;  %v5688_v13 = vpop.permute.xlu1 %5687 }
0x2082   :  { %v5918_v31 = vrot.slane %v5917_v29, 4  ;;  %v5715_v42 = vadd.f32 %v11279_v25, %v5688_v13  ;;  %v5756_v6 = vadd.f32 %v5733_v30, %v5716_v44 }
0x2083   :  { %v5811_v10 = vmax.f32 %v5809_v22, %v5810_v0 }
0x2084   :  { %vm5919_vm12 = vcmp.lt.s32.totalorder %v5917_v29, %v5918_v31  ;;  %v5755_v39 = vadd.f32 %v5732_v41, %v5715_v42  ;;  %v5821_v32 = vsel %vm12406_vm14, %v5756_v6, -inf }
0x2085   :  { %v5920_v2 = vsel %vm5919_vm12, %v5917_v29, %v5918_v31  ;;  %vm5840_vm6 = vcmp.ge.f32.partialorder %v5752_v26, %v5811_v10  ;;  %vm5841_vm15 = vcmp.ge.f32.partialorder %v11383_v49, %v5811_v10  ;;  %v5993_v45 = vsel %vm12402_vm8, %v5811_v10, %v5992_v34  ;;  %vm12407_vm12 = vmmov %vm12403_vm0  ;;  %v5969_v29 = vpop.permute.xlu2 %5968 }
0x2086   :  { %v5921_v28 = vrot.slane %v5920_v2, 2  ;;  %v5856_v23 = vsel %vm5840_vm6, %v10473_v52, 10  ;;  %v5857_v59 = vsel %vm5841_vm15, %v10477_v61, 10  ;;  %v5813_v35 = vsel %vm12403_vm0, %v5755_v39, -inf }
0x2087   :  { %v5927_v11 = vsel %vm12404_vm3, %v5856_v23, 2147483647  ;;  %v5928_v9 = vsel %vm12405_vm5, %v5857_v59, 2147483647  ;;  %v5814_v15 = vmax.f32 %v5812_v4, %v5813_v35  ;;  %vm12408_vm6 = vcmask 1044484  }
0x2088   :  { %vm5922_vm13 = vcmp.lt.s32.totalorder %v5920_v2, %v5921_v28  ;;  %vm5929_vm9 = vcmp.lt.s32.totalorder %v5927_v11, %v5928_v9  ;;  %vm12409_vm5 = vcmask 1045509  }
0x2089   :  { %v5923_v26 = vsel %vm5922_vm13, %v5920_v2, %v5921_v28  ;;  %v5930_v38 = vsel %vm5929_vm9, %v5927_v11, %v5928_v9  ;;  %v5815_v49 = vrot.slane %v5814_v15, 4  ;;  %v5701_v21 = vpop.permute.xlu1 %5700  ;;  %vm12410_vm13 = vmmov %vm12406_vm14 }
0x208a   :  { %v5924_v46 = vrot.slane %v5923_v26, 1  ;;  %v5931_v57 = vrot.slane %v5930_v38, 4  ;;  %v5717_v43 = vadd.f32 %v11279_v25, %v5701_v21  ;;  %vm12411_vm9 = vmmov %vm12407_vm12 }
0x208b   :  { %v5816_v18 = vmax.f32 %v5814_v15, %v5815_v49 }
0x208c   :  { %vm5925_vm4 = vcmp.lt.s32.totalorder %v5923_v26, %v5924_v46  ;;  %vm5932_vm10 = vcmp.lt.s32.totalorder %v5930_v38, %v5931_v57  ;;  %v5757_v55 = vadd.f32 %v5733_v30, %v5717_v43 }
0x208d   :  { %v5933_v1 = vsel %vm5932_vm10, %v5930_v38, %v5931_v57  ;;  %v5817_v63 = vrot.slane %v5816_v18, 2  ;;  %v5926_v33 = vsel %vm5925_vm4, %v5923_v26, %v5924_v46  ;;  %vm5970_vm10 = vcmp.eq.s32.totalorder %v5969_v29, 1 }
0x208e   :  { %v5934_v20 = vrot.slane %v5933_v1, 2  ;;  %v5822_v27 = vsel %vm12407_vm12, %v5757_v55, -inf  ;;  %v5974_v24 = vsel %vm12408_vm6, %v5926_v33, %v5973_v16 }
0x208f   :  { %v5818_v37 = vmax.f32 %v5816_v18, %v5817_v63  ;;  %v5823_v8 = vmax.f32 %v5821_v32, %v5822_v27  ;;  %v8334_v63 = vld [vmem:[%s12288_s7 + $0x28] sm:$0xff]  ;;  %v8912_v32 = vld [vmem:[%s12197_s13] ss:$0 sm:$0xff] }
0x2090   :  { %vm5935_vm15 = vcmp.lt.s32.totalorder %v5933_v1, %v5934_v20 }
0x2091   :  { %v5936_v50 = vsel %vm5935_vm15, %v5933_v1, %v5934_v20  ;;  %v5819_v7 = vrot.slane %v5818_v37, 1  ;;  %v5824_v12 = vrot.slane %v5823_v8, 4  ;;  %vm12412_vm15 = vcmask 1047559  }
0x2092   :  { %v5937_v41 = vrot.slane %v5936_v50, 1 }
0x2093   :  { %v5820_v47 = vmax.f32 %v5818_v37, %v5819_v7  ;;  %v5825_v56 = vmax.f32 %v5823_v8, %v5824_v12  ;;  %v6129_v7 = vperm.slane %v10856_v14, 0 }
0x2094   :  { %vm5938_vm8 = vcmp.lt.s32.totalorder %v5936_v50, %v5937_v41 }
0x2095   :  { %vm5842_vm0 = vcmp.ge.f32.partialorder %v5754_v62, %v5820_v47  ;;  %vm5843_vm3 = vcmp.ge.f32.partialorder %v5755_v39, %v5820_v47  ;;  %v5826_v48 = vrot.slane %v5825_v56, 2  ;;  %v5939_v54 = vsel %vm5938_vm8, %v5936_v50, %v5937_v41  ;;  %vm12413_vm8 = vmmov %vm12410_vm13 }
0x2096   :  { %v5858_v17 = vsel %vm5842_vm0, %v10473_v52, 10  ;;  %v5859_v40 = vsel %vm5843_vm3, %v10477_v61, 10  ;;  %v5975_v34 = vsel %vm12409_vm5, %v5939_v54, %v5974_v24  ;;  %v5994_v60 = vsel %vm4765_vm7, %v5820_v47, %v5993_v45  ;;  %vm12414_vm0 = vmmov %vm12411_vm9 }
0x2097   :  { %v5940_v36 = vsel %vm12410_vm13, %v5858_v17, 2147483647  ;;  %v5941_v22 = vsel %vm12411_vm9, %v5859_v40, 2147483647  ;;  %v5827_v16 = vmax.f32 %v5825_v56, %v5826_v48 }
0x2098   :  { %vm5942_vm4 = vcmp.lt.s32.totalorder %v5940_v36, %v5941_v22 }
0x2099   :  { %v5943_v58 = vsel %vm5942_vm4, %v5940_v36, %v5941_v22  ;;  %v5828_v62 = vrot.slane %v5827_v16, 1  ;;  %v6123_v36 = vrot.slane %v10856_v14, 2 }
0x209a   :  { %v5944_v0 = vrot.slane %v5943_v58, 4 }
0x209b   :  { %v5829_v13 = vmax.f32 %v5827_v16, %v5828_v62 }
0x209c   :  { %vm5945_vm14 = vcmp.lt.s32.totalorder %v5943_v58, %v5944_v0 }
0x209d   :  { %v5946_v31 = vsel %vm5945_vm14, %v5943_v58, %v5944_v0  ;;  %vm5844_vm12 = vcmp.ge.f32.partialorder %v5756_v6, %v5829_v13  ;;  %vm5845_vm6 = vcmp.ge.f32.partialorder %v5757_v55, %v5829_v13  ;;  %v5995_v42 = vsel %vm12412_vm15, %v5829_v13, %v5994_v60 }
0x209e   :  { %v5947_v53 = vrot.slane %v5946_v31, 2  ;;  %v5860_v10 = vsel %vm5844_vm12, %v10473_v52, 10  ;;  %v5861_v4 = vsel %vm5845_vm6, %v10477_v61, 10  ;;  %v11426_v44 = vsel %vm5970_vm10, %v5995_v42, %v11248_v3  ;;  %vm12415_vm12 = vmmov %vm12412_vm15 }
0x209f   :  { %v5953_v39 = vsel %vm12413_vm8, %v5860_v10, 2147483647  ;;  %v5954_v2 = vsel %vm12414_vm0, %v5861_v4, 2147483647  ;;  %v6014_v45 = vperm.slane %v11426_v44, 1  ;;  %v6001_v28 = vperm.slane %v11426_v44, 0  ;;  %vm12416_vm6 = vmmov %vm12413_vm8 }
0x20a0   :  { %vm5948_vm3 = vcmp.lt.s32.totalorder %v5946_v31, %v5947_v53  ;;  %vm5955_vm5 = vcmp.lt.s32.totalorder %v5953_v39, %v5954_v2  ;;  %v6053_v26 = vperm.slane %v11426_v44, 4  ;;  %v6027_v57 = vperm.slane %v11426_v44, 2  ;;  %vm12417_vm15 = vmmov %vm12416_vm6 }
0x20a1   :  { %v5956_v23 = vsel %vm5955_vm5, %v5953_v39, %v5954_v2  ;;  %v5949_v59 = vsel %vm5948_vm3, %v5946_v31, %v5947_v53  ;;  %6019 = vperm.xlu2 %8610, %v6014_v45   ;;  %6012 = vperm.xlu1 %8607, %v6001_v28   ;;  %v6040_v43 = vperm.slane %v11426_v44, 3  ;;  %v6079_v18 = vperm.slane %v11426_v44, 6  ;;  %vm12418_vm8 = vmmov %vm12416_vm6 }
0x20a2   :  { %v5957_v35 = vrot.slane %v5956_v23, 4  ;;  %v5950_v11 = vrot.slane %v5949_v59, 1  ;;  %6006 = vperm.xlu0 %8604, %v6001_v28   ;;  %v6066_v55 = vperm.slane %v11426_v44, 5  ;;  %v6092_v1 = vperm.slane %v11426_v44, 7  ;;  %vm12419_vm3 = vmmov %vm12416_vm6 }
0x20a3   :  { %v6131_v58 = vperm.slane %v6123_v36, 0  ;;  %v6124_v53 = vrot.slane %v10856_v14, 3  ;;  %v6122_v4 = vrot.slane %v10856_v14, 1  ;;  %vm12420_vm5 = vmmov %vm12414_vm0 }
0x20a4   :  { %vm5958_vm13 = vcmp.lt.s32.totalorder %v5956_v23, %v5957_v35  ;;  %vm5951_vm9 = vcmp.lt.s32.totalorder %v5949_v59, %v5950_v11 }
0x20a5   :  { %v5959_v3 = vsel %vm5958_vm13, %v5956_v23, %v5957_v35  ;;  %v5952_v9 = vsel %vm5951_vm9, %v5949_v59, %v5950_v11  ;;  %vm12421_vm13 = vmmov %vm12419_vm3  ;;  %v6132_v11 = vperm.slane %v6124_v53, 0 }
0x20a6   :  { %v5960_v15 = vrot.slane %v5959_v3, 2  ;;  %v5976_v30 = vsel %vm4765_vm7, %v5952_v9, %v5975_v34  ;;  %vm12422_vm9 = vmmov %vm12414_vm0 }
0x20a8   :  { %vm5961_vm4 = vcmp.lt.s32.totalorder %v5959_v3, %v5960_v15 }
0x20a9   :  { %v5962_v38 = vsel %vm5961_vm4, %v5959_v3, %v5960_v15  ;;  %8612 = vset.pattern.permute.xlu2 %v10477_v61  ;;  %8611 = vset.pattern.permute.xlu1 %v10473_v52  ;;  %v6130_v3 = vperm.slane %v6122_v4, 0  ;;  %vm12423_vm4 = vmmov %vm12419_vm3 }
0x20aa   :  { %v5963_v49 = vrot.slane %v5962_v38, 1  ;;  %6058 = vperm.xlu0 %8604, %v6053_v26  }
0x20ac   :  { %vm5964_vm14 = vcmp.lt.s32.totalorder %v5962_v38, %v5963_v49 }
0x20ad   :  { %v5965_v21 = vsel %vm5964_vm14, %v5962_v38, %v5963_v49  ;;  %vm12424_vm14 = vmmov %vm12419_vm3 }
0x20ae   :  { %v5977_v46 = vsel %vm12415_vm12, %v5965_v21, %v5976_v30  ;;  %vm12425_vm12 = vmmov %vm12414_vm0 }
0x20af   :  { %v5978_v6 = vsel %vm5970_vm10, %v5977_v46, %v10804_v19  ;;  %vm6000_vm10 = vcmp.gt.f32.partialorder %v8334_v63, 0.5 }
0x20b0   :  { %5980 = vst.msk [vmem:[#allocation6 + $0x20] sm:$0xff] %vm12416_vm6, %v5978_v6  ;;  %v6369_v27 = vsel %vm6000_vm10, 1, %v12285_v51 }
0x20b1   :  { %6038 = vperm.xlu2 %8612, %v6027_v57   ;;  %6032 = vperm.xlu1 %8611, %v6027_v57  }
0x20b2   :  { %8613 = vset.pattern.permute.xlu0 %v10477_v61 }
0x20b9   :  { %6051 = vperm.xlu2 %8612, %v6040_v43   ;;  %6045 = vperm.xlu1 %8611, %v6040_v43  }
0x20ba   :  { %6025 = vperm.xlu0 %8613, %v6014_v45  }
0x20c1   :  { %8615 = vset.pattern.permute.xlu2 %v10473_v52  ;;  %8614 = vset.pattern.permute.xlu1 %v10477_v61 }
0x20c2   :  { %6090 = vperm.xlu0 %8613, %v6079_v18  }
0x20c9   :  { %6071 = vperm.xlu2 %8615, %v6066_v55   ;;  %6064 = vperm.xlu1 %8614, %v6053_v26  }
0x20d1   :  { %6084 = vperm.xlu2 %8615, %v6079_v18   ;;  %6077 = vperm.xlu1 %8614, %v6066_v55  }
0x20d9   :  { %8617 = vset.pattern.permute.xlu2 %v10477_v61  ;;  %8616 = vset.pattern.permute.xlu1 %v10473_v52 }
0x20e1   :  { %6103 = vperm.xlu2 %8617, %v6092_v1   ;;  %6097 = vperm.xlu1 %8616, %v6092_v1  }
0x20e4   :  { %v4352_v33 = vpop.f32.mrf.mxu0 }
0x20e5   :  { %v11456_v20 = vadd.f32 %v8912_v32, %v4352_v33 }
0x20e7   :  { %4364 = vst.msk [vmem:[%s12201_s17 + $0x30] sm:$0xff] %vm12417_vm15, %v11456_v20  ;;  %vm12426_vm15 = vmmov %vm12419_vm3 }
0x20e9   :  { %8618 = vset.pattern.permute.xlu1 %v12285_v51  ;;  %8619 = vset.pattern.permute.xlu2 %v10473_v52 }
0x20ea   :  { %6371 = vperm.xlu1 %8618, %v6369_v27  }
0x20ec   :  { %v4354_v24 = vpop.f32.mrf.mxu0 }
0x20ed   :  { %v11466_v37 = vadd.f32 %v8912_v32, %v4354_v24 }
0x20ef   :  { %4365 = vst.msk [vmem:[%s12201_s17 + $0x38] sm:$0xff] %vm12418_vm8, %v11466_v37  ;;  %vm12427_vm8 = vmmov %vm12414_vm0 }
0x20f2   :  { %8620 = vset.pattern.permute.xlu1 %v10473_v52 }
0x20fb   :  { %v6020_v8 = vpop.permute.xlu2 %6019 }
0x20fc   :  { %v6107_v59 = vadd.f32 %v11292_v5, %v6020_v8 }
0x20fe   :  { %v6147_v21 = vadd.f32 %v6130_v3, %v6107_v59 }
0x2100   :  { %v6170_v33 = vsel %vm12424_vm14, %v6147_v21, -inf }
0x210b   :  { %v6039_v47 = vpop.permute.xlu2 %6038 }
0x210c   :  { %v6110_v16 = vadd.f32 %v11279_v25, %v6039_v47 }
0x210e   :  { %v11484_v0 = vadd.f32 %v6131_v58, %v6110_v16 }
0x2110   :  { %v6180_v2 = vsel %vm12420_vm5, %v11484_v0, -inf }
0x2113   :  { %v6013_v50 = vpop.permute.xlu1 %6012  ;;  %v6052_v22 = vpop.permute.xlu2 %6051 }
0x2114   :  { %v6106_v12 = vadd.f32 %v11279_v25, %v6013_v50  ;;  %v6007_v41 = vpop.permute.xlu0 %6006  ;;  %v6112_v45 = vadd.f32 %v11279_v25, %v6052_v22  ;;  %v6127_v50 = vrot.slane %v10856_v14, 6 }
0x2115   :  { %v6105_v56 = vadd.f32 %v11292_v5, %v6007_v41 }
0x2116   :  { %v11477_v48 = vadd.f32 %v6129_v7, %v6106_v12  ;;  %v11499_v30 = vadd.f32 %v6132_v11, %v6112_v45 }
0x2117   :  { %v6145_v54 = vadd.f32 %v6129_v7, %v6105_v56 }
0x2118   :  { %v6162_v17 = vsel %vm12414_vm0, %v11477_v48, -inf  ;;  %v6189_v55 = vsel %vm12422_vm9, %v11499_v30, -inf }
0x2119   :  { %v6161_v40 = vsel %vm12419_vm3, %v6145_v54, -inf }
0x211a   :  { %v6163_v34 = vmax.f32 %v6161_v40, %v6162_v17 }
0x211c   :  { %v6164_v60 = vrot.slane %v6163_v34, 4  ;;  %v6059_v31 = vpop.permute.xlu0 %6058 }
0x211d   :  { %v6113_v45 = vadd.f32 %v11292_v5, %v6059_v31 }
0x211e   :  { %v6165_v29 = vmax.f32 %v6163_v34, %v6164_v60  ;;  %v6135_v60 = vperm.slane %v6127_v50, 0 }
0x2120   :  { %v6166_v13 = vrot.slane %v6165_v29, 2 }
0x2122   :  { %v6167_v28 = vmax.f32 %v6165_v29, %v6166_v13 }
0x2123   :  { %v6033_v62 = vpop.permute.xlu1 %6032  ;;  %v11491_v39 = vpop.permute.xlu2 %6071 }
0x2124   :  { %v6109_v42 = vadd.f32 %v11292_v5, %v6033_v62  ;;  %v6168_v26 = vrot.slane %v6167_v28, 1 }
0x2126   :  { %v11488_v10 = vadd.f32 %v6131_v58, %v6109_v42  ;;  %v11507_v1 = vmax.f32 %v6167_v28, %v6168_v26 }
0x2128   :  { %v6179_v23 = vsel %vm12421_vm13, %v11488_v10, -inf  ;;  %vm6233_vm6 = vcmp.ge.f32.partialorder %v6145_v54, %v11507_v1  ;;  %vm6234_vm10 = vcmp.ge.f32.partialorder %v11477_v48, %v11507_v1  ;;  %v6125_v54 = vrot.slane %v10856_v14, 4 }
0x2129   :  { %v6181_v35 = vmax.f32 %v6179_v23, %v6180_v2  ;;  %v6249_v22 = vsel %vm6233_vm6, %v10473_v52, 10  ;;  %v6250_v16 = vsel %vm6234_vm10, %v10477_v61, 10  ;;  %vm12428_vm6 = vmmov %vm12419_vm3 }
0x212a   :  { %v6265_v53 = vsel %vm12426_vm15, %v6249_v22, 2147483647  ;;  %v6266_v4 = vsel %vm12427_vm8, %v6250_v16, 2147483647  ;;  %vm12429_vm15 = vmmov %vm12414_vm0 }
0x212b   :  { %v6182_v9 = vrot.slane %v6181_v35, 4  ;;  %v6046_v15 = vpop.permute.xlu1 %6045  ;;  %v6085_v27 = vpop.permute.xlu2 %6084  ;;  %vm6267_vm5 = vcmp.lt.s32.totalorder %v6265_v53, %v6266_v4  ;;  %vm12430_vm8 = vmmov %vm12419_vm3 }
0x212c   :  { %v6111_v38 = vadd.f32 %v11292_v5, %v6046_v15  ;;  %v6026_v49 = vpop.permute.xlu0 %6025  ;;  %v6117_v41 = vadd.f32 %v11292_v5, %v6085_v27 }
0x212d   :  { %v6183_v46 = vmax.f32 %v6181_v35, %v6182_v9  ;;  %v6108_v6 = vadd.f32 %v11279_v25, %v6026_v49  ;;  %v6133_v35 = vperm.slane %v6125_v54, 0  ;;  %v6126_v49 = vrot.slane %v10856_v14, 5 }
0x212e   :  { %v11503_v57 = vadd.f32 %v6132_v11, %v6111_v38  ;;  %v11522_v58 = vadd.f32 %v6135_v60, %v6117_v41 }
0x212f   :  { %v6184_v43 = vrot.slane %v6183_v46, 2  ;;  %v6148_v18 = vadd.f32 %v6130_v3, %v6108_v6  ;;  %v11542_v38 = vadd.f32 %v6133_v35, %v6113_v45  ;;  %v6115_v6 = vadd.f32 %v11292_v5, %v11491_v39 }
0x2130   :  { %v6188_v63 = vsel %vm12423_vm4, %v11503_v57, -inf  ;;  %v6215_v11 = vsel %vm12419_vm3, %v11522_v58, -inf  ;;  %v6134_v39 = vperm.slane %v6126_v49, 0 }
0x2131   :  { %v6185_v32 = vmax.f32 %v6183_v46, %v6184_v43  ;;  %v6190_v24 = vmax.f32 %v6188_v63, %v6189_v55  ;;  %v6171_v8 = vsel %vm12425_vm12, %v6148_v18, -inf  ;;  %v6268_v46 = vsel %vm6267_vm5, %v6265_v53, %v6266_v4  ;;  %vm12432_vm5 = vmmov %vm12429_vm15 }
0x2132   :  { %v6172_v7 = vmax.f32 %v6170_v33, %v6171_v8 }
0x2133   :  { %v6191_v12 = vrot.slane %v6190_v24, 4  ;;  %v6186_v17 = vrot.slane %v6185_v32, 1 }
0x2134   :  { %v6173_v47 = vrot.slane %v6172_v7, 4  ;;  %v6091_v56 = vpop.permute.xlu0 %6090 }
0x2135   :  { %v6192_v40 = vmax.f32 %v6190_v24, %v6191_v12  ;;  %v6118_v34 = vadd.f32 %v11279_v25, %v6091_v56  ;;  %v11524_v62 = vmax.f32 %v6185_v32, %v6186_v17  ;;  %v6197_v32 = vsel %vm12430_vm8, %v11542_v38, -inf }
0x2136   :  { %v6174_v36 = vmax.f32 %v6172_v7, %v6173_v47  ;;  %v11570_v12 = vadd.f32 %v6134_v39, %v6115_v6 }
0x2137   :  { %v6193_v29 = vrot.slane %v6192_v40, 2  ;;  %v11526_v42 = vadd.f32 %v6135_v60, %v6118_v34  ;;  %vm6237_vm13 = vcmp.ge.f32.partialorder %v11488_v10, %v11524_v62  ;;  %vm6238_vm9 = vcmp.ge.f32.partialorder %v11484_v0, %v11524_v62 }
0x2138   :  { %v6175_v48 = vrot.slane %v6174_v36, 2  ;;  %v6253_v10 = vsel %vm6237_vm13, %v10473_v52, 10  ;;  %v6254_v33 = vsel %vm6238_vm9, %v10477_v61, 10  ;;  %vm12433_vm13 = vmmov %vm12432_vm5 }
0x2139   :  { %v6194_v13 = vmax.f32 %v6192_v40, %v6193_v29  ;;  %v6216_v23 = vsel %vm12414_vm0, %v11526_v42, -inf  ;;  %vm12431_vm0 = vmmov %vm12419_vm3 }
0x213a   :  { %v6176_v2 = vmax.f32 %v6174_v36, %v6175_v48  ;;  %v6217_v9 = vmax.f32 %v6215_v11, %v6216_v23  ;;  %v6291_v27 = vsel %vm12431_vm0, %v6253_v10, 2147483647 }
0x213b   :  { %v6195_v28 = vrot.slane %v6194_v13, 1  ;;  %v6065_v59 = vpop.permute.xlu1 %6064 }
0x213c   :  { %v6177_v3 = vrot.slane %v6176_v2, 1  ;;  %v6114_v15 = vadd.f32 %v11279_v25, %v6065_v59  ;;  %v6218_v55 = vrot.slane %v6217_v9, 4  ;;  %v6128_v59 = vrot.slane %v10856_v14, 7 }
0x213d   :  { %v11538_v26 = vmax.f32 %v6194_v13, %v6195_v28 }
0x213e   :  { %v11540_v31 = vmax.f32 %v6176_v2, %v6177_v3  ;;  %v11553_v63 = vadd.f32 %v6133_v35, %v6114_v15  ;;  %v6219_v50 = vmax.f32 %v6217_v9, %v6218_v55  ;;  %v6104_v2 = vpop.permute.xlu2 %6103 }
0x213f   :  { %vm6239_vm12 = vcmp.ge.f32.partialorder %v11503_v57, %v11538_v26  ;;  %vm6240_vm10 = vcmp.ge.f32.partialorder %v11499_v30, %v11538_v26  ;;  %v6292_v57 = vsel %vm12432_vm5, %v6254_v33, 2147483647  ;;  %v6120_v49 = vadd.f32 %v11279_v25, %v6104_v2 }
0x2140   :  { %vm6235_vm4 = vcmp.ge.f32.partialorder %v6147_v21, %v11540_v31  ;;  %vm6236_vm14 = vcmp.ge.f32.partialorder %v6148_v18, %v11540_v31  ;;  %v6269_v18 = vrot.slane %v6268_v46, 4  ;;  %v6255_v8 = vsel %vm6239_vm12, %v10473_v52, 10  ;;  %vm12436_vm12 = vmmov %vm12431_vm0 }
0x2141   :  { %v6251_v43 = vsel %vm6235_vm4, %v10473_v52, 10  ;;  %v6252_v0 = vsel %vm6236_vm14, %v10477_v61, 10  ;;  %v6198_v7 = vsel %vm12433_vm13, %v11553_v63, -inf  ;;  %v6256_v30 = vsel %vm6240_vm10, %v10477_v61, 10  ;;  %vm12434_vm14 = vmmov %vm12431_vm0 }
0x2142   :  { %v6278_v5 = vsel %vm12428_vm6, %v6251_v43, 2147483647  ;;  %v6279_v21 = vsel %vm12429_vm15, %v6252_v0, 2147483647  ;;  %v6199_v47 = vmax.f32 %v6197_v32, %v6198_v7  ;;  %v6220_v56 = vrot.slane %v6219_v50, 2  ;;  %vm12435_vm6 = vmmov %vm12432_vm5  ;;  %v11609_v32 = vld [vmem:[%s12200_s16] sm:$0xff] }
0x2143   :  { %vm6280_vm3 = vcmp.lt.s32.totalorder %v6278_v5, %v6279_v21  ;;  %v6078_v24 = vpop.permute.xlu1 %6077  ;;  %vm6270_vm9 = vcmp.lt.s32.totalorder %v6268_v46, %v6269_v18  ;;  %vm6293_vm4 = vcmp.lt.s32.totalorder %v6291_v27, %v6292_v57  ;;  %v6304_v40 = vsel %vm12434_vm14, %v6255_v8, 2147483647  ;;  %vm12437_vm10 = vmmov %vm12432_vm5 }
0x2144   :  { %v6281_v41 = vsel %vm6280_vm3, %v6278_v5, %v6279_v21  ;;  %v6116_v17 = vadd.f32 %v11279_v25, %v6078_v24  ;;  %v6200_v34 = vrot.slane %v6199_v47, 4  ;;  %v6305_v60 = vsel %vm12435_vm6, %v6256_v30, 2147483647  ;;  %vm12438_vm5 = vmmov %vm12436_vm12 }
0x2145   :  { %v6282_v36 = vrot.slane %v6281_v41, 4  ;;  %v6221_v22 = vmax.f32 %v6219_v50, %v6220_v56  ;;  %v6206_v29 = vsel %vm12436_vm12, %v11570_v12, -inf  ;;  %v6271_v48 = vsel %vm6270_vm9, %v6268_v46, %v6269_v18  ;;  %vm12439_vm13 = vmmov %vm12435_vm6 }
0x2146   :  { %v11576_v16 = vadd.f32 %v6134_v39, %v6116_v17  ;;  %v6201_v54 = vmax.f32 %v6199_v47, %v6200_v34  ;;  %v6294_v13 = vsel %vm6293_vm4, %v6291_v27, %v6292_v57  ;;  %vm6306_vm15 = vcmp.lt.s32.totalorder %v6304_v40, %v6305_v60 }
0x2147   :  { %v6222_v53 = vrot.slane %v6221_v22, 1  ;;  %vm6283_vm8 = vcmp.lt.s32.totalorder %v6281_v41, %v6282_v36  ;;  %v6272_v35 = vrot.slane %v6271_v48, 2  ;;  %v6295_v11 = vrot.slane %v6294_v13, 4 }
0x2148   :  { %v6207_v4 = vsel %vm12437_vm10, %v11576_v16, -inf  ;;  %v6202_v45 = vrot.slane %v6201_v54, 2  ;;  %v6307_v15 = vsel %vm6306_vm15, %v6304_v40, %v6305_v60  ;;  %v6284_v46 = vsel %vm6283_vm8, %v6281_v41, %v6282_v36  ;;  %vm12442_vm10 = vmmov %vm12438_vm5 }
0x2149   :  { %v6208_v28 = vmax.f32 %v6206_v29, %v6207_v4  ;;  %v11582_v23 = vmax.f32 %v6221_v22, %v6222_v53  ;;  %vm11594_vm9 = vcmp.lt.s32.totalorder %v6271_v48, %v6272_v35  ;;  %vm6296_vm14 = vcmp.lt.s32.totalorder %v6294_v13, %v6295_v11  ;;  %vm12443_vm15 = vmmov %vm12439_vm13 }
0x214a   :  { %v6203_v3 = vmax.f32 %v6201_v54, %v6202_v45  ;;  %v6308_v25 = vrot.slane %v6307_v15, 4  ;;  %v6285_v5 = vrot.slane %v6284_v46, 2  ;;  %v6297_v7 = vsel %vm6296_vm14, %v6294_v13, %v6295_v11 }
0x214b   :  { %v6209_v9 = vrot.slane %v6208_v28, 4  ;;  %vm6245_vm0 = vcmp.ge.f32.partialorder %v11522_v58, %v11582_v23  ;;  %vm6246_vm3 = vcmp.ge.f32.partialorder %v11526_v42, %v11582_v23  ;;  %v6136_v58 = vperm.slane %v6128_v59, 0 }
0x214c   :  { %v6261_v6 = vsel %vm6245_vm0, %v10473_v52, 10  ;;  %v6262_v10 = vsel %vm6246_vm3, %v10477_v61, 10  ;;  %v6204_v43 = vrot.slane %v6203_v3, 1  ;;  %vm6309_vm8 = vcmp.lt.s32.totalorder %v6307_v15, %v6308_v25 }
0x214d   :  { %v6343_v14 = vsel %vm12438_vm5, %v6261_v6, 2147483647  ;;  %v6344_v55 = vsel %vm12439_vm13, %v6262_v10, 2147483647  ;;  %v6210_v33 = vmax.f32 %v6208_v28, %v6209_v9  ;;  %v11600_v18 = vadd.f32 %v6136_v58, %v6120_v49  ;;  %vm12444_vm5 = vmmov %vm12439_vm13 }
0x214e   :  { %vm6345_vm4 = vcmp.lt.s32.totalorder %v6343_v14, %v6344_v55  ;;  %v11598_v42 = vmax.f32 %v6203_v3, %v6204_v43  ;;  %vm6286_vm0 = vcmp.lt.s32.totalorder %v6284_v46, %v6285_v5  ;;  %vm12445_vm13 = vmmov %vm12442_vm10  ;;  %v11624_v34 = vsel %vm11594_vm9, %v6271_v48, %v6272_v35 }
0x214f   :  { %v6211_v39 = vrot.slane %v6210_v33, 2  ;;  %v6346_v24 = vsel %vm6345_vm4, %v6343_v14, %v6344_v55  ;;  %v6225_v56 = vsel %vm12444_vm5, %v11600_v18, -inf  ;;  %v6298_v29 = vrot.slane %v6297_v7, 2  ;;  %vm12446_vm9 = vmmov %vm12442_vm10 }
0x2150   :  { %vm6241_vm6 = vcmp.ge.f32.partialorder %v11542_v38, %v11598_v42  ;;  %vm6242_vm12 = vcmp.ge.f32.partialorder %v11553_v63, %v11598_v42  ;;  %v6347_v47 = vrot.slane %v6346_v24, 4  ;;  %v6310_v54 = vsel %vm6309_vm8, %v6307_v15, %v6308_v25 }
0x2151   :  { %v6257_v57 = vsel %vm6241_vm6, %v10473_v52, 10  ;;  %v6258_v8 = vsel %vm6242_vm12, %v10477_v61, 10  ;;  %v6212_v50 = vmax.f32 %v6210_v33, %v6211_v39  ;;  %v6287_v13 = vsel %vm6286_vm0, %v6284_v46, %v6285_v5 }
0x2152   :  { %v6317_v30 = vsel %vm12442_vm10, %v6257_v57, 2147483647  ;;  %v6318_v38 = vsel %vm12443_vm15, %v6258_v8, 2147483647  ;;  %v6392_v53 = vsel %vm4755_vm11, %v11540_v31, %v11507_v1  ;;  %vm6348_vm12 = vcmp.lt.s32.totalorder %v6346_v24, %v6347_v47  ;;  %vm12447_vm10 = vmmov %vm12444_vm5 }
0x2153   :  { %v6098_v21 = vpop.permute.xlu1 %6097  ;;  %vm6319_vm3 = vcmp.lt.s32.totalorder %v6317_v30, %v6318_v38  ;;  %v6213_v63 = vrot.slane %v6212_v50, 1  ;;  %v6311_v28 = vrot.slane %v6310_v54, 2  ;;  %vm6299_vm15 = vcmp.lt.s32.totalorder %v6297_v7, %v6298_v29 }
0x2154   :  { %v6119_v27 = vadd.f32 %v11609_v32, %v6098_v21  ;;  %v6320_v17 = vsel %vm6319_vm3, %v6317_v30, %v6318_v38  ;;  %v6393_v1 = vsel %vm4757_vm1, %v11524_v62, %v6392_v53  ;;  %v6275_v15 = vrot.slane %v11624_v34, 1 }
0x2155   :  { %v6321_v60 = vrot.slane %v6320_v17, 4  ;;  %v6214_v36 = vmax.f32 %v6212_v50, %v6213_v63  ;;  %v6300_v46 = vsel %vm6299_vm15, %v6297_v7, %v6298_v29  ;;  %vm6312_vm0 = vcmp.lt.s32.totalorder %v6310_v54, %v6311_v28 }
0x2156   :  { %v11616_v41 = vadd.f32 %v6136_v58, %v6119_v27  ;;  %v6394_v10 = vsel %vm4759_vm2, %v11538_v26, %v6393_v1  ;;  %v6301_v25 = vrot.slane %v6300_v46, 1  ;;  %v6313_v5 = vsel %vm6312_vm0, %v6310_v54, %v6311_v28 }
0x2157   :  { %vm6322_vm4 = vcmp.lt.s32.totalorder %v6320_v17, %v6321_v60  ;;  %vm6243_vm14 = vcmp.ge.f32.partialorder %v11570_v12, %v6214_v36  ;;  %vm6244_vm6 = vcmp.ge.f32.partialorder %v11576_v16, %v6214_v36  ;;  %v6288_v12 = vrot.slane %v6287_v13, 1 }
0x2158   :  { %v6224_v40 = vsel %vm12445_vm13, %v11616_v41, -inf  ;;  %v6323_v2 = vsel %vm6322_vm4, %v6320_v17, %v6321_v60  ;;  %v6259_v48 = vsel %vm6243_vm14, %v10473_v52, 10  ;;  %v6260_v45 = vsel %vm6244_vm6, %v10477_v61, 10 }
0x2159   :  { %v6226_v22 = vmax.f32 %v6224_v40, %v6225_v56  ;;  %v6330_v59 = vsel %vm12446_vm9, %v6259_v48, 2147483647  ;;  %v6331_v35 = vsel %vm12447_vm10, %v6260_v45, 2147483647  ;;  %v6324_v31 = vrot.slane %v6323_v2, 2 }
0x215a   :  { %vm6332_vm8 = vcmp.lt.s32.totalorder %v6330_v59, %v6331_v35  ;;  %v6349_v16 = vsel %vm6348_vm12, %v6346_v24, %v6347_v47  ;;  %vm12448_vm13 = vcmask 1044484   ;;  %vm6289_vm4 = vcmp.lt.s32.totalorder %v6287_v13, %v6288_v12 }
0x215b   :  { %v6227_v4 = vrot.slane %v6226_v22, 4  ;;  %v6333_v3 = vsel %vm6332_vm8, %v6330_v59, %v6331_v35  ;;  %v6350_v43 = vrot.slane %v6349_v16, 2  ;;  %vm6325_vm3 = vcmp.lt.s32.totalorder %v6323_v2, %v6324_v31 }
0x215c   :  { %v6334_v49 = vrot.slane %v6333_v3, 4  ;;  %v11640_v14 = vpop.permute.xlu1 %6371  ;;  %v6395_v62 = vsel %vm12448_vm13, %v11598_v42, %v6394_v10  ;;  %vm12449_vm14 = vcmask 1045509   ;;  %vm11646_vm6 = vcmp.lt.s32.totalorder %v11624_v34, %v6275_v15  ;;  %v8335_v10 = vld [vmem:[%s12288_s7 + $0x30] sm:$0xff] }
0x215d   :  { %v6228_v11 = vmax.f32 %v6226_v22, %v6227_v4  ;;  %v6396_v0 = vsel %vm12449_vm14, %v6214_v36, %v6395_v62  ;;  %v6326_v39 = vsel %vm6325_vm3, %v6323_v2, %v6324_v31  ;;  %vm6373_vm12 = vcmp.eq.s32.totalorder %v11640_v14, 1 }
0x215e   :  { %vm6335_vm5 = vcmp.lt.s32.totalorder %v6333_v3, %v6334_v49  ;;  %v6290_v27 = vsel %vm6289_vm4, %v6287_v13, %v6288_v12  ;;  %vm11651_vm9 = vcmp.lt.s32.totalorder %v6349_v16, %v6350_v43  ;;  %v6397_v24 = vsel %vm4765_vm7, %v11582_v23, %v6396_v0 }
0x215f   :  { %v6229_v9 = vrot.slane %v6228_v11, 2  ;;  %v6336_v55 = vsel %vm6335_vm5, %v6333_v3, %v6334_v49  ;;  %vm12454_vm5 = vcmask 1047559   ;;  %v6327_v50 = vrot.slane %v6326_v39, 1 }
0x2160   :  { %v6337_v26 = vrot.slane %v6336_v55, 2  ;;  %vm12455_vm0 = vcmask 80896   ;;  %vm12456_vm3 = vcmask 74752   ;;  %v6314_v47 = vrot.slane %v6313_v5, 1 }
0x2161   :  { %v6230_v6 = vmax.f32 %v6228_v11, %v6229_v9  ;;  %v6277_v17 = vsel %vm11646_vm6, %v11624_v34, %v6275_v15  ;;  %vm6302_vm4 = vcmp.lt.s32.totalorder %v6300_v46, %v6301_v25  ;;  %v6352_v36 = vsel %vm11651_vm9, %v6349_v16, %v6350_v43 }
0x2162   :  { %vm6338_vm10 = vcmp.lt.s32.totalorder %v6336_v55, %v6337_v26  ;;  %vm6328_vm14 = vcmp.lt.s32.totalorder %v6326_v39, %v6327_v50  ;;  %v6303_v22 = vsel %vm6302_vm4, %v6300_v46, %v6301_v25  ;;  %v6353_v54 = vrot.slane %v6352_v36, 1 }
0x2163   :  { %v6231_v33 = vrot.slane %v6230_v6, 1  ;;  %v6339_v57 = vsel %vm6338_vm10, %v6336_v55, %v6337_v26  ;;  %vm6315_vm10 = vcmp.lt.s32.totalorder %v6313_v5, %v6314_v47  ;;  %v6329_v53 = vsel %vm6328_vm14, %v6326_v39, %v6327_v50 }
0x2164   :  { %v6340_v56 = vrot.slane %v6339_v57, 1  ;;  %v6316_v4 = vsel %vm6315_vm10, %v6313_v5, %v6314_v47  ;;  %vm6354_vm9 = vcmp.lt.s32.totalorder %v6352_v36, %v6353_v54  ;;  %vm12460_vm4 = vcmask 80896  }
0x2165   :  { %v6232_v21 = vmax.f32 %v6230_v6, %v6231_v33  ;;  %v6355_v1 = vsel %vm6354_vm9, %v6352_v36, %v6353_v54  ;;  %v6525_v62 = vrot.slane %v11456_v20, 1  ;;  %v11711_v33 = vld [vmem:[%s12200_s16 + $0x8] sm:$0x3]  ;;  %vm12461_vm14 = vmmov %vm12460_vm4  ;;  %vm12462_vm10 = vcmask 74752  }
0x2166   :  { %vm12466_vm9 = vmmov %vm12460_vm4 }
0x2167   :  { %vm6247_vm15 = vcmp.ge.f32.partialorder %v11616_v41, %v6232_v21  ;;  %vm6248_vm8 = vcmp.ge.f32.partialorder %v11600_v18, %v6232_v21  ;;  %v6398_v8 = vsel %vm12454_vm5, %v6232_v21, %v6397_v24  ;;  %vm12457_vm5 = vcmask 1044484  }
0x2168   :  { %v6263_v7 = vsel %vm6247_vm15, %v10473_v52, 10  ;;  %v6264_v30 = vsel %vm6248_vm8, %v10477_v61, 10  ;;  %v11665_v38 = vsel %vm6373_vm12, %v6398_v8, %v11426_v44  ;;  %v6374_v44 = vsel %vm4755_vm11, %v6290_v27, %v6277_v17 }
0x2169   :  { %v6356_v63 = vsel %vm12455_vm0, %v6263_v7, 2147483647  ;;  %v6357_v23 = vsel %vm12456_vm3, %v6264_v30, 2147483647  ;;  %v6417_v41 = vperm.slane %v11665_v38, 1  ;;  %v6404_v18 = vperm.slane %v11665_v38, 0 }
0x216a   :  { %vm6358_vm13 = vcmp.lt.s32.totalorder %v6356_v63, %v6357_v23  ;;  %vm6341_vm8 = vcmp.lt.s32.totalorder %v6339_v57, %v6340_v56  ;;  %v6375_v34 = vsel %vm4757_vm1, %v6303_v22, %v6374_v44  ;;  %v6456_v48 = vperm.slane %v11665_v38, 4 }
0x216b   :  { %v6359_v40 = vsel %vm6358_vm13, %v6356_v63, %v6357_v23  ;;  %6422 = vperm.xlu1 %8620, %v6417_v41   ;;  %6415 = vperm.xlu0 %8613, %v6404_v18   ;;  %v6342_v2 = vsel %vm6341_vm8, %v6339_v57, %v6340_v56  ;;  %v6376_v45 = vsel %vm4759_vm2, %v6316_v4, %v6375_v34  ;;  %vm12458_vm0 = vcmask 1045509   ;;  %vm12464_vm8 = vmmov %vm12460_vm4 }
0x216c   :  { %v6360_v60 = vrot.slane %v6359_v40, 4  ;;  %6409 = vperm.xlu2 %8619, %v6404_v18   ;;  %v6377_v59 = vsel %vm12457_vm5, %v6329_v53, %v6376_v45  ;;  %vm12459_vm13 = vcmask 1047559   ;;  %v6430_v9 = vperm.slane %v11665_v38, 2  ;;  %vm12467_vm5 = vmmov %vm12460_vm4 }
0x216d   :  { %v6378_v11 = vsel %vm12458_vm0, %v6342_v2, %v6377_v59  ;;  %v6443_v15 = vperm.slane %v11665_v38, 3  ;;  %v6495_v49 = vperm.slane %v11665_v38, 7  ;;  %v6469_v46 = vperm.slane %v11665_v38, 5 }
0x216e   :  { %vm6361_vm15 = vcmp.lt.s32.totalorder %v6359_v40, %v6360_v60  ;;  %v6379_v12 = vsel %vm4765_vm7, %v6355_v1, %v6378_v11  ;;  %v6482_v6 = vperm.slane %v11665_v38, 6  ;;  %v6533_v26 = vperm.slane %v6525_v62, 0 }
0x216f   :  { %v6362_v29 = vsel %vm6361_vm15, %v6359_v40, %v6360_v60  ;;  %v6532_v21 = vperm.slane %v11456_v20, 0  ;;  %vm12463_vm15 = vmmov %vm12462_vm10  ;;  %v6528_v40 = vrot.slane %v11456_v20, 4  ;;  %v6526_v4 = vrot.slane %v11456_v20, 2 }
0x2170   :  { %v6363_v13 = vrot.slane %v6362_v29, 2 }
0x2171   :  { %v6536_v34 = vperm.slane %v6528_v40, 0  ;;  %v6534_v1 = vperm.slane %v6526_v4, 0  ;;  %v6530_v4 = vrot.slane %v11456_v20, 6 }
0x2172   :  { %vm6364_vm6 = vcmp.lt.s32.totalorder %v6362_v29, %v6363_v13 }
0x2173   :  { %v6365_v28 = vsel %vm6364_vm6, %v6362_v29, %v6363_v13  ;;  %8622 = vset.pattern.permute.xlu1 %v10477_v61  ;;  %6467 = vperm.xlu0 %8613, %v6456_v48   ;;  %v6527_v29 = vrot.slane %v11456_v20, 3  ;;  %vm12465_vm6 = vmmov %vm12462_vm10 }
0x2174   :  { %v6366_v35 = vrot.slane %v6365_v28, 1  ;;  %8621 = vset.pattern.permute.xlu2 %v10477_v61  ;;  %vm12468_vm0 = vmmov %vm12465_vm6 }
0x2175   :  { %v6535_v45 = vperm.slane %v6527_v29, 0 }
0x2176   :  { %vm6367_vm3 = vcmp.lt.s32.totalorder %v6365_v28, %v6366_v35 }
0x2177   :  { %v6368_v31 = vsel %vm6367_vm3, %v6365_v28, %v6366_v35  ;;  %vm12469_vm3 = vmmov %vm12468_vm0 }
0x2178   :  { %v6380_v16 = vsel %vm12459_vm13, %v6368_v31, %v6379_v12  ;;  %vm12470_vm13 = vmmov %vm12460_vm4 }
0x2179   :  { %v6381_v3 = vsel %vm6373_vm12, %v6380_v16, %v10804_v19  ;;  %vm6403_vm12 = vcmp.gt.f32.partialorder %v8335_v10, 0.5 }
0x217a   :  { %6383 = vst.msk [vmem:[#allocation6 + $0x28] sm:$0xff] %vm12460_vm4, %v6381_v3  ;;  %v6772_v43 = vsel %vm6403_vm12, 1, %v12285_v51 }
0x217b   :  { %6441 = vperm.xlu1 %8622, %v6430_v9   ;;  %8624 = vset.pattern.permute.xlu0 %v10473_v52 }
0x217c   :  { %6428 = vperm.xlu2 %8621, %v6417_v41  }
0x2183   :  { %6454 = vperm.xlu1 %8622, %v6443_v15   ;;  %6435 = vperm.xlu0 %8624, %v6430_v9  }
0x2184   :  { %8623 = vset.pattern.permute.xlu2 %v10473_v52 }
0x218b   :  { %8625 = vset.pattern.permute.xlu1 %v10473_v52  ;;  %6500 = vperm.xlu0 %8624, %v6495_v49  }
0x218c   :  { %6448 = vperm.xlu2 %8623, %v6443_v15  }
0x2193   :  { %6474 = vperm.xlu1 %8625, %v6469_v46  }
0x2194   :  { %6461 = vperm.xlu2 %8623, %v6456_v48  }
0x219b   :  { %6487 = vperm.xlu1 %8625, %v6482_v6  }
0x219c   :  { %8626 = vset.pattern.permute.xlu2 %v10477_v61 }
0x21a3   :  { %8627 = vset.pattern.permute.xlu1 %v10477_v61 }
0x21a4   :  { %6480 = vperm.xlu2 %8626, %v6469_v46  }
0x21ab   :  { %6506 = vperm.xlu1 %8627, %v6495_v49  }
0x21ac   :  { %6493 = vperm.xlu2 %8626, %v6482_v6  }
0x21b3   :  { %8629 = vset.pattern.permute.xlu1 %v10473_v52 }
0x21b4   :  { %8628 = vset.pattern.permute.xlu2 %v12285_v51 }
0x21b5   :  { %6774 = vperm.xlu2 %8628, %v6772_v43  }
0x21bd   :  { %8630 = vset.pattern.permute.xlu2 %v10477_v61 }
0x21c6   :  { %v6410_v14 = vpop.permute.xlu2 %6409 }
0x21c7   :  { %v6508_v27 = vadd.f32 %v11609_v32, %v6410_v14 }
0x21c9   :  { %v11724_v8 = vadd.f32 %v6532_v21, %v6508_v27 }
0x21cb   :  { %v6564_v41 = vsel %vm12464_vm8, %v11724_v8, -inf  ;;  %vm12472_vm8 = vmmov %vm12468_vm0 }
0x21d6   :  { %v6429_v55 = vpop.permute.xlu2 %6428 }
0x21d7   :  { %v6511_v0 = vadd.f32 %v11711_v33, %v6429_v55 }
0x21d9   :  { %v11720_v24 = vadd.f32 %v6533_v26, %v6511_v0 }
0x21db   :  { %v6574_v7 = vsel %vm12462_vm10, %v11720_v24, -inf }
0x21dd   :  { %v6423_v58 = vpop.permute.xlu1 %6422  ;;  %v6416_v25 = vpop.permute.xlu0 %6415 }
0x21de   :  { %v6510_v5 = vadd.f32 %v11609_v32, %v6423_v58  ;;  %v6509_v39 = vadd.f32 %v11711_v33, %v6416_v25 }
0x21e0   :  { %v11718_v42 = vadd.f32 %v6533_v26, %v6510_v5  ;;  %v11722_v57 = vadd.f32 %v6532_v21, %v6509_v39 }
0x21e2   :  { %v6573_v50 = vsel %vm12461_vm14, %v11718_v42, -inf  ;;  %v6565_v30 = vsel %vm12463_vm15, %v11722_v57, -inf  ;;  %vm12471_vm15 = vmmov %vm12467_vm5 }
0x21e3   :  { %v6575_v63 = vmax.f32 %v6573_v50, %v6574_v7  ;;  %v6566_v18 = vmax.f32 %v6564_v41, %v6565_v30 }
0x21e5   :  { %v6576_v47 = vrot.slane %v6575_v63, 4  ;;  %v6468_v56 = vpop.permute.xlu0 %6467  ;;  %v6567_v17 = vrot.slane %v6566_v18, 4 }
0x21e6   :  { %v6449_v23 = vpop.permute.xlu2 %6448  ;;  %v6517_v36 = vadd.f32 %v11711_v33, %v6468_v56 }
0x21e7   :  { %v6577_v60 = vmax.f32 %v6575_v63, %v6576_v47  ;;  %v6568_v54 = vmax.f32 %v6566_v18, %v6567_v17  ;;  %v6514_v53 = vadd.f32 %v11609_v32, %v6449_v23 }
0x21e8   :  { %v11740_v48 = vadd.f32 %v6536_v34, %v6517_v36 }
0x21e9   :  { %v6578_v2 = vrot.slane %v6577_v60, 2  ;;  %v6569_v59 = vrot.slane %v6568_v54, 2  ;;  %v11745_v11 = vadd.f32 %v6535_v45, %v6514_v53 }
0x21ea   :  { %v6601_v3 = vsel %vm12465_vm6, %v11740_v48, -inf }
0x21eb   :  { %v6579_v16 = vmax.f32 %v6577_v60, %v6578_v2  ;;  %v6570_v10 = vmax.f32 %v6568_v54, %v6569_v59  ;;  %v6591_v0 = vsel %vm12467_vm5, %v11745_v11, -inf }
0x21ed   :  { %v6442_v44 = vpop.permute.xlu1 %6441  ;;  %v6580_v55 = vrot.slane %v6579_v16, 1  ;;  %v6571_v39 = vrot.slane %v6570_v10, 1 }
0x21ee   :  { %v6462_v22 = vpop.permute.xlu2 %6461  ;;  %v6513_v28 = vadd.f32 %v11711_v33, %v6442_v44  ;;  %v6529_v44 = vrot.slane %v11456_v20, 5 }
0x21ef   :  { %v6516_v13 = vadd.f32 %v11609_v32, %v6462_v22  ;;  %v11764_v7 = vmax.f32 %v6579_v16, %v6580_v55  ;;  %v11766_v41 = vmax.f32 %v6570_v10, %v6571_v39 }
0x21f0   :  { %v11752_v49 = vadd.f32 %v6534_v1, %v6513_v28  ;;  %v6537_v53 = vperm.slane %v6529_v44, 0 }
0x21f1   :  { %v11743_v35 = vadd.f32 %v6536_v34, %v6516_v13  ;;  %vm6638_vm4 = vcmp.ge.f32.partialorder %v11718_v42, %v11764_v7  ;;  %vm6639_vm12 = vcmp.ge.f32.partialorder %v11720_v24, %v11764_v7  ;;  %vm6636_vm14 = vcmp.ge.f32.partialorder %v11724_v8, %v11766_v41 }
0x21f2   :  { %v6583_v25 = vsel %vm12469_vm3, %v11752_v49, -inf  ;;  %v6654_v36 = vsel %vm6638_vm4, %v10473_v52, 10  ;;  %vm6637_vm10 = vcmp.ge.f32.partialorder %v11722_v57, %v11766_v41  ;;  %v6655_v42 = vsel %vm6639_vm12, %v10477_v61, 10 }
0x21f3   :  { %v6600_v9 = vsel %vm12466_vm9, %v11743_v35, -inf  ;;  %v6652_v2 = vsel %vm6636_vm14, %v10473_v52, 10  ;;  %v6681_v59 = vsel %vm12471_vm15, %v6654_v36, 2147483647  ;;  %vm12473_vm9 = vmmov %vm12467_vm5 }
0x21f4   :  { %v6602_v46 = vmax.f32 %v6600_v9, %v6601_v3  ;;  %v6668_v9 = vsel %vm12473_vm9, %v6652_v2, 2147483647  ;;  %vm12474_vm5 = vmmov %vm12468_vm0 }
0x21f5   :  { %v6455_v31 = vpop.permute.xlu1 %6454  ;;  %v6436_v12 = vpop.permute.xlu0 %6435  ;;  %vm12475_vm14 = vmmov %vm12474_vm5 }
0x21f6   :  { %v6515_v15 = vadd.f32 %v11711_v33, %v6455_v31  ;;  %v6512_v6 = vadd.f32 %v11609_v32, %v6436_v12  ;;  %v6603_v14 = vrot.slane %v6602_v46, 4  ;;  %vm12477_vm15 = vmmov %vm12473_vm9 }
0x21f8   :  { %v11755_v43 = vadd.f32 %v6535_v45, %v6515_v15  ;;  %v6552_v62 = vadd.f32 %v6534_v1, %v6512_v6  ;;  %v6604_v27 = vmax.f32 %v6602_v46, %v6603_v14  ;;  %v6653_v45 = vsel %vm6637_vm10, %v10477_v61, 10  ;;  %vm12476_vm10 = vmmov %vm12473_vm9 }
0x21f9   :  { %v6682_v1 = vsel %vm12472_vm8, %v6655_v42, 2147483647  ;;  %v6669_v15 = vsel %vm12474_vm5, %v6653_v45, 2147483647  ;;  %v6538_v46 = vperm.slane %v6530_v4, 0  ;;  %vm12478_vm8 = vmmov %vm12474_vm5 }
0x21fa   :  { %v6592_v58 = vsel %vm12468_vm0, %v11755_v43, -inf  ;;  %v6582_v5 = vsel %vm12470_vm13, %v6552_v62, -inf  ;;  %v6605_v47 = vrot.slane %v6604_v27, 2  ;;  %vm6683_vm4 = vcmp.lt.s32.totalorder %v6681_v59, %v6682_v1  ;;  %vm12479_vm5 = vmmov %vm12476_vm10 }
0x21fb   :  { %v6593_v26 = vmax.f32 %v6591_v0, %v6592_v58  ;;  %v6584_v21 = vmax.f32 %v6582_v5, %v6583_v25  ;;  %vm6670_vm12 = vcmp.lt.s32.totalorder %v6668_v9, %v6669_v15 }
0x21fc   :  { %v6606_v22 = vmax.f32 %v6604_v27, %v6605_v47 }
0x21fd   :  { %v6594_v50 = vrot.slane %v6593_v26, 4  ;;  %v6585_v30 = vrot.slane %v6584_v21, 4  ;;  %v6501_v44 = vpop.permute.xlu0 %6500 }
0x21fe   :  { %v6481_v63 = vpop.permute.xlu2 %6480  ;;  %v6607_v31 = vrot.slane %v6606_v22, 1 }
0x21ff   :  { %v6595_v23 = vmax.f32 %v6593_v26, %v6594_v50  ;;  %v6586_v18 = vmax.f32 %v6584_v21, %v6585_v30  ;;  %v6519_v24 = vadd.f32 %v11711_v33, %v6481_v63  ;;  %v6684_v26 = vsel %vm6683_vm4, %v6681_v59, %v6682_v1  ;;  %vm12482_vm4 = vmmov %vm12479_vm5 }
0x2200   :  { %v11804_v6 = vmax.f32 %v6606_v22, %v6607_v31  ;;  %v6671_v50 = vsel %vm6670_vm12, %v6668_v9, %v6669_v15  ;;  %v6531_v22 = vrot.slane %v11456_v20, 7 }
0x2201   :  { %v6596_v56 = vrot.slane %v6595_v23, 2  ;;  %v6587_v17 = vrot.slane %v6586_v18, 2  ;;  %v11791_v12 = vadd.f32 %v6537_v53, %v6519_v24  ;;  %v6522_v24 = vadd.f32 %v11609_v32, %v6501_v44 }
0x2202   :  { %vm6645_vm9 = vcmp.ge.f32.partialorder %v11740_v48, %v11804_v6  ;;  %v6539_v2 = vperm.slane %v6531_v22, 0  ;;  %v6795_v44 = vsel %vm4755_vm11, %v11764_v7, %v11766_v41 }
0x2203   :  { %v6597_v40 = vmax.f32 %v6595_v23, %v6596_v56  ;;  %v6588_v60 = vmax.f32 %v6586_v18, %v6587_v17  ;;  %v6610_v55 = vsel %vm12475_vm14, %v11791_v12, -inf  ;;  %v6661_v48 = vsel %vm6645_vm9, %v10477_v61, 10  ;;  %vm12483_vm14 = vmmov %vm12482_vm4 }
0x2205   :  { %v6598_v29 = vrot.slane %v6597_v40, 1  ;;  %v6475_v54 = vpop.permute.xlu1 %6474  ;;  %v6589_v34 = vrot.slane %v6588_v60, 1 }
0x2206   :  { %v6518_v13 = vadd.f32 %v11609_v32, %v6475_v54  ;;  %v6494_v8 = vpop.permute.xlu2 %6493 }
0x2207   :  { %v11784_v28 = vmax.f32 %v6597_v40, %v6598_v29  ;;  %v11786_v57 = vmax.f32 %v6588_v60, %v6589_v34  ;;  %v6521_v3 = vadd.f32 %v11711_v33, %v6494_v8  ;;  %v6672_v40 = vrot.slane %v6671_v50, 4 }
0x2208   :  { %v11793_v16 = vadd.f32 %v6537_v53, %v6518_v13 }
0x2209   :  { %vm6640_vm6 = vcmp.ge.f32.partialorder %v6552_v62, %v11786_v57  ;;  %vm6641_vm0 = vcmp.ge.f32.partialorder %v11752_v49, %v11786_v57  ;;  %vm6642_vm3 = vcmp.ge.f32.partialorder %v11745_v11, %v11784_v28  ;;  %vm6643_vm13 = vcmp.ge.f32.partialorder %v11755_v43, %v11784_v28 }
0x220a   :  { %v6656_v10 = vsel %vm6640_vm6, %v10473_v52, 10  ;;  %v6657_v14 = vsel %vm6641_vm0, %v10477_v61, 10  ;;  %v6609_v49 = vsel %vm12476_vm10, %v11793_v16, -inf  ;;  %v11812_v11 = vadd.f32 %v6538_v46, %v6521_v3  ;;  %vm12480_vm0 = vmmov %vm12478_vm8 }
0x220b   :  { %v6658_v43 = vsel %vm6642_vm3, %v10473_v52, 10  ;;  %v6659_v0 = vsel %vm6643_vm13, %v10477_v61, 10  ;;  %v6611_v58 = vmax.f32 %v6609_v49, %v6610_v55  ;;  %v6694_v5 = vsel %vm12477_vm15, %v6656_v10, 2147483647  ;;  %vm12481_vm13 = vmmov %vm12480_vm0 }
0x220c   :  { %v6695_v39 = vsel %vm12478_vm8, %v6657_v14, 2147483647  ;;  %vm6644_vm6 = vcmp.ge.f32.partialorder %v11743_v35, %v11804_v6  ;;  %v6707_v30 = vsel %vm12479_vm5, %v6658_v43, 2147483647  ;;  %v6708_v63 = vsel %vm12480_vm0, %v6659_v0, 2147483647  ;;  %vm12484_vm10 = vmmov %vm12480_vm0 }
0x220d   :  { %v6488_v62 = vpop.permute.xlu1 %6487  ;;  %v6612_v21 = vrot.slane %v6611_v58, 4  ;;  %vm6696_vm3 = vcmp.lt.s32.totalorder %v6694_v5, %v6695_v39  ;;  %v6619_v18 = vsel %vm12481_vm13, %v11812_v11, -inf  ;;  %v6685_v35 = vrot.slane %v6684_v26, 4  ;;  %vm12488_vm13 = vmmov %vm12484_vm10 }
0x220e   :  { %v6520_v25 = vadd.f32 %v11609_v32, %v6488_v62  ;;  %v6660_v56 = vsel %vm6644_vm6, %v10473_v52, 10  ;;  %vm6709_vm12 = vcmp.lt.s32.totalorder %v6707_v30, %v6708_v63  ;;  %v6697_v36 = vsel %vm6696_vm3, %v6694_v5, %v6695_v39  ;;  %vm12487_vm3 = vmmov %vm12482_vm4 }
0x220f   :  { %v6613_v23 = vmax.f32 %v6611_v58, %v6612_v21  ;;  %v6720_v54 = vsel %vm12483_vm14, %v6660_v56, 2147483647  ;;  %v6721_v42 = vsel %vm12484_vm10, %v6661_v48, 2147483647  ;;  %vm6686_vm15 = vcmp.lt.s32.totalorder %v6684_v26, %v6685_v35  ;;  %vm12489_vm14 = vmmov %vm12487_vm3 }
0x2210   :  { %v11823_v27 = vadd.f32 %v6538_v46, %v6520_v25  ;;  %vm6673_vm8 = vcmp.lt.s32.totalorder %v6671_v50, %v6672_v40  ;;  %v6710_v53 = vsel %vm6709_vm12, %v6707_v30, %v6708_v63  ;;  %v6698_v4 = vrot.slane %v6697_v36, 4 }
0x2211   :  { %v6614_v60 = vrot.slane %v6613_v23, 2  ;;  %vm6722_vm6 = vcmp.lt.s32.totalorder %v6720_v54, %v6721_v42  ;;  %v6687_v59 = vsel %vm6686_vm15, %v6684_v26, %v6685_v35  ;;  %v6674_v20 = vsel %vm6673_vm8, %v6671_v50, %v6672_v40  ;;  %vm12490_vm8 = vmmov %vm12488_vm13 }
0x2212   :  { %v6618_v47 = vsel %vm12482_vm4, %v11823_v27, -inf  ;;  %v6711_v31 = vrot.slane %v6710_v53, 4  ;;  %v11839_v3 = vadd.f32 %v6539_v2, %v6522_v24  ;;  %v6723_v15 = vsel %vm6722_vm6, %v6720_v54, %v6721_v42 }
0x2213   :  { %v6620_v17 = vmax.f32 %v6618_v47, %v6619_v18  ;;  %v6615_v34 = vmax.f32 %v6613_v23, %v6614_v60  ;;  %vm11841_vm9 = vcmp.lt.s32.totalorder %v6697_v36, %v6698_v4  ;;  %v6688_v43 = vrot.slane %v6687_v59, 2 }
0x2214   :  { %v6675_v0 = vrot.slane %v6674_v20, 2  ;;  %vm6712_vm4 = vcmp.lt.s32.totalorder %v6710_v53, %v6711_v31  ;;  %v6700_v5 = vsel %vm11841_vm9, %v6697_v36, %v6698_v4  ;;  %v6627_v39 = vsel %vm12489_vm14, %v11839_v3, -inf  ;;  %vm12491_vm9 = vmmov %vm12487_vm3 }
0x2215   :  { %v6621_v29 = vrot.slane %v6620_v17, 4  ;;  %v6616_v8 = vrot.slane %v6615_v34, 1  ;;  %v6713_v63 = vsel %vm6712_vm4, %v6710_v53, %v6711_v31  ;;  %vm6689_vm6 = vcmp.lt.s32.totalorder %v6687_v59, %v6688_v43 }
0x2216   :  { %v6701_v35 = vrot.slane %v6700_v5, 2  ;;  %v6690_v40 = vsel %vm6689_vm6, %v6687_v59, %v6688_v43  ;;  %v6935_v31 = vperm.slane %v11466_v37, 0 }
0x2217   :  { %v6622_v13 = vmax.f32 %v6620_v17, %v6621_v29  ;;  %v11837_v1 = vmax.f32 %v6615_v34, %v6616_v8  ;;  %v6796_v29 = vsel %vm4757_vm1, %v11786_v57, %v6795_v44  ;;  %v6691_v24 = vrot.slane %v6690_v40, 1 }
0x2218   :  { %vm6702_vm4 = vcmp.lt.s32.totalorder %v6700_v5, %v6701_v35  ;;  %v6797_v7 = vsel %vm4759_vm2, %v11784_v28, %v6796_v29 }
0x2219   :  { %v6623_v45 = vrot.slane %v6622_v13, 2  ;;  %vm6646_vm5 = vcmp.ge.f32.partialorder %v11793_v16, %v11837_v1  ;;  %vm6647_vm0 = vcmp.ge.f32.partialorder %v11791_v12, %v11837_v1  ;;  %v6724_v12 = vrot.slane %v6723_v15, 4 }
0x221a   :  { %v6662_v14 = vsel %vm6646_vm5, %v10473_v52, 10  ;;  %v6663_v62 = vsel %vm6647_vm0, %v10477_v61, 10  ;;  %vm12492_vm5 = vmmov %vm12490_vm8  ;;  %vm6676_vm0 = vcmp.lt.s32.totalorder %v6674_v20, %v6675_v0  ;;  %v6703_v4 = vsel %vm6702_vm4, %v6700_v5, %v6701_v35 }
0x221b   :  { %v6624_v9 = vmax.f32 %v6622_v13, %v6623_v45  ;;  %v6733_v58 = vsel %vm12487_vm3, %v6662_v14, 2147483647  ;;  %v6734_v25 = vsel %vm12488_vm13, %v6663_v62, 2147483647  ;;  %vm6725_vm13 = vcmp.lt.s32.totalorder %v6723_v15, %v6724_v12  ;;  %v11875_v45 = vpop.permute.xlu2 %6774 }
0x221c   :  { %vm6735_vm12 = vcmp.lt.s32.totalorder %v6733_v58, %v6734_v25  ;;  %v6677_v22 = vsel %vm6676_vm0, %v6674_v20, %v6675_v0  ;;  %v6726_v54 = vsel %vm6725_vm13, %v6723_v15, %v6724_v12  ;;  %v6929_v14 = vrot.slane %v11466_v37, 2 }
0x221d   :  { %v6507_v10 = vpop.permute.xlu1 %6506  ;;  %v6625_v55 = vrot.slane %v6624_v9, 1  ;;  %v6736_v21 = vsel %vm6735_vm12, %v6733_v58, %v6734_v25  ;;  %v6678_v53 = vrot.slane %v6677_v22, 1  ;;  %v6727_v41 = vrot.slane %v6726_v54, 2 }
0x221e   :  { %v6523_v49 = vadd.f32 %v11711_v33, %v6507_v10  ;;  %v6737_v50 = vrot.slane %v6736_v21, 4 }
0x221f   :  { %v6626_v16 = vmax.f32 %v6624_v9, %v6625_v55  ;;  %v6704_v9 = vrot.slane %v6703_v4, 1  ;;  %vm11883_vm6 = vcmp.lt.s32.totalorder %v6677_v22, %v6678_v53  ;;  %vm11890_vm0 = vcmp.lt.s32.totalorder %v6726_v54, %v6727_v41 }
0x2220   :  { %v11854_v26 = vadd.f32 %v6539_v2, %v6523_v49  ;;  %vm6738_vm12 = vcmp.lt.s32.totalorder %v6736_v21, %v6737_v50 }
0x2221   :  { %vm6648_vm10 = vcmp.ge.f32.partialorder %v11823_v27, %v6626_v16  ;;  %vm6649_vm15 = vcmp.ge.f32.partialorder %v11812_v11, %v6626_v16  ;;  %v6714_v11 = vrot.slane %v6713_v63, 2  ;;  %v6739_v42 = vsel %vm6738_vm12, %v6736_v21, %v6737_v50 }
0x2222   :  { %v6628_v30 = vsel %vm12490_vm8, %v11854_v26, -inf  ;;  %v6664_v23 = vsel %vm6648_vm10, %v10473_v52, 10  ;;  %v6665_v18 = vsel %vm6649_vm15, %v10477_v61, 10  ;;  %v6740_v2 = vrot.slane %v6739_v42, 2 }
0x2223   :  { %v6629_v47 = vmax.f32 %v6627_v39, %v6628_v30  ;;  %v6746_v56 = vsel %vm12491_vm9, %v6664_v23, 2147483647  ;;  %v6747_v48 = vsel %vm12492_vm5, %v6665_v18, 2147483647  ;;  %vm6715_vm10 = vcmp.lt.s32.totalorder %v6713_v63, %v6714_v11 }
0x2224   :  { %vm6748_vm3 = vcmp.lt.s32.totalorder %v6746_v56, %v6747_v48  ;;  %v6716_v59 = vsel %vm6715_vm10, %v6713_v63, %v6714_v11  ;;  %vm11877_vm15 = vcmp.lt.s32.totalorder %v6690_v40, %v6691_v24  ;;  %vm12495_vm8 = vcmask 1044484  }
0x2225   :  { %v6630_v27 = vrot.slane %v6629_v47, 4  ;;  %v6749_v17 = vsel %vm6748_vm3, %v6746_v56, %v6747_v48  ;;  %v6798_v15 = vsel %vm12495_vm8, %v11804_v6, %v6797_v7  ;;  %vm12498_vm9 = vcmask 1045509  }
0x2226   :  { %v6750_v60 = vrot.slane %v6749_v17, 4  ;;  %v6799_v10 = vsel %vm12498_vm9, %v11837_v1, %v6798_v15  ;;  %vm6776_vm5 = vcmp.eq.s32.totalorder %v11875_v45, 1  ;;  %v6717_v62 = vrot.slane %v6716_v59, 1 }
0x2227   :  { %v6631_v36 = vmax.f32 %v6629_v47, %v6630_v27  ;;  %vm6741_vm3 = vcmp.lt.s32.totalorder %v6739_v42, %v6740_v2  ;;  %v6800_v55 = vsel %vm4765_vm7, %v6626_v16, %v6799_v10  ;;  %vm11898_vm10 = vcmp.lt.s32.totalorder %v6703_v4, %v6704_v9 }
0x2228   :  { %vm6751_vm14 = vcmp.lt.s32.totalorder %v6749_v17, %v6750_v60  ;;  %v6742_v58 = vsel %vm6741_vm3, %v6739_v42, %v6740_v2  ;;  %vm12504_vm8 = vcmask 80896   ;;  %vm12505_vm9 = vcmask 74752   ;;  %v8336_v2 = vld [vmem:[%s12288_s7 + $0x38] sm:$0xff] }
0x2229   :  { %v6632_v34 = vrot.slane %v6631_v36, 2  ;;  %v6752_v13 = vsel %vm6751_vm14, %v6749_v17, %v6750_v60  ;;  %vm12501_vm14 = vcmask 1047559   ;;  %v6693_v39 = vsel %vm11877_vm15, %v6690_v40, %v6691_v24 }
0x222a   :  { %v6753_v20 = vrot.slane %v6752_v13, 2  ;;  %vm6718_vm3 = vcmp.lt.s32.totalorder %v6716_v59, %v6717_v62  ;;  %v6706_v50 = vsel %vm11898_vm10, %v6703_v4, %v6704_v9  ;;  %v6743_v30 = vrot.slane %v6742_v58, 1 }
0x222b   :  { %v6633_v8 = vmax.f32 %v6631_v36, %v6632_v34  ;;  %v6719_v35 = vsel %vm6718_vm3, %v6716_v59, %v6717_v62 }
0x222c   :  { %vm6754_vm13 = vcmp.lt.s32.totalorder %v6752_v13, %v6753_v20  ;;  %vm6744_vm15 = vcmp.lt.s32.totalorder %v6742_v58, %v6743_v30 }
0x222d   :  { %v6634_v57 = vrot.slane %v6633_v8, 1  ;;  %v6755_v12 = vsel %vm6754_vm13, %v6752_v13, %v6753_v20  ;;  %v6745_v17 = vsel %vm6744_vm15, %v6742_v58, %v6743_v30 }
0x222e   :  { %v6756_v18 = vrot.slane %v6755_v12, 1 }
0x222f   :  { %v6635_v28 = vmax.f32 %v6633_v8, %v6634_v57 }
0x2230   :  { %vm6757_vm13 = vcmp.lt.s32.totalorder %v6755_v12, %v6756_v18 }
0x2231   :  { %vm6650_vm12 = vcmp.ge.f32.partialorder %v11839_v3, %v6635_v28  ;;  %vm6651_vm4 = vcmp.ge.f32.partialorder %v11854_v26, %v6635_v28  ;;  %v6801_v6 = vsel %vm12501_vm14, %v6635_v28, %v6800_v55  ;;  %v6729_v26 = vsel %vm11890_vm0, %v6726_v54, %v6727_v41 }
0x2232   :  { %v6666_v1 = vsel %vm6650_vm12, %v10473_v52, 10  ;;  %v6667_v43 = vsel %vm6651_vm4, %v10477_v61, 10  ;;  %v11907_v0 = vsel %vm6776_vm5, %v6801_v6, %v11665_v38  ;;  %v6680_v38 = vsel %vm11883_vm6, %v6677_v22, %v6678_v53 }
0x2233   :  { %v6759_v3 = vsel %vm12504_vm8, %v6666_v1, 2147483647  ;;  %v6760_v25 = vsel %vm12505_vm9, %v6667_v43, 2147483647  ;;  %v6820_v16 = vperm.slane %v11907_v0, 1  ;;  %v6807_v5 = vperm.slane %v11907_v0, 0 }
0x2234   :  { %vm6761_vm14 = vcmp.lt.s32.totalorder %v6759_v3, %v6760_v25  ;;  %v6730_v23 = vrot.slane %v6729_v26, 1  ;;  %v6777_v47 = vsel %vm4755_vm11, %v6693_v39, %v6680_v38  ;;  %v6758_v60 = vsel %vm6757_vm13, %v6755_v12, %v6756_v18 }
0x2235   :  { %v6762_v21 = vsel %vm6761_vm14, %v6759_v3, %v6760_v25  ;;  %6825 = vperm.xlu0 %8624, %v6820_v16   ;;  %6818 = vperm.xlu2 %8630, %v6807_v5   ;;  %v6778_v48 = vsel %vm4757_vm1, %v6706_v50, %v6777_v47  ;;  %vm12506_vm4 = vcmask 1044484   ;;  %vm12507_vm8 = vcmask 1045509  }
0x2236   :  { %v6763_v63 = vrot.slane %v6762_v21, 4  ;;  %6812 = vperm.xlu1 %8629, %v6807_v5   ;;  %vm6731_vm6 = vcmp.lt.s32.totalorder %v6729_v26, %v6730_v23  ;;  %v6779_v11 = vsel %vm4759_vm2, %v6719_v35, %v6778_v48  ;;  %vm12508_vm9 = vcmask 1047559  }
0x2237   :  { %v6732_v44 = vsel %vm6731_vm6, %v6729_v26, %v6730_v23  ;;  %v6833_v13 = vperm.slane %v11907_v0, 2  ;;  %vm12509_vm14 = vcmask 80896   ;;  %v6872_v53 = vperm.slane %v11907_v0, 5 }
0x2238   :  { %vm6764_vm0 = vcmp.lt.s32.totalorder %v6762_v21, %v6763_v63  ;;  %v6780_v22 = vsel %vm12506_vm4, %v6732_v44, %v6779_v11  ;;  %v6846_v4 = vperm.slane %v11907_v0, 3  ;;  %v6859_v8 = vperm.slane %v11907_v0, 4  ;;  %vm12510_vm3 = vmmov %vm12509_vm14 }
0x2239   :  { %v6765_v56 = vsel %vm6764_vm0, %v6762_v21, %v6763_v63  ;;  %v6781_v29 = vsel %vm12507_vm8, %v6745_v17, %v6780_v22  ;;  %v6898_v7 = vperm.slane %v11907_v0, 7  ;;  %v6885_v41 = vperm.slane %v11907_v0, 6  ;;  %vm12512_vm15 = vmmov %vm12510_vm3 }
0x223a   :  { %v6766_v27 = vrot.slane %v6765_v56, 2  ;;  %v6782_v42 = vsel %vm4765_vm7, %v6758_v60, %v6781_v29  ;;  %vm12511_vm0 = vcmask 74752   ;;  %v6928_v6 = vrot.slane %v11466_v37, 1  ;;  %vm12514_vm13 = vmmov %vm12510_vm3 }
0x223b   :  { %v6937_v1 = vperm.slane %v6929_v14, 0  ;;  %vm12513_vm6 = vmmov %vm12511_vm0  ;;  %v6930_v60 = vrot.slane %v11466_v37, 3 }
0x223c   :  { %vm6767_vm12 = vcmp.lt.s32.totalorder %v6765_v56, %v6766_v27  ;;  %vm12516_vm8 = vmmov %vm12511_vm0 }
0x223d   :  { %v6768_v40 = vsel %vm6767_vm12, %v6765_v56, %v6766_v27  ;;  %8633 = vset.pattern.permute.xlu0 %v10477_v61  ;;  %8632 = vset.pattern.permute.xlu2 %v10473_v52  ;;  %vm12515_vm12 = vmmov %vm12511_vm0 }
0x223e   :  { %v6769_v36 = vrot.slane %v6768_v40, 1  ;;  %8631 = vset.pattern.permute.xlu1 %v10477_v61 }
0x2240   :  { %vm6770_vm10 = vcmp.lt.s32.totalorder %v6768_v40, %v6769_v36 }
0x2241   :  { %v6771_v54 = vsel %vm6770_vm10, %v6768_v40, %v6769_v36 }
0x2242   :  { %v6783_v34 = vsel %vm12508_vm9, %v6771_v54, %v6782_v42  ;;  %vm12517_vm9 = vmmov %vm12510_vm3 }
0x2243   :  { %v6784_v24 = vsel %vm6776_vm5, %v6783_v34, %v10804_v19  ;;  %vm6806_vm5 = vcmp.gt.f32.partialorder %v8336_v2, 0.5 }
0x2244   :  { %6786 = vst.msk [vmem:[#allocation6 + $0x30] sm:$0xff] %vm12509_vm14, %v6784_v24  ;;  %v7175_v45 = vsel %vm6806_vm5, 1, %v12285_v51  ;;  %v6931_v24 = vrot.slane %v11466_v37, 4  ;;  %vm12518_vm14 = vmmov %vm12511_vm0 }
0x2245   :  { %6844 = vperm.xlu0 %8633, %v6833_v13   ;;  %6838 = vperm.xlu2 %8632, %v6833_v13   ;;  %v6938_v13 = vperm.slane %v6930_v60, 0  ;;  %vm12519_vm5 = vmmov %vm12510_vm3 }
0x2246   :  { %6831 = vperm.xlu1 %8631, %v6820_v16   ;;  %v6936_v16 = vperm.slane %v6928_v6, 0  ;;  %v6934_v6 = vrot.slane %v11466_v37, 7 }
0x224d   :  { %8636 = vset.pattern.permute.xlu0 %v10473_v52  ;;  %8635 = vset.pattern.permute.xlu2 %v10477_v61 }
0x224e   :  { %8634 = vset.pattern.permute.xlu1 %v10473_v52 }
0x2255   :  { %6877 = vperm.xlu0 %8636, %v6872_v53   ;;  %6857 = vperm.xlu2 %8635, %v6846_v4  }
0x2256   :  { %6851 = vperm.xlu1 %8634, %v6846_v4   ;;  %v11994_v4 = vld [vmem:[%s12200_s16] sm:$0xff] }
0x225d   :  { %8639 = vset.pattern.permute.xlu0 %v10477_v61  ;;  %6870 = vperm.xlu2 %8635, %v6859_v8  }
0x225e   :  { %6864 = vperm.xlu1 %8634, %v6859_v8  }
0x2265   :  { %6909 = vperm.xlu0 %8639, %v6898_v7   ;;  %8638 = vset.pattern.permute.xlu2 %v10473_v52 }
0x2266   :  { %8637 = vset.pattern.permute.xlu1 %v10477_v61 }
0x226d   :  { %8641 = vset.pattern.permute.xlu0 %v12285_v51  ;;  %6890 = vperm.xlu2 %8638, %v6885_v41  }
0x226e   :  { %6883 = vperm.xlu1 %8637, %v6872_v53  }
0x2275   :  { %6903 = vperm.xlu2 %8638, %v6898_v7  }
0x2276   :  { %6896 = vperm.xlu1 %8637, %v6885_v41  }
0x227e   :  { %8640 = vset.pattern.permute.xlu1 %v12285_v51 }
0x227f   :  { %7177 = vperm.xlu1 %8640, %v7175_v45  }
0x228f   :  { %v6819_v59 = vpop.permute.xlu2 %6818 }
0x2290   :  { %v6912_v9 = vadd.f32 %v11711_v33, %v6819_v59  ;;  %v6939_v59 = vperm.slane %v6931_v24, 0 }
0x2292   :  { %v11958_v10 = vadd.f32 %v6935_v31, %v6912_v9 }
0x2294   :  { %v6968_v62 = vsel %vm12511_vm0, %v11958_v10, -inf }
0x229f   :  { %v6839_v15 = vpop.permute.xlu2 %6838 }
0x22a0   :  { %v6915_v55 = vadd.f32 %v11609_v32, %v6839_v15 }
0x22a2   :  { %v11968_v25 = vadd.f32 %v6937_v1, %v6915_v55 }
0x22a7   :  { %v6826_v28 = vpop.permute.xlu0 %6825 }
0x22a8   :  { %v6813_v20 = vpop.permute.xlu1 %6812  ;;  %v6913_v43 = vadd.f32 %v11609_v32, %v6826_v28 }
0x22a9   :  { %v6911_v57 = vadd.f32 %v11609_v32, %v6813_v20  ;;  %v6985_v32 = vsel %vm12512_vm15, %v11968_v25, -inf }
0x22aa   :  { %v11972_v38 = vadd.f32 %v6936_v16, %v6913_v43 }
0x22ab   :  { %v11956_v46 = vadd.f32 %v6935_v31, %v6911_v57 }
0x22ac   :  { %v6976_v18 = vsel %vm12514_vm13, %v11972_v38, -inf }
0x22ad   :  { %v6967_v51 = vsel %vm12510_vm3, %v11956_v46, -inf }
0x22ae   :  { %v6969_v49 = vmax.f32 %v6967_v51, %v6968_v62 }
0x22af   :  { %v6858_v58 = vpop.permute.xlu2 %6857 }
0x22b0   :  { %v6970_v5 = vrot.slane %v6969_v49, 4  ;;  %v6918_v42 = vadd.f32 %v11711_v33, %v6858_v58 }
0x22b2   :  { %v6971_v63 = vmax.f32 %v6969_v49, %v6970_v5  ;;  %v12000_v2 = vadd.f32 %v6938_v13, %v6918_v42  ;;  %v6942_v5 = vperm.slane %v6934_v6, 0 }
0x22b4   :  { %v6972_v27 = vrot.slane %v6971_v63, 2  ;;  %v6995_v51 = vsel %vm12516_vm8, %v12000_v2, -inf  ;;  %vm12521_vm8 = vmmov %vm12511_vm0 }
0x22b6   :  { %v6973_v40 = vmax.f32 %v6971_v63, %v6972_v27 }
0x22b7   :  { %v6845_v3 = vpop.permute.xlu0 %6844  ;;  %v6871_v48 = vpop.permute.xlu2 %6870 }
0x22b8   :  { %v6916_v26 = vadd.f32 %v11711_v33, %v6845_v3  ;;  %v6832_v12 = vpop.permute.xlu1 %6831  ;;  %v6974_v54 = vrot.slane %v6973_v40, 1  ;;  %v6920_v41 = vadd.f32 %v11711_v33, %v6871_v48 }
0x22b9   :  { %v6914_v39 = vadd.f32 %v11711_v33, %v6832_v12 }
0x22ba   :  { %v11974_v21 = vadd.f32 %v6937_v1, %v6916_v26  ;;  %v11997_v7 = vmax.f32 %v6973_v40, %v6974_v54  ;;  %v12008_v15 = vadd.f32 %v6939_v59, %v6920_v41 }
0x22bb   :  { %v11976_v50 = vadd.f32 %v6936_v16, %v6914_v39 }
0x22bc   :  { %v6986_v30 = vsel %vm12513_vm6, %v11974_v21, -inf  ;;  %vm7039_vm4 = vcmp.ge.f32.partialorder %v11956_v46, %v11997_v7  ;;  %vm7040_vm10 = vcmp.ge.f32.partialorder %v11958_v10, %v11997_v7  ;;  %v7004_v3 = vsel %vm12518_vm14, %v12008_v15, -inf  ;;  %vm12523_vm14 = vmmov %vm12511_vm0 }
0x22bd   :  { %v6987_v23 = vmax.f32 %v6985_v32, %v6986_v30  ;;  %v6977_v47 = vsel %vm12515_vm12, %v11976_v50, -inf  ;;  %v7055_v46 = vsel %vm7039_vm4, %v10473_v52, 10  ;;  %v7056_v10 = vsel %vm7040_vm10, %v10477_v61, 10  ;;  %vm12520_vm10 = vmmov %vm12510_vm3 }
0x22be   :  { %v6978_v35 = vmax.f32 %v6976_v18, %v6977_v47  ;;  %v7071_v32 = vsel %vm12510_vm3, %v7055_v46, 2147483647  ;;  %v7072_v30 = vsel %vm12511_vm0, %v7056_v10, 2147483647 }
0x22bf   :  { %v6988_v56 = vrot.slane %v6987_v23, 4  ;;  %vm7073_vm4 = vcmp.lt.s32.totalorder %v7071_v32, %v7072_v30 }
0x22c0   :  { %v6979_v11 = vrot.slane %v6978_v35, 4  ;;  %v7074_v41 = vsel %vm7073_vm4, %v7071_v32, %v7072_v30 }
0x22c1   :  { %v6989_v17 = vmax.f32 %v6987_v23, %v6988_v56  ;;  %v6932_v56 = vrot.slane %v11466_v37, 5 }
0x22c2   :  { %v6980_v44 = vmax.f32 %v6978_v35, %v6979_v11 }
0x22c3   :  { %v6990_v36 = vrot.slane %v6989_v17, 2  ;;  %v6940_v42 = vperm.slane %v6932_v56, 0 }
0x22c4   :  { %v6981_v34 = vrot.slane %v6980_v44, 2 }
0x22c5   :  { %v6991_v53 = vmax.f32 %v6989_v17, %v6990_v36 }
0x22c6   :  { %v6982_v45 = vmax.f32 %v6980_v44, %v6981_v34 }
0x22c7   :  { %v11987_v22 = vpop.permute.xlu2 %6890  ;;  %v6878_v20 = vpop.permute.xlu0 %6877  ;;  %v6992_v57 = vrot.slane %v6991_v53, 1 }
0x22c8   :  { %v6852_v29 = vpop.permute.xlu1 %6851  ;;  %v6983_v62 = vrot.slane %v6982_v45, 1  ;;  %v6921_v17 = vadd.f32 %v11994_v4, %v6878_v20  ;;  %v6923_v30 = vadd.f32 %v11994_v4, %v11987_v22 }
0x22c9   :  { %v6917_v8 = vadd.f32 %v11994_v4, %v6852_v29  ;;  %v12020_v43 = vmax.f32 %v6991_v53, %v6992_v57 }
0x22ca   :  { %v12027_v12 = vmax.f32 %v6982_v45, %v6983_v62 }
0x22cb   :  { %v12002_v31 = vadd.f32 %v6938_v13, %v6917_v8  ;;  %vm7043_vm15 = vcmp.ge.f32.partialorder %v11968_v25, %v12020_v43  ;;  %vm7044_vm6 = vcmp.ge.f32.partialorder %v11974_v21, %v12020_v43 }
0x22cc   :  { %vm7041_vm13 = vcmp.ge.f32.partialorder %v11972_v38, %v12027_v12  ;;  %vm7042_vm12 = vcmp.ge.f32.partialorder %v11976_v50, %v12027_v12  ;;  %v7059_v25 = vsel %vm7043_vm15, %v10473_v52, 10  ;;  %v7060_v21 = vsel %vm7044_vm6, %v10477_v61, 10 }
0x22cd   :  { %v6994_v55 = vsel %vm12517_vm9, %v12002_v31, -inf  ;;  %v7057_v50 = vsel %vm7041_vm13, %v10473_v52, 10  ;;  %v7058_v36 = vsel %vm7042_vm12, %v10477_v61, 10  ;;  %vm12522_vm9 = vmmov %vm12510_vm3  ;;  %v7098_v13 = vsel %vm12523_vm14, %v7060_v21, 2147483647 }
0x22ce   :  { %v6996_v49 = vmax.f32 %v6994_v55, %v6995_v51  ;;  %v7097_v24 = vsel %vm12522_vm9, %v7059_v25, 2147483647 }
0x22cf   :  { %v6904_v28 = vpop.permute.xlu2 %6903  ;;  %vm7099_vm6 = vcmp.lt.s32.totalorder %v7097_v24, %v7098_v13 }
0x22d0   :  { %v6865_v9 = vpop.permute.xlu1 %6864  ;;  %v6925_v58 = vadd.f32 %v11994_v4, %v6904_v28  ;;  %v6997_v16 = vrot.slane %v6996_v49, 4 }
0x22d1   :  { %v6919_v14 = vadd.f32 %v11994_v4, %v6865_v9  ;;  %v12061_v9 = vadd.f32 %v6940_v42, %v6921_v17 }
0x22d2   :  { %v6998_v63 = vmax.f32 %v6996_v49, %v6997_v16  ;;  %v12033_v18 = vadd.f32 %v6942_v5, %v6925_v58 }
0x22d3   :  { %v12016_v1 = vadd.f32 %v6939_v59, %v6919_v14 }
0x22d4   :  { %v6999_v48 = vrot.slane %v6998_v63, 2  ;;  %v7030_v44 = vsel %vm12520_vm10, %v12033_v18, -inf }
0x22d5   :  { %v7003_v26 = vsel %vm12519_vm5, %v12016_v1, -inf  ;;  %vm12524_vm5 = vmmov %vm12510_vm3 }
0x22d6   :  { %v7005_v39 = vmax.f32 %v7003_v26, %v7004_v3  ;;  %v7000_v40 = vmax.f32 %v6998_v63, %v6999_v48  ;;  %v7084_v45 = vsel %vm12524_vm5, %v7057_v50, 2147483647  ;;  %vm12525_vm3 = vmmov %vm12511_vm0 }
0x22d7   :  { %v6910_v23 = vpop.permute.xlu0 %6909  ;;  %v7085_v59 = vsel %vm12525_vm3, %v7058_v36, 2147483647  ;;  %vm12526_vm12 = vmmov %vm12524_vm5 }
0x22d8   :  { %v7006_v47 = vrot.slane %v7005_v39, 4  ;;  %v6926_v35 = vadd.f32 %v11711_v33, %v6910_v23  ;;  %v7001_v29 = vrot.slane %v7000_v40, 1  ;;  %vm7086_vm13 = vcmp.lt.s32.totalorder %v7084_v45, %v7085_v59  ;;  %vm12527_vm4 = vmmov %vm12525_vm3 }
0x22d9   :  { %v7087_v16 = vsel %vm7086_vm13, %v7084_v45, %v7085_v59  ;;  %vm12528_vm9 = vmmov %vm12524_vm5 }
0x22da   :  { %v7007_v27 = vmax.f32 %v7005_v39, %v7006_v47  ;;  %v12043_v11 = vadd.f32 %v6942_v5, %v6926_v35  ;;  %v12056_v53 = vmax.f32 %v7000_v40, %v7001_v29  ;;  %v7012_v26 = vsel %vm12528_vm9, %v12061_v9, -inf  ;;  %vm12529_vm14 = vmmov %vm12525_vm3 }
0x22db   :  { %v6933_v5 = vrot.slane %v11466_v37, 6  ;;  %v7100_v39 = vsel %vm7099_vm6, %v7097_v24, %v7098_v13  ;;  %vm12530_vm3 = vmmov %vm12528_vm9  ;;  %v7088_v35 = vrot.slane %v7087_v16, 4 }
0x22dc   :  { %v7008_v60 = vrot.slane %v7007_v27, 2  ;;  %v7031_v38 = vsel %vm12521_vm8, %v12043_v11, -inf  ;;  %vm7045_vm0 = vcmp.ge.f32.partialorder %v12002_v31, %v12056_v53  ;;  %vm7046_vm15 = vcmp.ge.f32.partialorder %v12000_v2, %v12056_v53 }
0x22dd   :  { %v7032_v54 = vmax.f32 %v7030_v44, %v7031_v38  ;;  %v7061_v14 = vsel %vm7045_vm0, %v10473_v52, 10  ;;  %v7062_v51 = vsel %vm7046_vm15, %v10477_v61, 10  ;;  %v7075_v31 = vrot.slane %v7074_v41, 4  ;;  %vm12531_vm0 = vmmov %vm12527_vm4 }
0x22de   :  { %v7009_v34 = vmax.f32 %v7007_v27, %v7008_v60  ;;  %v7110_v6 = vsel %vm12526_vm12, %v7061_v14, 2147483647  ;;  %v7111_v46 = vsel %vm12527_vm4, %v7062_v51, 2147483647  ;;  %v7101_v48 = vrot.slane %v7100_v39, 4 }
0x22df   :  { %v7033_v8 = vrot.slane %v7032_v54, 4  ;;  %vm7112_vm5 = vcmp.lt.s32.totalorder %v7110_v6, %v7111_v46  ;;  %vm7076_vm15 = vcmp.lt.s32.totalorder %v7074_v41, %v7075_v31  ;;  %v6941_v27 = vperm.slane %v6933_v5, 0 }
0x22e0   :  { %v7010_v20 = vrot.slane %v7009_v34, 1  ;;  %v6884_v57 = vpop.permute.xlu1 %6883  ;;  %v7113_v25 = vsel %vm7112_vm5, %v7110_v6, %v7111_v46  ;;  %v7077_v4 = vsel %vm7076_vm15, %v7074_v41, %v7075_v31  ;;  %vm7089_vm4 = vcmp.lt.s32.totalorder %v7087_v16, %v7088_v35  ;;  %vm12534_vm5 = vmmov %vm12530_vm3 }
0x22e1   :  { %v7034_v28 = vmax.f32 %v7032_v54, %v7033_v8  ;;  %v6922_v55 = vadd.f32 %v11711_v33, %v6884_v57  ;;  %v12099_v40 = vadd.f32 %v6941_v27, %v6923_v30  ;;  %v7114_v60 = vrot.slane %v7113_v25, 4 }
0x22e2   :  { %v12069_v62 = vmax.f32 %v7009_v34, %v7010_v20  ;;  %vm7102_vm9 = vcmp.lt.s32.totalorder %v7100_v39, %v7101_v48  ;;  %v7090_v29 = vsel %vm7089_vm4, %v7087_v16, %v7088_v35 }
0x22e3   :  { %v7035_v49 = vrot.slane %v7034_v28, 2  ;;  %v12078_v2 = vadd.f32 %v6940_v42, %v6922_v55  ;;  %v7021_v42 = vsel %vm12534_vm5, %v12099_v40, -inf  ;;  %v7103_v13 = vsel %vm7102_vm9, %v7100_v39, %v7101_v48 }
0x22e4   :  { %vm7047_vm10 = vcmp.ge.f32.partialorder %v12016_v1, %v12069_v62  ;;  %vm7048_vm8 = vcmp.ge.f32.partialorder %v12008_v15, %v12069_v62  ;;  %v7091_v45 = vrot.slane %v7090_v29, 2  ;;  %v7104_v14 = vrot.slane %v7103_v13, 2 }
0x22e5   :  { %v7063_v10 = vsel %vm7047_vm10, %v10473_v52, 10  ;;  %v7064_v58 = vsel %vm7048_vm8, %v10477_v61, 10  ;;  %v7036_v3 = vmax.f32 %v7034_v28, %v7035_v49  ;;  %v7013_v1 = vsel %vm12529_vm14, %v12078_v2, -inf  ;;  %vm12532_vm10 = vmmov %vm12530_vm3 }
0x22e6   :  { %v7014_v32 = vmax.f32 %v7012_v26, %v7013_v1  ;;  %v7123_v63 = vsel %vm12530_vm3, %v7063_v10, 2147483647  ;;  %v7124_v23 = vsel %vm12531_vm0, %v7064_v58, 2147483647  ;;  %vm12533_vm8 = vmmov %vm12531_vm0  ;;  %vm7115_vm3 = vcmp.lt.s32.totalorder %v7113_v25, %v7114_v60 }
0x22e7   :  { %v7037_v15 = vrot.slane %v7036_v3, 1  ;;  %vm7125_vm6 = vcmp.lt.s32.totalorder %v7123_v63, %v7124_v23  ;;  %v7116_v20 = vsel %vm7115_vm3, %v7113_v25, %v7114_v60  ;;  %vm7092_vm4 = vcmp.lt.s32.totalorder %v7090_v29, %v7091_v45 }
0x22e8   :  { %v6897_v47 = vpop.permute.xlu1 %6896  ;;  %v7015_v37 = vrot.slane %v7014_v32, 4  ;;  %v7126_v50 = vsel %vm7125_vm6, %v7123_v63, %v7124_v23  ;;  %v7117_v6 = vrot.slane %v7116_v20, 2  ;;  %vm7105_vm9 = vcmp.lt.s32.totalorder %v7103_v13, %v7104_v14 }
0x22e9   :  { %v12092_v56 = vmax.f32 %v7036_v3, %v7037_v15  ;;  %v6924_v17 = vadd.f32 %v11711_v33, %v6897_v47  ;;  %v7127_v34 = vrot.slane %v7126_v50, 4 }
0x22ea   :  { %v7016_v22 = vmax.f32 %v7014_v32, %v7015_v37  ;;  %vm7118_vm3 = vcmp.lt.s32.totalorder %v7116_v20, %v7117_v6  ;;  %v7106_v32 = vsel %vm7105_vm9, %v7103_v13, %v7104_v14  ;;  %vm12539_vm9 = vcmask 1047559  }
0x22eb   :  { %vm7053_vm13 = vcmp.ge.f32.partialorder %v12033_v18, %v12092_v56  ;;  %vm7054_vm12 = vcmp.ge.f32.partialorder %v12043_v11, %v12092_v56  ;;  %v12105_v18 = vadd.f32 %v6941_v27, %v6924_v17  ;;  %v7078_v11 = vrot.slane %v7077_v4, 2 }
0x22ec   :  { %v7069_v21 = vsel %vm7053_vm13, %v10473_v52, 10  ;;  %v7070_v44 = vsel %vm7054_vm12, %v10477_v61, 10  ;;  %v7017_v36 = vrot.slane %v7016_v22, 2  ;;  %vm7128_vm6 = vcmp.lt.s32.totalorder %v7126_v50, %v7127_v34 }
0x22ed   :  { %v7162_v38 = vsel %vm12532_vm10, %v7069_v21, 2147483647  ;;  %v7163_v33 = vsel %vm12533_vm8, %v7070_v44, 2147483647  ;;  %v7022_v24 = vsel %vm12531_vm0, %v12105_v18, -inf  ;;  %vm7079_vm15 = vcmp.lt.s32.totalorder %v7077_v4, %v7078_v11  ;;  %vm12535_vm10 = vmmov %vm12534_vm5 }
0x22ee   :  { %vm7164_vm14 = vcmp.lt.s32.totalorder %v7162_v38, %v7163_v33  ;;  %v7018_v54 = vmax.f32 %v7016_v22, %v7017_v36  ;;  %v7023_v41 = vmax.f32 %v7021_v42, %v7022_v24  ;;  %v7129_v31 = vsel %vm7128_vm6, %v7126_v50, %v7127_v34  ;;  %vm12536_vm8 = vmmov %vm12531_vm0 }
0x22ef   :  { %v7165_v59 = vsel %vm7164_vm14, %v7162_v38, %v7163_v33  ;;  %v7080_v16 = vsel %vm7079_vm15, %v7077_v4, %v7078_v11  ;;  %v7130_v1 = vrot.slane %v7129_v31, 2  ;;  %v7119_v35 = vsel %vm7118_vm3, %v7116_v20, %v7117_v6 }
0x22f0   :  { %v7019_v8 = vrot.slane %v7018_v54, 1  ;;  %v7024_v28 = vrot.slane %v7023_v41, 4  ;;  %v7166_v51 = vrot.slane %v7165_v59, 4  ;;  %v7081_v15 = vrot.slane %v7080_v16, 1 }
0x22f1   :  { %v12122_v23 = vpop.permute.xlu1 %7177  ;;  %vm12537_vm15 = vcmask 1044484   ;;  %vm7131_vm6 = vcmp.lt.s32.totalorder %v7129_v31, %v7130_v1  ;;  %v7107_v33 = vrot.slane %v7106_v32, 1 }
0x22f2   :  { %v7020_v57 = vmax.f32 %v7018_v54, %v7019_v8  ;;  %v7025_v55 = vmax.f32 %v7023_v41, %v7024_v28  ;;  %vm7167_vm5 = vcmp.lt.s32.totalorder %v7165_v59, %v7166_v51  ;;  %v7132_v44 = vsel %vm7131_vm6, %v7129_v31, %v7130_v1 }
0x22f3   :  { %vm7082_vm6 = vcmp.lt.s32.totalorder %v7080_v16, %v7081_v15 }
0x22f4   :  { %vm7049_vm13 = vcmp.ge.f32.partialorder %v12061_v9, %v7020_v57  ;;  %vm7050_vm12 = vcmp.ge.f32.partialorder %v12078_v2, %v7020_v57  ;;  %v7026_v3 = vrot.slane %v7025_v55, 2  ;;  %v7198_v9 = vsel %vm4755_vm11, %v12027_v12, %v11997_v7 }
0x22f5   :  { %v7065_v49 = vsel %vm7049_vm13, %v10473_v52, 10  ;;  %v7066_v46 = vsel %vm7050_vm12, %v10477_v61, 10  ;;  %v7093_v2 = vsel %vm7092_vm4, %v7090_v29, %v7091_v45  ;;  %v7199_v30 = vsel %vm4757_vm1, %v12020_v43, %v7198_v9  ;;  %v8647_v43 = vld [vmem:[%s12199_s15] ss:$0 sm:$0xff] }
0x22f6   :  { %v7136_v10 = vsel %vm12535_vm10, %v7065_v49, 2147483647  ;;  %v7137_v58 = vsel %vm12536_vm8, %v7066_v46, 2147483647  ;;  %v7027_v5 = vmax.f32 %v7025_v55, %v7026_v3  ;;  %v7094_v47 = vrot.slane %v7093_v2, 1 }
0x22f7   :  { %vm7138_vm14 = vcmp.lt.s32.totalorder %v7136_v10, %v7137_v58  ;;  %v7200_v7 = vsel %vm4759_vm2, %v12056_v53, %v7199_v30  ;;  %v7168_v12 = vsel %vm7167_vm5, %v7165_v59, %v7166_v51  ;;  %vm12538_vm13 = vcmask 1045509  }
0x22f8   :  { %v7139_v26 = vsel %vm7138_vm14, %v7136_v10, %v7137_v58  ;;  %v7028_v63 = vrot.slane %v7027_v5, 1  ;;  %v7201_v27 = vsel %vm12537_vm15, %v12069_v62, %v7200_v7  ;;  %vm7179_vm12 = vcmp.eq.s32.totalorder %v12122_v23, 1 }
0x22f9   :  { %v7140_v39 = vrot.slane %v7139_v26, 4  ;;  %v7202_v17 = vsel %vm12538_vm13, %v7020_v57, %v7201_v27  ;;  %v7169_v22 = vrot.slane %v7168_v12, 2  ;;  %vm12540_vm14 = vcmask 80896  }
0x22fa   :  { %v7029_v48 = vmax.f32 %v7027_v5, %v7028_v63  ;;  %vm12541_vm5 = vcmask 74752   ;;  %vm12542_vm13 = vmmov %vm12540_vm14  ;;  %v7083_v34 = vsel %vm7082_vm6, %v7080_v16, %v7081_v15  ;;  %vm12546_vm6 = vcmask 80896  }
0x22fb   :  { %vm7141_vm0 = vcmp.lt.s32.totalorder %v7139_v26, %v7140_v39  ;;  %vm7170_vm15 = vcmp.lt.s32.totalorder %v7168_v12, %v7169_v22 }
0x22fc   :  { %v7142_v37 = vsel %vm7141_vm0, %v7139_v26, %v7140_v39  ;;  %vm7051_vm4 = vcmp.ge.f32.partialorder %v12099_v40, %v7029_v48  ;;  %vm7052_vm10 = vcmp.ge.f32.partialorder %v12105_v18, %v7029_v48  ;;  %v7203_v53 = vsel %vm4765_vm7, %v7029_v48, %v7202_v17 }
0x22fd   :  { %v7143_v25 = vrot.slane %v7142_v37, 2  ;;  %v7067_v62 = vsel %vm7051_vm4, %v10473_v52, 10  ;;  %v7068_v4 = vsel %vm7052_vm10, %v10477_v61, 10  ;;  %v7204_v21 = vsel %vm12539_vm9, %v12092_v56, %v7203_v53 }
0x22fe   :  { %v7149_v60 = vsel %vm12540_vm14, %v7067_v62, 2147483647  ;;  %v7150_v38 = vsel %vm12541_vm5, %v7068_v4, 2147483647  ;;  %v7206_v40 = vsel %vm7179_vm12, %v7204_v21, %v11907_v0  ;;  %vm7095_vm0 = vcmp.lt.s32.totalorder %v7093_v2, %v7094_v47 }
0x22ff   :  { %vm7144_vm8 = vcmp.lt.s32.totalorder %v7142_v37, %v7143_v25  ;;  %vm7151_vm3 = vcmp.lt.s32.totalorder %v7149_v60, %v7150_v38  ;;  %v7211_v36 = vadd.f32 %v8647_v43, %v7206_v40  ;;  %v7120_v52 = vrot.slane %v7119_v35, 1 }
0x2300   :  { %v7145_v50 = vsel %vm7144_vm8, %v7142_v37, %v7143_v25  ;;  %v7152_v18 = vsel %vm7151_vm3, %v7149_v60, %v7150_v38  ;;  %v7133_v61 = vrot.slane %v7132_v44, 1  ;;  %vm7108_vm4 = vcmp.lt.s32.totalorder %v7106_v32, %v7107_v33  ;;  %v7252_v60 = vld [vmem:[#allocation6 + $0x30] sm:$0xff] }
0x2301   :  { %v7153_v11 = vrot.slane %v7152_v18, 4  ;;  %v7212_v56 = vsel %vm12542_vm13, %v7211_v36, -inf  ;;  %v7146_v29 = vrot.slane %v7145_v50, 1  ;;  %v7096_v54 = vsel %vm7095_vm0, %v7093_v2, %v7094_v47 }
0x2302   :  { %7213 = vmax.xlane.f32.xlu2 %v7212_v56  ;;  %v7171_v42 = vsel %vm7170_vm15, %v7168_v12, %v7169_v22  ;;  %vm7121_vm9 = vcmp.lt.s32.totalorder %v7119_v35, %v7120_v52  ;;  %vm7134_vm8 = vcmp.lt.s32.totalorder %v7132_v44, %v7133_v61  ;;  %v7109_v13 = vsel %vm7108_vm4, %v7106_v32, %v7107_v33 }
0x2303   :  { %vm7154_vm10 = vcmp.lt.s32.totalorder %v7152_v18, %v7153_v11  ;;  %v7180_v8 = vsel %vm4755_vm11, %v7096_v54, %v7083_v34  ;;  %vm7147_vm14 = vcmp.lt.s32.totalorder %v7145_v50, %v7146_v29  ;;  %v7172_v41 = vrot.slane %v7171_v42, 1 }
0x2304   :  { %v7155_v0 = vsel %vm7154_vm10, %v7152_v18, %v7153_v11  ;;  %v7122_v45 = vsel %vm7121_vm9, %v7119_v35, %v7120_v52  ;;  %v7135_v59 = vsel %vm7134_vm8, %v7132_v44, %v7133_v61  ;;  %v7148_v57 = vsel %vm7147_vm14, %v7145_v50, %v7146_v29 }
0x2305   :  { %v7156_v24 = vrot.slane %v7155_v0, 2  ;;  %v7181_v14 = vsel %vm4757_vm1, %v7109_v13, %v7180_v8  ;;  %vm7173_vm3 = vcmp.lt.s32.totalorder %v7171_v42, %v7172_v41  ;;  %vm12543_vm15 = vcmask 1044484  }
0x2306   :  { %v7182_v51 = vsel %vm4759_vm2, %v7122_v45, %v7181_v14  ;;  %vm12544_vm13 = vcmask 1045509   ;;  %v7174_v46 = vsel %vm7173_vm3, %v7171_v42, %v7172_v41  ;;  %vm12545_vm11 = vcmask 1047559   ;;  %vm12547_vm2 = vmmov %vm12546_vm6 }
0x2307   :  { %vm7157_vm5 = vcmp.lt.s32.totalorder %v7155_v0, %v7156_v24  ;;  %v7183_v55 = vsel %vm12543_vm15, %v7135_v59, %v7182_v51  ;;  %vm12548_vm4 = vmmov %vm12547_vm2  ;;  %vm7232_vm10 = vcmp.eq.s32.totalorder %v10804_v19, 7  ;;  %vm7250_vm9 = vcmp.eq.s32.totalorder %v10804_v19, 6 }
0x2308   :  { %v7158_v20 = vsel %vm7157_vm5, %v7155_v0, %v7156_v24  ;;  %v7184_v49 = vsel %vm12544_vm13, %v7148_v57, %v7183_v55  ;;  %vm12549_vm14 = vmmov %vm12547_vm2  ;;  %vm7268_vm5 = vcmp.eq.s32.totalorder %v10804_v19, 5  ;;  %v7270_v0 = vld [vmem:[#allocation6 + $0x28] sm:$0xff]  ;;  %vm7286_vm15 = vcmp.eq.s32.totalorder %v10804_v19, 4 }
0x2309   :  { %v7159_v28 = vrot.slane %v7158_v20, 1 }
0x230b   :  { %vm7160_vm0 = vcmp.lt.s32.totalorder %v7158_v20, %v7159_v28 }
0x230c   :  { %v7161_v6 = vsel %vm7160_vm0, %v7158_v20, %v7159_v28  ;;  %vm12550_vm0 = vmmov %vm12547_vm2 }
0x230d   :  { %v7185_v31 = vsel %vm4765_vm7, %v7161_v6, %v7184_v49  ;;  %v7288_v6 = vld [vmem:[#allocation6 + $0x20] sm:$0xff] }
0x230e   :  { %v7186_v10 = vsel %vm12545_vm11, %v7174_v46, %v7185_v31  ;;  %vm12551_vm11 = vmmov %vm12550_vm0 }
0x230f   :  { %v7187_v58 = vsel %vm7179_vm12, %v7186_v10, %v10804_v19 }
0x2310   :  { %7189 = vst.msk [vmem:[#allocation6 + $0x38] sm:$0xff] %vm12546_vm6, %v7187_v58  ;;  %vm7304_vm6 = vcmp.eq.s32.totalorder %v10804_v19, 3 }
0x2317   :  { %v7234_v7 = vld [vmem:[#allocation6 + $0x38] sm:$0xff] }
0x2375   :  { %v7214_v3 = vpop.xlane.xlu2 %7213 }
0x2376   :  { %vm7215_vm1 = vcmp.ge.f32.partialorder %v7211_v36, %v7214_v3 }
0x2377   :  { %v7216_v16 = vsel %vm7215_vm1, %v10804_v19, 10 }
0x2378   :  { %v7217_v9 = vsel %vm12547_vm2, %v7216_v16, 2147483647  ;;  %vm12552_vm2 = vmmov %vm12550_vm0 }
0x2379   :  { %v7219_v2 = vshra.s32 %v7217_v9, 16  ;;  %v7218_v5 = vand.u32 65535, %v7217_v9 }
0x237b   :  { %v7221_v26 = vcvt.s32.f32 %v7219_v2  ;;  %v7220_v39 = vcvt.s32.f32 %v7218_v5 }
0x237d   :  { %7222 = vmin.xlane.f32.xlu1 %v7221_v26 }
0x23f0   :  { %v7223_v1 = vpop.xlane.xlu1 %7222 }
0x23f1   :  { %vm7224_vm7 = vcmp.eq.f32.partialorder %v7221_v26, %v7223_v1  ;;  %v7229_v32 = vcvt.f32.s32 %v7223_v1 }
0x23f2   :  { %v7225_v15 = vsel %vm7224_vm7, %v7220_v39, inf  ;;  %v7306_v39 = vld [vmem:[#allocation6 + $0x18] sm:$0xff]  ;;  %vm7322_vm7 = vcmp.eq.s32.totalorder %v10804_v19, 2 }
0x23f3   :  { %7226 = vmin.xlane.f32.xlu0 %v7225_v15  ;;  %v7230_v63 = vshll.u32 %v7229_v32, 16 }
0x2466   :  { %v7227_v30 = vpop.xlane.xlu0 %7226 }
0x2467   :  { %v7228_v23 = vcvt.f32.s32 %v7227_v30 }
0x2469   :  { %v7231_v47 = vadd.s32 %v7230_v63, %v7228_v23 }
0x246b   :  { %vm7235_vm12 = vcmp.eq.s32.totalorder %v10804_v19, %v7231_v47  ;;  %v7233_v21 = vsel %vm7232_vm10, %v7231_v47, 0  ;;  %vm7340_vm10 = vcmp.eq.s32.totalorder %v10804_v19, 1 }
0x246c   :  { %v7236_v12 = vsel %vm7235_vm12, %v7234_v7, 0 }
0x246d   :  { %v7237_v35 = vsel %vm12548_vm4, %v7236_v12, 0  ;;  %vm12553_vm4 = vmmov %vm12550_vm0 }
0x246e   :  { %v7239_v37 = vshrl.u32 %v7237_v35, 16  ;;  %v7238_v27 = vand.u32 65535, %v7237_v35 }
0x2470   :  { %v7241_v48 = vcvt.s32.f32 %v7239_v37  ;;  %v7240_v25 = vcvt.s32.f32 %v7238_v27 }
0x2472   :  { %7244 = vadd.xlane.f32.xlu2 %v7241_v48 }
0x247a   :  { %7242 = vadd.xlane.f32.xlu2 %v7240_v25 }
0x24e5   :  { %v7245_v17 = vpop.xlane.xlu2 %7244 }
0x24e6   :  { %v7247_v43 = vcvt.f32.s32 %v7245_v17 }
0x24e8   :  { %v7248_v53 = vshll.u32 %v7247_v43, 16  ;;  %v7324_v43 = vld [vmem:[#allocation6 + $0x10] sm:$0xff] }
0x24ed   :  { %v7243_v22 = vpop.xlane.xlu2 %7242 }
0x24ee   :  { %v7246_v62 = vcvt.f32.s32 %v7243_v22 }
0x24f0   :  { %v7249_v4 = vadd.s32 %v7248_v53, %v7246_v62 }
0x24f2   :  { %v7251_v44 = vsel %vm7250_vm9, %v7249_v4, %v7233_v21  ;;  %vm7253_vm8 = vcmp.eq.s32.totalorder %v10804_v19, %v7249_v4 }
0x24f3   :  { %v7254_v38 = vsel %vm7253_vm8, %v7252_v60, 0  ;;  %vm12554_vm8 = vmmov %vm12550_vm0 }
0x24f4   :  { %v7255_v40 = vsel %vm12549_vm14, %v7254_v38, 0  ;;  %vm7358_vm14 = vcmp.eq.s32.totalorder %v10804_v19, 0 }
0x24f5   :  { %v7257_v33 = vshrl.u32 %v7255_v40, 16  ;;  %v7256_v50 = vand.u32 65535, %v7255_v40 }
0x24f7   :  { %v7259_v36 = vcvt.s32.f32 %v7257_v33  ;;  %v7258_v52 = vcvt.s32.f32 %v7256_v50 }
0x24f9   :  { %7262 = vadd.xlane.f32.xlu1 %v7259_v36  ;;  %7260 = vadd.xlane.f32.xlu2 %v7258_v52  ;;  %v7342_v52 = vld [vmem:[#allocation6 + $0x8] sm:$0xff] }
0x256c   :  { %v7263_v18 = vpop.xlane.xlu1 %7262  ;;  %v7261_v61 = vpop.xlane.xlu2 %7260 }
0x256d   :  { %v7265_v11 = vcvt.f32.s32 %v7263_v18  ;;  %v7264_v29 = vcvt.f32.s32 %v7261_v61 }
0x256f   :  { %v7266_v56 = vshll.u32 %v7265_v11, 16 }
0x2571   :  { %v7267_v54 = vadd.s32 %v7266_v56, %v7264_v29 }
0x2573   :  { %v7269_v42 = vsel %vm7268_vm5, %v7267_v54, %v7251_v44  ;;  %vm7271_vm3 = vcmp.eq.s32.totalorder %v10804_v19, %v7267_v54  ;;  %vm7360_vm5 = vcmask 64512  }
0x2574   :  { %v7272_v34 = vsel %vm7271_vm3, %v7270_v0, 0 }
0x2575   :  { %v7273_v24 = vsel %vm12550_vm0, %v7272_v34, 0 }
0x2576   :  { %v7275_v13 = vshrl.u32 %v7273_v24, 16  ;;  %v7274_v8 = vand.u32 65535, %v7273_v24 }
0x2578   :  { %v7277_v41 = vcvt.s32.f32 %v7275_v13  ;;  %v7276_v45 = vcvt.s32.f32 %v7274_v8 }
0x257a   :  { %7280 = vadd.xlane.f32.xlu0 %v7277_v41  ;;  %7278 = vadd.xlane.f32.xlu1 %v7276_v45 }
0x25ed   :  { %v7281_v59 = vpop.xlane.xlu0 %7280  ;;  %v7279_v20 = vpop.xlane.xlu1 %7278 }
0x25ee   :  { %v7283_v57 = vcvt.f32.s32 %v7281_v59  ;;  %v7282_v14 = vcvt.f32.s32 %v7279_v20 }
0x25f0   :  { %v7284_v28 = vshll.u32 %v7283_v57, 16 }
0x25f2   :  { %v7285_v51 = vadd.s32 %v7284_v28, %v7282_v14 }
0x25f4   :  { %v7287_v55 = vsel %vm7286_vm15, %v7285_v51, %v7269_v42  ;;  %vm7289_vm13 = vcmp.eq.s32.totalorder %v10804_v19, %v7285_v51 }
0x25f5   :  { %v7290_v49 = vsel %vm7289_vm13, %v7288_v6, 0 }
0x25f6   :  { %v7291_v46 = vsel %vm12551_vm11, %v7290_v49, 0 }
0x25f7   :  { %v7293_v31 = vshrl.u32 %v7291_v46, 16  ;;  %v7292_v10 = vand.u32 65535, %v7291_v46 }
0x25f9   :  { %v7295_v58 = vcvt.s32.f32 %v7293_v31  ;;  %v7294_v3 = vcvt.s32.f32 %v7292_v10 }
0x25fb   :  { %7298 = vadd.xlane.f32.xlu2 %v7295_v58  ;;  %7296 = vadd.xlane.f32.xlu0 %v7294_v3 }
0x266e   :  { %v7299_v16 = vpop.xlane.xlu2 %7298  ;;  %v7297_v9 = vpop.xlane.xlu0 %7296 }
0x266f   :  { %v7301_v2 = vcvt.f32.s32 %v7299_v16  ;;  %v7300_v5 = vcvt.f32.s32 %v7297_v9 }
0x2671   :  { %v7302_v26 = vshll.u32 %v7301_v2, 16 }
0x2673   :  { %v7303_v1 = vadd.s32 %v7302_v26, %v7300_v5 }
0x2675   :  { %v7305_v15 = vsel %vm7304_vm6, %v7303_v1, %v7287_v55  ;;  %vm7307_vm1 = vcmp.eq.s32.totalorder %v10804_v19, %v7303_v1 }
0x2676   :  { %v7308_v32 = vsel %vm7307_vm1, %v7306_v39, 0 }
0x2677   :  { %v7309_v30 = vsel %vm12552_vm2, %v7308_v32, 0 }
0x2678   :  { %v7311_v63 = vshrl.u32 %v7309_v30, 16  ;;  %v7310_v23 = vand.u32 65535, %v7309_v30 }
0x267a   :  { %v7313_v47 = vcvt.s32.f32 %v7311_v63  ;;  %v7312_v7 = vcvt.s32.f32 %v7310_v23 }
0x267c   :  { %7316 = vadd.xlane.f32.xlu1 %v7313_v47  ;;  %7314 = vadd.xlane.f32.xlu2 %v7312_v7 }
0x26ef   :  { %v7317_v12 = vpop.xlane.xlu1 %7316  ;;  %v7315_v35 = vpop.xlane.xlu2 %7314 }
0x26f0   :  { %v7319_v37 = vcvt.f32.s32 %v7317_v12  ;;  %v7318_v27 = vcvt.f32.s32 %v7315_v35 }
0x26f2   :  { %v7320_v48 = vshll.u32 %v7319_v37, 16 }
0x26f4   :  { %v7321_v25 = vadd.s32 %v7320_v48, %v7318_v27 }
0x26f6   :  { %v7323_v17 = vsel %vm7322_vm7, %v7321_v25, %v7305_v15  ;;  %vm7325_vm12 = vcmp.eq.s32.totalorder %v10804_v19, %v7321_v25 }
0x26f7   :  { %v7326_v22 = vsel %vm7325_vm12, %v7324_v43, 0 }
0x26f8   :  { %v7327_v53 = vsel %vm12553_vm4, %v7326_v22, 0 }
0x26f9   :  { %v7329_v62 = vshrl.u32 %v7327_v53, 16  ;;  %v7328_v4 = vand.u32 65535, %v7327_v53 }
0x26fb   :  { %v7331_v21 = vcvt.s32.f32 %v7329_v62  ;;  %v7330_v44 = vcvt.s32.f32 %v7328_v4 }
0x26fd   :  { %7334 = vadd.xlane.f32.xlu0 %v7331_v21  ;;  %7332 = vadd.xlane.f32.xlu1 %v7330_v44 }
0x2770   :  { %v7335_v60 = vpop.xlane.xlu0 %7334  ;;  %v7333_v38 = vpop.xlane.xlu1 %7332 }
0x2771   :  { %v7337_v40 = vcvt.f32.s32 %v7335_v60  ;;  %v7336_v50 = vcvt.f32.s32 %v7333_v38 }
0x2773   :  { %v7338_v33 = vshll.u32 %v7337_v40, 16 }
0x2775   :  { %v7339_v36 = vadd.s32 %v7338_v33, %v7336_v50 }
0x2777   :  { %v7341_v18 = vsel %vm7340_vm10, %v7339_v36, %v7323_v17  ;;  %vm7343_vm9 = vcmp.eq.s32.totalorder %v10804_v19, %v7339_v36 }
0x2778   :  { %v7344_v61 = vsel %vm7343_vm9, %v7342_v52, 0 }
0x2779   :  { %v7345_v11 = vsel %vm12554_vm8, %v7344_v61, 0 }
0x277a   :  { %v7347_v56 = vshrl.u32 %v7345_v11, 16  ;;  %v7346_v29 = vand.u32 65535, %v7345_v11 }
0x277c   :  { %v7349_v54 = vcvt.s32.f32 %v7347_v56  ;;  %v7348_v42 = vcvt.s32.f32 %v7346_v29 }
0x277e   :  { %7352 = vadd.xlane.f32.xlu2 %v7349_v54  ;;  %7350 = vadd.xlane.f32.xlu0 %v7348_v42 }
0x27f1   :  { %v7353_v0 = vpop.xlane.xlu2 %7352  ;;  %v7351_v34 = vpop.xlane.xlu0 %7350 }
0x27f2   :  { %v7355_v24 = vcvt.f32.s32 %v7353_v0  ;;  %v7354_v8 = vcvt.f32.s32 %v7351_v34 }
0x27f4   :  { %v7356_v13 = vshll.u32 %v7355_v24, 16 }
0x27f6   :  { %v7357_v41 = vadd.s32 %v7356_v13, %v7354_v8 }
0x27f8   :  { %v7359_v45 = vsel %vm7358_vm14, %v7357_v41, %v7341_v18 }
0x27f9   :  { %7361 = vst.msk [vmem:[%s12202_s18] sm:$0xff] %vm7360_vm5, %v7359_v45 }
0x27fa   :  { %7370 = vsyncpa [#allocation8], 1 }

</bundles_post_ra>
